<compile_context>
chip_gen: v6e
topology: v6e:2x2x1
jax: 0.10.0
libtpu: 0.0.40
codegen_flags: <defaults>
</compile_context>

<pallas_src>
import functools
import jax
import jax.numpy as jnp
from jax import lax
from jax.experimental import pallas as pl
from jax.experimental.pallas import tpu as pltpu


def _fused_dcdisc_kernel(x_ref, m1_ref, m2_ref, m3_ref, m4_ref, w5_ref,
                         bias_ref, b5_ref, o_ref,
                         buf1, buf2, buf3, buf4, *, C):
    """One batch element: 4 x (conv k4 s2 p1 + LeakyReLU 0.1) + final 4x4 valid conv."""

    def conv_layer(buf_ref, m_ref, bias2d, h_in, cout):
        # buf_ref: (h_in+2, (h_in+2)*cin) bf16 zero-padded input slab
        #          (interior rows/cols first, pad rows/cols at the end).
        # m_ref:   (4, (h_in+2)*cin, (h_in//2)*cout) bf16 Toeplitz matrices.
        hout = h_in // 2
        Hp = h_in + 2
        n_out = hout * cout                      # = wout * cout (square input)
        buf_v = buf_ref[...]                     # (Hp, Wp*cin) bf16
        acc = jnp.zeros((hout, n_out), jnp.float32)
        for kh in range(4):
            # 0/1 selection matrix picking padded input row 2*oh + kh
            # (rows are stored interior-first: padded row h -> slab row h-1,
            #  padded row 0 -> slab row h_in, padded row h_in+1 -> slab row h_in+1)
            oh = lax.broadcasted_iota(jnp.int32, (hout, Hp), 0)
            col = lax.broadcasted_iota(jnp.int32, (hout, Hp), 1)
            h = 2 * oh + kh
            row = jnp.where(h == 0, h_in,
                            jnp.where(h == h_in + 1, h_in + 1, h - 1))
            sel = (col == row).astype(jnp.bfloat16)
            # Gather stride-2 rows on the MXU (exact: 0/1 weights).
            x_rows = jnp.dot(sel, buf_v, preferred_element_type=jnp.float32)
            # Wide GEMM: contraction over (w, ci), lane-dense output (n_out).
            acc = acc + jnp.dot(x_rows.astype(jnp.bfloat16), m_ref[kh],
                                preferred_element_type=jnp.float32)
        y = acc + bias2d                          # f32 bias add
        return jnp.where(y > 0.0, y, 0.1 * y)     # LeakyReLU(0.1), f32

    NINT = 32 * C  # interior slab width written by every layer (= wout*cout)

    # Zero the padded activation slabs so padding rows/cols read as 0.
    for sref in (buf1, buf2, buf3, buf4):
        sref[...] = jnp.zeros(sref.shape, sref.dtype)

    # layer 1: 64x64x1 -> 32x32xC
    buf1[0:64, 0:64] = x_ref[0].astype(jnp.bfloat16)
    y1 = conv_layer(buf1, m1_ref, bias_ref[0:1, :], 64, C)            # (32, 32C)
    # layer 2: 32x32xC -> 16x16x2C
    buf2[0:32, 0:NINT] = y1.astype(jnp.bfloat16)
    y2 = conv_layer(buf2, m2_ref, bias_ref[1:2, :], 32, 2 * C)        # (16, 32C)
    # layer 3: 16x16x2C -> 8x8x4C
    buf3[0:16, 0:NINT] = y2.astype(jnp.bfloat16)
    y3 = conv_layer(buf3, m3_ref, bias_ref[2:3, :], 16, 4 * C)        # (8, 32C)
    # layer 4: 8x8x4C -> 4x4x8C
    buf4[0:8, 0:NINT] = y3.astype(jnp.bfloat16)
    y4 = conv_layer(buf4, m4_ref, bias_ref[3:4, :], 8, 8 * C)         # (4, 32C)

    # last: 4x4 stride-1 VALID conv to a single scalar = VPU multiply + reduce.
    dot5 = jnp.sum(y4 * w5_ref[...], keepdims=True)                   # (1, 1) f32
    o_ref[...] = jnp.reshape(dot5 + b5_ref[...], (1, 1, 1))


def _build_toeplitz(w_hwio, w_in):
    """(4,4,Cin,Cout) HWIO conv weight -> per-kh Toeplitz GEMM matrices
    (4, (w_in+2)*Cin, (w_in//2)*Cout) bf16, with the padded columns (w=0 and
    w=w_in+1) permuted to the end to match the in-kernel slab layout."""
    K, _, Cin, Cout = w_hwio.shape
    Wp = w_in + 2
    wout = w_in // 2
    w_idx = jnp.arange(Wp)[:, None]                   # padded column index
    ow_idx = jnp.arange(wout)[None, :]
    kw = w_idx - 2 * ow_idx                           # (Wp, wout)
    valid = ((kw >= 0) & (kw < K)).astype(w_hwio.dtype)
    kw_safe = jnp.clip(kw, 0, K - 1)
    m = w_hwio[:, kw_safe, :, :]                      # (K, Wp, wout, Cin, Cout)
    m = m * valid[None, :, :, None, None]
    m = jnp.transpose(m, (0, 1, 3, 2, 4))             # (K, Wp, Cin, wout, Cout)
    perm = list(range(1, w_in + 1)) + [0, w_in + 1]   # interior first, pads last
    m = m[:, jnp.array(perm)]
    return m.reshape(K, Wp * Cin, wout * Cout).astype(jnp.bfloat16)


@jax.jit
def dc_discriminator_forward(x_nchw, params):
    N, cin0, H, W = x_nchw.shape
    assert cin0 == 1 and H == 64 and W == 64, "DCDiscriminator expects 1x64x64 input"
    C = params[0][0].shape[3]          # base channel count (image_size)
    NINT = 32 * C

    # Wrapper-side weight preprocessing (one-time, tiny): Toeplitz matrices,
    # spatially tiled biases, flattened last-layer weights.
    m_all, b_all = [], []
    w_in = 64
    for (w, b) in params[:4]:
        m_all.append(_build_toeplitz(w, w_in))
        b_all.append(jnp.tile(b.astype(jnp.float32), w_in // 2))     # (32*C,)
        w_in //= 2
    bias = jnp.stack(b_all)                                          # (4, 32*C) f32
    w5, b5 = params[4]
    w5_flat = w5[:, :, :, 0].reshape(4, 4 * 8 * C).astype(jnp.float32)  # (4, 32*C)
    b5_ = b5.reshape(1, 1).astype(jnp.float32)

    x = x_nchw[:, 0, :, :].astype(jnp.float32)                       # (N, 64, 64)

    kernel = functools.partial(_fused_dcdisc_kernel, C=C)
    grid_spec = pltpu.PrefetchScalarGridSpec(
        num_scalar_prefetch=0,
        grid=(N,),
        in_specs=[
            pl.BlockSpec((1, 64, 64), lambda n: (n, 0, 0)),          # x
            pl.BlockSpec(m_all[0].shape, lambda n: (0, 0, 0)),       # layer-1 Toeplitz
            pl.BlockSpec(m_all[1].shape, lambda n: (0, 0, 0)),       # layer-2 Toeplitz
            pl.BlockSpec(m_all[2].shape, lambda n: (0, 0, 0)),       # layer-3 Toeplitz
            pl.BlockSpec(m_all[3].shape, lambda n: (0, 0, 0)),       # layer-4 Toeplitz
            pl.BlockSpec((4, NINT), lambda n: (0, 0)),               # last-layer weight
            pl.BlockSpec((4, NINT), lambda n: (0, 0)),               # tiled biases
            pl.BlockSpec((1, 1), lambda n: (0, 0)),                  # last-layer bias
        ],
        out_specs=pl.BlockSpec((1, 1, 1), lambda n: (n, 0, 0)),
        scratch_shapes=[
            pltpu.VMEM((66, 66), jnp.bfloat16),              # layer-1 padded slab
            pltpu.VMEM((34, 34 * C), jnp.bfloat16),          # layer-2 padded slab
            pltpu.VMEM((18, 18 * 2 * C), jnp.bfloat16),      # layer-3 padded slab
            pltpu.VMEM((10, 10 * 4 * C), jnp.bfloat16),      # layer-4 padded slab
        ],
    )
    out = pl.pallas_call(
        kernel,
        out_shape=jax.ShapeDtypeStruct((N, 1, 1), jnp.float32),
        grid_spec=grid_spec,
        compiler_params=pltpu.CompilerParams(
            dimension_semantics=("parallel",),
            vmem_limit_bytes=40 * 1024 * 1024),
    )(x, m_all[0], m_all[1], m_all[2], m_all[3], w5_flat, bias, b5_)
    return out.reshape(N, 1, 1, 1)


def init_params(key, image_size):
    # Conv channel progression from DCDiscriminator.__init__ (bias=True, k=4).
    chans = [1, image_size, image_size * 2, image_size * 4, image_size * 8, 1]
    params = []
    for i in range(5):
        key, kw, kb = jax.random.split(key, 3)
        cin, cout = chans[i], chans[i + 1]
        fan_in = cin * 16
        w = jax.random.normal(kw, (4, 4, cin, cout), jnp.float32) / jnp.sqrt(fan_in)
        b_ = jax.random.normal(kb, (cout,), jnp.float32) * 0.01
        params.append((w, b_))
    return params


def reference_forward(x_nchw, params):
    dn = ('NHWC', 'HWIO', 'NHWC')
    x = jnp.transpose(x_nchw, (0, 2, 3, 1))
    for w, b in params[:4]:
        x = jax.lax.conv_general_dilated(x, w, (2, 2), [(1, 1), (1, 1)],
                                         dimension_numbers=dn) + b
        x = jnp.where(x > 0, x, 0.1 * x)
    w, b = params[4]
    x = jax.lax.conv_general_dilated(x, w, (1, 1), 'VALID',
                                     dimension_numbers=dn) + b
    return jnp.transpose(x, (0, 3, 1, 2))


if __name__ == "__main__":
    key = jax.random.PRNGKey(0)
    kx, kp = jax.random.split(key)

    # Small config: base channels (image_size) = 16 (PyTorch default is 64).
    # Spatial must be 64x64 so the final 4x4 stride-1 conv yields 1x1.
    image_size = 16
    batch = 2
    x = jax.random.normal(kx, (batch, 1, 64, 64), jnp.float32)  # NCHW, 1 channel
    params = init_params(kp, image_size)

    out = dc_discriminator_forward(x, params)
    out = jax.block_until_ready(out)
    assert out.shape == (batch, 1, 1, 1), out.shape

    ref = reference_forward(x, params)
    # bf16 matmul operands (f32 accumulation) -> compare with a bf16-appropriate
    # tolerance against the f32 lax.conv reference.
    assert jnp.allclose(out, ref, rtol=5e-2, atol=5e-2), (out, ref)
    print("KERNEL_OK")
</pallas_src>

<mosaic_0001>
module attributes {stable_mosaic.version = 11 : i64} {
  func.func @_fused_dcdisc_kernel(%arg0: i32, %arg1: memref<1x64x64xf32, #tpu.memory_space<vmem>>, %arg2: memref<4x66x512xbf16, #tpu.memory_space<vmem>>, %arg3: memref<4x544x512xbf16, #tpu.memory_space<vmem>>, %arg4: memref<4x576x512xbf16, #tpu.memory_space<vmem>>, %arg5: memref<4x640x512xbf16, #tpu.memory_space<vmem>>, %arg6: memref<4x512xf32, #tpu.memory_space<vmem>>, %arg7: memref<4x512xf32, #tpu.memory_space<vmem>>, %arg8: memref<1x1xf32, #tpu.memory_space<vmem>>, %arg9: memref<1x1x1xf32, #tpu.memory_space<vmem>>, %arg10: memref<66x66xbf16, #tpu.memory_space<vmem>>, %arg11: memref<34x544xbf16, #tpu.memory_space<vmem>>, %arg12: memref<18x576xbf16, #tpu.memory_space<vmem>>, %arg13: memref<10x640xbf16, #tpu.memory_space<vmem>>) attributes {dimension_semantics = [#tpu.dimension_semantics<parallel>], iteration_bounds = array<i64: 2>, scalar_prefetch = 0 : i64, scratch_operands = 4 : i64, tpu.core_type = #tpu.core_type<tc>, window_params = [{transform_indices = @transform_0, window_bounds = array<i64: 1, 64, 64>}, {pipeline_mode = #tpu.pipeline_mode<synchronous>, transform_indices = @transform_1, window_bounds = array<i64: 4, 66, 512>}, {pipeline_mode = #tpu.pipeline_mode<synchronous>, transform_indices = @transform_2, window_bounds = array<i64: 4, 544, 512>}, {pipeline_mode = #tpu.pipeline_mode<synchronous>, transform_indices = @transform_3, window_bounds = array<i64: 4, 576, 512>}, {pipeline_mode = #tpu.pipeline_mode<synchronous>, transform_indices = @transform_4, window_bounds = array<i64: 4, 640, 512>}, {pipeline_mode = #tpu.pipeline_mode<synchronous>, transform_indices = @transform_5, window_bounds = array<i64: 4, 512>}, {pipeline_mode = #tpu.pipeline_mode<synchronous>, transform_indices = @transform_6, window_bounds = array<i64: 4, 512>}, {pipeline_mode = #tpu.pipeline_mode<synchronous>, transform_indices = @transform_7, window_bounds = array<i64: 1, 1>}, {transform_indices = @transform_8, window_bounds = array<i64: 1, 1, 1>}]} {
    %cst = arith.constant 0.000000e+00 : bf16
    %0 = vector.broadcast %cst : bf16 to vector<66x66xbf16>
    %c0 = arith.constant 0 : index
    %c0_0 = arith.constant 0 : index
    %1 = vector.load %arg10[%c0, %c0_0] : memref<66x66xbf16, #tpu.memory_space<vmem>>, vector<66x66xbf16>
    tpu.vector_store %arg10[%c0, %c0_0], %0 {strides = array<i32>} : memref<66x66xbf16, #tpu.memory_space<vmem>>, vector<66x66xbf16>,
    %cst_1 = arith.constant 0.000000e+00 : bf16
    %2 = vector.broadcast %cst_1 : bf16 to vector<34x544xbf16>
    %c0_2 = arith.constant 0 : index
    %c0_3 = arith.constant 0 : index
    %3 = vector.load %arg11[%c0_2, %c0_3] : memref<34x544xbf16, #tpu.memory_space<vmem>>, vector<34x544xbf16>
    tpu.vector_store %arg11[%c0_2, %c0_3], %2 {strides = array<i32>} : memref<34x544xbf16, #tpu.memory_space<vmem>>, vector<34x544xbf16>,
    %cst_4 = arith.constant 0.000000e+00 : bf16
    %4 = vector.broadcast %cst_4 : bf16 to vector<18x576xbf16>
    %c0_5 = arith.constant 0 : index
    %c0_6 = arith.constant 0 : index
    %5 = vector.load %arg12[%c0_5, %c0_6] : memref<18x576xbf16, #tpu.memory_space<vmem>>, vector<18x576xbf16>
    tpu.vector_store %arg12[%c0_5, %c0_6], %4 {strides = array<i32>} : memref<18x576xbf16, #tpu.memory_space<vmem>>, vector<18x576xbf16>,
    %cst_7 = arith.constant 0.000000e+00 : bf16
    %6 = vector.broadcast %cst_7 : bf16 to vector<10x640xbf16>
    %c0_8 = arith.constant 0 : index
    %c0_9 = arith.constant 0 : index
    %7 = vector.load %arg13[%c0_8, %c0_9] : memref<10x640xbf16, #tpu.memory_space<vmem>>, vector<10x640xbf16>
    tpu.vector_store %arg13[%c0_8, %c0_9], %6 {strides = array<i32>} : memref<10x640xbf16, #tpu.memory_space<vmem>>, vector<10x640xbf16>,
    %c0_10 = arith.constant 0 : index
    %c0_11 = arith.constant 0 : index
    %c0_12 = arith.constant 0 : index
    %8 = vector.load %arg1[%c0_10, %c0_11, %c0_12] : memref<1x64x64xf32, #tpu.memory_space<vmem>>, vector<1x64x64xf32>
    %9 = vector.shape_cast %8 : vector<1x64x64xf32> to vector<64x64xf32>
    %10 = arith.truncf %9 : vector<64x64xf32> to vector<64x64xbf16>
    %c0_13 = arith.constant 0 : index
    %c0_14 = arith.constant 0 : index
    %11 = vector.load %arg10[%c0_13, %c0_14] : memref<66x66xbf16, #tpu.memory_space<vmem>>, vector<64x64xbf16>
    tpu.vector_store %arg10[%c0_13, %c0_14], %10 {strides = array<i32>} : memref<66x66xbf16, #tpu.memory_space<vmem>>, vector<64x64xbf16>,
    %c0_15 = arith.constant 0 : index
    %c0_16 = arith.constant 0 : index
    %12 = vector.load %arg7[%c0_15, %c0_16] : memref<4x512xf32, #tpu.memory_space<vmem>>, vector<1x512xf32>
    %c0_17 = arith.constant 0 : index
    %c0_18 = arith.constant 0 : index
    %13 = vector.load %arg10[%c0_17, %c0_18] : memref<66x66xbf16, #tpu.memory_space<vmem>>, vector<66x66xbf16>
    %cst_19 = arith.constant 0.000000e+00 : f32
    %14 = vector.broadcast %cst_19 : f32 to vector<32x512xf32>
    %15 = tpu.iota {dimensions = array<i32: 0>} : vector<32x66xi32>
    %16 = tpu.iota {dimensions = array<i32: 1>} : vector<32x66xi32>
    %c2_i32 = arith.constant 2 : i32
    %17 = vector.broadcast %c2_i32 : i32 to vector<32x66xi32>
    %18 = arith.muli %17, %15 : vector<32x66xi32>
    %c0_i32 = arith.constant 0 : i32
    %19 = vector.broadcast %c0_i32 : i32 to vector<32x66xi32>
    %20 = arith.addi %18, %19 : vector<32x66xi32>
    %c0_i32_20 = arith.constant 0 : i32
    %21 = vector.broadcast %c0_i32_20 : i32 to vector<32x66xi32>
    %22 = arith.cmpi eq, %20, %21 : vector<32x66xi32>
    %c65_i32 = arith.constant 65 : i32
    %23 = vector.broadcast %c65_i32 : i32 to vector<32x66xi32>
    %24 = arith.cmpi eq, %20, %23 : vector<32x66xi32>
    %c1_i32 = arith.constant 1 : i32
    %25 = vector.broadcast %c1_i32 : i32 to vector<32x66xi32>
    %26 = arith.subi %20, %25 : vector<32x66xi32>
    %c65_i32_21 = arith.constant 65 : i32
    %27 = vector.broadcast %c65_i32_21 : i32 to vector<32x66xi32>
    %28 = arith.select %24, %27, %26 : vector<32x66xi1>, vector<32x66xi32>
    %c64_i32 = arith.constant 64 : i32
    %29 = vector.broadcast %c64_i32 : i32 to vector<32x66xi32>
    %30 = arith.select %22, %29, %28 : vector<32x66xi1>, vector<32x66xi32>
    %31 = arith.cmpi eq, %16, %30 : vector<32x66xi32>
    %32 = arith.extui %31 : vector<32x66xi1> to vector<32x66xi32>
    %33 = arith.sitofp %32 : vector<32x66xi32> to vector<32x66xf32>
    %34 = arith.truncf %33 : vector<32x66xf32> to vector<32x66xbf16>
    %cst_22 = arith.constant dense<0.000000e+00> : vector<32x66xf32>
    %35 = tpu.matmul %34, %13, %cst_22 {dimension_numbers = #tpu.dot_dimension_numbers<[1], [0], [0], [1], [0, 0, 1, 1], [], []>} : vector<32x66xbf16>, vector<66x66xbf16>, vector<32x66xf32> -> vector<32x66xf32>
    %36 = arith.truncf %35 : vector<32x66xf32> to vector<32x66xbf16>
    %c0_23 = arith.constant 0 : index
    %c0_24 = arith.constant 0 : index
    %c0_25 = arith.constant 0 : index
    %37 = vector.load %arg2[%c0_23, %c0_24, %c0_25] : memref<4x66x512xbf16, #tpu.memory_space<vmem>>, vector<1x66x512xbf16>
    %38 = vector.shape_cast %37 : vector<1x66x512xbf16> to vector<66x512xbf16>
    %cst_26 = arith.constant dense<0.000000e+00> : vector<32x512xf32>
    %39 = tpu.matmul %36, %38, %cst_26 {dimension_numbers = #tpu.dot_dimension_numbers<[1], [0], [0], [1], [0, 0, 1, 1], [], []>} : vector<32x66xbf16>, vector<66x512xbf16>, vector<32x512xf32> -> vector<32x512xf32>
    %40 = arith.addf %14, %39 : vector<32x512xf32>
    %41 = tpu.iota {dimensions = array<i32: 0>} : vector<32x66xi32>
    %42 = tpu.iota {dimensions = array<i32: 1>} : vector<32x66xi32>
    %c2_i32_27 = arith.constant 2 : i32
    %43 = vector.broadcast %c2_i32_27 : i32 to vector<32x66xi32>
    %44 = arith.muli %43, %41 : vector<32x66xi32>
    %c1_i32_28 = arith.constant 1 : i32
    %45 = vector.broadcast %c1_i32_28 : i32 to vector<32x66xi32>
    %46 = arith.addi %44, %45 : vector<32x66xi32>
    %c0_i32_29 = arith.constant 0 : i32
    %47 = vector.broadcast %c0_i32_29 : i32 to vector<32x66xi32>
    %48 = arith.cmpi eq, %46, %47 : vector<32x66xi32>
    %c65_i32_30 = arith.constant 65 : i32
    %49 = vector.broadcast %c65_i32_30 : i32 to vector<32x66xi32>
    %50 = arith.cmpi eq, %46, %49 : vector<32x66xi32>
    %c1_i32_31 = arith.constant 1 : i32
    %51 = vector.broadcast %c1_i32_31 : i32 to vector<32x66xi32>
    %52 = arith.subi %46, %51 : vector<32x66xi32>
    %c65_i32_32 = arith.constant 65 : i32
    %53 = vector.broadcast %c65_i32_32 : i32 to vector<32x66xi32>
    %54 = arith.select %50, %53, %52 : vector<32x66xi1>, vector<32x66xi32>
    %c64_i32_33 = arith.constant 64 : i32
    %55 = vector.broadcast %c64_i32_33 : i32 to vector<32x66xi32>
    %56 = arith.select %48, %55, %54 : vector<32x66xi1>, vector<32x66xi32>
    %57 = arith.cmpi eq, %42, %56 : vector<32x66xi32>
    %58 = arith.extui %57 : vector<32x66xi1> to vector<32x66xi32>
    %59 = arith.sitofp %58 : vector<32x66xi32> to vector<32x66xf32>
    %60 = arith.truncf %59 : vector<32x66xf32> to vector<32x66xbf16>
    %cst_34 = arith.constant dense<0.000000e+00> : vector<32x66xf32>
    %61 = tpu.matmul %60, %13, %cst_34 {dimension_numbers = #tpu.dot_dimension_numbers<[1], [0], [0], [1], [0, 0, 1, 1], [], []>} : vector<32x66xbf16>, vector<66x66xbf16>, vector<32x66xf32> -> vector<32x66xf32>
    %62 = arith.truncf %61 : vector<32x66xf32> to vector<32x66xbf16>
    %c1 = arith.constant 1 : index
    %c0_35 = arith.constant 0 : index
    %c0_36 = arith.constant 0 : index
    %63 = vector.load %arg2[%c1, %c0_35, %c0_36] : memref<4x66x512xbf16, #tpu.memory_space<vmem>>, vector<1x66x512xbf16>
    %64 = vector.shape_cast %63 : vector<1x66x512xbf16> to vector<66x512xbf16>
    %cst_37 = arith.constant dense<0.000000e+00> : vector<32x512xf32>
    %65 = tpu.matmul %62, %64, %cst_37 {dimension_numbers = #tpu.dot_dimension_numbers<[1], [0], [0], [1], [0, 0, 1, 1], [], []>} : vector<32x66xbf16>, vector<66x512xbf16>, vector<32x512xf32> -> vector<32x512xf32>
    %66 = arith.addf %40, %65 : vector<32x512xf32>
    %67 = tpu.iota {dimensions = array<i32: 0>} : vector<32x66xi32>
    %68 = tpu.iota {dimensions = array<i32: 1>} : vector<32x66xi32>
    %c2_i32_38 = arith.constant 2 : i32
    %69 = vector.broadcast %c2_i32_38 : i32 to vector<32x66xi32>
    %70 = arith.muli %69, %67 : vector<32x66xi32>
    %c2_i32_39 = arith.constant 2 : i32
    %71 = vector.broadcast %c2_i32_39 : i32 to vector<32x66xi32>
    %72 = arith.addi %70, %71 : vector<32x66xi32>
    %c0_i32_40 = arith.constant 0 : i32
    %73 = vector.broadcast %c0_i32_40 : i32 to vector<32x66xi32>
    %74 = arith.cmpi eq, %72, %73 : vector<32x66xi32>
    %c65_i32_41 = arith.constant 65 : i32
    %75 = vector.broadcast %c65_i32_41 : i32 to vector<32x66xi32>
    %76 = arith.cmpi eq, %72, %75 : vector<32x66xi32>
    %c1_i32_42 = arith.constant 1 : i32
    %77 = vector.broadcast %c1_i32_42 : i32 to vector<32x66xi32>
    %78 = arith.subi %72, %77 : vector<32x66xi32>
    %c65_i32_43 = arith.constant 65 : i32
    %79 = vector.broadcast %c65_i32_43 : i32 to vector<32x66xi32>
    %80 = arith.select %76, %79, %78 : vector<32x66xi1>, vector<32x66xi32>
    %c64_i32_44 = arith.constant 64 : i32
    %81 = vector.broadcast %c64_i32_44 : i32 to vector<32x66xi32>
    %82 = arith.select %74, %81, %80 : vector<32x66xi1>, vector<32x66xi32>
    %83 = arith.cmpi eq, %68, %82 : vector<32x66xi32>
    %84 = arith.extui %83 : vector<32x66xi1> to vector<32x66xi32>
    %85 = arith.sitofp %84 : vector<32x66xi32> to vector<32x66xf32>
    %86 = arith.truncf %85 : vector<32x66xf32> to vector<32x66xbf16>
    %cst_45 = arith.constant dense<0.000000e+00> : vector<32x66xf32>
    %87 = tpu.matmul %86, %13, %cst_45 {dimension_numbers = #tpu.dot_dimension_numbers<[1], [0], [0], [1], [0, 0, 1, 1], [], []>} : vector<32x66xbf16>, vector<66x66xbf16>, vector<32x66xf32> -> vector<32x66xf32>
    %88 = arith.truncf %87 : vector<32x66xf32> to vector<32x66xbf16>
    %c2 = arith.constant 2 : index
    %c0_46 = arith.constant 0 : index
    %c0_47 = arith.constant 0 : index
    %89 = vector.load %arg2[%c2, %c0_46, %c0_47] : memref<4x66x512xbf16, #tpu.memory_space<vmem>>, vector<1x66x512xbf16>
    %90 = vector.shape_cast %89 : vector<1x66x512xbf16> to vector<66x512xbf16>
    %cst_48 = arith.constant dense<0.000000e+00> : vector<32x512xf32>
    %91 = tpu.matmul %88, %90, %cst_48 {dimension_numbers = #tpu.dot_dimension_numbers<[1], [0], [0], [1], [0, 0, 1, 1], [], []>} : vector<32x66xbf16>, vector<66x512xbf16>, vector<32x512xf32> -> vector<32x512xf32>
    %92 = arith.addf %66, %91 : vector<32x512xf32>
    %93 = tpu.iota {dimensions = array<i32: 0>} : vector<32x66xi32>
    %94 = tpu.iota {dimensions = array<i32: 1>} : vector<32x66xi32>
    %c2_i32_49 = arith.constant 2 : i32
    %95 = vector.broadcast %c2_i32_49 : i32 to vector<32x66xi32>
    %96 = arith.muli %95, %93 : vector<32x66xi32>
    %c3_i32 = arith.constant 3 : i32
    %97 = vector.broadcast %c3_i32 : i32 to vector<32x66xi32>
    %98 = arith.addi %96, %97 : vector<32x66xi32>
    %c0_i32_50 = arith.constant 0 : i32
    %99 = vector.broadcast %c0_i32_50 : i32 to vector<32x66xi32>
    %100 = arith.cmpi eq, %98, %99 : vector<32x66xi32>
    %c65_i32_51 = arith.constant 65 : i32
    %101 = vector.broadcast %c65_i32_51 : i32 to vector<32x66xi32>
    %102 = arith.cmpi eq, %98, %101 : vector<32x66xi32>
    %c1_i32_52 = arith.constant 1 : i32
    %103 = vector.broadcast %c1_i32_52 : i32 to vector<32x66xi32>
    %104 = arith.subi %98, %103 : vector<32x66xi32>
    %c65_i32_53 = arith.constant 65 : i32
    %105 = vector.broadcast %c65_i32_53 : i32 to vector<32x66xi32>
    %106 = arith.select %102, %105, %104 : vector<32x66xi1>, vector<32x66xi32>
    %c64_i32_54 = arith.constant 64 : i32
    %107 = vector.broadcast %c64_i32_54 : i32 to vector<32x66xi32>
    %108 = arith.select %100, %107, %106 : vector<32x66xi1>, vector<32x66xi32>
    %109 = arith.cmpi eq, %94, %108 : vector<32x66xi32>
    %110 = arith.extui %109 : vector<32x66xi1> to vector<32x66xi32>
    %111 = arith.sitofp %110 : vector<32x66xi32> to vector<32x66xf32>
    %112 = arith.truncf %111 : vector<32x66xf32> to vector<32x66xbf16>
    %cst_55 = arith.constant dense<0.000000e+00> : vector<32x66xf32>
    %113 = tpu.matmul %112, %13, %cst_55 {dimension_numbers = #tpu.dot_dimension_numbers<[1], [0], [0], [1], [0, 0, 1, 1], [], []>} : vector<32x66xbf16>, vector<66x66xbf16>, vector<32x66xf32> -> vector<32x66xf32>
    %114 = arith.truncf %113 : vector<32x66xf32> to vector<32x66xbf16>
    %c3 = arith.constant 3 : index
    %c0_56 = arith.constant 0 : index
    %c0_57 = arith.constant 0 : index
    %115 = vector.load %arg2[%c3, %c0_56, %c0_57] : memref<4x66x512xbf16, #tpu.memory_space<vmem>>, vector<1x66x512xbf16>
    %116 = vector.shape_cast %115 : vector<1x66x512xbf16> to vector<66x512xbf16>
    %cst_58 = arith.constant dense<0.000000e+00> : vector<32x512xf32>
    %117 = tpu.matmul %114, %116, %cst_58 {dimension_numbers = #tpu.dot_dimension_numbers<[1], [0], [0], [1], [0, 0, 1, 1], [], []>} : vector<32x66xbf16>, vector<66x512xbf16>, vector<32x512xf32> -> vector<32x512xf32>
    %118 = arith.addf %92, %117 : vector<32x512xf32>
    %119 = vector.broadcast %12 : vector<1x512xf32> to vector<32x512xf32>
    %120 = arith.addf %118, %119 : vector<32x512xf32>
    %cst_59 = arith.constant 0.000000e+00 : f32
    %121 = vector.broadcast %cst_59 : f32 to vector<32x512xf32>
    %122 = arith.cmpf ogt, %120, %121 : vector<32x512xf32>
    %cst_60 = arith.constant 1.000000e-01 : f32
    %123 = vector.broadcast %cst_60 : f32 to vector<32x512xf32>
    %124 = arith.mulf %123, %120 : vector<32x512xf32>
    %125 = arith.select %122, %120, %124 : vector<32x512xi1>, vector<32x512xf32>
    %126 = arith.truncf %125 : vector<32x512xf32> to vector<32x512xbf16>
    %c0_61 = arith.constant 0 : index
    %c0_62 = arith.constant 0 : index
    %127 = vector.load %arg11[%c0_61, %c0_62] : memref<34x544xbf16, #tpu.memory_space<vmem>>, vector<32x512xbf16>
    tpu.vector_store %arg11[%c0_61, %c0_62], %126 {strides = array<i32>} : memref<34x544xbf16, #tpu.memory_space<vmem>>, vector<32x512xbf16>,
    %c1_63 = arith.constant 1 : index
    %c0_64 = arith.constant 0 : index
    %128 = vector.load %arg7[%c1_63, %c0_64] : memref<4x512xf32, #tpu.memory_space<vmem>>, vector<1x512xf32>
    %c0_65 = arith.constant 0 : index
    %c0_66 = arith.constant 0 : index
    %129 = vector.load %arg11[%c0_65, %c0_66] : memref<34x544xbf16, #tpu.memory_space<vmem>>, vector<34x544xbf16>
    %cst_67 = arith.constant 0.000000e+00 : f32
    %130 = vector.broadcast %cst_67 : f32 to vector<16x512xf32>
    %131 = tpu.iota {dimensions = array<i32: 0>} : vector<16x34xi32>
    %132 = tpu.iota {dimensions = array<i32: 1>} : vector<16x34xi32>
    %c2_i32_68 = arith.constant 2 : i32
    %133 = vector.broadcast %c2_i32_68 : i32 to vector<16x34xi32>
    %134 = arith.muli %133, %131 : vector<16x34xi32>
    %c0_i32_69 = arith.constant 0 : i32
    %135 = vector.broadcast %c0_i32_69 : i32 to vector<16x34xi32>
    %136 = arith.addi %134, %135 : vector<16x34xi32>
    %c0_i32_70 = arith.constant 0 : i32
    %137 = vector.broadcast %c0_i32_70 : i32 to vector<16x34xi32>
    %138 = arith.cmpi eq, %136, %137 : vector<16x34xi32>
    %c33_i32 = arith.constant 33 : i32
    %139 = vector.broadcast %c33_i32 : i32 to vector<16x34xi32>
    %140 = arith.cmpi eq, %136, %139 : vector<16x34xi32>
    %c1_i32_71 = arith.constant 1 : i32
    %141 = vector.broadcast %c1_i32_71 : i32 to vector<16x34xi32>
    %142 = arith.subi %136, %141 : vector<16x34xi32>
    %c33_i32_72 = arith.constant 33 : i32
    %143 = vector.broadcast %c33_i32_72 : i32 to vector<16x34xi32>
    %144 = arith.select %140, %143, %142 : vector<16x34xi1>, vector<16x34xi32>
    %c32_i32 = arith.constant 32 : i32
    %145 = vector.broadcast %c32_i32 : i32 to vector<16x34xi32>
    %146 = arith.select %138, %145, %144 : vector<16x34xi1>, vector<16x34xi32>
    %147 = arith.cmpi eq, %132, %146 : vector<16x34xi32>
    %148 = arith.extui %147 : vector<16x34xi1> to vector<16x34xi32>
    %149 = arith.sitofp %148 : vector<16x34xi32> to vector<16x34xf32>
    %150 = arith.truncf %149 : vector<16x34xf32> to vector<16x34xbf16>
    %cst_73 = arith.constant dense<0.000000e+00> : vector<16x544xf32>
    %151 = tpu.matmul %150, %129, %cst_73 {dimension_numbers = #tpu.dot_dimension_numbers<[1], [0], [0], [1], [0, 0, 1, 1], [], []>} : vector<16x34xbf16>, vector<34x544xbf16>, vector<16x544xf32> -> vector<16x544xf32>
    %152 = arith.truncf %151 : vector<16x544xf32> to vector<16x544xbf16>
    %c0_74 = arith.constant 0 : index
    %c0_75 = arith.constant 0 : index
    %c0_76 = arith.constant 0 : index
    %153 = vector.load %arg3[%c0_74, %c0_75, %c0_76] : memref<4x544x512xbf16, #tpu.memory_space<vmem>>, vector<1x544x512xbf16>
    %154 = vector.shape_cast %153 : vector<1x544x512xbf16> to vector<544x512xbf16>
    %cst_77 = arith.constant dense<0.000000e+00> : vector<16x512xf32>
    %155 = tpu.matmul %152, %154, %cst_77 {dimension_numbers = #tpu.dot_dimension_numbers<[1], [0], [0], [1], [0, 0, 1, 1], [], []>} : vector<16x544xbf16>, vector<544x512xbf16>, vector<16x512xf32> -> vector<16x512xf32>
    %156 = arith.addf %130, %155 : vector<16x512xf32>
    %157 = tpu.iota {dimensions = array<i32: 0>} : vector<16x34xi32>
    %158 = tpu.iota {dimensions = array<i32: 1>} : vector<16x34xi32>
    %c2_i32_78 = arith.constant 2 : i32
    %159 = vector.broadcast %c2_i32_78 : i32 to vector<16x34xi32>
    %160 = arith.muli %159, %157 : vector<16x34xi32>
    %c1_i32_79 = arith.constant 1 : i32
    %161 = vector.broadcast %c1_i32_79 : i32 to vector<16x34xi32>
    %162 = arith.addi %160, %161 : vector<16x34xi32>
    %c0_i32_80 = arith.constant 0 : i32
    %163 = vector.broadcast %c0_i32_80 : i32 to vector<16x34xi32>
    %164 = arith.cmpi eq, %162, %163 : vector<16x34xi32>
    %c33_i32_81 = arith.constant 33 : i32
    %165 = vector.broadcast %c33_i32_81 : i32 to vector<16x34xi32>
    %166 = arith.cmpi eq, %162, %165 : vector<16x34xi32>
    %c1_i32_82 = arith.constant 1 : i32
    %167 = vector.broadcast %c1_i32_82 : i32 to vector<16x34xi32>
    %168 = arith.subi %162, %167 : vector<16x34xi32>
    %c33_i32_83 = arith.constant 33 : i32
    %169 = vector.broadcast %c33_i32_83 : i32 to vector<16x34xi32>
    %170 = arith.select %166, %169, %168 : vector<16x34xi1>, vector<16x34xi32>
    %c32_i32_84 = arith.constant 32 : i32
    %171 = vector.broadcast %c32_i32_84 : i32 to vector<16x34xi32>
    %172 = arith.select %164, %171, %170 : vector<16x34xi1>, vector<16x34xi32>
    %173 = arith.cmpi eq, %158, %172 : vector<16x34xi32>
    %174 = arith.extui %173 : vector<16x34xi1> to vector<16x34xi32>
    %175 = arith.sitofp %174 : vector<16x34xi32> to vector<16x34xf32>
    %176 = arith.truncf %175 : vector<16x34xf32> to vector<16x34xbf16>
    %cst_85 = arith.constant dense<0.000000e+00> : vector<16x544xf32>
    %177 = tpu.matmul %176, %129, %cst_85 {dimension_numbers = #tpu.dot_dimension_numbers<[1], [0], [0], [1], [0, 0, 1, 1], [], []>} : vector<16x34xbf16>, vector<34x544xbf16>, vector<16x544xf32> -> vector<16x544xf32>
    %178 = arith.truncf %177 : vector<16x544xf32> to vector<16x544xbf16>
    %c1_86 = arith.constant 1 : index
    %c0_87 = arith.constant 0 : index
    %c0_88 = arith.constant 0 : index
    %179 = vector.load %arg3[%c1_86, %c0_87, %c0_88] : memref<4x544x512xbf16, #tpu.memory_space<vmem>>, vector<1x544x512xbf16>
    %180 = vector.shape_cast %179 : vector<1x544x512xbf16> to vector<544x512xbf16>
    %cst_89 = arith.constant dense<0.000000e+00> : vector<16x512xf32>
    %181 = tpu.matmul %178, %180, %cst_89 {dimension_numbers = #tpu.dot_dimension_numbers<[1], [0], [0], [1], [0, 0, 1, 1], [], []>} : vector<16x544xbf16>, vector<544x512xbf16>, vector<16x512xf32> -> vector<16x512xf32>
    %182 = arith.addf %156, %181 : vector<16x512xf32>
    %183 = tpu.iota {dimensions = array<i32: 0>} : vector<16x34xi32>
    %184 = tpu.iota {dimensions = array<i32: 1>} : vector<16x34xi32>
    %c2_i32_90 = arith.constant 2 : i32
    %185 = vector.broadcast %c2_i32_90 : i32 to vector<16x34xi32>
    %186 = arith.muli %185, %183 : vector<16x34xi32>
    %c2_i32_91 = arith.constant 2 : i32
    %187 = vector.broadcast %c2_i32_91 : i32 to vector<16x34xi32>
    %188 = arith.addi %186, %187 : vector<16x34xi32>
    %c0_i32_92 = arith.constant 0 : i32
    %189 = vector.broadcast %c0_i32_92 : i32 to vector<16x34xi32>
    %190 = arith.cmpi eq, %188, %189 : vector<16x34xi32>
    %c33_i32_93 = arith.constant 33 : i32
    %191 = vector.broadcast %c33_i32_93 : i32 to vector<16x34xi32>
    %192 = arith.cmpi eq, %188, %191 : vector<16x34xi32>
    %c1_i32_94 = arith.constant 1 : i32
    %193 = vector.broadcast %c1_i32_94 : i32 to vector<16x34xi32>
    %194 = arith.subi %188, %193 : vector<16x34xi32>
    %c33_i32_95 = arith.constant 33 : i32
    %195 = vector.broadcast %c33_i32_95 : i32 to vector<16x34xi32>
    %196 = arith.select %192, %195, %194 : vector<16x34xi1>, vector<16x34xi32>
    %c32_i32_96 = arith.constant 32 : i32
    %197 = vector.broadcast %c32_i32_96 : i32 to vector<16x34xi32>
    %198 = arith.select %190, %197, %196 : vector<16x34xi1>, vector<16x34xi32>
    %199 = arith.cmpi eq, %184, %198 : vector<16x34xi32>
    %200 = arith.extui %199 : vector<16x34xi1> to vector<16x34xi32>
    %201 = arith.sitofp %200 : vector<16x34xi32> to vector<16x34xf32>
    %202 = arith.truncf %201 : vector<16x34xf32> to vector<16x34xbf16>
    %cst_97 = arith.constant dense<0.000000e+00> : vector<16x544xf32>
    %203 = tpu.matmul %202, %129, %cst_97 {dimension_numbers = #tpu.dot_dimension_numbers<[1], [0], [0], [1], [0, 0, 1, 1], [], []>} : vector<16x34xbf16>, vector<34x544xbf16>, vector<16x544xf32> -> vector<16x544xf32>
    %204 = arith.truncf %203 : vector<16x544xf32> to vector<16x544xbf16>
    %c2_98 = arith.constant 2 : index
    %c0_99 = arith.constant 0 : index
    %c0_100 = arith.constant 0 : index
    %205 = vector.load %arg3[%c2_98, %c0_99, %c0_100] : memref<4x544x512xbf16, #tpu.memory_space<vmem>>, vector<1x544x512xbf16>
    %206 = vector.shape_cast %205 : vector<1x544x512xbf16> to vector<544x512xbf16>
    %cst_101 = arith.constant dense<0.000000e+00> : vector<16x512xf32>
    %207 = tpu.matmul %204, %206, %cst_101 {dimension_numbers = #tpu.dot_dimension_numbers<[1], [0], [0], [1], [0, 0, 1, 1], [], []>} : vector<16x544xbf16>, vector<544x512xbf16>, vector<16x512xf32> -> vector<16x512xf32>
    %208 = arith.addf %182, %207 : vector<16x512xf32>
    %209 = tpu.iota {dimensions = array<i32: 0>} : vector<16x34xi32>
    %210 = tpu.iota {dimensions = array<i32: 1>} : vector<16x34xi32>
    %c2_i32_102 = arith.constant 2 : i32
    %211 = vector.broadcast %c2_i32_102 : i32 to vector<16x34xi32>
    %212 = arith.muli %211, %209 : vector<16x34xi32>
    %c3_i32_103 = arith.constant 3 : i32
    %213 = vector.broadcast %c3_i32_103 : i32 to vector<16x34xi32>
    %214 = arith.addi %212, %213 : vector<16x34xi32>
    %c0_i32_104 = arith.constant 0 : i32
    %215 = vector.broadcast %c0_i32_104 : i32 to vector<16x34xi32>
    %216 = arith.cmpi eq, %214, %215 : vector<16x34xi32>
    %c33_i32_105 = arith.constant 33 : i32
    %217 = vector.broadcast %c33_i32_105 : i32 to vector<16x34xi32>
    %218 = arith.cmpi eq, %214, %217 : vector<16x34xi32>
    %c1_i32_106 = arith.constant 1 : i32
    %219 = vector.broadcast %c1_i32_106 : i32 to vector<16x34xi32>
    %220 = arith.subi %214, %219 : vector<16x34xi32>
    %c33_i32_107 = arith.constant 33 : i32
    %221 = vector.broadcast %c33_i32_107 : i32 to vector<16x34xi32>
    %222 = arith.select %218, %221, %220 : vector<16x34xi1>, vector<16x34xi32>
    %c32_i32_108 = arith.constant 32 : i32
    %223 = vector.broadcast %c32_i32_108 : i32 to vector<16x34xi32>
    %224 = arith.select %216, %223, %222 : vector<16x34xi1>, vector<16x34xi32>
    %225 = arith.cmpi eq, %210, %224 : vector<16x34xi32>
    %226 = arith.extui %225 : vector<16x34xi1> to vector<16x34xi32>
    %227 = arith.sitofp %226 : vector<16x34xi32> to vector<16x34xf32>
    %228 = arith.truncf %227 : vector<16x34xf32> to vector<16x34xbf16>
    %cst_109 = arith.constant dense<0.000000e+00> : vector<16x544xf32>
    %229 = tpu.matmul %228, %129, %cst_109 {dimension_numbers = #tpu.dot_dimension_numbers<[1], [0], [0], [1], [0, 0, 1, 1], [], []>} : vector<16x34xbf16>, vector<34x544xbf16>, vector<16x544xf32> -> vector<16x544xf32>
    %230 = arith.truncf %229 : vector<16x544xf32> to vector<16x544xbf16>
    %c3_110 = arith.constant 3 : index
    %c0_111 = arith.constant 0 : index
    %c0_112 = arith.constant 0 : index
    %231 = vector.load %arg3[%c3_110, %c0_111, %c0_112] : memref<4x544x512xbf16, #tpu.memory_space<vmem>>, vector<1x544x512xbf16>
    %232 = vector.shape_cast %231 : vector<1x544x512xbf16> to vector<544x512xbf16>
    %cst_113 = arith.constant dense<0.000000e+00> : vector<16x512xf32>
    %233 = tpu.matmul %230, %232, %cst_113 {dimension_numbers = #tpu.dot_dimension_numbers<[1], [0], [0], [1], [0, 0, 1, 1], [], []>} : vector<16x544xbf16>, vector<544x512xbf16>, vector<16x512xf32> -> vector<16x512xf32>
    %234 = arith.addf %208, %233 : vector<16x512xf32>
    %235 = vector.broadcast %128 : vector<1x512xf32> to vector<16x512xf32>
    %236 = arith.addf %234, %235 : vector<16x512xf32>
    %cst_114 = arith.constant 0.000000e+00 : f32
    %237 = vector.broadcast %cst_114 : f32 to vector<16x512xf32>
    %238 = arith.cmpf ogt, %236, %237 : vector<16x512xf32>
    %cst_115 = arith.constant 1.000000e-01 : f32
    %239 = vector.broadcast %cst_115 : f32 to vector<16x512xf32>
    %240 = arith.mulf %239, %236 : vector<16x512xf32>
    %241 = arith.select %238, %236, %240 : vector<16x512xi1>, vector<16x512xf32>
    %242 = arith.truncf %241 : vector<16x512xf32> to vector<16x512xbf16>
    %c0_116 = arith.constant 0 : index
    %c0_117 = arith.constant 0 : index
    %243 = vector.load %arg12[%c0_116, %c0_117] : memref<18x576xbf16, #tpu.memory_space<vmem>>, vector<16x512xbf16>
    tpu.vector_store %arg12[%c0_116, %c0_117], %242 {strides = array<i32>} : memref<18x576xbf16, #tpu.memory_space<vmem>>, vector<16x512xbf16>,
    %c2_118 = arith.constant 2 : index
    %c0_119 = arith.constant 0 : index
    %244 = vector.load %arg7[%c2_118, %c0_119] : memref<4x512xf32, #tpu.memory_space<vmem>>, vector<1x512xf32>
    %c0_120 = arith.constant 0 : index
    %c0_121 = arith.constant 0 : index
    %245 = vector.load %arg12[%c0_120, %c0_121] : memref<18x576xbf16, #tpu.memory_space<vmem>>, vector<18x576xbf16>
    %cst_122 = arith.constant 0.000000e+00 : f32
    %246 = vector.broadcast %cst_122 : f32 to vector<8x512xf32>
    %247 = tpu.iota {dimensions = array<i32: 0>} : vector<8x18xi32>
    %248 = tpu.iota {dimensions = array<i32: 1>} : vector<8x18xi32>
    %c2_i32_123 = arith.constant 2 : i32
    %249 = vector.broadcast %c2_i32_123 : i32 to vector<8x18xi32>
    %250 = arith.muli %249, %247 : vector<8x18xi32>
    %c0_i32_124 = arith.constant 0 : i32
    %251 = vector.broadcast %c0_i32_124 : i32 to vector<8x18xi32>
    %252 = arith.addi %250, %251 : vector<8x18xi32>
    %c0_i32_125 = arith.constant 0 : i32
    %253 = vector.broadcast %c0_i32_125 : i32 to vector<8x18xi32>
    %254 = arith.cmpi eq, %252, %253 : vector<8x18xi32>
    %c17_i32 = arith.constant 17 : i32
    %255 = vector.broadcast %c17_i32 : i32 to vector<8x18xi32>
    %256 = arith.cmpi eq, %252, %255 : vector<8x18xi32>
    %c1_i32_126 = arith.constant 1 : i32
    %257 = vector.broadcast %c1_i32_126 : i32 to vector<8x18xi32>
    %258 = arith.subi %252, %257 : vector<8x18xi32>
    %c17_i32_127 = arith.constant 17 : i32
    %259 = vector.broadcast %c17_i32_127 : i32 to vector<8x18xi32>
    %260 = arith.select %256, %259, %258 : vector<8x18xi1>, vector<8x18xi32>
    %c16_i32 = arith.constant 16 : i32
    %261 = vector.broadcast %c16_i32 : i32 to vector<8x18xi32>
    %262 = arith.select %254, %261, %260 : vector<8x18xi1>, vector<8x18xi32>
    %263 = arith.cmpi eq, %248, %262 : vector<8x18xi32>
    %264 = arith.extui %263 : vector<8x18xi1> to vector<8x18xi32>
    %265 = arith.sitofp %264 : vector<8x18xi32> to vector<8x18xf32>
    %266 = arith.truncf %265 : vector<8x18xf32> to vector<8x18xbf16>
    %cst_128 = arith.constant dense<0.000000e+00> : vector<8x576xf32>
    %267 = tpu.matmul %266, %245, %cst_128 {dimension_numbers = #tpu.dot_dimension_numbers<[1], [0], [0], [1], [0, 0, 1, 1], [], []>} : vector<8x18xbf16>, vector<18x576xbf16>, vector<8x576xf32> -> vector<8x576xf32>
    %268 = arith.truncf %267 : vector<8x576xf32> to vector<8x576xbf16>
    %c0_129 = arith.constant 0 : index
    %c0_130 = arith.constant 0 : index
    %c0_131 = arith.constant 0 : index
    %269 = vector.load %arg4[%c0_129, %c0_130, %c0_131] : memref<4x576x512xbf16, #tpu.memory_space<vmem>>, vector<1x576x512xbf16>
    %270 = vector.shape_cast %269 : vector<1x576x512xbf16> to vector<576x512xbf16>
    %cst_132 = arith.constant dense<0.000000e+00> : vector<8x512xf32>
    %271 = tpu.matmul %268, %270, %cst_132 {dimension_numbers = #tpu.dot_dimension_numbers<[1], [0], [0], [1], [0, 0, 1, 1], [], []>} : vector<8x576xbf16>, vector<576x512xbf16>, vector<8x512xf32> -> vector<8x512xf32>
    %272 = arith.addf %246, %271 : vector<8x512xf32>
    %273 = tpu.iota {dimensions = array<i32: 0>} : vector<8x18xi32>
    %274 = tpu.iota {dimensions = array<i32: 1>} : vector<8x18xi32>
    %c2_i32_133 = arith.constant 2 : i32
    %275 = vector.broadcast %c2_i32_133 : i32 to vector<8x18xi32>
    %276 = arith.muli %275, %273 : vector<8x18xi32>
    %c1_i32_134 = arith.constant 1 : i32
    %277 = vector.broadcast %c1_i32_134 : i32 to vector<8x18xi32>
    %278 = arith.addi %276, %277 : vector<8x18xi32>
    %c0_i32_135 = arith.constant 0 : i32
    %279 = vector.broadcast %c0_i32_135 : i32 to vector<8x18xi32>
    %280 = arith.cmpi eq, %278, %279 : vector<8x18xi32>
    %c17_i32_136 = arith.constant 17 : i32
    %281 = vector.broadcast %c17_i32_136 : i32 to vector<8x18xi32>
    %282 = arith.cmpi eq, %278, %281 : vector<8x18xi32>
    %c1_i32_137 = arith.constant 1 : i32
    %283 = vector.broadcast %c1_i32_137 : i32 to vector<8x18xi32>
    %284 = arith.subi %278, %283 : vector<8x18xi32>
    %c17_i32_138 = arith.constant 17 : i32
    %285 = vector.broadcast %c17_i32_138 : i32 to vector<8x18xi32>
    %286 = arith.select %282, %285, %284 : vector<8x18xi1>, vector<8x18xi32>
    %c16_i32_139 = arith.constant 16 : i32
    %287 = vector.broadcast %c16_i32_139 : i32 to vector<8x18xi32>
    %288 = arith.select %280, %287, %286 : vector<8x18xi1>, vector<8x18xi32>
    %289 = arith.cmpi eq, %274, %288 : vector<8x18xi32>
    %290 = arith.extui %289 : vector<8x18xi1> to vector<8x18xi32>
    %291 = arith.sitofp %290 : vector<8x18xi32> to vector<8x18xf32>
    %292 = arith.truncf %291 : vector<8x18xf32> to vector<8x18xbf16>
    %cst_140 = arith.constant dense<0.000000e+00> : vector<8x576xf32>
    %293 = tpu.matmul %292, %245, %cst_140 {dimension_numbers = #tpu.dot_dimension_numbers<[1], [0], [0], [1], [0, 0, 1, 1], [], []>} : vector<8x18xbf16>, vector<18x576xbf16>, vector<8x576xf32> -> vector<8x576xf32>
    %294 = arith.truncf %293 : vector<8x576xf32> to vector<8x576xbf16>
    %c1_141 = arith.constant 1 : index
    %c0_142 = arith.constant 0 : index
    %c0_143 = arith.constant 0 : index
    %295 = vector.load %arg4[%c1_141, %c0_142, %c0_143] : memref<4x576x512xbf16, #tpu.memory_space<vmem>>, vector<1x576x512xbf16>
    %296 = vector.shape_cast %295 : vector<1x576x512xbf16> to vector<576x512xbf16>
    %cst_144 = arith.constant dense<0.000000e+00> : vector<8x512xf32>
    %297 = tpu.matmul %294, %296, %cst_144 {dimension_numbers = #tpu.dot_dimension_numbers<[1], [0], [0], [1], [0, 0, 1, 1], [], []>} : vector<8x576xbf16>, vector<576x512xbf16>, vector<8x512xf32> -> vector<8x512xf32>
    %298 = arith.addf %272, %297 : vector<8x512xf32>
    %299 = tpu.iota {dimensions = array<i32: 0>} : vector<8x18xi32>
    %300 = tpu.iota {dimensions = array<i32: 1>} : vector<8x18xi32>
    %c2_i32_145 = arith.constant 2 : i32
    %301 = vector.broadcast %c2_i32_145 : i32 to vector<8x18xi32>
    %302 = arith.muli %301, %299 : vector<8x18xi32>
    %c2_i32_146 = arith.constant 2 : i32
    %303 = vector.broadcast %c2_i32_146 : i32 to vector<8x18xi32>
    %304 = arith.addi %302, %303 : vector<8x18xi32>
    %c0_i32_147 = arith.constant 0 : i32
    %305 = vector.broadcast %c0_i32_147 : i32 to vector<8x18xi32>
    %306 = arith.cmpi eq, %304, %305 : vector<8x18xi32>
    %c17_i32_148 = arith.constant 17 : i32
    %307 = vector.broadcast %c17_i32_148 : i32 to vector<8x18xi32>
    %308 = arith.cmpi eq, %304, %307 : vector<8x18xi32>
    %c1_i32_149 = arith.constant 1 : i32
    %309 = vector.broadcast %c1_i32_149 : i32 to vector<8x18xi32>
    %310 = arith.subi %304, %309 : vector<8x18xi32>
    %c17_i32_150 = arith.constant 17 : i32
    %311 = vector.broadcast %c17_i32_150 : i32 to vector<8x18xi32>
    %312 = arith.select %308, %311, %310 : vector<8x18xi1>, vector<8x18xi32>
    %c16_i32_151 = arith.constant 16 : i32
    %313 = vector.broadcast %c16_i32_151 : i32 to vector<8x18xi32>
    %314 = arith.select %306, %313, %312 : vector<8x18xi1>, vector<8x18xi32>
    %315 = arith.cmpi eq, %300, %314 : vector<8x18xi32>
    %316 = arith.extui %315 : vector<8x18xi1> to vector<8x18xi32>
    %317 = arith.sitofp %316 : vector<8x18xi32> to vector<8x18xf32>
    %318 = arith.truncf %317 : vector<8x18xf32> to vector<8x18xbf16>
    %cst_152 = arith.constant dense<0.000000e+00> : vector<8x576xf32>
    %319 = tpu.matmul %318, %245, %cst_152 {dimension_numbers = #tpu.dot_dimension_numbers<[1], [0], [0], [1], [0, 0, 1, 1], [], []>} : vector<8x18xbf16>, vector<18x576xbf16>, vector<8x576xf32> -> vector<8x576xf32>
    %320 = arith.truncf %319 : vector<8x576xf32> to vector<8x576xbf16>
    %c2_153 = arith.constant 2 : index
    %c0_154 = arith.constant 0 : index
    %c0_155 = arith.constant 0 : index
    %321 = vector.load %arg4[%c2_153, %c0_154, %c0_155] : memref<4x576x512xbf16, #tpu.memory_space<vmem>>, vector<1x576x512xbf16>
    %322 = vector.shape_cast %321 : vector<1x576x512xbf16> to vector<576x512xbf16>
    %cst_156 = arith.constant dense<0.000000e+00> : vector<8x512xf32>
    %323 = tpu.matmul %320, %322, %cst_156 {dimension_numbers = #tpu.dot_dimension_numbers<[1], [0], [0], [1], [0, 0, 1, 1], [], []>} : vector<8x576xbf16>, vector<576x512xbf16>, vector<8x512xf32> -> vector<8x512xf32>
    %324 = arith.addf %298, %323 : vector<8x512xf32>
    %325 = tpu.iota {dimensions = array<i32: 0>} : vector<8x18xi32>
    %326 = tpu.iota {dimensions = array<i32: 1>} : vector<8x18xi32>
    %c2_i32_157 = arith.constant 2 : i32
    %327 = vector.broadcast %c2_i32_157 : i32 to vector<8x18xi32>
    %328 = arith.muli %327, %325 : vector<8x18xi32>
    %c3_i32_158 = arith.constant 3 : i32
    %329 = vector.broadcast %c3_i32_158 : i32 to vector<8x18xi32>
    %330 = arith.addi %328, %329 : vector<8x18xi32>
    %c0_i32_159 = arith.constant 0 : i32
    %331 = vector.broadcast %c0_i32_159 : i32 to vector<8x18xi32>
    %332 = arith.cmpi eq, %330, %331 : vector<8x18xi32>
    %c17_i32_160 = arith.constant 17 : i32
    %333 = vector.broadcast %c17_i32_160 : i32 to vector<8x18xi32>
    %334 = arith.cmpi eq, %330, %333 : vector<8x18xi32>
    %c1_i32_161 = arith.constant 1 : i32
    %335 = vector.broadcast %c1_i32_161 : i32 to vector<8x18xi32>
    %336 = arith.subi %330, %335 : vector<8x18xi32>
    %c17_i32_162 = arith.constant 17 : i32
    %337 = vector.broadcast %c17_i32_162 : i32 to vector<8x18xi32>
    %338 = arith.select %334, %337, %336 : vector<8x18xi1>, vector<8x18xi32>
    %c16_i32_163 = arith.constant 16 : i32
    %339 = vector.broadcast %c16_i32_163 : i32 to vector<8x18xi32>
    %340 = arith.select %332, %339, %338 : vector<8x18xi1>, vector<8x18xi32>
    %341 = arith.cmpi eq, %326, %340 : vector<8x18xi32>
    %342 = arith.extui %341 : vector<8x18xi1> to vector<8x18xi32>
    %343 = arith.sitofp %342 : vector<8x18xi32> to vector<8x18xf32>
    %344 = arith.truncf %343 : vector<8x18xf32> to vector<8x18xbf16>
    %cst_164 = arith.constant dense<0.000000e+00> : vector<8x576xf32>
    %345 = tpu.matmul %344, %245, %cst_164 {dimension_numbers = #tpu.dot_dimension_numbers<[1], [0], [0], [1], [0, 0, 1, 1], [], []>} : vector<8x18xbf16>, vector<18x576xbf16>, vector<8x576xf32> -> vector<8x576xf32>
    %346 = arith.truncf %345 : vector<8x576xf32> to vector<8x576xbf16>
    %c3_165 = arith.constant 3 : index
    %c0_166 = arith.constant 0 : index
    %c0_167 = arith.constant 0 : index
    %347 = vector.load %arg4[%c3_165, %c0_166, %c0_167] : memref<4x576x512xbf16, #tpu.memory_space<vmem>>, vector<1x576x512xbf16>
    %348 = vector.shape_cast %347 : vector<1x576x512xbf16> to vector<576x512xbf16>
    %cst_168 = arith.constant dense<0.000000e+00> : vector<8x512xf32>
    %349 = tpu.matmul %346, %348, %cst_168 {dimension_numbers = #tpu.dot_dimension_numbers<[1], [0], [0], [1], [0, 0, 1, 1], [], []>} : vector<8x576xbf16>, vector<576x512xbf16>, vector<8x512xf32> -> vector<8x512xf32>
    %350 = arith.addf %324, %349 : vector<8x512xf32>
    %351 = vector.broadcast %244 : vector<1x512xf32> to vector<8x512xf32>
    %352 = arith.addf %350, %351 : vector<8x512xf32>
    %cst_169 = arith.constant 0.000000e+00 : f32
    %353 = vector.broadcast %cst_169 : f32 to vector<8x512xf32>
    %354 = arith.cmpf ogt, %352, %353 : vector<8x512xf32>
    %cst_170 = arith.constant 1.000000e-01 : f32
    %355 = vector.broadcast %cst_170 : f32 to vector<8x512xf32>
    %356 = arith.mulf %355, %352 : vector<8x512xf32>
    %357 = arith.select %354, %352, %356 : vector<8x512xi1>, vector<8x512xf32>
    %358 = arith.truncf %357 : vector<8x512xf32> to vector<8x512xbf16>
    %c0_171 = arith.constant 0 : index
    %c0_172 = arith.constant 0 : index
    %359 = vector.load %arg13[%c0_171, %c0_172] : memref<10x640xbf16, #tpu.memory_space<vmem>>, vector<8x512xbf16>
    tpu.vector_store %arg13[%c0_171, %c0_172], %358 {strides = array<i32>} : memref<10x640xbf16, #tpu.memory_space<vmem>>, vector<8x512xbf16>,
    %c3_173 = arith.constant 3 : index
    %c0_174 = arith.constant 0 : index
    %360 = vector.load %arg7[%c3_173, %c0_174] : memref<4x512xf32, #tpu.memory_space<vmem>>, vector<1x512xf32>
    %c0_175 = arith.constant 0 : index
    %c0_176 = arith.constant 0 : index
    %361 = vector.load %arg13[%c0_175, %c0_176] : memref<10x640xbf16, #tpu.memory_space<vmem>>, vector<10x640xbf16>
    %cst_177 = arith.constant 0.000000e+00 : f32
    %362 = vector.broadcast %cst_177 : f32 to vector<4x512xf32>
    %363 = tpu.iota {dimensions = array<i32: 0>} : vector<4x10xi32>
    %364 = tpu.iota {dimensions = array<i32: 1>} : vector<4x10xi32>
    %c2_i32_178 = arith.constant 2 : i32
    %365 = vector.broadcast %c2_i32_178 : i32 to vector<4x10xi32>
    %366 = arith.muli %365, %363 : vector<4x10xi32>
    %c0_i32_179 = arith.constant 0 : i32
    %367 = vector.broadcast %c0_i32_179 : i32 to vector<4x10xi32>
    %368 = arith.addi %366, %367 : vector<4x10xi32>
    %c0_i32_180 = arith.constant 0 : i32
    %369 = vector.broadcast %c0_i32_180 : i32 to vector<4x10xi32>
    %370 = arith.cmpi eq, %368, %369 : vector<4x10xi32>
    %c9_i32 = arith.constant 9 : i32
    %371 = vector.broadcast %c9_i32 : i32 to vector<4x10xi32>
    %372 = arith.cmpi eq, %368, %371 : vector<4x10xi32>
    %c1_i32_181 = arith.constant 1 : i32
    %373 = vector.broadcast %c1_i32_181 : i32 to vector<4x10xi32>
    %374 = arith.subi %368, %373 : vector<4x10xi32>
    %c9_i32_182 = arith.constant 9 : i32
    %375 = vector.broadcast %c9_i32_182 : i32 to vector<4x10xi32>
    %376 = arith.select %372, %375, %374 : vector<4x10xi1>, vector<4x10xi32>
    %c8_i32 = arith.constant 8 : i32
    %377 = vector.broadcast %c8_i32 : i32 to vector<4x10xi32>
    %378 = arith.select %370, %377, %376 : vector<4x10xi1>, vector<4x10xi32>
    %379 = arith.cmpi eq, %364, %378 : vector<4x10xi32>
    %380 = arith.extui %379 : vector<4x10xi1> to vector<4x10xi32>
    %381 = arith.sitofp %380 : vector<4x10xi32> to vector<4x10xf32>
    %382 = arith.truncf %381 : vector<4x10xf32> to vector<4x10xbf16>
    %cst_183 = arith.constant dense<0.000000e+00> : vector<4x640xf32>
    %383 = tpu.matmul %382, %361, %cst_183 {dimension_numbers = #tpu.dot_dimension_numbers<[1], [0], [0], [1], [0, 0, 1, 1], [], []>} : vector<4x10xbf16>, vector<10x640xbf16>, vector<4x640xf32> -> vector<4x640xf32>
    %384 = arith.truncf %383 : vector<4x640xf32> to vector<4x640xbf16>
    %c0_184 = arith.constant 0 : index
    %c0_185 = arith.constant 0 : index
    %c0_186 = arith.constant 0 : index
    %385 = vector.load %arg5[%c0_184, %c0_185, %c0_186] : memref<4x640x512xbf16, #tpu.memory_space<vmem>>, vector<1x640x512xbf16>
    %386 = vector.shape_cast %385 : vector<1x640x512xbf16> to vector<640x512xbf16>
    %cst_187 = arith.constant dense<0.000000e+00> : vector<4x512xf32>
    %387 = tpu.matmul %384, %386, %cst_187 {dimension_numbers = #tpu.dot_dimension_numbers<[1], [0], [0], [1], [0, 0, 1, 1], [], []>} : vector<4x640xbf16>, vector<640x512xbf16>, vector<4x512xf32> -> vector<4x512xf32>
    %388 = arith.addf %362, %387 : vector<4x512xf32>
    %389 = tpu.iota {dimensions = array<i32: 0>} : vector<4x10xi32>
    %390 = tpu.iota {dimensions = array<i32: 1>} : vector<4x10xi32>
    %c2_i32_188 = arith.constant 2 : i32
    %391 = vector.broadcast %c2_i32_188 : i32 to vector<4x10xi32>
    %392 = arith.muli %391, %389 : vector<4x10xi32>
    %c1_i32_189 = arith.constant 1 : i32
    %393 = vector.broadcast %c1_i32_189 : i32 to vector<4x10xi32>
    %394 = arith.addi %392, %393 : vector<4x10xi32>
    %c0_i32_190 = arith.constant 0 : i32
    %395 = vector.broadcast %c0_i32_190 : i32 to vector<4x10xi32>
    %396 = arith.cmpi eq, %394, %395 : vector<4x10xi32>
    %c9_i32_191 = arith.constant 9 : i32
    %397 = vector.broadcast %c9_i32_191 : i32 to vector<4x10xi32>
    %398 = arith.cmpi eq, %394, %397 : vector<4x10xi32>
    %c1_i32_192 = arith.constant 1 : i32
    %399 = vector.broadcast %c1_i32_192 : i32 to vector<4x10xi32>
    %400 = arith.subi %394, %399 : vector<4x10xi32>
    %c9_i32_193 = arith.constant 9 : i32
    %401 = vector.broadcast %c9_i32_193 : i32 to vector<4x10xi32>
    %402 = arith.select %398, %401, %400 : vector<4x10xi1>, vector<4x10xi32>
    %c8_i32_194 = arith.constant 8 : i32
    %403 = vector.broadcast %c8_i32_194 : i32 to vector<4x10xi32>
    %404 = arith.select %396, %403, %402 : vector<4x10xi1>, vector<4x10xi32>
    %405 = arith.cmpi eq, %390, %404 : vector<4x10xi32>
    %406 = arith.extui %405 : vector<4x10xi1> to vector<4x10xi32>
    %407 = arith.sitofp %406 : vector<4x10xi32> to vector<4x10xf32>
    %408 = arith.truncf %407 : vector<4x10xf32> to vector<4x10xbf16>
    %cst_195 = arith.constant dense<0.000000e+00> : vector<4x640xf32>
    %409 = tpu.matmul %408, %361, %cst_195 {dimension_numbers = #tpu.dot_dimension_numbers<[1], [0], [0], [1], [0, 0, 1, 1], [], []>} : vector<4x10xbf16>, vector<10x640xbf16>, vector<4x640xf32> -> vector<4x640xf32>
    %410 = arith.truncf %409 : vector<4x640xf32> to vector<4x640xbf16>
    %c1_196 = arith.constant 1 : index
    %c0_197 = arith.constant 0 : index
    %c0_198 = arith.constant 0 : index
    %411 = vector.load %arg5[%c1_196, %c0_197, %c0_198] : memref<4x640x512xbf16, #tpu.memory_space<vmem>>, vector<1x640x512xbf16>
    %412 = vector.shape_cast %411 : vector<1x640x512xbf16> to vector<640x512xbf16>
    %cst_199 = arith.constant dense<0.000000e+00> : vector<4x512xf32>
    %413 = tpu.matmul %410, %412, %cst_199 {dimension_numbers = #tpu.dot_dimension_numbers<[1], [0], [0], [1], [0, 0, 1, 1], [], []>} : vector<4x640xbf16>, vector<640x512xbf16>, vector<4x512xf32> -> vector<4x512xf32>
    %414 = arith.addf %388, %413 : vector<4x512xf32>
    %415 = tpu.iota {dimensions = array<i32: 0>} : vector<4x10xi32>
    %416 = tpu.iota {dimensions = array<i32: 1>} : vector<4x10xi32>
    %c2_i32_200 = arith.constant 2 : i32
    %417 = vector.broadcast %c2_i32_200 : i32 to vector<4x10xi32>
    %418 = arith.muli %417, %415 : vector<4x10xi32>
    %c2_i32_201 = arith.constant 2 : i32
    %419 = vector.broadcast %c2_i32_201 : i32 to vector<4x10xi32>
    %420 = arith.addi %418, %419 : vector<4x10xi32>
    %c0_i32_202 = arith.constant 0 : i32
    %421 = vector.broadcast %c0_i32_202 : i32 to vector<4x10xi32>
    %422 = arith.cmpi eq, %420, %421 : vector<4x10xi32>
    %c9_i32_203 = arith.constant 9 : i32
    %423 = vector.broadcast %c9_i32_203 : i32 to vector<4x10xi32>
    %424 = arith.cmpi eq, %420, %423 : vector<4x10xi32>
    %c1_i32_204 = arith.constant 1 : i32
    %425 = vector.broadcast %c1_i32_204 : i32 to vector<4x10xi32>
    %426 = arith.subi %420, %425 : vector<4x10xi32>
    %c9_i32_205 = arith.constant 9 : i32
    %427 = vector.broadcast %c9_i32_205 : i32 to vector<4x10xi32>
    %428 = arith.select %424, %427, %426 : vector<4x10xi1>, vector<4x10xi32>
    %c8_i32_206 = arith.constant 8 : i32
    %429 = vector.broadcast %c8_i32_206 : i32 to vector<4x10xi32>
    %430 = arith.select %422, %429, %428 : vector<4x10xi1>, vector<4x10xi32>
    %431 = arith.cmpi eq, %416, %430 : vector<4x10xi32>
    %432 = arith.extui %431 : vector<4x10xi1> to vector<4x10xi32>
    %433 = arith.sitofp %432 : vector<4x10xi32> to vector<4x10xf32>
    %434 = arith.truncf %433 : vector<4x10xf32> to vector<4x10xbf16>
    %cst_207 = arith.constant dense<0.000000e+00> : vector<4x640xf32>
    %435 = tpu.matmul %434, %361, %cst_207 {dimension_numbers = #tpu.dot_dimension_numbers<[1], [0], [0], [1], [0, 0, 1, 1], [], []>} : vector<4x10xbf16>, vector<10x640xbf16>, vector<4x640xf32> -> vector<4x640xf32>
    %436 = arith.truncf %435 : vector<4x640xf32> to vector<4x640xbf16>
    %c2_208 = arith.constant 2 : index
    %c0_209 = arith.constant 0 : index
    %c0_210 = arith.constant 0 : index
    %437 = vector.load %arg5[%c2_208, %c0_209, %c0_210] : memref<4x640x512xbf16, #tpu.memory_space<vmem>>, vector<1x640x512xbf16>
    %438 = vector.shape_cast %437 : vector<1x640x512xbf16> to vector<640x512xbf16>
    %cst_211 = arith.constant dense<0.000000e+00> : vector<4x512xf32>
    %439 = tpu.matmul %436, %438, %cst_211 {dimension_numbers = #tpu.dot_dimension_numbers<[1], [0], [0], [1], [0, 0, 1, 1], [], []>} : vector<4x640xbf16>, vector<640x512xbf16>, vector<4x512xf32> -> vector<4x512xf32>
    %440 = arith.addf %414, %439 : vector<4x512xf32>
    %441 = tpu.iota {dimensions = array<i32: 0>} : vector<4x10xi32>
    %442 = tpu.iota {dimensions = array<i32: 1>} : vector<4x10xi32>
    %c2_i32_212 = arith.constant 2 : i32
    %443 = vector.broadcast %c2_i32_212 : i32 to vector<4x10xi32>
    %444 = arith.muli %443, %441 : vector<4x10xi32>
    %c3_i32_213 = arith.constant 3 : i32
    %445 = vector.broadcast %c3_i32_213 : i32 to vector<4x10xi32>
    %446 = arith.addi %444, %445 : vector<4x10xi32>
    %c0_i32_214 = arith.constant 0 : i32
    %447 = vector.broadcast %c0_i32_214 : i32 to vector<4x10xi32>
    %448 = arith.cmpi eq, %446, %447 : vector<4x10xi32>
    %c9_i32_215 = arith.constant 9 : i32
    %449 = vector.broadcast %c9_i32_215 : i32 to vector<4x10xi32>
    %450 = arith.cmpi eq, %446, %449 : vector<4x10xi32>
    %c1_i32_216 = arith.constant 1 : i32
    %451 = vector.broadcast %c1_i32_216 : i32 to vector<4x10xi32>
    %452 = arith.subi %446, %451 : vector<4x10xi32>
    %c9_i32_217 = arith.constant 9 : i32
    %453 = vector.broadcast %c9_i32_217 : i32 to vector<4x10xi32>
    %454 = arith.select %450, %453, %452 : vector<4x10xi1>, vector<4x10xi32>
    %c8_i32_218 = arith.constant 8 : i32
    %455 = vector.broadcast %c8_i32_218 : i32 to vector<4x10xi32>
    %456 = arith.select %448, %455, %454 : vector<4x10xi1>, vector<4x10xi32>
    %457 = arith.cmpi eq, %442, %456 : vector<4x10xi32>
    %458 = arith.extui %457 : vector<4x10xi1> to vector<4x10xi32>
    %459 = arith.sitofp %458 : vector<4x10xi32> to vector<4x10xf32>
    %460 = arith.truncf %459 : vector<4x10xf32> to vector<4x10xbf16>
    %cst_219 = arith.constant dense<0.000000e+00> : vector<4x640xf32>
    %461 = tpu.matmul %460, %361, %cst_219 {dimension_numbers = #tpu.dot_dimension_numbers<[1], [0], [0], [1], [0, 0, 1, 1], [], []>} : vector<4x10xbf16>, vector<10x640xbf16>, vector<4x640xf32> -> vector<4x640xf32>
    %462 = arith.truncf %461 : vector<4x640xf32> to vector<4x640xbf16>
    %c3_220 = arith.constant 3 : index
    %c0_221 = arith.constant 0 : index
    %c0_222 = arith.constant 0 : index
    %463 = vector.load %arg5[%c3_220, %c0_221, %c0_222] : memref<4x640x512xbf16, #tpu.memory_space<vmem>>, vector<1x640x512xbf16>
    %464 = vector.shape_cast %463 : vector<1x640x512xbf16> to vector<640x512xbf16>
    %cst_223 = arith.constant dense<0.000000e+00> : vector<4x512xf32>
    %465 = tpu.matmul %462, %464, %cst_223 {dimension_numbers = #tpu.dot_dimension_numbers<[1], [0], [0], [1], [0, 0, 1, 1], [], []>} : vector<4x640xbf16>, vector<640x512xbf16>, vector<4x512xf32> -> vector<4x512xf32>
    %466 = arith.addf %440, %465 : vector<4x512xf32>
    %467 = vector.broadcast %360 : vector<1x512xf32> to vector<4x512xf32>
    %468 = arith.addf %466, %467 : vector<4x512xf32>
    %cst_224 = arith.constant 0.000000e+00 : f32
    %469 = vector.broadcast %cst_224 : f32 to vector<4x512xf32>
    %470 = arith.cmpf ogt, %468, %469 : vector<4x512xf32>
    %cst_225 = arith.constant 1.000000e-01 : f32
    %471 = vector.broadcast %cst_225 : f32 to vector<4x512xf32>
    %472 = arith.mulf %471, %468 : vector<4x512xf32>
    %473 = arith.select %470, %468, %472 : vector<4x512xi1>, vector<4x512xf32>
    %c0_226 = arith.constant 0 : index
    %c0_227 = arith.constant 0 : index
    %474 = vector.load %arg6[%c0_226, %c0_227] : memref<4x512xf32, #tpu.memory_space<vmem>>, vector<4x512xf32>
    %475 = arith.mulf %473, %474 : vector<4x512xf32>
    %476 = vector.shape_cast %475 : vector<4x512xf32> to vector<1x4x512xf32>
    %cst_228 = arith.constant dense<0.000000e+00> : vector<1xf32>
    %477 = vector.multi_reduction <add>, %476, %cst_228 [1, 2] : vector<1x4x512xf32> to vector<1xf32>
    %478 = vector.shape_cast %477 : vector<1xf32> to vector<1x1x1xf32>
    %479 = vector.extract %478[0, 0, 0] : f32 from vector<1x1x1xf32>
    %480 = vector.broadcast %479 : f32 to vector<1x1xf32>
    %c0_229 = arith.constant 0 : index
    %c0_230 = arith.constant 0 : index
    %481 = vector.load %arg8[%c0_229, %c0_230] : memref<1x1xf32, #tpu.memory_space<vmem>>, vector<1x1xf32>
    %482 = arith.addf %480, %481 : vector<1x1xf32>
    %483 = vector.shape_cast %482 : vector<1x1xf32> to vector<1x1x1xf32>
    %c0_231 = arith.constant 0 : index
    %c0_232 = arith.constant 0 : index
    %c0_233 = arith.constant 0 : index
    %484 = vector.load %arg9[%c0_231, %c0_232, %c0_233] : memref<1x1x1xf32, #tpu.memory_space<vmem>>, vector<1x1x1xf32>
    tpu.vector_store %arg9[%c0_231, %c0_232, %c0_233], %483 {strides = array<i32>} : memref<1x1x1xf32, #tpu.memory_space<vmem>>, vector<1x1x1xf32>,
    return
  }
  func.func @transform_0(%arg0: i32) -> (i32, i32, i32) {
    %c0_i32 = arith.constant 0 : i32
    %c0_i32_0 = arith.constant 0 : i32
    %c0_i32_1 = arith.constant 0 : i32
    return %arg0, %c0_i32, %c0_i32_0 : i32, i32, i32
  }
  func.func @transform_1(%arg0: i32) -> (i32, i32, i32) {
    %c0_i32 = arith.constant 0 : i32
    %c0_i32_0 = arith.constant 0 : i32
    %c0_i32_1 = arith.constant 0 : i32
    %c0_i32_2 = arith.constant 0 : i32
    return %c0_i32, %c0_i32_0, %c0_i32_1 : i32, i32, i32
  }
  func.func @transform_2(%arg0: i32) -> (i32, i32, i32) {
    %c0_i32 = arith.constant 0 : i32
    %c0_i32_0 = arith.constant 0 : i32
    %c0_i32_1 = arith.constant 0 : i32
    %c0_i32_2 = arith.constant 0 : i32
    return %c0_i32, %c0_i32_0, %c0_i32_1 : i32, i32, i32
  }
  func.func @transform_3(%arg0: i32) -> (i32, i32, i32) {
    %c0_i32 = arith.constant 0 : i32
    %c0_i32_0 = arith.constant 0 : i32
    %c0_i32_1 = arith.constant 0 : i32
    %c0_i32_2 = arith.constant 0 : i32
    return %c0_i32, %c0_i32_0, %c0_i32_1 : i32, i32, i32
  }
  func.func @transform_4(%arg0: i32) -> (i32, i32, i32) {
    %c0_i32 = arith.constant 0 : i32
    %c0_i32_0 = arith.constant 0 : i32
    %c0_i32_1 = arith.constant 0 : i32
    %c0_i32_2 = arith.constant 0 : i32
    return %c0_i32, %c0_i32_0, %c0_i32_1 : i32, i32, i32
  }
  func.func @transform_5(%arg0: i32) -> (i32, i32) {
    %c0_i32 = arith.constant 0 : i32
    %c0_i32_0 = arith.constant 0 : i32
    %c0_i32_1 = arith.constant 0 : i32
    return %c0_i32, %c0_i32_0 : i32, i32
  }
  func.func @transform_6(%arg0: i32) -> (i32, i32) {
    %c0_i32 = arith.constant 0 : i32
    %c0_i32_0 = arith.constant 0 : i32
    %c0_i32_1 = arith.constant 0 : i32
    return %c0_i32, %c0_i32_0 : i32, i32
  }
  func.func @transform_7(%arg0: i32) -> (i32, i32) {
    %c0_i32 = arith.constant 0 : i32
    %c0_i32_0 = arith.constant 0 : i32
    %c0_i32_1 = arith.constant 0 : i32
    return %c0_i32, %c0_i32_0 : i32, i32
  }
  func.func @transform_8(%arg0: i32) -> (i32, i32, i32) {
    %c0_i32 = arith.constant 0 : i32
    %c0_i32_0 = arith.constant 0 : i32
    %c0_i32_1 = arith.constant 0 : i32
    return %arg0, %c0_i32, %c0_i32_0 : i32, i32, i32
  }
}

</mosaic_0001>

<bundles_post_ra>
// kernel: tile.23
= control target key start
LH: loop header
LB: loop body
LE: loop exit
PB: predicated region body
PF: predicated region fallthrough
CT: control target
= control target key end

     0   :  { %s40_s0 = inlined_call_operand.vmem [shape: f32[16], index: 0, kind: input, shape index: {}]   ;;  %s41_s1 = inlined_call_operand.vmem [shape: f32[32,16], index: 1, kind: output, shape index: {}]  }
   0x1   :  { %v4_v0 = vld [vmem:[%s40_s0] ss:$0 sm:$0xff] }
   0x2   :  { %5 = vst [vmem:[%s41_s1] sm:$0xff] %v4_v0  ;;  %12 = vst [vmem:[%s41_s1 + $0x8] sm:$0xff] %v4_v0 }
   0x3   :  { %13 = vst [vmem:[%s41_s1 + $0x10] sm:$0xff] %v4_v0  ;;  %14 = vst [vmem:[%s41_s1 + $0x18] sm:$0xff] %v4_v0 }

// kernel: tile.36
= control target key start
LH: loop header
LB: loop body
LE: loop exit
PB: predicated region body
PF: predicated region fallthrough
CT: control target
= control target key end

     0   :  { %s94_s8 = smov 112   ;;  %s95_s11 = smov 80   ;;  %vm3_vm0 = vcmask 130048   ;;  %vm9_vm1 = vcmask 1048448   ;;  %vm15_vm2 = vcmask 917248   ;;  %vm21_vm3 = vcmask 786048   ;;  %s147_s0 = inlined_call_operand.vmem [shape: f32[32,16], index: 0, kind: input, shape index: {}]   ;;  %s148_s1 = inlined_call_operand.vmem [shape: f32[1,512], index: 1, kind: output, shape index: {}]  }
   0x1   :  { %v77_v0 = vld [vmem:[%s147_s0 + $0x7] ss:$8 sm:$0xf]   ;;  %v79_v1 = vld [vmem:[%s147_s0 + $0x5] ss:$8 sm:$0xf]  }
   0x2   :  { %7 = vrot.lane.b32.xlu0 %v77_v0, %s94_s8  ;;  %19 = vrot.lane.b32.xlu1 %v79_v1, %s95_s11  ;;  %v78_v2 = vld [vmem:[%s147_s0 + $0x6] ss:$8 sm:$0xf]   ;;  %v80_v3 = vld [vmem:[%s147_s0 + $0x4] ss:$8 sm:$0xf]  }
   0x3   :  { %s96_s16 = smov 96   ;;  %v2_v4 = vld [vmem:[%s147_s0] ss:$8 sm:$0xf]   ;;  %s97_s19 = smov 64   ;;  %vm27_vm4 = vcmask 654848  }
   0x4   :  { %v81_v5 = vld [vmem:[%s147_s0 + $0x3] ss:$8 sm:$0xf]   ;;  %4 = vst.msk [vmem:[#allocation0] ss:$8 sm:$0xf] %vm3_vm0, %v2_v4  }
   0x5   :  { %v82_v6 = vld [vmem:[%s147_s0 + $0x2] ss:$8 sm:$0xf]   ;;  %s98_s24 = smov 48   ;;  %s99_s25 = smov 32   ;;  %vm33_vm5 = vcmask 523648  }
   0x6   :  { %13 = vrot.lane.b32.xlu0 %v78_v2, %s96_s16  ;;  %25 = vrot.lane.b32.xlu1 %v80_v3, %s97_s19  ;;  %v83_v7 = vld [vmem:[%s147_s0 + $0x1] ss:$8 sm:$0xf]   ;;  %s100_s0 = smov 16   ;;  %vm39_vm6 = vcmask 392448   ;;  %vm45_vm7 = vcmask 261248  }
   0xa   :  { %31 = vrot.lane.b32.xlu0 %v81_v5, %s98_s24  ;;  %37 = vrot.lane.b32.xlu1 %v82_v6, %s99_s25 }
   0xe   :  { %43 = vrot.lane.b32.xlu0 %v83_v7, %s100_s0 }
  0x74   :  { %v8_v8 = vpop.permute.xlu0 %7   ;;  %v20_v9 = vpop.permute.xlu1 %19  }
  0x75   :  { %10 = vst.msk [vmem:[#allocation0] ss:$8 sm:$0xf] %vm9_vm1, %v8_v8  }
  0x78   :  { %v14_v10 = vpop.permute.xlu0 %13   ;;  %v26_v11 = vpop.permute.xlu1 %25  }
  0x79   :  { %16 = vst.msk [vmem:[#allocation0] ss:$8 sm:$0xf] %vm15_vm2, %v14_v10  }
  0x7a   :  { %22 = vst.msk [vmem:[#allocation0] ss:$8 sm:$0xf] %vm21_vm3, %v20_v9  }
  0x7b   :  { %28 = vst.msk [vmem:[#allocation0] ss:$8 sm:$0xf] %vm27_vm4, %v26_v11  }
  0x7c   :  { %v32_v12 = vpop.permute.xlu0 %31   ;;  %v38_v13 = vpop.permute.xlu1 %37  }
  0x7d   :  { %34 = vst.msk [vmem:[#allocation0] ss:$8 sm:$0xf] %vm33_vm5, %v32_v12  }
  0x7e   :  { %40 = vst.msk [vmem:[#allocation0] ss:$8 sm:$0xf] %vm39_vm6, %v38_v13  }
  0x80   :  { %v44_v14 = vpop.permute.xlu0 %43  }
  0x81   :  { %46 = vst.msk [vmem:[#allocation0] ss:$8 sm:$0xf] %vm45_vm7, %v44_v14  }
  0x88   :  { %v51_v15 = vld [vmem:[#allocation0] sm:$0x1]  ;;  %v56_v16 = vld [vmem:[#allocation0 + $0x8] sm:$0x1]  ;;  %v62_v17 = vld [vmem:[#allocation0 + $0x10] sm:$0x1] }
  0x89   :  { %54 = vst [vmem:[%s148_s1] sm:$0x1] %v51_v15  ;;  %84 = vst [vmem:[%s148_s1 + $0x1] sm:$0x1] %v56_v16  ;;  %v69_v18 = vld [vmem:[#allocation0 + $0x18] sm:$0x1] }
  0x8a   :  { %85 = vst [vmem:[%s148_s1 + $0x2] sm:$0x1] %v62_v17  ;;  %86 = vst [vmem:[%s148_s1 + $0x3] sm:$0x1] %v69_v18 }

// kernel: tile.27
= control target key start
LH: loop header
LB: loop body
LE: loop exit
PB: predicated region body
PF: predicated region fallthrough
CT: control target
= control target key end

     0   :  { %s28_s0 = inlined_call_operand.vmem [shape: f32[32], index: 0, kind: input, shape index: {}]   ;;  %s29_s1 = inlined_call_operand.vmem [shape: f32[16,32], index: 1, kind: output, shape index: {}]  }
   0x1   :  { %v4_v0 = vld [vmem:[%s28_s0] ss:$0 sm:$0xff] }
   0x2   :  { %5 = vst [vmem:[%s29_s1] sm:$0xff] %v4_v0  ;;  %8 = vst [vmem:[%s29_s1 + $0x8] sm:$0xff] %v4_v0 }

// kernel: tile.37
= control target key start
LH: loop header
LB: loop body
LE: loop exit
PB: predicated region body
PF: predicated region fallthrough
CT: control target
= control target key end

     0   :  { %s62_s8 = smov 96   ;;  %vm3_vm0 = vcmask 261120   ;;  %s64_s15 = smov 64   ;;  %vm9_vm1 = vcmask 1048320   ;;  %vm15_vm2 = vcmask 785920   ;;  %vm21_vm3 = vcmask 523520   ;;  %s99_s0 = inlined_call_operand.vmem [shape: f32[16,32], index: 0, kind: input, shape index: {}]   ;;  %s100_s1 = inlined_call_operand.vmem [shape: f32[1,512], index: 1, kind: output, shape index: {}]  }
   0x1   :  { %v53_v0 = vld [vmem:[%s99_s0 + $0x3] ss:$4 sm:$0xf]   ;;  %v54_v1 = vld [vmem:[%s99_s0 + $0x2] ss:$4 sm:$0xf]  }
   0x2   :  { %7 = vrot.lane.b32.xlu0 %v53_v0, %s62_s8  ;;  %v55_v2 = vld [vmem:[%s99_s0 + $0x1] ss:$4 sm:$0xf]   ;;  %v2_v3 = vld [vmem:[%s99_s0] ss:$4 sm:$0xf]  }
   0x3   :  { %s63_s0 = smov 32   ;;  %4 = vst.msk [vmem:[#allocation0] ss:$8 sm:$0xf] %vm3_vm0, %v2_v3  }
   0x4   :  { %19 = vrot.lane.b32.xlu1 %v55_v2, %s63_s0 }
   0x6   :  { %13 = vrot.lane.b32.xlu0 %v54_v1, %s64_s15 }
  0x74   :  { %v8_v4 = vpop.permute.xlu0 %7  }
  0x75   :  { %10 = vst.msk [vmem:[#allocation0] ss:$8 sm:$0xf] %vm9_vm1, %v8_v4  }
  0x76   :  { %v20_v5 = vpop.permute.xlu1 %19  }
  0x78   :  { %v14_v6 = vpop.permute.xlu0 %13  }
  0x79   :  { %16 = vst.msk [vmem:[#allocation0] ss:$8 sm:$0xf] %vm15_vm2, %v14_v6  }
  0x7a   :  { %22 = vst.msk [vmem:[#allocation0] ss:$8 sm:$0xf] %vm21_vm3, %v20_v5  }
  0x81   :  { %v27_v7 = vld [vmem:[#allocation0] sm:$0x1]  ;;  %v32_v8 = vld [vmem:[#allocation0 + $0x8] sm:$0x1]  ;;  %v38_v9 = vld [vmem:[#allocation0 + $0x10] sm:$0x1] }
  0x82   :  { %30 = vst [vmem:[%s100_s1] sm:$0x1] %v27_v7  ;;  %56 = vst [vmem:[%s100_s1 + $0x1] sm:$0x1] %v32_v8  ;;  %v45_v10 = vld [vmem:[#allocation0 + $0x18] sm:$0x1] }
  0x83   :  { %57 = vst [vmem:[%s100_s1 + $0x2] sm:$0x1] %v38_v9  ;;  %58 = vst [vmem:[%s100_s1 + $0x3] sm:$0x1] %v45_v10 }

// kernel: tile.31
= control target key start
LH: loop header
LB: loop body
LE: loop exit
PB: predicated region body
PF: predicated region fallthrough
CT: control target
= control target key end

     0   :  { %s22_s0 = inlined_call_operand.vmem [shape: f32[64], index: 0, kind: input, shape index: {}]   ;;  %s23_s1 = inlined_call_operand.vmem [shape: f32[8,64], index: 1, kind: output, shape index: {}]  }
   0x1   :  { %v4_v0 = vld [vmem:[%s22_s0] ss:$0 sm:$0xff] }
   0x2   :  { %5 = vst [vmem:[%s23_s1] sm:$0xff] %v4_v0 }

// kernel: tile.38
= control target key start
LH: loop header
LB: loop body
LE: loop exit
PB: predicated region body
PF: predicated region fallthrough
CT: control target
= control target key end

     0   :  { %vm3_vm0 = vcmask 523264   ;;  %s46_s8 = smov 64   ;;  %vm9_vm1 = vcmask 1048064   ;;  %s75_s0 = inlined_call_operand.vmem [shape: f32[8,64], index: 0, kind: input, shape index: {}]   ;;  %s76_s1 = inlined_call_operand.vmem [shape: f32[1,512], index: 1, kind: output, shape index: {}]  }
   0x1   :  { %v41_v0 = vld [vmem:[%s75_s0 + $0x1] ss:$2 sm:$0xf]   ;;  %v2_v1 = vld [vmem:[%s75_s0] ss:$2 sm:$0xf]  }
   0x2   :  { %7 = vrot.lane.b32.xlu0 %v41_v0, %s46_s8  ;;  %4 = vst.msk [vmem:[#allocation0] ss:$8 sm:$0xf] %vm3_vm0, %v2_v1  }
  0x74   :  { %v8_v2 = vpop.permute.xlu0 %7  }
  0x75   :  { %10 = vst.msk [vmem:[#allocation0] ss:$8 sm:$0xf] %vm9_vm1, %v8_v2  }
  0x7c   :  { %v15_v3 = vld [vmem:[#allocation0] sm:$0x1]  ;;  %v20_v4 = vld [vmem:[#allocation0 + $0x8] sm:$0x1]  ;;  %v26_v5 = vld [vmem:[#allocation0 + $0x10] sm:$0x1] }
  0x7d   :  { %18 = vst [vmem:[%s76_s1] sm:$0x1] %v15_v3  ;;  %42 = vst [vmem:[%s76_s1 + $0x1] sm:$0x1] %v20_v4  ;;  %v33_v6 = vld [vmem:[#allocation0 + $0x18] sm:$0x1] }
  0x7e   :  { %43 = vst [vmem:[%s76_s1 + $0x2] sm:$0x1] %v26_v5  ;;  %44 = vst [vmem:[%s76_s1 + $0x3] sm:$0x1] %v33_v6 }

// kernel: tile.35
= control target key start
LH: loop header
LB: loop body
LE: loop exit
PB: predicated region body
PF: predicated region fallthrough
CT: control target
= control target key end

     0   :  { %s22_s0 = inlined_call_operand.vmem [shape: f32[128], index: 0, kind: input, shape index: {}]   ;;  %s23_s1 = inlined_call_operand.vmem [shape: f32[4,128], index: 1, kind: output, shape index: {}]  }
   0x1   :  { %v4_v0 = vld [vmem:[%s22_s0] ss:$0 sm:$0xff] }
   0x2   :  { %5 = vst [vmem:[%s23_s1] sm:$0xf] %v4_v0 }

// kernel: dc_discriminator_forward.1
= control target key start
LH: loop header
LB: loop body
LE: loop exit
PB: predicated region body
PF: predicated region fallthrough
CT: control target
= control target key end

     0   :  { %s24253_s29 = smov 0   ;;  %s31125_s0 = inlined_call_operand.vmem [shape: f32[2,64,64], index: 0, kind: input, shape index: {}]   ;;  %s31126_s1 = inlined_call_operand.vmem [shape: bf16[4,66,512], index: 1, kind: input, shape index: {}]   ;;  %s31127_s2 = inlined_call_operand.vmem [shape: bf16[4,544,512], index: 2, kind: input, shape index: {}]   ;;  %s31128_s3 = inlined_call_operand.vmem [shape: bf16[4,576,512], index: 3, kind: input, shape index: {}]   ;;  %s31129_s4 = inlined_call_operand.vmem [shape: bf16[4,640,512], index: 4, kind: input, shape index: {}]   ;;  %s31130_s5 = inlined_call_operand.vmem [shape: f32[4,512], index: 5, kind: input, shape index: {}]   ;;  %s31131_s6 = inlined_call_operand.vmem [shape: f32[4,512], index: 6, kind: input, shape index: {}]   ;;  %s31132_s7 = inlined_call_operand.<no memory space> [shape: f32[1,1], index: 7, kind: input, shape index: {}]   ;;  %s31133_s8 = inlined_call_operand.vmem [shape: f32[2,1,1], index: 8, kind: output, shape index: {}]  }
   0x1   :  { %v13_v0 = vstv %s31132_s7 }
   0x2   :  { %14 = vst [vmem:[#allocation6] sm:$0x1] %v13_v0 }
   0x3 LB: > { %s17706_s30 = sadd.s32 4294967295, %s24200_s29   ;;  %p17710_p0 = scmp.ge.s32.totalorder %s24200_s29, 1  ;;  %s24200_s29 = sphi %s24253_s29, %s20_s29  }
   0x4   : > { %p264_p1 = scmp.lt.s32.totalorder %s24200_s29, 3 }
   0x6   : > { %p265_p2 = pnand %p17710_p0, %p264_p1 }
   0x7   : > { %p24261_p3 = scmp.lt.s32.totalorder (!%p265_p2), %s17706_s30, 1 }
   0x8   : > { %268 = sbr.rel (%p265_p2) target bundleno = 4856 (0x12f8), region = 52 }
   0xd   : > { %vm314_vm0 = vcmask 532480   ;;  %vm305_vm1 = vcmask 535552   ;;  %v31134_v1 = vmov 0   ;;  %vm335_vm2 = vcmask 519168   ;;  %s31142_s30 = smov (!%p24261_p3, %s17706_s30), 1 }
   0xe   : > { %315 = vst.msk [vmem:[#allocation2 + $0x20] sm:$0x1] %vm314_vm0, %v31134_v1  ;;  %329 = vst [vmem:[#allocation3 + $0x50] sm:$0x11] %v31134_v1  ;;  %v408_v2 = vlaneseq  ;;  %s21141_s7 = sshll.u32 %s31142_s30, 6  ;;  %vm487_vm3 = vcmask 1040384   ;;  %s303_s17 = scalar_lea.vmem %s31133_s8, %s31142_s30 }
   0xf   : > { %330 = vst [vmem:[#allocation3 + $0x58] sm:$0x11] %v31134_v1  ;;  %340 = vst [vmem:[#allocation4 + $0x28] sm:$0x11] %v31134_v1  ;;  %s300_s12 = scalar_lea.vmem %s31125_s0, %s21141_s7  ;;  %vm480_vm4 = vcmask 539648   ;;  %v31136_v41 = vmov 0.0  }
  0x10   : > { %341 = vst [vmem:[#allocation4 + $0x30] sm:$0x11] %v31134_v1  ;;  %346 = vst [vmem:[#allocation5 + $0x10] sm:$0xf] %v31134_v1  ;;  %v24298_v3 = vshrl.u32 %v408_v2, 7  ;;  %v356_v6 = vld [vmem:[%s300_s12 + $0x30] sm:$0xff] }
  0x11   : > { %347 = vst [vmem:[#allocation5 + $0x14] sm:$0x11] %v31134_v1  ;;  %348 = vst [vmem:[#allocation5 + $0x1c] sm:$0x11] %v31134_v1  ;;  %v357_v7 = vld [vmem:[%s300_s12 + $0x38] sm:$0xff]  ;;  %v354_v8 = vld [vmem:[%s300_s12 + $0x20] sm:$0xff]  ;;  %v21148_v11 = vpack.c.bf16 %v356_v6, %v356_v6 }
  0x12   : > { %349 = vst [vmem:[#allocation5 + $0x24] sm:$0x1] %v31134_v1  ;;  %312 = vst.msk [vmem:[#allocation2 + $0x18] sm:$0xf] %vm305_vm1, %v31134_v1  ;;  %v410_v4 = vadd.s32 8, %v24298_v3  ;;  %v24306_v5 = vmul.u32 2, %v24298_v3  ;;  %v21149_v12 = vpack.c.bf16 %v357_v7, %v357_v7  ;;  %v21146_v14 = vpack.c.bf16 %v354_v8, %v354_v8 }
  0x13   : > { %313 = vst.msk [vmem:[#allocation2 + $0x1c] sm:$0xf] %vm305_vm1, %v31134_v1  ;;  %306 = vst.msk [vmem:[#allocation2] sm:$0xf] %vm305_vm1, %v31134_v1  ;;  %v411_v9 = vadd.s32 16, %v24298_v3  ;;  %v412_v10 = vadd.s32 24, %v24298_v3 }
  0x14   : > { %307 = vst.msk [vmem:[#allocation2 + $0x4] sm:$0xf] %vm305_vm1, %v31134_v1  ;;  %308 = vst.msk [vmem:[#allocation2 + $0x8] sm:$0xf] %vm305_vm1, %v31134_v1  ;;  %v355_v13 = vld [vmem:[%s300_s12 + $0x28] sm:$0xff]  ;;  %v352_v15 = vld [vmem:[%s300_s12 + $0x10] sm:$0xff] }
  0x15   : > { %309 = vst.msk [vmem:[#allocation2 + $0xc] sm:$0xf] %vm305_vm1, %v31134_v1  ;;  %310 = vst.msk [vmem:[#allocation2 + $0x10] sm:$0xf] %vm305_vm1, %v31134_v1  ;;  %v353_v16 = vld [vmem:[%s300_s12 + $0x18] sm:$0xff]  ;;  %v24310_v17 = vmul.u32 2, %v410_v4  ;;  %v21147_v19 = vpack.c.bf16 %v355_v13, %v355_v13  ;;  %v21144_v20 = vpack.c.bf16 %v352_v15, %v352_v15 }
  0x16   : > { %311 = vst.msk [vmem:[#allocation2 + $0x14] sm:$0xf] %vm305_vm1, %v31134_v1  ;;  %v21397_v18 = vld [vmem:[#allocation2 + $0x20] ss:$0 sps:$4 sm:$0x11]   ;;  %v21145_v21 = vpack.c.bf16 %v353_v16, %v353_v16  ;;  %v351_v23 = vld [vmem:[%s300_s12 + $0x8] sm:$0xff] }
  0x17   : > { %336 = vst.msk [vmem:[#allocation4 + $0x10] sm:$0xf] %vm335_vm2, %v31134_v1  ;;  %339 = vst.msk [vmem:[#allocation4 + $0x24] sm:$0xf] %vm335_vm2, %v31134_v1  ;;  %v350_v22 = vld [vmem:[%s300_s12] sm:$0xff]  ;;  %v24315_v25 = vand.u32 127, %v408_v2  ;;  %21381 = vmatprep.subr.msk.bf16.mxu1 %vm487_vm3, %v21397_v18  ;;  %21380 = vmatprep.subr.msk.bf16.mxu0 %vm487_vm3, %v21397_v18  ;;  %v21143_v29 = vpack.c.bf16 %v351_v23, %v351_v23 }
  0x18   : > { %396 = vst.msk [vmem:[#allocation2 + $0x18] sm:$0xf] %vm335_vm2, %v21148_v11  ;;  %397 = vst.msk [vmem:[#allocation2 + $0x1c] sm:$0xf] %vm335_vm2, %v21149_v12  ;;  %v21142_v24 = vpack.c.bf16 %v350_v22, %v350_v22  ;;  %v24318_v26 = vadd.s32 1, %v24306_v5  ;;  %v561_v27 = vadd.s32 1, %v24310_v17 }
  0x19   : > { %394 = vst.msk [vmem:[#allocation2 + $0x10] sm:$0xf] %vm335_vm2, %v21146_v14  ;;  %v24323_v28 = vsel %vm487_vm3, %v21397_v18, 0  ;;  %395 = vst.msk [vmem:[#allocation2 + $0x14] sm:$0xf] %vm335_vm2, %v21147_v19  ;;  %v24329_v30 = vmul.u32 2, %v411_v9 }
  0x1a   : > { %392 = vst.msk [vmem:[#allocation2 + $0x8] sm:$0xf] %vm335_vm2, %v21144_v20  ;;  %393 = vst.msk [vmem:[#allocation2 + $0xc] sm:$0xf] %vm335_vm2, %v21145_v21  ;;  %v24331_v31 = vmul.u32 2, %v412_v10  ;;  %21243 = vmatpush3.bf16.msra.mxu1 %v24323_v28  ;;  %21229 = vmatpush3.bf16.msra.mxu0 %v24323_v28  ;;  %vm564_vm5 = vcmp.eq.s32.totalorder %v24318_v26, 0 }
  0x1b   : > { %390 = vst.msk [vmem:[#allocation2] sm:$0xf] %vm335_vm2, %v21142_v24  ;;  %vm565_vm6 = vcmp.eq.s32.totalorder %v561_v27, 0  ;;  %vm568_vm7 = vcmp.eq.s32.totalorder %v24318_v26, 65  ;;  %vm569_vm8 = vcmp.eq.s32.totalorder %v561_v27, 65  ;;  %vm2309_vm9 = vcmp.eq.s32.totalorder %v24318_v26, 33 }
  0x1c   : > { %391 = vst.msk [vmem:[#allocation2 + $0x4] sm:$0xf] %vm335_vm2, %v21143_v29  ;;  %v572_v32 = vsel %vm568_vm7, 65, %v24306_v5  ;;  %v573_v33 = vsel %vm569_vm8, 65, %v24310_v17  ;;  %vm2310_vm10 = vcmp.eq.s32.totalorder %v561_v27, 33  ;;  %v2311_v37 = vsel %vm2309_vm9, 33, %v24306_v5 }
  0x1d   : > { %v24345_v34 = vld [vmem:[%s31126_s1 + $0x118] sm:$0x11]  ;;  %v576_v35 = vsel %vm564_vm5, 64, %v572_v32  ;;  %v577_v36 = vsel %vm565_vm6, 64, %v573_v33  ;;  %v2312_v38 = vsel %vm2310_vm10, 33, %v24310_v17  ;;  %v2313_v39 = vsel %vm564_vm5, 32, %v2311_v37 }
  0x1e   : > { %vm580_vm11 = vcmp.eq.s32.totalorder %v24315_v25, %v576_v35  ;;  %vm581_vm12 = vcmp.eq.s32.totalorder %v24315_v25, %v577_v36  ;;  %v2314_v40 = vsel %vm565_vm6, 32, %v2312_v38  ;;  %vm2315_vm13 = vcmp.eq.s32.totalorder %v24315_v25, %v2313_v39  ;;  %v24371_v51 = vld [vmem:[%s31126_s1 + $0x110] sm:$0x11]  ;;  %v21411_v21 = vld [vmem:[%s31126_s1 + $0xfc] ss:$16 sps:$4 sm:$0xff]  }
  0x1f   : > { %v17736_v42 = vsel %vm580_vm11, 1.0, %v31136_v41  ;;  %v17737_v43 = vsel %vm581_vm12, 1.0, %v31136_v41  ;;  %vm2316_vm14 = vcmp.eq.s32.totalorder %v24315_v25, %v2314_v40  ;;  %v21398_v44 = vld [vmem:[#allocation2 + $0x18] sm:$0xff]   ;;  %v17951_v46 = vsel %vm2315_vm13, 1.0, %v31136_v41 }
  0x20   : > { %v592_v45 = vpack.c.bf16 %v17737_v43, %v17736_v42  ;;  %v21399_v47 = vld [vmem:[#allocation2 + $0x10] sm:$0xff]   ;;  %v17952_v48 = vsel %vm2316_vm14, 1.0, %v31136_v41  ;;  %v17778_v49 = vcombine.low %v24345_v34, %v24345_v34  ;;  %21244 = vmatprep.subr.bf16.mxu1 %v21398_v44  ;;  %21230 = vmatprep.subr.bf16.mxu0 %v21398_v44  ;;  %vm7373_vm15 = vcmp.eq.s32.totalorder %v24318_v26, 17  ;;  %v21417_v36 = vld [vmem:[%s31126_s1 + $0xdc] ss:$16 sps:$4 sm:$0xff]  }
  0x21   : > { %v24365_v50 = vpack.c.bf16 %v17952_v48, %v17951_v46  ;;  %21245 = vmatpush3.bf16.msra.mxu1 %v21398_v44  ;;  %v21400_v52 = vld [vmem:[#allocation2 + $0x8] sm:$0xff]   ;;  %21231 = vmatpush3.bf16.msra.mxu0 %v21398_v44  ;;  %v7374_v53 = vsel %vm7373_vm15, 17, %v24306_v5  ;;  %vm12502_vm0 = vcmp.eq.s32.totalorder %v24318_v26, 9  ;;  %v562_v55 = vadd.s32 1, %v24329_v30 }
  0x22   : > { %21246 = vmatprep.subr.bf16.mxu1 %v21399_v47  ;;  %21252 = vmatprep.mubr.msk.bf16.mxu1 %vm480_vm4, %v592_v45  ;;  %v24377_v54 = vsel %vm564_vm5, 16, %v7374_v53  ;;  %v563_v56 = vadd.s32 1, %v24331_v31  ;;  %v12503_v57 = vsel %vm12502_vm0, 9, %v24306_v5  ;;  %vm419_vm1 = vcmp.eq.s32.totalorder %v24306_v5, 0  ;;  %v21415_v40 = vld [vmem:[%s31126_s1 + $0xd8] ss:$16 sps:$4 sm:$0xff]  }
  0x23   : > { %21232 = vmatprep.subr.bf16.mxu0 %v21399_v47  ;;  %v24385_v58 = vsel %vm487_vm3, %v17778_v49, 0  ;;  %v21401_v59 = vld [vmem:[#allocation2] sm:$0xff]   ;;  %v24389_v60 = vsel %vm564_vm5, 8, %v12503_v57  ;;  %vm566_vm2 = vcmp.eq.s32.totalorder %v562_v55, 0  ;;  %vm570_vm7 = vcmp.eq.s32.totalorder %v562_v55, 65 }
  0x24   : > { %vm567_vm6 = vcmp.eq.s32.totalorder %v563_v56, 0  ;;  %vm571_vm8 = vcmp.eq.s32.totalorder %v563_v56, 65  ;;  %vm420_vm9 = vcmp.eq.s32.totalorder %v24310_v17, 0  ;;  %v17777_v61 = vcombine.high %v24371_v51, %v24371_v51  ;;  %v21414_v53 = vld [vmem:[%s31126_s1 + $0xd4] ss:$16 sps:$4 sm:$0xff]  }
  0x25   : > { %21247 = vmatpush3.bf16.msra.mxu1 %v21399_v47  ;;  %21233 = vmatpush3.bf16.msra.mxu0 %v21399_v47  ;;  %v574_v62 = vsel %vm570_vm7, 65, %v24329_v30  ;;  %v575_v63 = vsel %vm571_vm8, 65, %v24331_v31  ;;  %vm423_vm5 = vcmp.eq.s32.totalorder %v24306_v5, 65  ;;  %vm424_vm10 = vcmp.eq.s32.totalorder %v24310_v17, 65  ;;  %v21408_v47 = vld [vmem:[%s31126_s1 + $0xf4] ss:$16 sps:$4 sm:$0xff]  }
  0x26   : > { %21248 = vmatprep.subr.bf16.mxu1 %v21400_v52  ;;  %21234 = vmatprep.subr.bf16.mxu0 %v21400_v52  ;;  %v578_v0 = vsel %vm566_vm2, 64, %v574_v62  ;;  %v579_v2 = vsel %vm567_vm6, 64, %v575_v63  ;;  %v17721_v4 = vadd.s32 4294967295, %v24306_v5  ;;  %v17779_v6 = vcombine.high %v24345_v34, %v24345_v34  ;;  %v21409_v34 = vld [vmem:[%s31126_s1 + $0xf8] ss:$16 sps:$4 sm:$0xff]  }
  0x27   : > { %vm582_vm11 = vcmp.eq.s32.totalorder %v24315_v25, %v578_v0  ;;  %vm583_vm12 = vcmp.eq.s32.totalorder %v24315_v25, %v579_v2  ;;  %v17722_v7 = vadd.s32 4294967295, %v24310_v17  ;;  %vm1944_vm13 = vcmp.eq.s32.totalorder %v24306_v5, 33  ;;  %v21412_v55 = vld [vmem:[%s31126_s1 + $0xd0] ss:$16 sps:$4 sm:$0xff]   ;;  %v21420_v56 = vld [vmem:[%s31126_s1 + $0xb4] ss:$16 sps:$4 sm:$0xff]  }
  0x28   : > { %v17738_v8 = vsel %vm582_vm11, 1.0, %v31136_v41  ;;  %v17739_v9 = vsel %vm583_vm12, 1.0, %v31136_v41  ;;  %v431_v10 = vsel %vm423_vm5, 65, %v17721_v4  ;;  %vm1945_vm14 = vcmp.eq.s32.totalorder %v24310_v17, 33  ;;  %v21423_v57 = vld [vmem:[%s31126_s1 + $0xbc] ss:$16 sps:$4 sm:$0xff]  }
  0x29   : > { %21249 = vmatpush3.bf16.msra.mxu1 %v21400_v52  ;;  %21235 = vmatpush3.bf16.msra.mxu0 %v21400_v52  ;;  %v593_v11 = vpack.c.bf16 %v17739_v9, %v17738_v8  ;;  %v432_v12 = vsel %vm424_vm10, 65, %v17722_v7  ;;  %v435_v13 = vsel %vm419_vm1, 64, %v431_v10  ;;  %v1946_v14 = vsel %vm1944_vm13, 33, %v17721_v4  ;;  %v21429_v62 = vld [vmem:[%s31126_s1 + $0x9c] ss:$16 sps:$4 sm:$0xff]  }
  0x2a   : > { %21250 = vmatprep.subr.bf16.mxu1 %v21401_v59  ;;  %21236 = vmatprep.subr.bf16.mxu0 %v21401_v59  ;;  %v436_v15 = vsel %vm420_vm9, 64, %v432_v12  ;;  %vm439_vm15 = vcmp.eq.s32.totalorder %v24315_v25, %v435_v13  ;;  %v1947_v16 = vsel %vm1945_vm14, 33, %v17722_v7  ;;  %v1948_v18 = vsel %vm419_vm1, 32, %v1946_v14  ;;  %v21424_v63 = vld [vmem:[%s31126_s1 + $0x90] ss:$16 sps:$4 sm:$0xff]  }
  0x2b   : > { %vm440_vm0 = vcmp.eq.s32.totalorder %v24315_v25, %v436_v15  ;;  %v17725_v19 = vsel %vm439_vm15, 1.0, %v31136_v41  ;;  %v1949_v20 = vsel %vm420_vm9, 32, %v1947_v16  ;;  %vm1950_vm2 = vcmp.eq.s32.totalorder %v24315_v25, %v1948_v18  ;;  %v21427_v0 = vld [vmem:[%s31126_s1 + $0x98] ss:$16 sps:$4 sm:$0xff]   ;;  %v558_v2 = vld [vmem:[%s31126_s1 + $0x80] sm:$0x11] }
  0x2c   : > { %v17726_v22 = vsel %vm440_vm0, 1.0, %v31136_v41  ;;  %vm1951_vm6 = vcmp.eq.s32.totalorder %v24315_v25, %v1949_v20  ;;  %v17929_v23 = vsel %vm1950_vm2, 1.0, %v31136_v41  ;;  %vm7037_vm7 = vcmp.eq.s32.totalorder %v24306_v5, 17  ;;  %v21436_v18 = vld [vmem:[%s31126_s1 + $0x64] ss:$16 sps:$4 sm:$0xff]  }
  0x2d   : > { %21251 = vmatpush3.bf16.msra.mxu1 %v21401_v59  ;;  %21237 = vmatpush3.bf16.msra.mxu0 %v21401_v59  ;;  %v451_v24 = vpack.c.bf16 %v17726_v22, %v17725_v19  ;;  %v17930_v26 = vsel %vm1951_vm6, 1.0, %v31136_v41  ;;  %v7038_v27 = vsel %vm7037_vm7, 17, %v17721_v4  ;;  %vm12167_vm8 = vcmp.eq.s32.totalorder %v24306_v5, 9  ;;  %v21421_v59 = vld [vmem:[%s31126_s1 + $0xb8] ss:$16 sps:$4 sm:$0xff]  }
  0x2e   : > { %17780 = vmatprep.subr.msk.bf16.mxu0 %vm487_vm3, %v17777_v61  ;;  %17783 = vmatprep.subr.msk.bf16.mxu1 %vm487_vm3, %v17779_v6  ;;  %v24433_v29 = vpack.c.bf16 %v17930_v26, %v17929_v23  ;;  %v24437_v32 = vsel %vm419_vm1, 16, %v7038_v27  ;;  %v12168_v33 = vsel %vm12167_vm8, 9, %v17721_v4  ;;  %vm425_vm9 = vcmp.eq.s32.totalorder %v24329_v30, 65  ;;  %v21426_v61 = vld [vmem:[%s31126_s1 + $0x94] ss:$16 sps:$4 sm:$0xff]  }
  0x2f   : > { %21238 = vmatprep.mubr.msk.bf16.mxu0 %vm480_vm4, %v451_v24  ;;  %v24446_v35 = vsel %vm419_vm1, 8, %v12168_v33  ;;  %vm421_vm5 = vcmp.eq.s32.totalorder %v24329_v30, 0  ;;  %vm426_vm10 = vcmp.eq.s32.totalorder %v24331_v31, 65  ;;  %v17723_v37 = vadd.s32 4294967295, %v24329_v30  ;;  %v559_v4 = vld [vmem:[%s31126_s1 + $0x88] sm:$0x11] }
  0x30   : > { %21253 = vmatmul.mubr.msk.bf16.vlgmr.msra.gmra.mxu1 %vm480_vm4, %v593_v11  ;;  %vm422_vm11 = vcmp.eq.s32.totalorder %v24331_v31, 0  ;;  %v17724_v38 = vadd.s32 4294967295, %v24331_v31  ;;  %v17776_v44 = vcombine.low %v24371_v51, %v24371_v51  ;;  %v21406_v51 = vld [vmem:[%s31126_s1 + $0xf0] ss:$16 sps:$4 sm:$0xff]   ;;  %v17803_v6 = vcombine.high %v558_v2, %v558_v2  ;;  %v21439_v19 = vld [vmem:[%s31126_s1 + $0x6c] ss:$16 sps:$4 sm:$0xff]  }
  0x31   : > { %838 = vmatpush1.bf16.msra.mxu1 %v24385_v58  ;;  %863 = vmatprep.mubr.bf16.mxu1 %v31134_v1  ;;  %v433_v39 = vsel %vm425_vm9, 65, %v17723_v37  ;;  %v21418_v58 = vld [vmem:[%s31126_s1 + $0xb0] ss:$16 sps:$4 sm:$0xff]   ;;  %v17805_v7 = vcombine.high %v559_v4, %v559_v4  ;;  %v24516_v8 = vadd.s32 2, %v24310_v17  ;;  %v17802_v14 = vcombine.low %v558_v2, %v558_v2  ;;  %v21437_v26 = vld [vmem:[%s31126_s1 + $0x68] ss:$16 sps:$4 sm:$0xff]  }
  0x32   : > { %839 = vmatprep.subr.bf16.mxu1 %v21411_v21  ;;  %v434_v42 = vsel %vm426_vm10, 65, %v17724_v38  ;;  %v437_v43 = vsel %vm421_vm5, 64, %v433_v39  ;;  %v767_v52 = vsel %vm487_vm3, %v17776_v44, 0  ;;  %v17804_v15 = vcombine.low %v559_v4, %v559_v4  ;;  %v21434_v24 = vld [vmem:[%s31126_s1 + $0x60] ss:$16 sps:$4 sm:$0xff]   ;;  %v24171_v4 = vld [vmem:[#allocation2 + $0x18] sm:$0xff]  }
  0x33   : > { %v438_v45 = vsel %vm422_vm11, 64, %v434_v42  ;;  %vm441_vm1 = vcmp.eq.s32.totalorder %v24315_v25, %v437_v43  ;;  %v17813_v9 = vadd.s32 4294967295, %v24516_v8  ;;  %vm4478_vm13 = vcmp.eq.s32.totalorder %v24516_v8, 33  ;;  %v21442_v27 = vld [vmem:[%s31126_s1 + $0x44] ss:$16 sps:$4 sm:$0xff]  }
  0x34   : > { %vm442_vm12 = vcmp.eq.s32.totalorder %v24315_v25, %v438_v45  ;;  %v17727_v46 = vsel %vm441_vm1, 1.0, %v31136_v41  ;;  %vm1103_vm14 = vcmp.eq.s32.totalorder %v24516_v8, 0  ;;  %v981_v22 = vsel %vm487_vm3, %v17802_v14, 0  ;;  %v21445_v33 = vld [vmem:[%s31126_s1 + $0x4c] ss:$16 sps:$4 sm:$0xff]  }
  0x35   : > { %840 = vmatpush1.bf16.msra.mxu1 %v21409_v34  ;;  %v17728_v48 = vsel %vm442_vm12, 1.0, %v31136_v41  ;;  %v4480_v10 = vsel %vm4478_vm13, 33, %v17813_v9  ;;  %v987_v23 = vsel %vm487_vm3, %v17804_v15, 0  ;;  %v21443_v37 = vld [vmem:[%s31126_s1 + $0x48] ss:$16 sps:$4 sm:$0xff]   ;;  %vm1107_vm0 = vcmp.eq.s32.totalorder %v24516_v8, 65 }
  0x36   : > { %841 = vmatprep.subr.bf16.mxu1 %v21417_v36  ;;  %v452_v49 = vpack.c.bf16 %v17728_v48, %v17727_v46  ;;  %v24523_v11 = vsel %vm1103_vm14, 32, %v4480_v10  ;;  %v21440_v36 = vld [vmem:[%s31126_s1 + $0x40] ss:$16 sps:$4 sm:$0xff]   ;;  %v21448_v38 = vld [vmem:[%s31126_s1 + $0x24] ss:$16 sps:$4 sm:$0xff]  }
  0x37   : > { %v21451_v39 = vld [vmem:[%s31126_s1 + $0x2c] ss:$16 sps:$4 sm:$0xff]   ;;  %v21446_v44 = vld [vmem:[%s31126_s1 + $0x20] ss:$16 sps:$4 sm:$0xff]   ;;  %v21449_v45 = vld [vmem:[%s31126_s1 + $0x28] ss:$16 sps:$4 sm:$0xff]  }
  0x38   : > { %21239 = vmatmul.mubr.msk.bf16.vlgmr.msra.gmra.mxu0 %vm480_vm4, %v452_v49  ;;  %v21454_v46 = vld [vmem:[%s31126_s1 + $0x4] ss:$16 sps:$4 sm:$0xff]  }
  0x39   : > { %842 = vmatpush1.bf16.msra.mxu1 %v21415_v40  ;;  %785 = vmatpush1.bf16.msra.mxu0 %v767_v52  ;;  %v24564_v40 = vadd.s32 2, %v24306_v5  ;;  %v21452_v52 = vld [vmem:[%s31126_s1] ss:$16 sps:$4 sm:$0xff]  }
  0x3a   : > { %810 = vmatprep.mubr.bf16.mxu0 %v31134_v1  ;;  %786 = vmatprep.subr.bf16.mxu0 %v21408_v47  ;;  %v21457_v47 = vld [vmem:[%s31126_s1 + $0xc] ss:$16 sps:$4 sm:$0xff]  }
  0x3b   : > { %843 = vmatprep.subr.bf16.mxu1 %v21423_v57  ;;  %v24581_v48 = vadd.s32 4294967295, %v24564_v40  ;;  %vm1106_vm15 = vcmp.eq.s32.totalorder %v24564_v40, 65  ;;  %vm1102_vm2 = vcmp.eq.s32.totalorder %v24564_v40, 0  ;;  %v1100_v57 = vadd.s32 2, %v24329_v30 }
  0x3d   : > { %787 = vmatpush1.bf16.msra.mxu0 %v21406_v51  ;;  %844 = vmatpush1.bf16.msra.mxu1 %v21421_v59  ;;  %v21455_v51 = vld [vmem:[%s31126_s1 + $0x8] ss:$16 sps:$4 sm:$0xff]   ;;  %vm1108_vm8 = vcmp.eq.s32.totalorder %v1100_v57, 65  ;;  %vm1104_vm5 = vcmp.eq.s32.totalorder %v1100_v57, 0 }
  0x3e   : > { %788 = vmatprep.subr.bf16.mxu0 %v21414_v53  ;;  %845 = vmatprep.subr.bf16.mxu1 %v21429_v62  ;;  %v1114_v53 = vsel %vm1106_vm15, 65, %v24581_v48 }
  0x41   : > { %789 = vmatpush1.bf16.msra.mxu0 %v21412_v55  ;;  %846 = vmatpush1.bf16.msra.mxu1 %v21427_v0  ;;  %v1115_v55 = vsel %vm1107_vm0, 65, %v17813_v9  ;;  %v17814_v0 = vadd.s32 4294967295, %v1100_v57  ;;  %v21483_v57 = vld [vmem:[%s31126_s1 + $0x128] ss:$16 sps:$4 sm:$0xff]  }
  0x42   : > { %790 = vmatprep.subr.bf16.mxu0 %v21420_v56  ;;  %17809 = vmatprep.subr.msk.bf16.mxu1 %vm487_vm3, %v17805_v7  ;;  %v1119_v59 = vsel %vm1103_vm14, 64, %v1115_v55  ;;  %v21480_v55 = vld [vmem:[%s31126_s1 + $0x120] ss:$16 sps:$4 sm:$0xff]  }
  0x43   : > { %vm1123_vm7 = vcmp.eq.s32.totalorder %v24315_v25, %v1119_v59  ;;  %v1116_v8 = vsel %vm1108_vm8, 65, %v17814_v0 }
  0x44   : > { %v17817_v7 = vsel %vm1123_vm7, 1.0, %v31136_v41  ;;  %v1120_v14 = vsel %vm1104_vm5, 64, %v1116_v8 }
  0x45   : > { %791 = vmatpush1.bf16.msra.mxu0 %v21418_v58  ;;  %v1118_v58 = vsel %vm1102_vm2, 64, %v1114_v53  ;;  %vm1124_vm11 = vcmp.eq.s32.totalorder %v24315_v25, %v1120_v14  ;;  %v21482_v53 = vld [vmem:[%s31126_s1 + $0x124] ss:$16 sps:$4 sm:$0xff]  }
  0x46   : > { %792 = vmatprep.subr.bf16.mxu0 %v21426_v61  ;;  %v1101_v61 = vadd.s32 2, %v24331_v31  ;;  %vm1122_vm6 = vcmp.eq.s32.totalorder %v24315_v25, %v1118_v58  ;;  %v1443_v58 = vadd.s32 3, %v24310_v17 }
  0x48   : > { %v17815_v2 = vadd.s32 4294967295, %v1101_v61  ;;  %vm1109_vm9 = vcmp.eq.s32.totalorder %v1101_v61, 65  ;;  %vm1105_vm10 = vcmp.eq.s32.totalorder %v1101_v61, 0  ;;  %v17867_v59 = vadd.s32 4294967295, %v1443_v58 }
  0x49   : > { %793 = vmatpush1.bf16.msra.mxu0 %v21424_v63  ;;  %v24601_v63 = vld [vmem:[#allocation2 + $0x20] ss:$0 sps:$4 sm:$0x11]   ;;  %vm5712_vm12 = vcmp.eq.s32.totalorder %v1443_v58, 33  ;;  %vm1447_vm13 = vcmp.eq.s32.totalorder %v1443_v58, 0  ;;  %vm1451_vm15 = vcmp.eq.s32.totalorder %v1443_v58, 65 }
  0x4a   : > { %17806 = vmatprep.subr.msk.bf16.mxu0 %vm487_vm3, %v17803_v6  ;;  %v17816_v6 = vsel %vm1122_vm6, 1.0, %v31136_v41  ;;  %v1117_v9 = vsel %vm1109_vm9, 65, %v17815_v2  ;;  %v5714_v61 = vsel %vm5712_vm12, 33, %v17867_v59  ;;  %vm318_vm12 = vcmask 257024  }
  0x4b   : > { %v1134_v10 = vpack.c.bf16 %v17817_v7, %v17816_v6  ;;  %v1121_v15 = vsel %vm1105_vm10, 64, %v1117_v9  ;;  %325 = vst.msk [vmem:[#allocation3 + $0x38] sm:$0xf] %vm318_vm12, %v31134_v1  ;;  %328 = vst.msk [vmem:[#allocation3 + $0x4c] sm:$0xf] %vm318_vm12, %v31134_v1 }
  0x4c   : > { %vm1125_vm1 = vcmp.eq.s32.totalorder %v24315_v25, %v1121_v15  ;;  %319 = vst.msk [vmem:[#allocation3 + $0x10] sm:$0xf] %vm318_vm12, %v31134_v1  ;;  %322 = vst.msk [vmem:[#allocation3 + $0x24] sm:$0xf] %vm318_vm12, %v31134_v1 }
  0xf0   : > { %v21254_v12 = vpop.f32.mrf.mxu1 }
  0xf2   : > { %v634_v13 = vpop.f32.mrf.mxu1 }
  0xf4   : > { %v21255_v16 = vpop.f32.mrf.mxu1 }
  0xf5   : > { %v650_v42 = vpack.c.bf16 %v21255_v16, %v21254_v12  ;;  %v24173_v16 = vld [vmem:[#allocation2 + $0x8] sm:$0xff]  }
  0xf6   : > { %v637_v20 = vpop.f32.mrf.mxu1 }
  0xf7   : > { %v649_v21 = vpack.c.bf16 %v637_v20, %v634_v13  ;;  %v24172_v13 = vld [vmem:[#allocation2 + $0x10] sm:$0xff]   ;;  %v24174_v20 = vld [vmem:[#allocation2] sm:$0xff]  }
  0xf8   : > { %v24547_v34 = vpop.f32.mrf.mxu0 }
  0xf9   : > { %17781 = vmatmul.mubr.msk.bf16.vlgmr.msra.gmra.mxu0 %vm480_vm4, %v649_v21  ;;  %17784 = vmatmul.mubr.msk.bf16.vlgmr.msra.gmra.mxu1 %vm480_vm4, %v649_v21 }
  0xfa   : > { %999 = vmatpush1.bf16.msra.mxu0 %v981_v22  ;;  %1052 = vmatpush1.bf16.msra.mxu1 %v987_v23  ;;  %v525_v43 = vpop.f32.mrf.mxu0  ;;  %v17838_v22 = vld [vmem:[%s31126_s1 + $0x1a0] sm:$0x11] }
  0xfb   : > { %1000 = vmatprep.subr.bf16.mxu0 %v21436_v18  ;;  %1053 = vmatprep.subr.bf16.mxu1 %v21439_v19  ;;  %v17818_v18 = vsel %vm1124_vm11, 1.0, %v31136_v41  ;;  %v17819_v19 = vsel %vm1125_vm1, 1.0, %v31136_v41  ;;  %v17857_v23 = vcombine.high %v17838_v22, %v17838_v22 }
  0xfc   : > { %820 = vmatprep.mubr.bf16.mxu0 %v31134_v1  ;;  %873 = vmatprep.mubr.bf16.mxu1 %v31134_v1  ;;  %v21241_v49 = vpop.f32.mrf.mxu0  ;;  %v1135_v21 = vpack.c.bf16 %v17819_v19, %v17818_v18 }
  0xfd   : > { %v541_v12 = vpack.c.bf16 %v21241_v49, %v24547_v34  ;;  %v21474_v49 = vld [vmem:[%s31126_s1 + $0x140] ss:$16 sps:$4 sm:$0xff]  }
  0xfe   : > { %1001 = vmatpush1.bf16.msra.mxu0 %v21434_v24  ;;  %1054 = vmatpush1.bf16.msra.mxu1 %v21437_v26  ;;  %v528_v56 = vpop.f32.mrf.mxu0  ;;  %v17856_v24 = vcombine.low %v17838_v22, %v17838_v22  ;;  %v17839_v26 = vld [vmem:[%s31126_s1 + $0x1a8] sm:$0x11] }
  0xff   : > { %1002 = vmatprep.subr.bf16.mxu0 %v21442_v27  ;;  %1055 = vmatprep.subr.bf16.mxu1 %v21445_v33  ;;  %v540_v62 = vpack.c.bf16 %v528_v56, %v525_v43  ;;  %v17859_v27 = vcombine.high %v17839_v26, %v17839_v26  ;;  %v17858_v33 = vcombine.low %v17839_v26, %v17839_v26  ;;  %v21470_v43 = vld [vmem:[%s31126_s1 + $0x164] ss:$16 sps:$4 sm:$0xff]   ;;  %v21485_v56 = vld [vmem:[%s31126_s1 + $0x12c] ss:$16 sps:$4 sm:$0xff]  }
 0x100   : > { %v1309_v34 = vsel %vm487_vm3, %v17856_v24, 0 }
 0x101   : > { %17782 = vmatmul.mubr.msk.bf16.gmra.mxu0 %vm480_vm4, %v650_v42  ;;  %17785 = vmatmul.mubr.msk.bf16.gmra.mxu1 %vm480_vm4, %v650_v42  ;;  %v21465_v42 = vld [vmem:[%s31126_s1 + $0x188] ss:$16 sps:$4 sm:$0xff]  }
 0x102   : > { %1003 = vmatpush1.bf16.msra.mxu0 %v21440_v36  ;;  %1056 = vmatpush1.bf16.msra.mxu1 %v21443_v37  ;;  %v1315_v36 = vsel %vm487_vm3, %v17858_v33, 0  ;;  %v21464_v37 = vld [vmem:[%s31126_s1 + $0x184] ss:$16 sps:$4 sm:$0xff]  }
 0x103   : > { %1004 = vmatprep.subr.bf16.mxu0 %v21448_v38  ;;  %1057 = vmatprep.subr.bf16.mxu1 %v21451_v39  ;;  %v21462_v38 = vld [vmem:[%s31126_s1 + $0x180] ss:$16 sps:$4 sm:$0xff]   ;;  %v21467_v39 = vld [vmem:[%s31126_s1 + $0x18c] ss:$16 sps:$4 sm:$0xff]  }
 0x104   : > { %1024 = vmatprep.mubr.bf16.mxu0 %v31134_v1  ;;  %1077 = vmatprep.mubr.bf16.mxu1 %v31134_v1 }
 0x106   : > { %1005 = vmatpush1.bf16.msra.mxu0 %v21446_v44  ;;  %1058 = vmatpush1.bf16.msra.mxu1 %v21449_v45  ;;  %v21468_v44 = vld [vmem:[%s31126_s1 + $0x160] ss:$16 sps:$4 sm:$0xff]   ;;  %v21471_v45 = vld [vmem:[%s31126_s1 + $0x168] ss:$16 sps:$4 sm:$0xff]  }
 0x107   : > { %1006 = vmatprep.subr.bf16.mxu0 %v21454_v46  ;;  %1059 = vmatprep.subr.bf16.mxu1 %v21457_v47  ;;  %v21473_v46 = vld [vmem:[%s31126_s1 + $0x16c] ss:$16 sps:$4 sm:$0xff]   ;;  %v21476_v47 = vld [vmem:[%s31126_s1 + $0x144] ss:$16 sps:$4 sm:$0xff]  }
 0x10a   : > { %1007 = vmatpush1.bf16.msra.mxu0 %v21452_v52  ;;  %1060 = vmatpush1.bf16.msra.mxu1 %v21455_v51  ;;  %v21479_v52 = vld [vmem:[%s31126_s1 + $0x14c] ss:$16 sps:$4 sm:$0xff]   ;;  %v21477_v51 = vld [vmem:[%s31126_s1 + $0x148] ss:$16 sps:$4 sm:$0xff]  }
 0x10b   : > { %21382 = vmatprep.subr.msk.bf16.mxu0 %vm487_vm3, %v24601_v63  ;;  %17860 = vmatprep.subr.msk.bf16.mxu1 %vm487_vm3, %v17857_v23 }
 0x10d   : > { %17807 = vmatmul.mubr.msk.bf16.vlgmr.msra.gmra.mxu0 %vm480_vm4, %v540_v62  ;;  %17810 = vmatmul.mubr.msk.bf16.vlgmr.msra.gmra.mxu1 %vm480_vm4, %v540_v62  ;;  %v24687_v62 = vsel %vm1447_vm13, 32, %v5714_v61 }
 0x10e   : > { %21257 = vmatpush3.bf16.msra.mxu0 %v24323_v28  ;;  %1034 = vmatprep.mubr.bf16.mxu0 %v31134_v1 }
 0x10f   : > { %21258 = vmatprep.subr.bf16.mxu0 %v24171_v4  ;;  %1087 = vmatprep.mubr.bf16.mxu1 %v31134_v1 }
 0x110   : > { %1327 = vmatpush1.bf16.msra.mxu1 %v1309_v34 }
 0x111   : > { %1328 = vmatprep.subr.bf16.mxu1 %v21464_v37 }
 0x112   : > { %21259 = vmatpush3.bf16.msra.mxu0 %v24171_v4 }
 0x113   : > { %21260 = vmatprep.subr.bf16.mxu0 %v24172_v13 }
 0x114   : > { %1329 = vmatpush1.bf16.msra.mxu1 %v21462_v38 }
 0x115   : > { %17808 = vmatmul.mubr.msk.bf16.gmra.mxu0 %vm480_vm4, %v541_v12  ;;  %17811 = vmatmul.mubr.msk.bf16.gmra.mxu1 %vm480_vm4, %v541_v12 }
 0x116   : > { %21261 = vmatpush3.bf16.msra.mxu0 %v24172_v13  ;;  %21266 = vmatprep.mubr.msk.bf16.mxu0 %vm480_vm4, %v1134_v10 }
 0x117   : > { %21262 = vmatprep.subr.bf16.mxu0 %v24173_v16  ;;  %1352 = vmatprep.mubr.bf16.mxu1 %v31134_v1 }
 0x118   : > { %1330 = vmatprep.subr.bf16.mxu1 %v21470_v43 }
 0x119   : > { %1331 = vmatpush1.bf16.msra.mxu1 %v21468_v44 }
 0x11a   : > { %21263 = vmatpush3.bf16.msra.mxu0 %v24173_v16  ;;  %1332 = vmatprep.subr.bf16.mxu1 %v21476_v47 }
 0x11b   : > { %21264 = vmatprep.subr.bf16.mxu0 %v24174_v20 }
 0x11d   : > { %1333 = vmatpush1.bf16.msra.mxu1 %v21474_v49 }
 0x11e   : > { %21265 = vmatpush3.bf16.msra.mxu0 %v24174_v20  ;;  %1334 = vmatprep.subr.bf16.mxu1 %v21482_v53 }
 0x11f   : > { %17863 = vmatprep.subr.msk.bf16.mxu0 %vm487_vm3, %v17859_v27 }
 0x121   : > { %21267 = vmatmul.mubr.msk.bf16.vlgmr.msra.gmra.mxu0 %vm480_vm4, %v1135_v21  ;;  %1335 = vmatpush1.bf16.msra.mxu1 %v21480_v55 }
 0x122   : > { %1405 = vmatprep.mubr.bf16.mxu0 %v31134_v1  ;;  %1380 = vmatpush1.bf16.msra.mxu0 %v1315_v36 }
 0x123   : > { %1381 = vmatprep.subr.bf16.mxu0 %v21467_v39  ;;  %21383 = vmatprep.subr.msk.bf16.mxu1 %vm487_vm3, %v24601_v63 }
 0x126   : > { %1382 = vmatpush1.bf16.msra.mxu0 %v21465_v42 }
 0x127   : > { %1383 = vmatprep.subr.bf16.mxu0 %v21473_v46 }
 0x12a   : > { %1384 = vmatpush1.bf16.msra.mxu0 %v21471_v45 }
 0x12b   : > { %1385 = vmatprep.subr.bf16.mxu0 %v21479_v52 }
 0x12e   : > { %1386 = vmatpush1.bf16.msra.mxu0 %v21477_v51 }
 0x12f   : > { %1387 = vmatprep.subr.bf16.mxu0 %v21485_v56 }
 0x132   : > { %1388 = vmatpush1.bf16.msra.mxu0 %v21483_v57  ;;  %v24726_v57 = vadd.s32 3, %v24306_v5 }
 0x134   : > { %vm1450_vm14 = vcmp.eq.s32.totalorder %v24726_v57, 65  ;;  %vm1446_vm0 = vcmp.eq.s32.totalorder %v24726_v57, 0 }
 0x1b9   : > { %v812_v0 = vpop.f32.mrf.mxu0  ;;  %v865_v2 = vpop.f32.mrf.mxu1 }
 0x1bb   : > { %v814_v4 = vpop.f32.mrf.mxu0  ;;  %v867_v6 = vpop.f32.mrf.mxu1 }
 0x1bd   : > { %v816_v7 = vpop.f32.mrf.mxu0  ;;  %v869_v8 = vpop.f32.mrf.mxu1 }
 0x1bf   : > { %v24689_v9 = vpop.f32.mrf.mxu0  ;;  %v24691_v10 = vpop.f32.mrf.mxu1 }
 0x1c1   : > { %v822_v63 = vpop.f32.mrf.mxu0  ;;  %v875_v12 = vpop.f32.mrf.mxu1 }
 0x1c3   : > { %v824_v17 = vpop.f32.mrf.mxu0  ;;  %v877_v13 = vpop.f32.mrf.mxu1 }
 0x1c5   : > { %v826_v14 = vpop.f32.mrf.mxu0  ;;  %v879_v15 = vpop.f32.mrf.mxu1 }
 0x1c7   : > { %v24693_v16 = vpop.f32.mrf.mxu0  ;;  %v24695_v18 = vpop.f32.mrf.mxu1 }
 0x1cd   : > { %v1026_v19 = vpop.f32.mrf.mxu0  ;;  %v1079_v20 = vpop.f32.mrf.mxu1 }
 0x1ce   : > { %v24697_v21 = vadd.f32 %v1026_v19, %v812_v0  ;;  %v24699_v22 = vadd.f32 %v1079_v20, %v865_v2  ;;  %v24731_v0 = vadd.s32 4294967295, %v24726_v57 }
 0x1cf   : > { %v1028_v23 = vpop.f32.mrf.mxu0  ;;  %v1081_v24 = vpop.f32.mrf.mxu1 }
 0x1d0   : > { %v24701_v26 = vadd.f32 %v1028_v23, %v814_v4  ;;  %v24703_v27 = vadd.f32 %v1081_v24, %v867_v6  ;;  %v1458_v6 = vsel %vm1450_vm14, 65, %v24731_v0 }
 0x1d1   : > { %v1030_v33 = vpop.f32.mrf.mxu0  ;;  %v1083_v34 = vpop.f32.mrf.mxu1  ;;  %v1462_v5 = vsel %vm1446_vm0, 64, %v1458_v6 }
 0x1d2   : > { %v24705_v36 = vadd.f32 %v1030_v33, %v816_v7  ;;  %v24707_v37 = vadd.f32 %v1083_v34, %v869_v8  ;;  %v1459_v7 = vsel %vm1451_vm15, 65, %v17867_v59  ;;  %vm1466_vm6 = vcmp.eq.s32.totalorder %v24315_v25, %v1462_v5 }
 0x1d3   : > { %v24709_v38 = vpop.f32.mrf.mxu0  ;;  %v24711_v39 = vpop.f32.mrf.mxu1 }
 0x1d5   : > { %v1036_v42 = vpop.f32.mrf.mxu0  ;;  %v1089_v43 = vpop.f32.mrf.mxu1 }
 0x1d6   : > { %v24713_v44 = vadd.f32 %v1036_v42, %v822_v63  ;;  %v24715_v45 = vadd.f32 %v1089_v43, %v875_v12  ;;  %v1444_v63 = vadd.s32 3, %v24329_v30  ;;  %v1463_v12 = vsel %vm1447_vm13, 64, %v1459_v7  ;;  %v24175_v30 = vld [vmem:[#allocation2 + $0x18] sm:$0xff]   ;;  %v24177_v42 = vld [vmem:[#allocation2 + $0x8] sm:$0xff]  }
 0x1d7   : > { %v1038_v46 = vpop.f32.mrf.mxu0  ;;  %v1091_v47 = vpop.f32.mrf.mxu1  ;;  %vm1467_vm7 = vcmp.eq.s32.totalorder %v24315_v25, %v1463_v12  ;;  %v21492_v12 = vld [vmem:[%s31126_s1 + $0x214] ss:$16 sps:$4 sm:$0xff]  }
 0x1d8   : > { %v24717_v49 = vadd.f32 %v1038_v46, %v824_v17  ;;  %v24719_v52 = vadd.f32 %v1091_v47, %v877_v13  ;;  %v1445_v17 = vadd.s32 3, %v24331_v31  ;;  %v17868_v59 = vadd.s32 4294967295, %v1444_v63  ;;  %v24178_v47 = vld [vmem:[#allocation2] sm:$0xff]  }
 0x1d9   : > { %v1040_v51 = vpop.f32.mrf.mxu0  ;;  %v1093_v53 = vpop.f32.mrf.mxu1  ;;  %vm1452_vm8 = vcmp.eq.s32.totalorder %v1444_v63, 65  ;;  %v17870_v31 = vsel %vm1466_vm6, 1.0, %v31136_v41  ;;  %v17871_v58 = vsel %vm1467_vm7, 1.0, %v31136_v41  ;;  %vm1448_vm5 = vcmp.eq.s32.totalorder %v1444_v63, 0 }
 0x1da   : > { %v24721_v55 = vadd.f32 %v1040_v51, %v826_v14  ;;  %v24723_v56 = vadd.f32 %v1093_v53, %v879_v15  ;;  %v17869_v15 = vadd.s32 4294967295, %v1445_v17  ;;  %vm1453_vm9 = vcmp.eq.s32.totalorder %v1445_v17, 65  ;;  %v17892_v53 = vld [vmem:[%s31126_s1 + $0x230] sm:$0x11] }
 0x1db   : > { %v24728_v61 = vpop.f32.mrf.mxu0  ;;  %vm1449_vm10 = vcmp.eq.s32.totalorder %v1445_v17, 0  ;;  %v1460_v19 = vsel %vm1452_vm8, 65, %v17868_v59  ;;  %v1478_v23 = vpack.c.bf16 %v17871_v58, %v17870_v31  ;;  %v17910_v7 = vcombine.low %v17892_v53, %v17892_v53  ;;  %v21495_v17 = vld [vmem:[%s31126_s1 + $0x21c] ss:$16 sps:$4 sm:$0xff]   ;;  %v21496_v59 = vld [vmem:[%s31126_s1 + $0x1f0] ss:$16 sps:$4 sm:$0xff]  }
 0x1dc   : > { %v1461_v20 = vsel %vm1453_vm9, 65, %v17869_v15  ;;  %v1464_v33 = vsel %vm1448_vm5, 64, %v1460_v19  ;;  %v21498_v15 = vld [vmem:[%s31126_s1 + $0x1f4] ss:$16 sps:$4 sm:$0xff]   ;;  %v21501_v31 = vld [vmem:[%s31126_s1 + $0x1fc] ss:$16 sps:$4 sm:$0xff]  }
 0x1dd   : > { %v1465_v34 = vsel %vm1449_vm10, 64, %v1461_v20  ;;  %vm1468_vm11 = vcmp.eq.s32.totalorder %v24315_v25, %v1464_v33  ;;  %v1653_v63 = vsel %vm487_vm3, %v17910_v7, 0  ;;  %v21504_v58 = vld [vmem:[%s31126_s1 + $0x1d4] ss:$16 sps:$4 sm:$0xff]   ;;  %v21507_v19 = vld [vmem:[%s31126_s1 + $0x1dc] ss:$16 sps:$4 sm:$0xff]  }
 0x1de   : > { %vm1469_vm1 = vcmp.eq.s32.totalorder %v24315_v25, %v1465_v34  ;;  %v17872_v43 = vsel %vm1468_vm11, 1.0, %v31136_v41  ;;  %v21502_v20 = vld [vmem:[%s31126_s1 + $0x1d0] ss:$16 sps:$4 sm:$0xff]   ;;  %v21511_v34 = vld [vmem:[%s31126_s1 + $0x1b8] ss:$16 sps:$4 sm:$0xff]  }
 0x1df   : > { %v17873_v46 = vsel %vm1469_vm1, 1.0, %v31136_v41  ;;  %v21508_v33 = vld [vmem:[%s31126_s1 + $0x1b0] ss:$16 sps:$4 sm:$0xff]  }
 0x1e0   : > { %v1479_v51 = vpack.c.bf16 %v17873_v46, %v17872_v43 }
 0x1e1   : > { %v21268_v2 = vpop.f32.mrf.mxu0 }
 0x1e3   : > { %v1176_v4 = vpop.f32.mrf.mxu0 }
 0x1e5   : > { %v21269_v8 = vpop.f32.mrf.mxu0 }
 0x1e6   : > { %v1192_v24 = vpack.c.bf16 %v21269_v8, %v21268_v2  ;;  %v17893_v2 = vld [vmem:[%s31126_s1 + $0x238] sm:$0x11] }
 0x1e7   : > { %v1179_v13 = vpop.f32.mrf.mxu0  ;;  %v17913_v6 = vcombine.high %v17893_v2, %v17893_v2  ;;  %v17912_v8 = vcombine.low %v17893_v2, %v17893_v2 }
 0x1e8   : > { %v1191_v14 = vpack.c.bf16 %v1179_v13, %v1176_v4  ;;  %v17911_v4 = vcombine.high %v17892_v53, %v17892_v53  ;;  %v21490_v13 = vld [vmem:[%s31126_s1 + $0x210] ss:$16 sps:$4 sm:$0xff]  }
 0x1e9   : > { %v1659_v5 = vsel %vm487_vm3, %v17912_v8, 0 }
 0x1ea   : > { %17861 = vmatmul.mubr.msk.bf16.vlgmr.msra.gmra.mxu1 %vm480_vm4, %v1191_v14  ;;  %17864 = vmatmul.mubr.msk.bf16.vlgmr.msra.gmra.mxu0 %vm480_vm4, %v1191_v14  ;;  %v21493_v14 = vld [vmem:[%s31126_s1 + $0x218] ss:$16 sps:$4 sm:$0xff]  }
 0x1eb   : > { %21271 = vmatpush3.bf16.msra.mxu1 %v24323_v28  ;;  %1362 = vmatprep.mubr.bf16.mxu1 %v31134_v1  ;;  %v24176_v28 = vld [vmem:[#allocation2 + $0x10] sm:$0xff]  }
 0x1ec   : > { %21272 = vmatprep.subr.bf16.mxu1 %v24175_v30  ;;  %1415 = vmatprep.mubr.bf16.mxu0 %v31134_v1 }
 0x1ed   : > { %17914 = vmatprep.subr.msk.bf16.mxu0 %vm487_vm3, %v17911_v4 }
 0x1ee   : > { %1671 = vmatpush1.bf16.msra.mxu0 %v1653_v63 }
 0x1ef   : > { %21273 = vmatpush3.bf16.msra.mxu1 %v24175_v30  ;;  %1672 = vmatprep.subr.bf16.mxu0 %v21492_v12  ;;  %v21499_v30 = vld [vmem:[%s31126_s1 + $0x1f8] ss:$16 sps:$4 sm:$0xff]  }
 0x1f0   : > { %21274 = vmatprep.subr.bf16.mxu1 %v24176_v28 }
 0x1f2   : > { %17862 = vmatmul.mubr.msk.bf16.gmra.mxu1 %vm480_vm4, %v1192_v24  ;;  %17865 = vmatmul.mubr.msk.bf16.gmra.mxu0 %vm480_vm4, %v1192_v24  ;;  %v21510_v24 = vld [vmem:[%s31126_s1 + $0x1b4] ss:$16 sps:$4 sm:$0xff]  }
 0x1f3   : > { %21275 = vmatpush3.bf16.msra.mxu1 %v24176_v28  ;;  %21280 = vmatprep.mubr.msk.bf16.mxu1 %vm480_vm4, %v1478_v23  ;;  %v21505_v23 = vld [vmem:[%s31126_s1 + $0x1d8] ss:$16 sps:$4 sm:$0xff]   ;;  %v21513_v28 = vld [vmem:[%s31126_s1 + $0x1bc] ss:$16 sps:$4 sm:$0xff]  }
 0x1f4   : > { %21276 = vmatprep.subr.bf16.mxu1 %v24177_v42  ;;  %1696 = vmatprep.mubr.bf16.mxu0 %v31134_v1 }
 0x1f5   : > { %1673 = vmatpush1.bf16.msra.mxu0 %v21490_v13 }
 0x1f6   : > { %1674 = vmatprep.subr.bf16.mxu0 %v21498_v15 }
 0x1f7   : > { %21277 = vmatpush3.bf16.msra.mxu1 %v24177_v42  ;;  %v24818_v42 = vpop.f32.mrf.mxu1 }
 0x1f8   : > { %21278 = vmatprep.subr.bf16.mxu1 %v24178_v47 }
 0x1f9   : > { %1675 = vmatpush1.bf16.msra.mxu0 %v21496_v59 }
 0x1fa   : > { %1676 = vmatprep.subr.bf16.mxu0 %v21504_v58 }
 0x1fb   : > { %21279 = vmatpush3.bf16.msra.mxu1 %v24178_v47 }
 0x1fc   : > { %17917 = vmatprep.subr.msk.bf16.mxu1 %vm487_vm3, %v17913_v6 }
 0x1fd   : > { %1677 = vmatpush1.bf16.msra.mxu0 %v21502_v20 }
 0x1fe   : > { %21281 = vmatmul.mubr.msk.bf16.vlgmr.msra.gmra.mxu1 %vm480_vm4, %v1479_v51  ;;  %1678 = vmatprep.subr.bf16.mxu0 %v21510_v24 }
 0x1ff   : > { %1749 = vmatprep.mubr.bf16.mxu1 %v31134_v1  ;;  %1724 = vmatpush1.bf16.msra.mxu1 %v1659_v5 }
 0x200   : > { %1725 = vmatprep.subr.bf16.mxu1 %v21495_v17 }
 0x201   : > { %1679 = vmatpush1.bf16.msra.mxu0 %v21508_v33 }
 0x203   : > { %1726 = vmatpush1.bf16.msra.mxu1 %v21493_v14 }
 0x204   : > { %1727 = vmatprep.subr.bf16.mxu1 %v21501_v31 }
 0x207   : > { %1728 = vmatpush1.bf16.msra.mxu1 %v21499_v30 }
 0x208   : > { %1729 = vmatprep.subr.bf16.mxu1 %v21507_v19 }
 0x20b   : > { %1730 = vmatpush1.bf16.msra.mxu1 %v21505_v23 }
 0x20c   : > { %1731 = vmatprep.subr.bf16.mxu1 %v21513_v28 }
 0x20f   : > { %1732 = vmatpush1.bf16.msra.mxu1 %v21511_v34 }
 0x2aa   : > { %v1354_v43 = vpop.f32.mrf.mxu1  ;;  %v1407_v20 = vpop.f32.mrf.mxu0 }
 0x2ab   : > { %v24821_v46 = vadd.f32 %v1354_v43, %v24697_v21 }
 0x2ac   : > { %v1356_v47 = vpop.f32.mrf.mxu1  ;;  %v1409_v23 = vpop.f32.mrf.mxu0 }
 0x2ad   : > { %v24824_v51 = vadd.f32 %v1356_v47, %v24701_v26  ;;  %v24872_v47 = vsub.s32 0, %v24298_v3 }
 0x2ae   : > { %v1358_v53 = vpop.f32.mrf.mxu1  ;;  %v1411_v24 = vpop.f32.mrf.mxu0 }
 0x2af   : > { %v24827_v2 = vadd.f32 %v1358_v53, %v24705_v36  ;;  %v24875_v53 = vsub.s32 2, %v24298_v3 }
 0x2b0   : > { %v24829_v4 = vpop.f32.mrf.mxu1  ;;  %v1413_v28 = vpop.f32.mrf.mxu0 }
 0x2b2   : > { %v1364_v6 = vpop.f32.mrf.mxu1  ;;  %v1417_v33 = vpop.f32.mrf.mxu0 }
 0x2b3   : > { %v24832_v7 = vadd.f32 %v1364_v6, %v24713_v44  ;;  %v398_v6 = vld [vmem:[%s31131_s6] ss:$4 sm:$0xf] }
 0x2b4   : > { %v1366_v8 = vpop.f32.mrf.mxu1  ;;  %v1419_v34 = vpop.f32.mrf.mxu0 }
 0x2b5   : > { %v24835_v63 = vadd.f32 %v1366_v8, %v24717_v49  ;;  %v1941_v49 = vld [vmem:[#allocation3 + $0x50] sm:$0x11] }
 0x2b6   : > { %v1368_v21 = vpop.f32.mrf.mxu1  ;;  %v24850_v59 = vcombine.high %v1941_v49, %v1941_v49  ;;  %v17941_v30 = vcombine.low %v1941_v49, %v1941_v49  ;;  %v1421_v43 = vpop.f32.mrf.mxu0  ;;  %v1043_v49 = vadd.f32 %v24728_v61, %v24693_v16 }
 0x2b7   : > { %v24838_v5 = vadd.f32 %v1368_v21, %v24721_v55  ;;  %v1942_v55 = vld [vmem:[#allocation3 + $0x58] sm:$0x11]  ;;  %v24883_v21 = vsub.s32 1, %v24298_v3 }
 0x2b8   : > { %v24840_v26 = vpop.f32.mrf.mxu1  ;;  %v24852_v15 = vcombine.high %v1942_v55, %v1942_v55  ;;  %v17943_v31 = vcombine.low %v1942_v55, %v1942_v55  ;;  %17946 = vmatprep.subr.msk.bf16.mxu0 %vm487_vm3, %v24850_v59  ;;  %v24859_v58 = vsel %vm487_vm3, %v17941_v30, 0  ;;  %v24880_v8 = vpop.f32.mrf.mxu0  ;;  %v1429_v30 = vadd.f32 %v1409_v23, %v24703_v27 }
 0x2b9   : > { %v1440_v23 = vadd.f32 %v1421_v43, %v24723_v56 }
 0x2ba   : > { %17948 = vmatprep.subr.msk.bf16.mxu1 %vm487_vm3, %v24852_v15  ;;  %v24862_v19 = vsel %vm487_vm3, %v17943_v31, 0  ;;  %v1432_v31 = vadd.f32 %v1411_v24, %v24707_v37  ;;  %v24922_v24 = vadd.f32 %v24840_v26, %v1043_v49 }
 0x2be   : > { %v21282_v12 = vpop.f32.mrf.mxu1 }
 0x2c0   : > { %v1520_v17 = vpop.f32.mrf.mxu1 }
 0x2c2   : > { %v21283_v36 = vpop.f32.mrf.mxu1 }
 0x2c3   : > { %v1536_v44 = vpack.c.bf16 %v21283_v36, %v21282_v12  ;;  %v24886_v12 = vsub.s32 3, %v24298_v3  ;;  %v24890_v36 = vrot.slane %v398_v6, %v24872_v47  ;;  %v24903_v3 = vadd.f32 %v24818_v42, %v24695_v18 }
 0x2c4   : > { %v1523_v13 = vpop.f32.mrf.mxu1 }
 0x2c5   : > { %v1535_v14 = vpack.c.bf16 %v1523_v13, %v1520_v17  ;;  %v1428_v17 = vadd.f32 %v1407_v20, %v24699_v22  ;;  %v24893_v13 = vrot.slane %v398_v6, %v24875_v53  ;;  %v24913_v18 = vrot.slane %v398_v6, %v24886_v12 }
 0x2c7   : > { %17915 = vmatmul.mubr.msk.bf16.vlgmr.msra.gmra.mxu0 %vm480_vm4, %v1535_v14  ;;  %17918 = vmatmul.mubr.msk.bf16.vlgmr.msra.gmra.mxu1 %vm480_vm4, %v1535_v14  ;;  %v1033_v14 = vadd.f32 %v24709_v38, %v24689_v9 }
 0x2c8   : > { %1706 = vmatprep.mubr.bf16.mxu0 %v31134_v1  ;;  %1759 = vmatprep.mubr.bf16.mxu1 %v31134_v1 }
 0x2c9   : > { %2052 = vmatpush1.bf16.msra.mxu0 %v24859_v58  ;;  %2095 = vmatpush1.bf16.msra.mxu1 %v24862_v19  ;;  %v1431_v9 = vadd.f32 %v24829_v4, %v1033_v14  ;;  %v1437_v4 = vadd.f32 %v1419_v34, %v24719_v52 }
 0x2cf   : > { %17916 = vmatmul.mubr.msk.bf16.gmra.mxu0 %vm480_vm4, %v1536_v44  ;;  %17919 = vmatmul.mubr.msk.bf16.gmra.mxu1 %vm480_vm4, %v1536_v44  ;;  %vm331_vm4 = vcmask 253952   ;;  %v1086_v44 = vadd.f32 %v24711_v39, %v24691_v10  ;;  %v24910_v39 = vrot.slane %v398_v6, %v24883_v21 }
 0x2d0   : > { %2073 = vmatprep.mubr.bf16.mxu0 %v31134_v1  ;;  %2116 = vmatprep.mubr.bf16.mxu1 %v31134_v1  ;;  %332 = vst.msk [vmem:[#allocation3 + $0x60] sm:$0x1] %vm331_vm4, %v31134_v1 }
 0x2d1   : > { %v1433_v38 = vadd.f32 %v1413_v28, %v1086_v44 }
 0x387   : > { %v1698_v22 = vpop.f32.mrf.mxu0  ;;  %v1751_v55 = vpop.f32.mrf.mxu1 }
 0x388   : > { %v1770_v20 = vadd.f32 %v1698_v22, %v24821_v46  ;;  %v1772_v1 = vadd.f32 %v1751_v55, %v1428_v17  ;;  %v1436_v46 = vadd.f32 %v1417_v33, %v24715_v45 }
 0x389   : > { %v1700_v10 = vpop.f32.mrf.mxu0  ;;  %v1753_v16 = vpop.f32.mrf.mxu1 }
 0x38a   : > { %v1807_v61 = vadd.f32 %v24890_v36, %v1770_v20  ;;  %v1809_v27 = vadd.f32 %v24893_v13, %v1772_v1  ;;  %v1771_v37 = vadd.f32 %v1700_v10, %v24824_v51  ;;  %v1773_v42 = vadd.f32 %v1753_v16, %v1429_v30 }
 0x38b   : > { %v1702_v28 = vpop.f32.mrf.mxu0  ;;  %v1755_v17 = vpop.f32.mrf.mxu1 }
 0x38c   : > { %vm1823_vm13 = vcmp.gt.f32.partialorder %v1807_v61, 0.0  ;;  %v1839_v6 = vmul.f32 0.1, %v1807_v61  ;;  %vm1825_vm14 = vcmp.gt.f32.partialorder %v1809_v27, 0.0  ;;  %v1841_v14 = vmul.f32 0.1, %v1809_v27 }
 0x38d   : > { %v1808_v1 = vadd.f32 %v24910_v39, %v1771_v37  ;;  %v1810_v51 = vadd.f32 %v24913_v18, %v1773_v42  ;;  %v1774_v44 = vadd.f32 %v1702_v28, %v24827_v2  ;;  %v1776_v45 = vadd.f32 %v1755_v17, %v1432_v31  ;;  %v1704_v33 = vpop.f32.mrf.mxu0  ;;  %v1757_v52 = vpop.f32.mrf.mxu1 }
 0x38e   : > { %v24927_v34 = vsel %vm1823_vm13, %v1807_v61, %v1839_v6  ;;  %v24929_v56 = vsel %vm1825_vm14, %v1809_v27, %v1841_v14  ;;  %v1775_v26 = vadd.f32 %v1704_v33, %v1431_v9  ;;  %v1777_v43 = vadd.f32 %v1757_v52, %v1433_v38 }
 0x38f   : > { %vm1824_vm15 = vcmp.gt.f32.partialorder %v1808_v1, 0.0  ;;  %v1840_v49 = vmul.f32 0.1, %v1808_v1  ;;  %vm1826_vm6 = vcmp.gt.f32.partialorder %v1810_v51, 0.0  ;;  %v1842_v22 = vmul.f32 0.1, %v1810_v51  ;;  %v1708_v55 = vpop.f32.mrf.mxu0  ;;  %v1761_v30 = vpop.f32.mrf.mxu1 }
 0x390   : > { %v1811_v20 = vadd.f32 %v24890_v36, %v1774_v44  ;;  %v1813_v10 = vadd.f32 %v24893_v13, %v1776_v45  ;;  %v1812_v2 = vadd.f32 %v24910_v39, %v1775_v26  ;;  %v1814_v31 = vadd.f32 %v24913_v18, %v1777_v43 }
 0x391   : > { %v1856_v16 = vsel %vm1824_vm15, %v1808_v1, %v1840_v49  ;;  %v1858_v61 = vsel %vm1826_vm6, %v1810_v51, %v1842_v22  ;;  %v1778_v27 = vadd.f32 %v1708_v55, %v24832_v7  ;;  %v1780_v9 = vadd.f32 %v1761_v30, %v1436_v46  ;;  %v1710_v38 = vpop.f32.mrf.mxu0  ;;  %v1763_v37 = vpop.f32.mrf.mxu1 }
 0x392   : > { %vm1827_vm7 = vcmp.gt.f32.partialorder %v1811_v20, 0.0  ;;  %v1843_v42 = vmul.f32 0.1, %v1811_v20  ;;  %vm1829_vm8 = vcmp.gt.f32.partialorder %v1813_v10, 0.0  ;;  %v1845_v28 = vmul.f32 0.1, %v1813_v10 }
 0x393   : > { %vm1828_vm9 = vcmp.gt.f32.partialorder %v1812_v2, 0.0  ;;  %v1844_v17 = vmul.f32 0.1, %v1812_v2  ;;  %v1712_v6 = vpop.f32.mrf.mxu0  ;;  %v1765_v14 = vpop.f32.mrf.mxu1  ;;  %vm1830_vm5 = vcmp.gt.f32.partialorder %v1814_v31, 0.0  ;;  %v1846_v45 = vmul.f32 0.1, %v1814_v31 }
 0x394   : > { %v1859_v44 = vsel %vm1827_vm7, %v1811_v20, %v1843_v42  ;;  %v1815_v33 = vadd.f32 %v24890_v36, %v1778_v27  ;;  %v1861_v1 = vsel %vm1829_vm8, %v1813_v10, %v1845_v28  ;;  %v1817_v7 = vadd.f32 %v24893_v13, %v1780_v9 }
 0x395   : > { %v1860_v51 = vsel %vm1828_vm9, %v1812_v2, %v1844_v17  ;;  %v1779_v46 = vadd.f32 %v1710_v38, %v24835_v63  ;;  %v1862_v52 = vsel %vm1830_vm5, %v1814_v31, %v1846_v45  ;;  %v1714_v43 = vpop.f32.mrf.mxu0  ;;  %v1441_v49 = vadd.f32 %v24880_v8, %v24903_v3  ;;  %v1767_v55 = vpop.f32.mrf.mxu1 }
 0x396   : > { %vm1831_vm10 = vcmp.gt.f32.partialorder %v1815_v33, 0.0  ;;  %v1847_v26 = vmul.f32 0.1, %v1815_v33  ;;  %vm1833_vm11 = vcmp.gt.f32.partialorder %v1817_v7, 0.0  ;;  %v1849_v30 = vmul.f32 0.1, %v1817_v7 }
 0x397   : > { %v1816_v22 = vadd.f32 %v24910_v39, %v1779_v46  ;;  %v1781_v20 = vadd.f32 %v1763_v37, %v1437_v4  ;;  %v1782_v10 = vadd.f32 %v1712_v6, %v24838_v5  ;;  %v1784_v2 = vadd.f32 %v1765_v14, %v1440_v23 }
 0x398   : > { %v1863_v27 = vsel %vm1831_vm10, %v1815_v33, %v1847_v26  ;;  %v1783_v63 = vadd.f32 %v1714_v43, %v24922_v24  ;;  %v1785_v3 = vadd.f32 %v1767_v55, %v1441_v49  ;;  %v24948_v17 = vpack.c.bf16 %v1860_v51, %v1856_v16  ;;  %v21520_v26 = vld [vmem:[#allocation3 + $0x10] ss:$20 sps:$4 sm:$0xff]   ;;  %v21521_v49 = vld [vmem:[%s31127_s2 + $0x520] ss:$16 sps:$4 sm:$0xff]  }
 0x399   : > { %vm1832_vm1 = vcmp.gt.f32.partialorder %v1816_v22, 0.0  ;;  %v1848_v9 = vmul.f32 0.1, %v1816_v22  ;;  %v1818_v31 = vadd.f32 %v24913_v18, %v1781_v20  ;;  %v1819_v38 = vadd.f32 %v24890_v36, %v1782_v10  ;;  %v21532_v43 = vld [vmem:[%s31127_s2 + $0x724] ss:$16 sps:$4 sm:$0xff]  }
 0x39a   : > { %v1821_v8 = vadd.f32 %v24893_v13, %v1784_v2  ;;  %v1820_v28 = vadd.f32 %v24910_v39, %v1783_v63  ;;  %v24950_v4 = vpack.c.bf16 %v1862_v52, %v1858_v61  ;;  %v1865_v5 = vsel %vm1833_vm11, %v1817_v7, %v1849_v30  ;;  %v21530_v55 = vld [vmem:[%s31127_s2 + $0x720] ss:$16 sps:$4 sm:$0xff]   ;;  %v21538_v30 = vld [vmem:[%s31127_s2 + $0x704] ss:$16 sps:$4 sm:$0xff]  }
 0x39b   : > { %v1864_v42 = vsel %vm1832_vm1, %v1816_v22, %v1848_v9  ;;  %vm1834_vm4 = vcmp.gt.f32.partialorder %v1818_v31, 0.0  ;;  %v1850_v23 = vmul.f32 0.1, %v1818_v31  ;;  %vm1835_vm12 = vcmp.gt.f32.partialorder %v1819_v38, 0.0  ;;  %v21526_v22 = vld [vmem:[%s31127_s2 + $0x504] ss:$16 sps:$4 sm:$0xff]  }
 0x39c   : > { %v1851_v24 = vmul.f32 0.1, %v1819_v38  ;;  %v1853_v37 = vmul.f32 0.1, %v1821_v8  ;;  %vm1836_vm13 = vcmp.gt.f32.partialorder %v1820_v28, 0.0  ;;  %v1822_v13 = vadd.f32 %v24913_v18, %v1785_v3 }
 0x39d   : > { %v1866_v6 = vsel %vm1834_vm4, %v1818_v31, %v1850_v23  ;;  %v1852_v36 = vmul.f32 0.1, %v1820_v28  ;;  %v24955_v14 = vpack.c.bf16 %v1859_v44, %v24927_v34  ;;  %vm1837_vm14 = vcmp.gt.f32.partialorder %v1821_v8, 0.0  ;;  %v21524_v20 = vld [vmem:[%s31127_s2 + $0x500] ss:$16 sps:$4 sm:$0xff]  }
 0x39e   : > { %v24958_v39 = vpack.c.bf16 %v1861_v1, %v24929_v56  ;;  %v1867_v16 = vsel %vm1835_vm12, %v1819_v38, %v1851_v24  ;;  %vm1838_vm15 = vcmp.gt.f32.partialorder %v1822_v13, 0.0  ;;  %v1854_v45 = vmul.f32 0.1, %v1822_v13  ;;  %v21518_v56 = vld [vmem:[#allocation3 + $0x60] ss:$0 sps:$4 sm:$0x11]  }
 0x39f   : > { %v1868_v61 = vsel %vm1836_vm13, %v1820_v28, %v1852_v36  ;;  %v1869_v33 = vsel %vm1837_vm14, %v1821_v8, %v1853_v37  ;;  %v24962_v46 = vpack.c.bf16 %v1867_v16, %v1863_v27  ;;  %vm2022_vm6 = vcmask 277504   ;;  %v21519_v1 = vld [vmem:[#allocation3 + $0x38] ss:$20 sps:$4 sm:$0xff]   ;;  %v21529_v10 = vld [vmem:[%s31127_s2 + $0x4e4] ss:$16 sps:$4 sm:$0xff]  }
 0x3a0   : > { %v1870_v51 = vsel %vm1838_vm15, %v1822_v13, %v1854_v45  ;;  %v24960_v7 = vpack.c.bf16 %v1868_v61, %v1864_v42  ;;  %v24967_v34 = vpack.c.bf16 %v1869_v33, %v1865_v5  ;;  %v24977_v44 = vsel %vm487_vm3, %v21518_v56, 0  ;;  %v21536_v2 = vld [vmem:[%s31127_s2 + $0x700] ss:$16 sps:$4 sm:$0xff]   ;;  %v21544_v27 = vld [vmem:[%s31127_s2 + $0x6e4] ss:$16 sps:$4 sm:$0xff]  }
 0x3a1   : > { %v24965_v18 = vpack.c.bf16 %v1870_v51, %v1866_v6  ;;  %vm24204_vm7 = vmmov 0   ;;  %v31139_v52 = vmov 0   ;;  %v21535_v9 = vld [vmem:[%s31127_s2 + $0x4c4] ss:$16 sps:$4 sm:$0xff]   ;;  %v21542_v63 = vld [vmem:[%s31127_s2 + $0x6e0] ss:$16 sps:$4 sm:$0xff]   ;;  %vm4484_vm5 = vcmp.eq.s32.totalorder %v24315_v25, %v24523_v11 }
 0x3a2   : > { %2053 = vmatprep.subr.bf16.mxu0 %v24960_v7  ;;  %v21550_v31 = vld [vmem:[%s31127_s2 + $0x6c4] ss:$16 sps:$4 sm:$0xff]   ;;  %v21533_v38 = vld [vmem:[%s31127_s2 + $0x4c0] ss:$16 sps:$4 sm:$0xff]   ;;  %vm3274_vm8 = vcmask 261120   ;;  %vm4477_vm9 = vcmp.eq.s32.totalorder %v24564_v40, 33  ;;  %vm5718_vm1 = vcmp.eq.s32.totalorder %v24315_v25, %v24687_v62 }
 0x3a3   : > { %2054 = vmatpush1.bf16.msra.mxu0 %v24962_v46  ;;  %2096 = vmatprep.subr.bf16.mxu1 %v24965_v18  ;;  %v21541_v8 = vld [vmem:[%s31127_s2 + $0x4a4] ss:$16 sps:$4 sm:$0xff]   ;;  %v21548_v3 = vld [vmem:[%s31127_s2 + $0x6c0] ss:$16 sps:$4 sm:$0xff]   ;;  %v18371_v11 = vsel %vm4484_vm5, 1.0, %v31136_v41  ;;  %vm5711_vm11 = vcmp.eq.s32.totalorder %v24726_v57, 33 }
 0x3a4   : > { %2055 = vmatprep.subr.bf16.mxu0 %v24948_v17  ;;  %2097 = vmatpush1.bf16.msra.mxu1 %v24967_v34  ;;  %v21556_v42 = vld [vmem:[%s31127_s2 + $0x6a4] ss:$16 sps:$4 sm:$0xff]   ;;  %v21539_v28 = vld [vmem:[%s31127_s2 + $0x4a0] ss:$16 sps:$4 sm:$0xff]   ;;  %vm342_vm12 = vcmask 516096  }
 0x3a5   : > { %2098 = vmatprep.subr.bf16.mxu1 %v24950_v4  ;;  %v21547_v5 = vld [vmem:[%s31127_s2 + $0x484] ss:$16 sps:$4 sm:$0xff]   ;;  %v21554_v23 = vld [vmem:[%s31127_s2 + $0x6a0] ss:$16 sps:$4 sm:$0xff]   ;;  %343 = vst.msk [vmem:[#allocation4 + $0x38] sm:$0x1] %vm342_vm12, %v31139_v52 }
 0x3a6   : > { %v21562_v24 = vld [vmem:[%s31127_s2 + $0x684] ss:$16 sps:$4 sm:$0xff]   ;;  %v21545_v37 = vld [vmem:[%s31127_s2 + $0x480] ss:$16 sps:$4 sm:$0xff]   ;;  %vm8375_vm12 = vcmask 523264  }
 0x3a7   : > { %2056 = vmatpush1.bf16.msra.mxu0 %v24955_v14  ;;  %v21553_v6 = vld [vmem:[%s31127_s2 + $0x464] ss:$16 sps:$4 sm:$0xff]   ;;  %v21560_v36 = vld [vmem:[%s31127_s2 + $0x680] ss:$16 sps:$4 sm:$0xff]  }
 0x3a8   : > { %21284 = vmatprep.subr.bf16.mxu0 %v31136_v41  ;;  %2099 = vmatpush1.bf16.msra.mxu1 %v24958_v39  ;;  %v21568_v13 = vld [vmem:[%s31127_s2 + $0x664] ss:$16 sps:$4 sm:$0xff]   ;;  %v21551_v16 = vld [vmem:[%s31127_s2 + $0x460] ss:$16 sps:$4 sm:$0xff]  }
 0x3a9   : > { %17953 = vmatprep.subr.msk.bf16.mxu1 %vm487_vm3, %v24850_v59  ;;  %v21559_v61 = vld [vmem:[%s31127_s2 + $0x444] ss:$16 sps:$4 sm:$0xff]   ;;  %v21566_v45 = vld [vmem:[%s31127_s2 + $0x660] ss:$16 sps:$4 sm:$0xff]  }
 0x3aa   : > { %17947 = vmatmul.mubr.msk.bf16.vlgmr.msra.gmra.mxu0 %vm2022_vm6, %v24433_v29  ;;  %v21574_v33 = vld [vmem:[%s31127_s2 + $0x644] ss:$16 sps:$4 sm:$0xff]   ;;  %v21557_v51 = vld [vmem:[%s31127_s2 + $0x440] ss:$16 sps:$4 sm:$0xff]  }
 0x3ab   : > { %21285 = vmatpush3.bf16.msra.mxu0 %v24977_v44  ;;  %21290 = vmatprep.mubr.msk.bf16.mxu0 %vm24204_vm7, %v31136_v41  ;;  %v21565_v56 = vld [vmem:[%s31127_s2 + $0x624] ss:$16 sps:$4 sm:$0xff]  }
 0x3ac   : > { %17949 = vmatmul.mubr.msk.bf16.vlgmr.msra.gmra.mxu1 %vm2022_vm6, %v24433_v29  ;;  %21286 = vmatprep.subr.bf16.mxu0 %v31136_v41 }
 0x3ad   : > { %2336 = vmatpush1.bf16.msra.mxu1 %v24859_v58  ;;  %2357 = vmatprep.mubr.bf16.mxu1 %v31139_v52 }
 0x3ae   : > { %2337 = vmatprep.subr.bf16.mxu1 %v24960_v7 }
 0x3af   : > { %21287 = vmatpush3.bf16.msra.mxu0 %v21519_v1 }
 0x3b0   : > { %21288 = vmatprep.subr.bf16.mxu0 %v31136_v41 }
 0x3b1   : > { %2338 = vmatpush1.bf16.msra.mxu1 %v24962_v46 }
 0x3b2   : > { %2339 = vmatprep.subr.bf16.mxu1 %v24948_v17 }
 0x3b3   : > { %21289 = vmatpush3.bf16.msra.mxu0 %v21520_v26 }
 0x3b4   : > { %17955 = vmatprep.subr.msk.bf16.mxu0 %vm487_vm3, %v24852_v15 }
 0x3b5   : > { %2340 = vmatpush1.bf16.msra.mxu1 %v24955_v14 }
 0x3b6   : > { %21291 = vmatmul.mubr.msk.bf16.vlgmr.msra.gmra.mxu0 %vm2022_vm6, %v24433_v29  ;;  %21294 = vmatprep.subr.bf16.mxu1 %v31136_v41  ;;  %v21523_v29 = vld [vmem:[%s31127_s2 + $0x524] ss:$16 sps:$4 sm:$0xff]  }
 0x3b7   : > { %2379 = vmatpush1.bf16.msra.mxu0 %v24862_v19  ;;  %2400 = vmatprep.mubr.bf16.mxu0 %v31139_v52 }
 0x3b8   : > { %17954 = vmatmul.mubr.msk.bf16.vlgmr.msra.gmra.mxu1 %vm2022_vm6, %v24365_v50  ;;  %2380 = vmatprep.subr.bf16.mxu0 %v24965_v18 }
 0x3b9   : > { %21295 = vmatpush3.bf16.msra.mxu1 %v24977_v44  ;;  %21300 = vmatprep.mubr.msk.bf16.mxu1 %vm24204_vm7, %v31136_v41 }
 0x3ba   : > { %21296 = vmatprep.subr.bf16.mxu1 %v31136_v41 }
 0x3bb   : > { %2381 = vmatpush1.bf16.msra.mxu0 %v24967_v34 }
 0x3bc   : > { %2382 = vmatprep.subr.bf16.mxu0 %v24950_v4 }
 0x3bd   : > { %21297 = vmatpush3.bf16.msra.mxu1 %v21519_v1  ;;  %v21572_v1 = vld [vmem:[%s31127_s2 + $0x640] ss:$16 sps:$4 sm:$0xff]  }
 0x3be   : > { %21298 = vmatprep.subr.bf16.mxu1 %v31136_v41 }
 0x3bf   : > { %2383 = vmatpush1.bf16.msra.mxu0 %v24958_v39 }
 0x3c0   : > { %3278 = vmatprep.subr.bf16.mxu0 %v21523_v29  ;;  %v21571_v29 = vld [vmem:[%s31127_s2 + $0x604] ss:$16 sps:$4 sm:$0xff]  }
 0x3c1   : > { %21299 = vmatpush3.bf16.msra.mxu1 %v21520_v26  ;;  %v21563_v26 = vld [vmem:[%s31127_s2 + $0x620] ss:$16 sps:$4 sm:$0xff]  }
 0x3c2   : > { %17956 = vmatmul.mubr.msk.bf16.vlgmr.msra.gmra.mxu0 %vm2022_vm6, %v24365_v50  ;;  %3321 = vmatprep.subr.bf16.mxu1 %v21532_v43  ;;  %v21569_v43 = vld [vmem:[%s31127_s2 + $0x600] ss:$16 sps:$4 sm:$0xff]  }
 0x3c3   : > { %3279 = vmatpush1.bf16.msra.mxu0 %v21521_v49  ;;  %v21577_v49 = vld [vmem:[%s31127_s2 + $0x5e4] ss:$16 sps:$4 sm:$0xff]  }
 0x3c4   : > { %21301 = vmatmul.mubr.msk.bf16.vlgmr.msra.gmra.mxu1 %vm2022_vm6, %v24365_v50  ;;  %3280 = vmatprep.subr.bf16.mxu0 %v21526_v22  ;;  %v21527_v50 = vld [vmem:[%s31127_s2 + $0x4e0] ss:$16 sps:$4 sm:$0xff]  }
 0x3c5   : > { %3322 = vmatpush1.bf16.msra.mxu1 %v21530_v55  ;;  %v21575_v22 = vld [vmem:[%s31127_s2 + $0x5e0] ss:$16 sps:$4 sm:$0xff]  }
 0x3c6   : > { %3323 = vmatprep.subr.bf16.mxu1 %v21538_v30  ;;  %v21578_v55 = vld [vmem:[%s31127_s2 + $0x820] ss:$16 sps:$4 sm:$0xff]   ;;  %v21580_v30 = vld [vmem:[%s31127_s2 + $0x824] ss:$16 sps:$4 sm:$0xff]  }
 0x3c7   : > { %3281 = vmatpush1.bf16.msra.mxu0 %v21524_v20  ;;  %v21581_v20 = vld [vmem:[%s31127_s2 + $0x5c0] ss:$16 sps:$4 sm:$0xff]  }
 0x3c8   : > { %3282 = vmatprep.subr.bf16.mxu0 %v21529_v10  ;;  %v21583_v10 = vld [vmem:[%s31127_s2 + $0x5c4] ss:$16 sps:$4 sm:$0xff]  }
 0x3c9   : > { %3324 = vmatpush1.bf16.msra.mxu1 %v21536_v2  ;;  %v21584_v2 = vld [vmem:[%s31127_s2 + $0x800] ss:$16 sps:$4 sm:$0xff]  }
 0x3ca   : > { %3325 = vmatprep.subr.bf16.mxu1 %v21544_v27  ;;  %v21586_v27 = vld [vmem:[%s31127_s2 + $0x804] ss:$16 sps:$4 sm:$0xff]  }
 0x3cb   : > { %3283 = vmatpush1.bf16.msra.mxu0 %v21527_v50  ;;  %v21589_v50 = vld [vmem:[%s31127_s2 + $0x5a4] ss:$16 sps:$4 sm:$0xff]  }
 0x3cc   : > { %3284 = vmatprep.subr.bf16.mxu0 %v21535_v9  ;;  %v21587_v9 = vld [vmem:[%s31127_s2 + $0x5a0] ss:$16 sps:$4 sm:$0xff]  }
 0x3cd   : > { %3326 = vmatpush1.bf16.msra.mxu1 %v21542_v63  ;;  %v21592_v63 = vld [vmem:[%s31127_s2 + $0x7e4] ss:$16 sps:$4 sm:$0xff]  }
 0x3ce   : > { %3327 = vmatprep.subr.bf16.mxu1 %v21550_v31  ;;  %v21590_v31 = vld [vmem:[%s31127_s2 + $0x7e0] ss:$16 sps:$4 sm:$0xff]  }
 0x3cf   : > { %3285 = vmatpush1.bf16.msra.mxu0 %v21533_v38  ;;  %v21595_v38 = vld [vmem:[%s31127_s2 + $0x584] ss:$16 sps:$4 sm:$0xff]  }
 0x3d0   : > { %3286 = vmatprep.subr.bf16.mxu0 %v21541_v8  ;;  %v21593_v8 = vld [vmem:[%s31127_s2 + $0x580] ss:$16 sps:$4 sm:$0xff]  }
 0x3d1   : > { %3328 = vmatpush1.bf16.msra.mxu1 %v21548_v3  ;;  %v21596_v3 = vld [vmem:[%s31127_s2 + $0x7c0] ss:$16 sps:$4 sm:$0xff]  }
 0x3d2   : > { %3329 = vmatprep.subr.bf16.mxu1 %v21556_v42  ;;  %v21598_v42 = vld [vmem:[%s31127_s2 + $0x7c4] ss:$16 sps:$4 sm:$0xff]  }
 0x3d3   : > { %3287 = vmatpush1.bf16.msra.mxu0 %v21539_v28  ;;  %v21599_v28 = vld [vmem:[%s31127_s2 + $0x560] ss:$16 sps:$4 sm:$0xff]  }
 0x3d4   : > { %3288 = vmatprep.subr.bf16.mxu0 %v21547_v5  ;;  %v21601_v5 = vld [vmem:[%s31127_s2 + $0x564] ss:$16 sps:$4 sm:$0xff]  }
 0x3d5   : > { %3330 = vmatpush1.bf16.msra.mxu1 %v21554_v23  ;;  %v21602_v23 = vld [vmem:[%s31127_s2 + $0x7a0] ss:$16 sps:$4 sm:$0xff]  }
 0x3d6   : > { %3331 = vmatprep.subr.bf16.mxu1 %v21562_v24  ;;  %v21604_v24 = vld [vmem:[%s31127_s2 + $0x7a4] ss:$16 sps:$4 sm:$0xff]  }
 0x3d7   : > { %3289 = vmatpush1.bf16.msra.mxu0 %v21545_v37  ;;  %v21607_v37 = vld [vmem:[%s31127_s2 + $0x544] ss:$16 sps:$4 sm:$0xff]  }
 0x3d8   : > { %3290 = vmatprep.subr.bf16.mxu0 %v21553_v6  ;;  %v21605_v6 = vld [vmem:[%s31127_s2 + $0x540] ss:$16 sps:$4 sm:$0xff]  }
 0x3d9   : > { %3332 = vmatpush1.bf16.msra.mxu1 %v21560_v36  ;;  %v21608_v36 = vld [vmem:[%s31127_s2 + $0x780] ss:$16 sps:$4 sm:$0xff]  }
 0x3da   : > { %3333 = vmatprep.subr.bf16.mxu1 %v21568_v13  ;;  %v21610_v13 = vld [vmem:[%s31127_s2 + $0x784] ss:$16 sps:$4 sm:$0xff]  }
 0x3db   : > { %3291 = vmatpush1.bf16.msra.mxu0 %v21551_v16  ;;  %v21613_v16 = vld [vmem:[%s31127_s2 + $0x864] ss:$16 sps:$4 sm:$0xff]  }
 0x3dc   : > { %3292 = vmatprep.subr.bf16.mxu0 %v21559_v61  ;;  %v21614_v61 = vld [vmem:[%s31127_s2 + $0x760] ss:$16 sps:$4 sm:$0xff]  }
 0x3dd   : > { %3334 = vmatpush1.bf16.msra.mxu1 %v21566_v45  ;;  %v21616_v45 = vld [vmem:[%s31127_s2 + $0x764] ss:$16 sps:$4 sm:$0xff]  }
 0x3de   : > { %3335 = vmatprep.subr.bf16.mxu1 %v21574_v33  ;;  %v21620_v33 = vld [vmem:[%s31127_s2 + $0x740] ss:$16 sps:$4 sm:$0xff]  }
 0x3df   : > { %3293 = vmatpush1.bf16.msra.mxu0 %v21557_v51  ;;  %v21622_v51 = vld [vmem:[%s31127_s2 + $0x744] ss:$16 sps:$4 sm:$0xff]  }
 0x3e0   : > { %3294 = vmatprep.subr.bf16.mxu0 %v21565_v56  ;;  %v21628_v56 = vld [vmem:[%s31127_s2 + $0x52c] ss:$16 sps:$4 sm:$0xff]  }
 0x3e1   : > { %3336 = vmatpush1.bf16.msra.mxu1 %v21572_v1 }
 0x3e2   : > { %3337 = vmatprep.subr.bf16.mxu1 %v21580_v30 }
 0x3e3   : > { %3295 = vmatpush2.bf16.msra.mxu0 %v21563_v26 }
 0x3e4   : > { %3296 = vmatprep.subr.bf16.mxu0 %v21571_v29 }
 0x3e5   : > { %3338 = vmatpush2.bf16.msra.mxu1 %v21578_v55 }
 0x3e6   : > { %3339 = vmatprep.subr.bf16.mxu1 %v21586_v27 }
 0x3e7   : > { %3297 = vmatpush2.bf16.msra.mxu0 %v21569_v43 }
 0x3e8   : > { %3298 = vmatprep.subr.bf16.mxu0 %v21577_v49 }
 0x3e9   : > { %3340 = vmatpush2.bf16.msra.mxu1 %v21584_v2 }
 0x3ea   : > { %3341 = vmatprep.subr.bf16.mxu1 %v21592_v63 }
 0x3eb   : > { %3299 = vmatpush2.bf16.msra.mxu0 %v21575_v22 }
 0x3ec   : > { %3300 = vmatprep.subr.bf16.mxu0 %v21583_v10 }
 0x3ed   : > { %3342 = vmatpush2.bf16.msra.mxu1 %v21590_v31 }
 0x3ee   : > { %3343 = vmatprep.subr.bf16.mxu1 %v21598_v42 }
 0x3ef   : > { %3301 = vmatpush2.bf16.msra.mxu0 %v21581_v20 }
 0x3f0   : > { %3302 = vmatprep.subr.bf16.mxu0 %v21589_v50 }
 0x3f1   : > { %3344 = vmatpush2.bf16.msra.mxu1 %v21596_v3 }
 0x3f2   : > { %3345 = vmatprep.subr.bf16.mxu1 %v21604_v24 }
 0x3f3   : > { %3303 = vmatpush2.bf16.msra.mxu0 %v21587_v9 }
 0x3f4   : > { %3304 = vmatprep.subr.bf16.mxu0 %v21595_v38 }
 0x3f5   : > { %3346 = vmatpush2.bf16.msra.mxu1 %v21602_v23  ;;  %v21619_v23 = vld [vmem:[%s31127_s2 + $0x844] ss:$16 sps:$4 sm:$0xff]  }
 0x3f6   : > { %3347 = vmatprep.subr.bf16.mxu1 %v21610_v13  ;;  %v21625_v13 = vld [vmem:[%s31127_s2 + $0x72c] ss:$16 sps:$4 sm:$0xff]  }
 0x3f7   : > { %3305 = vmatpush2.bf16.msra.mxu0 %v21593_v8 }
 0x3f8   : > { %3306 = vmatprep.subr.bf16.mxu0 %v21601_v5 }
 0x3f9   : > { %3348 = vmatpush2.bf16.msra.mxu1 %v21608_v36 }
 0x3fa   : > { %3349 = vmatprep.subr.bf16.mxu1 %v21616_v45 }
 0x3fb   : > { %3307 = vmatpush2.bf16.msra.mxu0 %v21599_v28  ;;  %v21611_v28 = vld [vmem:[%s31127_s2 + $0x860] ss:$16 sps:$4 sm:$0xff]  }
 0x3fc   : > { %3308 = vmatprep.subr.bf16.mxu0 %v21607_v37  ;;  %v21617_v37 = vld [vmem:[%s31127_s2 + $0x840] ss:$16 sps:$4 sm:$0xff]  }
 0x3fd   : > { %3350 = vmatpush2.bf16.msra.mxu1 %v21614_v61 }
 0x3fe   : > { %3351 = vmatprep.subr.bf16.mxu1 %v21622_v51  ;;  %v21623_v51 = vld [vmem:[%s31127_s2 + $0x728] ss:$16 sps:$4 sm:$0xff]  }
 0x3ff   : > { %3309 = vmatpush2.bf16.msra.mxu0 %v21605_v6 }
 0x400   : > { %3376 = vmatprep.subr.bf16.mxu0 %v21613_v16 }
 0x401   : > { %3352 = vmatpush2.bf16.msra.mxu1 %v21620_v33 }
 0x402   : > { %3407 = vmatprep.subr.bf16.mxu1 %v21628_v56 }
 0x46a   : > { %v2075_v1 = vpop.f32.mrf.mxu0 }
 0x46c   : > { %v2118_v26 = vpop.f32.mrf.mxu1  ;;  %v25217_v29 = vpop.f32.mrf.mxu0 }
 0x46e   : > { %v25219_v43 = vpop.f32.mrf.mxu1  ;;  %v2079_v49 = vpop.f32.mrf.mxu0 }
 0x46f   : > { %v25221_v22 = vpack.c.bf16 %v2079_v49, %v2075_v1 }
 0x470   : > { %v2122_v55 = vpop.f32.mrf.mxu1  ;;  %v25225_v20 = vpop.f32.mrf.mxu0 }
 0x471   : > { %v25223_v30 = vpack.c.bf16 %v2122_v55, %v2118_v26  ;;  %v21631_v26 = vld [vmem:[%s31127_s2 + $0x70c] ss:$16 sps:$4 sm:$0xff]   ;;  %v21626_v55 = vld [vmem:[%s31127_s2 + $0x528] ss:$16 sps:$4 sm:$0xff]  }
 0x472   : > { %v25227_v10 = vpop.f32.mrf.mxu1 }
 0x476   : > { %v2161_v2 = vpop.f32.mrf.mxu0 }
 0x478   : > { %v2359_v27 = vpop.f32.mrf.mxu1  ;;  %v21292_v50 = vpop.f32.mrf.mxu0 }
 0x479   : > { %v21629_v50 = vld [vmem:[%s31127_s2 + $0x708] ss:$16 sps:$4 sm:$0xff]  }
 0x47a   : > { %v2361_v9 = vpop.f32.mrf.mxu1  ;;  %v2164_v63 = vpop.f32.mrf.mxu0 }
 0x47b   : > { %v25229_v31 = vpack.c.bf16 %v2164_v63, %v2161_v2  ;;  %v21632_v63 = vld [vmem:[%s31127_s2 + $0x508] ss:$16 sps:$4 sm:$0xff]  }
 0x47c   : > { %v2363_v38 = vpop.f32.mrf.mxu1  ;;  %v21293_v8 = vpop.f32.mrf.mxu0 }
 0x47d   : > { %v25234_v5 = vpack.c.bf16 %v2363_v38, %v2359_v27  ;;  %v21634_v27 = vld [vmem:[%s31127_s2 + $0x50c] ss:$16 sps:$4 sm:$0xff]   ;;  %v21635_v8 = vld [vmem:[%s31127_s2 + $0x6e8] ss:$16 sps:$4 sm:$0xff]  }
 0x47e   : > { %v2365_v3 = vpop.f32.mrf.mxu1  ;;  %v21640_v38 = vld [vmem:[%s31127_s2 + $0x4ec] ss:$16 sps:$4 sm:$0xff]  }
 0x47f   : > { %v2453_v42 = vpack.c.bf16 %v2365_v3, %v2361_v9  ;;  %v21637_v9 = vld [vmem:[%s31127_s2 + $0x6ec] ss:$16 sps:$4 sm:$0xff]  }
 0x480   : > { %v21643_v3 = vld [vmem:[%s31127_s2 + $0x6cc] ss:$16 sps:$4 sm:$0xff]  }
 0x481   : > { %3310 = vmatprep.mubr.bf16.mxu0 %v2453_v42 }
 0x482   : > { %3311 = vmatmul.mubr.bf16.vlgmr.msra.gmra.mxu0 %v25234_v5  ;;  %v2402_v24 = vpop.f32.mrf.mxu0 }
 0x483   : > { %3377 = vmatpush1.bf16.msra.mxu0 %v21611_v28  ;;  %3396 = vmatprep.mubr.bf16.mxu0 %v31139_v52  ;;  %v21646_v28 = vld [vmem:[%s31127_s2 + $0x4cc] ss:$16 sps:$4 sm:$0xff]  }
 0x484   : > { %v2445_v6 = vpop.f32.mrf.mxu1  ;;  %v2404_v36 = vpop.f32.mrf.mxu0  ;;  %3378 = vmatprep.subr.bf16.mxu0 %v21619_v23  ;;  %v21641_v23 = vld [vmem:[%s31127_s2 + $0x6c8] ss:$16 sps:$4 sm:$0xff]  }
 0x486   : > { %v21302_v16 = vpop.f32.mrf.mxu1  ;;  %v2406_v61 = vpop.f32.mrf.mxu0 }
 0x487   : > { %3379 = vmatpush1.bf16.msra.mxu0 %v21617_v37  ;;  %v25258_v2 = vpack.c.bf16 %v2406_v61, %v2402_v24  ;;  %v21649_v24 = vld [vmem:[%s31127_s2 + $0x6ac] ss:$16 sps:$4 sm:$0xff]   ;;  %v21644_v37 = vld [vmem:[%s31127_s2 + $0x4c8] ss:$16 sps:$4 sm:$0xff]  }
 0x488   : > { %v2448_v45 = vpop.f32.mrf.mxu1  ;;  %v2408_v33 = vpop.f32.mrf.mxu0  ;;  %3450 = vmatprep.subr.bf16.mxu0 %v21625_v13  ;;  %v21655_v13 = vld [vmem:[%s31127_s2 + $0x68c] ss:$16 sps:$4 sm:$0xff]   ;;  %v21650_v16 = vld [vmem:[%s31127_s2 + $0x4a8] ss:$16 sps:$4 sm:$0xff]  }
 0x489   : > { %v25250_v56 = vpack.c.bf16 %v2448_v45, %v2445_v6  ;;  %v2455_v1 = vpack.c.bf16 %v2408_v33, %v2404_v36  ;;  %v21652_v6 = vld [vmem:[%s31127_s2 + $0x4ac] ss:$16 sps:$4 sm:$0xff]   ;;  %v21647_v36 = vld [vmem:[%s31127_s2 + $0x6a8] ss:$16 sps:$4 sm:$0xff]  }
 0x48a   : > { %v21303_v49 = vpop.f32.mrf.mxu1  ;;  %v21658_v61 = vld [vmem:[%s31127_s2 + $0x48c] ss:$16 sps:$4 sm:$0xff]   ;;  %v21653_v45 = vld [vmem:[%s31127_s2 + $0x688] ss:$16 sps:$4 sm:$0xff]  }
 0x48b   : > { %18230 = vmatmul.mubr.msk.bf16.vlgmr.msra.gmra.mxu0 %vm3274_vm8, %v25250_v56  ;;  %3353 = vmatprep.mubr.bf16.mxu1 %v2455_v1  ;;  %v21661_v33 = vld [vmem:[%s31127_s2 + $0x66c] ss:$16 sps:$4 sm:$0xff]  }
 0x48c   : > { %3451 = vmatpush1.bf16.msra.mxu0 %v21623_v51  ;;  %3482 = vmatprep.mubr.bf16.mxu0 %v2455_v1  ;;  %v21656_v51 = vld [vmem:[%s31127_s2 + $0x488] ss:$16 sps:$4 sm:$0xff]   ;;  %v21664_v1 = vld [vmem:[%s31127_s2 + $0x46c] ss:$16 sps:$4 sm:$0xff]  }
 0x48d   : > { %3354 = vmatmul.mubr.bf16.vlgmr.msra.gmra.mxu1 %v25258_v2  ;;  %3452 = vmatprep.subr.bf16.mxu0 %v21631_v26  ;;  %v21659_v26 = vld [vmem:[%s31127_s2 + $0x668] ss:$16 sps:$4 sm:$0xff]   ;;  %v21667_v49 = vld [vmem:[%s31127_s2 + $0x64c] ss:$16 sps:$4 sm:$0xff]  }
 0x48e   : > { %3408 = vmatpush1.bf16.msra.mxu1 %v21626_v55  ;;  %3439 = vmatprep.mubr.bf16.mxu1 %v2453_v42  ;;  %v21638_v42 = vld [vmem:[%s31127_s2 + $0x4e8] ss:$16 sps:$4 sm:$0xff]  }
 0x48f   : > { %3409 = vmatprep.subr.bf16.mxu1 %v21634_v27  ;;  %v21662_v55 = vld [vmem:[%s31127_s2 + $0x468] ss:$16 sps:$4 sm:$0xff]   ;;  %v21670_v27 = vld [vmem:[%s31127_s2 + $0x44c] ss:$16 sps:$4 sm:$0xff]  }
 0x490   : > { %3453 = vmatpush1.bf16.msra.mxu0 %v21629_v50  ;;  %v21665_v50 = vld [vmem:[%s31127_s2 + $0x648] ss:$16 sps:$4 sm:$0xff]  }
 0x491   : > { %3454 = vmatprep.subr.bf16.mxu0 %v21637_v9  ;;  %v21673_v9 = vld [vmem:[%s31127_s2 + $0x82c] ss:$16 sps:$4 sm:$0xff]  }
 0x492   : > { %3410 = vmatpush1.bf16.msra.mxu1 %v21632_v63  ;;  %v21668_v63 = vld [vmem:[%s31127_s2 + $0x448] ss:$16 sps:$4 sm:$0xff]  }
 0x493   : > { %3411 = vmatprep.subr.bf16.mxu1 %v21640_v38  ;;  %v21676_v38 = vld [vmem:[%s31127_s2 + $0x62c] ss:$16 sps:$4 sm:$0xff]  }
 0x494   : > { %3455 = vmatpush1.bf16.msra.mxu0 %v21635_v8  ;;  %v21671_v8 = vld [vmem:[%s31127_s2 + $0x828] ss:$16 sps:$4 sm:$0xff]  }
 0x495   : > { %3456 = vmatprep.subr.bf16.mxu0 %v21643_v3  ;;  %v21679_v3 = vld [vmem:[%s31127_s2 + $0x80c] ss:$16 sps:$4 sm:$0xff]  }
 0x496   : > { %3412 = vmatpush1.bf16.msra.mxu1 %v21638_v42  ;;  %v21674_v42 = vld [vmem:[%s31127_s2 + $0x628] ss:$16 sps:$4 sm:$0xff]  }
 0x497   : > { %3413 = vmatprep.subr.bf16.mxu1 %v21646_v28  ;;  %v21682_v28 = vld [vmem:[%s31127_s2 + $0x60c] ss:$16 sps:$4 sm:$0xff]  }
 0x498   : > { %3457 = vmatpush1.bf16.msra.mxu0 %v21641_v23  ;;  %v21677_v23 = vld [vmem:[%s31127_s2 + $0x808] ss:$16 sps:$4 sm:$0xff]  }
 0x499   : > { %3458 = vmatprep.subr.bf16.mxu0 %v21649_v24  ;;  %v21685_v24 = vld [vmem:[%s31127_s2 + $0x7ec] ss:$16 sps:$4 sm:$0xff]  }
 0x49a   : > { %3414 = vmatpush1.bf16.msra.mxu1 %v21644_v37  ;;  %v21680_v37 = vld [vmem:[%s31127_s2 + $0x608] ss:$16 sps:$4 sm:$0xff]  }
 0x49b   : > { %3415 = vmatprep.subr.bf16.mxu1 %v21652_v6  ;;  %v21688_v6 = vld [vmem:[%s31127_s2 + $0x5ec] ss:$16 sps:$4 sm:$0xff]  }
 0x49c   : > { %3459 = vmatpush1.bf16.msra.mxu0 %v21647_v36  ;;  %v21683_v36 = vld [vmem:[%s31127_s2 + $0x7e8] ss:$16 sps:$4 sm:$0xff]  }
 0x49d   : > { %3460 = vmatprep.subr.bf16.mxu0 %v21655_v13  ;;  %v21691_v13 = vld [vmem:[%s31127_s2 + $0x7cc] ss:$16 sps:$4 sm:$0xff]  }
 0x49e   : > { %3416 = vmatpush1.bf16.msra.mxu1 %v21650_v16  ;;  %v21686_v16 = vld [vmem:[%s31127_s2 + $0x5e8] ss:$16 sps:$4 sm:$0xff]  }
 0x49f   : > { %3417 = vmatprep.subr.bf16.mxu1 %v21658_v61  ;;  %v21694_v61 = vld [vmem:[%s31127_s2 + $0x5cc] ss:$16 sps:$4 sm:$0xff]  }
 0x4a0   : > { %3461 = vmatpush1.bf16.msra.mxu0 %v21653_v45  ;;  %v21689_v45 = vld [vmem:[%s31127_s2 + $0x7c8] ss:$16 sps:$4 sm:$0xff]  }
 0x4a1   : > { %3462 = vmatprep.subr.bf16.mxu0 %v21661_v33  ;;  %v21697_v33 = vld [vmem:[%s31127_s2 + $0x7ac] ss:$16 sps:$4 sm:$0xff]  }
 0x4a2   : > { %3418 = vmatpush1.bf16.msra.mxu1 %v21656_v51  ;;  %v21692_v51 = vld [vmem:[%s31127_s2 + $0x5c8] ss:$16 sps:$4 sm:$0xff]  }
 0x4a3   : > { %3419 = vmatprep.subr.bf16.mxu1 %v21664_v1  ;;  %v21700_v1 = vld [vmem:[%s31127_s2 + $0x5ac] ss:$16 sps:$4 sm:$0xff]  }
 0x4a4   : > { %3463 = vmatpush1.bf16.msra.mxu0 %v21659_v26  ;;  %v21695_v26 = vld [vmem:[%s31127_s2 + $0x7a8] ss:$16 sps:$4 sm:$0xff]  }
 0x4a5   : > { %3464 = vmatprep.subr.bf16.mxu0 %v21667_v49  ;;  %v21703_v49 = vld [vmem:[%s31127_s2 + $0x78c] ss:$16 sps:$4 sm:$0xff]  }
 0x4a6   : > { %3420 = vmatpush1.bf16.msra.mxu1 %v21662_v55  ;;  %v21698_v55 = vld [vmem:[%s31127_s2 + $0x5a8] ss:$16 sps:$4 sm:$0xff]  }
 0x4a7   : > { %3421 = vmatprep.subr.bf16.mxu1 %v21670_v27  ;;  %v21706_v27 = vld [vmem:[%s31127_s2 + $0x58c] ss:$16 sps:$4 sm:$0xff]  }
 0x4a8   : > { %3465 = vmatpush1.bf16.msra.mxu0 %v21665_v50  ;;  %v21701_v50 = vld [vmem:[%s31127_s2 + $0x788] ss:$16 sps:$4 sm:$0xff]  }
 0x4a9   : > { %3466 = vmatprep.subr.bf16.mxu0 %v21673_v9  ;;  %v21709_v9 = vld [vmem:[%s31127_s2 + $0x76c] ss:$16 sps:$4 sm:$0xff]  }
 0x4aa   : > { %3422 = vmatpush1.bf16.msra.mxu1 %v21668_v63  ;;  %v21704_v63 = vld [vmem:[%s31127_s2 + $0x588] ss:$16 sps:$4 sm:$0xff]  }
 0x4ab   : > { %3423 = vmatprep.subr.bf16.mxu1 %v21676_v38  ;;  %v21712_v38 = vld [vmem:[%s31127_s2 + $0x56c] ss:$16 sps:$4 sm:$0xff]  }
 0x4ac   : > { %3467 = vmatpush2.bf16.msra.mxu0 %v21671_v8  ;;  %v21707_v8 = vld [vmem:[%s31127_s2 + $0x768] ss:$16 sps:$4 sm:$0xff]  }
 0x4ad   : > { %3468 = vmatprep.subr.bf16.mxu0 %v21679_v3  ;;  %v21715_v3 = vld [vmem:[%s31127_s2 + $0x74c] ss:$16 sps:$4 sm:$0xff]  }
 0x4ae   : > { %3424 = vmatpush2.bf16.msra.mxu1 %v21674_v42  ;;  %v21710_v42 = vld [vmem:[%s31127_s2 + $0x568] ss:$16 sps:$4 sm:$0xff]  }
 0x4af   : > { %3425 = vmatprep.subr.bf16.mxu1 %v21682_v28  ;;  %v21718_v28 = vld [vmem:[%s31127_s2 + $0x54c] ss:$16 sps:$4 sm:$0xff]  }
 0x4b0   : > { %3469 = vmatpush2.bf16.msra.mxu0 %v21677_v23  ;;  %v21713_v23 = vld [vmem:[%s31127_s2 + $0x748] ss:$16 sps:$4 sm:$0xff]  }
 0x4b1   : > { %3470 = vmatprep.subr.bf16.mxu0 %v21685_v24  ;;  %v21721_v24 = vld [vmem:[%s31127_s2 + $0xe4] ss:$16 sps:$4 sm:$0xff]  }
 0x4b2   : > { %3426 = vmatpush2.bf16.msra.mxu1 %v21680_v37  ;;  %v21716_v37 = vld [vmem:[%s31127_s2 + $0x548] ss:$16 sps:$4 sm:$0xff]  }
 0x4b3   : > { %3427 = vmatprep.subr.bf16.mxu1 %v21688_v6  ;;  %v21724_v6 = vld [vmem:[%s31127_s2 + $0x86c] ss:$16 sps:$4 sm:$0xff]  }
 0x4b4   : > { %3471 = vmatpush2.bf16.msra.mxu0 %v21683_v36  ;;  %v21719_v36 = vld [vmem:[%s31127_s2 + $0xe0] ss:$16 sps:$4 sm:$0xff]  }
 0x4b5   : > { %3472 = vmatprep.subr.bf16.mxu0 %v21691_v13  ;;  %v21727_v13 = vld [vmem:[%s31127_s2 + $0xc4] ss:$16 sps:$4 sm:$0xff]  }
 0x4b6   : > { %3428 = vmatpush2.bf16.msra.mxu1 %v21686_v16  ;;  %v25454_v16 = vpack.c.bf16 %v25225_v20, %v25217_v29  ;;  %v21725_v29 = vld [vmem:[%s31127_s2 + $0xc0] ss:$16 sps:$4 sm:$0xff]   ;;  %v21733_v20 = vld [vmem:[%s31127_s2 + $0xa4] ss:$16 sps:$4 sm:$0xff]  }
 0x4b7   : > { %3429 = vmatprep.subr.bf16.mxu1 %v21694_v61  ;;  %v21722_v61 = vld [vmem:[%s31127_s2 + $0x868] ss:$16 sps:$4 sm:$0xff]  }
 0x4b8   : > { %3473 = vmatpush2.bf16.msra.mxu0 %v21689_v45  ;;  %v21730_v45 = vld [vmem:[%s31127_s2 + $0x84c] ss:$16 sps:$4 sm:$0xff]  }
 0x4b9   : > { %3474 = vmatprep.subr.bf16.mxu0 %v21697_v33  ;;  %v21736_v33 = vld [vmem:[%s31127_s2 + $0x2e4] ss:$16 sps:$4 sm:$0xff]  }
 0x4ba   : > { %3430 = vmatpush2.bf16.msra.mxu1 %v21692_v51  ;;  %v21739_v51 = vld [vmem:[%s31127_s2 + $0x84] ss:$16 sps:$4 sm:$0xff]  }
 0x4bb   : > { %3431 = vmatprep.subr.bf16.mxu1 %v21700_v1  ;;  %v21734_v1 = vld [vmem:[%s31127_s2 + $0x2e0] ss:$16 sps:$4 sm:$0xff]  }
 0x4bc   : > { %3475 = vmatpush2.bf16.msra.mxu0 %v21695_v26  ;;  %v21742_v26 = vld [vmem:[%s31127_s2 + $0x2c4] ss:$16 sps:$4 sm:$0xff]  }
 0x4bd   : > { %3476 = vmatprep.subr.bf16.mxu0 %v21703_v49  ;;  %v25492_v49 = vpack.c.bf16 %v25227_v10, %v25219_v43  ;;  %v21740_v43 = vld [vmem:[%s31127_s2 + $0x2c0] ss:$16 sps:$4 sm:$0xff]   ;;  %v21748_v10 = vld [vmem:[%s31127_s2 + $0x2a4] ss:$16 sps:$4 sm:$0xff]  }
 0x4be   : > { %3432 = vmatpush2.bf16.msra.mxu1 %v21698_v55  ;;  %v21737_v55 = vld [vmem:[%s31127_s2 + $0x80] ss:$16 sps:$4 sm:$0xff]  }
 0x4bf   : > { %3433 = vmatprep.subr.bf16.mxu1 %v21706_v27  ;;  %v21745_v27 = vld [vmem:[%s31127_s2 + $0x64] ss:$16 sps:$4 sm:$0xff]  }
 0x4c0   : > { %3477 = vmatpush2.bf16.msra.mxu0 %v21701_v50  ;;  %v21751_v50 = vld [vmem:[%s31127_s2 + $0x44] ss:$16 sps:$4 sm:$0xff]  }
 0x4c1   : > { %3478 = vmatprep.subr.bf16.mxu0 %v21709_v9  ;;  %v21746_v9 = vld [vmem:[%s31127_s2 + $0x2a0] ss:$16 sps:$4 sm:$0xff]  }
 0x4c2   : > { %3434 = vmatpush2.bf16.msra.mxu1 %v21704_v63  ;;  %v21754_v63 = vld [vmem:[%s31127_s2 + $0x284] ss:$16 sps:$4 sm:$0xff]  }
 0x4c3   : > { %3435 = vmatprep.subr.bf16.mxu1 %v21712_v38  ;;  %v21749_v38 = vld [vmem:[%s31127_s2 + $0x40] ss:$16 sps:$4 sm:$0xff]  }
 0x4c4   : > { %3479 = vmatpush2.bf16.msra.mxu0 %v21707_v8  ;;  %v21757_v8 = vld [vmem:[%s31127_s2 + $0x24] ss:$16 sps:$4 sm:$0xff]  }
 0x4c5   : > { %3480 = vmatprep.subr.bf16.mxu0 %v21715_v3  ;;  %v21752_v3 = vld [vmem:[%s31127_s2 + $0x280] ss:$16 sps:$4 sm:$0xff]  }
 0x4c6   : > { %3436 = vmatpush2.bf16.msra.mxu1 %v21710_v42  ;;  %v21760_v42 = vld [vmem:[%s31127_s2 + $0x264] ss:$16 sps:$4 sm:$0xff]  }
 0x4c7   : > { %3437 = vmatprep.subr.bf16.mxu1 %v21718_v28  ;;  %v21755_v28 = vld [vmem:[%s31127_s2 + $0x20] ss:$16 sps:$4 sm:$0xff]  }
 0x4c8   : > { %3481 = vmatpush2.bf16.msra.mxu0 %v21713_v23  ;;  %v21763_v23 = vld [vmem:[%s31127_s2 + $0x4] ss:$16 sps:$4 sm:$0xff]  }
 0x4c9   : > { %4219 = vmatprep.subr.bf16.mxu0 %v21721_v24  ;;  %v21758_v24 = vld [vmem:[%s31127_s2 + $0x260] ss:$16 sps:$4 sm:$0xff]  }
 0x4ca   : > { %3438 = vmatpush2.bf16.msra.mxu1 %v21716_v37  ;;  %v21766_v37 = vld [vmem:[%s31127_s2 + $0x244] ss:$16 sps:$4 sm:$0xff]  }
 0x4cb   : > { %3483 = vmatmul.mubr.bf16.vlgmr.msra.gmra.mxu0 %v25258_v2  ;;  %3505 = vmatprep.subr.bf16.mxu1 %v21724_v6  ;;  %v21728_v2 = vld [vmem:[%s31127_s2 + $0x848] ss:$16 sps:$4 sm:$0xff]   ;;  %v21761_v6 = vld [vmem:[%s31127_s2] ss:$16 sps:$4 sm:$0xff]  }
 0x4cc   : > { %4220 = vmatpush1.bf16.msra.mxu0 %v21719_v36  ;;  %4251 = vmatprep.mubr.bf16.mxu0 %v25454_v16  ;;  %v21769_v36 = vld [vmem:[%s31127_s2 + $0x1e4] ss:$16 sps:$4 sm:$0xff]  }
 0x4cd   : > { %3440 = vmatmul.mubr.bf16.vlgmr.msra.gmra.mxu1 %v25234_v5  ;;  %4221 = vmatprep.subr.bf16.mxu0 %v21727_v13  ;;  %v21731_v5 = vld [vmem:[%s31127_s2 + $0xa0] ss:$16 sps:$4 sm:$0xff]  }
 0x4ce   : > { %3506 = vmatpush1.bf16.msra.mxu1 %v21722_v61  ;;  %3525 = vmatprep.mubr.bf16.mxu1 %v31139_v52  ;;  %v21764_v13 = vld [vmem:[%s31127_s2 + $0x240] ss:$16 sps:$4 sm:$0xff]   ;;  %v21772_v61 = vld [vmem:[%s31127_s2 + $0x224] ss:$16 sps:$4 sm:$0xff]  }
 0x4cf   : > { %3507 = vmatprep.subr.bf16.mxu1 %v21730_v45  ;;  %v21767_v45 = vld [vmem:[%s31127_s2 + $0x1e0] ss:$16 sps:$4 sm:$0xff]  }
 0x4d0   : > { %4222 = vmatpush1.bf16.msra.mxu0 %v21725_v29  ;;  %v21775_v29 = vld [vmem:[%s31127_s2 + $0x1c4] ss:$16 sps:$4 sm:$0xff]  }
 0x4d1   : > { %4223 = vmatprep.subr.bf16.mxu0 %v21733_v20  ;;  %v21770_v20 = vld [vmem:[%s31127_s2 + $0x220] ss:$16 sps:$4 sm:$0xff]  }
 0x4d2   : > { %3508 = vmatpush1.bf16.msra.mxu1 %v21728_v2  ;;  %v21778_v2 = vld [vmem:[%s31127_s2 + $0x204] ss:$16 sps:$4 sm:$0xff]  }
 0x4d3   : > { %4262 = vmatprep.subr.bf16.mxu1 %v21736_v33  ;;  %v21773_v33 = vld [vmem:[%s31127_s2 + $0x1c0] ss:$16 sps:$4 sm:$0xff]  }
 0x4d4   : > { %4224 = vmatpush1.bf16.msra.mxu0 %v21731_v5  ;;  %v21781_v5 = vld [vmem:[%s31127_s2 + $0x1a4] ss:$16 sps:$4 sm:$0xff]  }
 0x4d5   : > { %18231 = vmatmul.mubr.msk.bf16.vlgmr.msra.gmra.mxu1 %vm3274_vm8, %v25250_v56  ;;  %4225 = vmatprep.subr.bf16.mxu0 %v21739_v51  ;;  %v21743_v56 = vld [vmem:[%s31127_s2 + $0x60] ss:$16 sps:$4 sm:$0xff]  }
 0x4d6   : > { %4263 = vmatpush1.bf16.msra.mxu1 %v21734_v1  ;;  %4294 = vmatprep.mubr.bf16.mxu1 %v25492_v49  ;;  %v21776_v51 = vld [vmem:[%s31127_s2 + $0x200] ss:$16 sps:$4 sm:$0xff]   ;;  %v21784_v1 = vld [vmem:[%s31127_s2 + $0x3e4] ss:$16 sps:$4 sm:$0xff]  }
 0x4d7   : > { %4264 = vmatprep.subr.bf16.mxu1 %v21742_v26  ;;  %v21779_v26 = vld [vmem:[%s31127_s2 + $0x1a0] ss:$16 sps:$4 sm:$0xff]  }
 0x4d8   : > { %4226 = vmatpush1.bf16.msra.mxu0 %v21737_v55  ;;  %v21787_v55 = vld [vmem:[%s31127_s2 + $0x184] ss:$16 sps:$4 sm:$0xff]  }
 0x4d9   : > { %4227 = vmatprep.subr.bf16.mxu0 %v21745_v27  ;;  %v21782_v27 = vld [vmem:[%s31127_s2 + $0x3e0] ss:$16 sps:$4 sm:$0xff]  }
 0x4da   : > { %4265 = vmatpush1.bf16.msra.mxu1 %v21740_v43  ;;  %v21790_v43 = vld [vmem:[%s31127_s2 + $0x3c4] ss:$16 sps:$4 sm:$0xff]  }
 0x4db   : > { %4266 = vmatprep.subr.bf16.mxu1 %v21748_v10  ;;  %v21785_v10 = vld [vmem:[%s31127_s2 + $0x180] ss:$16 sps:$4 sm:$0xff]  }
 0x4dc   : > { %4228 = vmatpush1.bf16.msra.mxu0 %v21743_v56  ;;  %v21793_v56 = vld [vmem:[%s31127_s2 + $0x164] ss:$16 sps:$4 sm:$0xff]  }
 0x4dd   : > { %4229 = vmatprep.subr.bf16.mxu0 %v21751_v50  ;;  %v21788_v50 = vld [vmem:[%s31127_s2 + $0x3c0] ss:$16 sps:$4 sm:$0xff]  }
 0x4de   : > { %4267 = vmatpush1.bf16.msra.mxu1 %v21746_v9  ;;  %v21796_v9 = vld [vmem:[%s31127_s2 + $0x3a4] ss:$16 sps:$4 sm:$0xff]  }
 0x4df   : > { %4268 = vmatprep.subr.bf16.mxu1 %v21754_v63  ;;  %v21791_v63 = vld [vmem:[%s31127_s2 + $0x160] ss:$16 sps:$4 sm:$0xff]  }
 0x4e0   : > { %4230 = vmatpush1.bf16.msra.mxu0 %v21749_v38  ;;  %v21799_v38 = vld [vmem:[%s31127_s2 + $0x144] ss:$16 sps:$4 sm:$0xff]  }
 0x4e1   : > { %4231 = vmatprep.subr.bf16.mxu0 %v21757_v8  ;;  %v21794_v8 = vld [vmem:[%s31127_s2 + $0x3a0] ss:$16 sps:$4 sm:$0xff]  }
 0x4e2   : > { %4269 = vmatpush1.bf16.msra.mxu1 %v21752_v3  ;;  %v21802_v3 = vld [vmem:[%s31127_s2 + $0x384] ss:$16 sps:$4 sm:$0xff]  }
 0x4e3   : > { %4270 = vmatprep.subr.bf16.mxu1 %v21760_v42  ;;  %v21797_v42 = vld [vmem:[%s31127_s2 + $0x140] ss:$16 sps:$4 sm:$0xff]  }
 0x4e4   : > { %4232 = vmatpush1.bf16.msra.mxu0 %v21755_v28  ;;  %v21805_v28 = vld [vmem:[%s31127_s2 + $0x124] ss:$16 sps:$4 sm:$0xff]  }
 0x4e5   : > { %4233 = vmatprep.subr.bf16.mxu0 %v21763_v23  ;;  %v21800_v23 = vld [vmem:[%s31127_s2 + $0x380] ss:$16 sps:$4 sm:$0xff]  }
 0x4e6   : > { %4271 = vmatpush1.bf16.msra.mxu1 %v21758_v24  ;;  %v21808_v24 = vld [vmem:[%s31127_s2 + $0x364] ss:$16 sps:$4 sm:$0xff]  }
 0x4e7   : > { %4272 = vmatprep.subr.bf16.mxu1 %v21766_v37  ;;  %v21803_v37 = vld [vmem:[%s31127_s2 + $0x120] ss:$16 sps:$4 sm:$0xff]  }
 0x4e8   : > { %4234 = vmatpush1.bf16.msra.mxu0 %v21761_v6  ;;  %v21811_v6 = vld [vmem:[%s31127_s2 + $0x104] ss:$16 sps:$4 sm:$0xff]  }
 0x4e9   : > { %4235 = vmatprep.subr.bf16.mxu0 %v21769_v36  ;;  %v21806_v36 = vld [vmem:[%s31127_s2 + $0x360] ss:$16 sps:$4 sm:$0xff]  }
 0x4ea   : > { %4273 = vmatpush1.bf16.msra.mxu1 %v21764_v13  ;;  %v21814_v13 = vld [vmem:[%s31127_s2 + $0x344] ss:$16 sps:$4 sm:$0xff]  }
 0x4eb   : > { %4274 = vmatprep.subr.bf16.mxu1 %v21772_v61  ;;  %v21809_v61 = vld [vmem:[%s31127_s2 + $0x100] ss:$16 sps:$4 sm:$0xff]  }
 0x4ec   : > { %4236 = vmatpush2.bf16.msra.mxu0 %v21767_v45  ;;  %v21817_v45 = vld [vmem:[%s31127_s2 + $0x424] ss:$16 sps:$4 sm:$0xff]  }
 0x4ed   : > { %4237 = vmatprep.subr.bf16.mxu0 %v21775_v29  ;;  %v21812_v29 = vld [vmem:[%s31127_s2 + $0x340] ss:$16 sps:$4 sm:$0xff]  }
 0x4ee   : > { %4275 = vmatpush1.bf16.msra.mxu1 %v21770_v20  ;;  %v21820_v20 = vld [vmem:[%s31127_s2 + $0x324] ss:$16 sps:$4 sm:$0xff]  }
 0x4ef   : > { %4276 = vmatprep.subr.bf16.mxu1 %v21778_v2  ;;  %v21815_v2 = vld [vmem:[%s31127_s2 + $0x420] ss:$16 sps:$4 sm:$0xff]  }
 0x4f0   : > { %4238 = vmatpush2.bf16.msra.mxu0 %v21773_v33  ;;  %v21823_v33 = vld [vmem:[%s31127_s2 + $0x404] ss:$16 sps:$4 sm:$0xff]  }
 0x4f1   : > { %4239 = vmatprep.subr.bf16.mxu0 %v21781_v5  ;;  %v21818_v5 = vld [vmem:[%s31127_s2 + $0x320] ss:$16 sps:$4 sm:$0xff]  }
 0x4f2   : > { %4277 = vmatpush1.bf16.msra.mxu1 %v21776_v51  ;;  %v21826_v51 = vld [vmem:[%s31127_s2 + $0x304] ss:$16 sps:$4 sm:$0xff]  }
 0x4f3   : > { %4278 = vmatprep.subr.bf16.mxu1 %v21784_v1  ;;  %v21821_v1 = vld [vmem:[%s31127_s2 + $0x400] ss:$16 sps:$4 sm:$0xff]  }
 0x4f4   : > { %4240 = vmatpush2.bf16.msra.mxu0 %v21779_v26  ;;  %v21829_v26 = vld [vmem:[%s31127_s2 + $0x2ec] ss:$16 sps:$4 sm:$0xff]  }
 0x4f5   : > { %4241 = vmatprep.subr.bf16.mxu0 %v21787_v55  ;;  %v21824_v55 = vld [vmem:[%s31127_s2 + $0x300] ss:$16 sps:$4 sm:$0xff]  }
 0x4f6   : > { %4279 = vmatpush2.bf16.msra.mxu1 %v21782_v27  ;;  %v21832_v27 = vld [vmem:[%s31127_s2 + $0xec] ss:$16 sps:$4 sm:$0xff]  }
 0x4f7   : > { %4280 = vmatprep.subr.bf16.mxu1 %v21790_v43  ;;  %v21827_v43 = vld [vmem:[%s31127_s2 + $0x2e8] ss:$16 sps:$4 sm:$0xff]  }
 0x4f8   : > { %4242 = vmatpush2.bf16.msra.mxu0 %v21785_v10  ;;  %v21835_v10 = vld [vmem:[%s31127_s2 + $0x2cc] ss:$16 sps:$4 sm:$0xff]  }
 0x4f9   : > { %4243 = vmatprep.subr.bf16.mxu0 %v21793_v56  ;;  %v21830_v56 = vld [vmem:[%s31127_s2 + $0xe8] ss:$16 sps:$4 sm:$0xff]  }
 0x4fa   : > { %4281 = vmatpush2.bf16.msra.mxu1 %v21788_v50  ;;  %v21838_v50 = vld [vmem:[%s31127_s2 + $0xcc] ss:$16 sps:$4 sm:$0xff]  }
 0x4fb   : > { %4282 = vmatprep.subr.bf16.mxu1 %v21796_v9  ;;  %v21833_v9 = vld [vmem:[%s31127_s2 + $0x2c8] ss:$16 sps:$4 sm:$0xff]  }
 0x4fc   : > { %4244 = vmatpush2.bf16.msra.mxu0 %v21791_v63  ;;  %v21841_v63 = vld [vmem:[%s31127_s2 + $0x2ac] ss:$16 sps:$4 sm:$0xff]  }
 0x4fd   : > { %4245 = vmatprep.subr.bf16.mxu0 %v21799_v38  ;;  %v21836_v38 = vld [vmem:[%s31127_s2 + $0xc8] ss:$16 sps:$4 sm:$0xff]  }
 0x4fe   : > { %4283 = vmatpush2.bf16.msra.mxu1 %v21794_v8  ;;  %v21839_v8 = vld [vmem:[%s31127_s2 + $0x2a8] ss:$16 sps:$4 sm:$0xff]  }
 0x4ff   : > { %4284 = vmatprep.subr.bf16.mxu1 %v21802_v3  ;;  %v21847_v3 = vld [vmem:[%s31127_s2 + $0x28c] ss:$16 sps:$4 sm:$0xff]  }
 0x500   : > { %4246 = vmatpush2.bf16.msra.mxu0 %v21797_v42  ;;  %v21850_v42 = vld [vmem:[%s31127_s2 + $0x8c] ss:$16 sps:$4 sm:$0xff]  }
 0x501   : > { %4247 = vmatprep.subr.bf16.mxu0 %v21805_v28  ;;  %v21845_v28 = vld [vmem:[%s31127_s2 + $0x288] ss:$16 sps:$4 sm:$0xff]  }
 0x502   : > { %4285 = vmatpush2.bf16.msra.mxu1 %v21800_v23  ;;  %v21853_v23 = vld [vmem:[%s31127_s2 + $0x26c] ss:$16 sps:$4 sm:$0xff]  }
 0x503   : > { %4286 = vmatprep.subr.bf16.mxu1 %v21808_v24  ;;  %v21848_v24 = vld [vmem:[%s31127_s2 + $0x88] ss:$16 sps:$4 sm:$0xff]  }
 0x504   : > { %4248 = vmatpush2.bf16.msra.mxu0 %v21803_v37  ;;  %v21856_v37 = vld [vmem:[%s31127_s2 + $0x6c] ss:$16 sps:$4 sm:$0xff]  }
 0x505   : > { %4249 = vmatprep.subr.bf16.mxu0 %v21811_v6  ;;  %v21851_v6 = vld [vmem:[%s31127_s2 + $0x268] ss:$16 sps:$4 sm:$0xff]  }
 0x506   : > { %4287 = vmatpush2.bf16.msra.mxu1 %v21806_v36  ;;  %v21859_v36 = vld [vmem:[%s31127_s2 + $0x24c] ss:$16 sps:$4 sm:$0xff]  }
 0x507   : > { %4288 = vmatprep.subr.bf16.mxu1 %v21814_v13  ;;  %v21854_v13 = vld [vmem:[%s31127_s2 + $0x68] ss:$16 sps:$4 sm:$0xff]  }
 0x508   : > { %4250 = vmatpush2.bf16.msra.mxu0 %v21809_v61  ;;  %v21862_v61 = vld [vmem:[%s31127_s2 + $0x4c] ss:$16 sps:$4 sm:$0xff]  }
 0x509   : > { %4317 = vmatprep.subr.bf16.mxu0 %v21817_v45  ;;  %v21857_v45 = vld [vmem:[%s31127_s2 + $0x248] ss:$16 sps:$4 sm:$0xff]  }
 0x50a   : > { %4289 = vmatpush2.bf16.msra.mxu1 %v21812_v29  ;;  %v21865_v29 = vld [vmem:[%s31127_s2 + $0x22c] ss:$16 sps:$4 sm:$0xff]  }
 0x50b   : > { %4252 = vmatmul.mubr.bf16.vlgmr.msra.gmra.mxu0 %v25221_v22  ;;  %4290 = vmatprep.subr.bf16.mxu1 %v21820_v20  ;;  %v21860_v20 = vld [vmem:[%s31127_s2 + $0x48] ss:$16 sps:$4 sm:$0xff]  }
 0x50c   : > { %4318 = vmatpush1.bf16.msra.mxu0 %v21815_v2  ;;  %4337 = vmatprep.mubr.bf16.mxu0 %v31139_v52  ;;  %v21868_v2 = vld [vmem:[%s31127_s2 + $0x2c] ss:$16 sps:$4 sm:$0xff]  }
 0x50d   : > { %4319 = vmatprep.subr.bf16.mxu0 %v21823_v33  ;;  %v21863_v33 = vld [vmem:[%s31127_s2 + $0x228] ss:$16 sps:$4 sm:$0xff]  }
 0x50e   : > { %4291 = vmatpush2.bf16.msra.mxu1 %v21818_v5  ;;  %v21871_v5 = vld [vmem:[%s31127_s2 + $0x20c] ss:$16 sps:$4 sm:$0xff]  }
 0x50f   : > { %4292 = vmatprep.subr.bf16.mxu1 %v21826_v51  ;;  %v21866_v51 = vld [vmem:[%s31127_s2 + $0x28] ss:$16 sps:$4 sm:$0xff]  }
 0x510   : > { %4320 = vmatpush1.bf16.msra.mxu0 %v21821_v1  ;;  %v21874_v1 = vld [vmem:[%s31127_s2 + $0xc] ss:$16 sps:$4 sm:$0xff]  }
 0x511   : > { %4391 = vmatprep.subr.bf16.mxu0 %v21829_v26  ;;  %v21869_v26 = vld [vmem:[%s31127_s2 + $0x208] ss:$16 sps:$4 sm:$0xff]  }
 0x512   : > { %4293 = vmatpush2.bf16.msra.mxu1 %v21824_v55  ;;  %v21877_v55 = vld [vmem:[%s31127_s2 + $0x3ec] ss:$16 sps:$4 sm:$0xff]  }
 0x513   : > { %18368 = vmatmul.mubr.msk.bf16.vlgmr.msra.gmra.mxu0 %vm3274_vm8, %v25229_v31  ;;  %4348 = vmatprep.subr.bf16.mxu1 %v21832_v27  ;;  %v21872_v27 = vld [vmem:[%s31127_s2 + $0x8] ss:$16 sps:$4 sm:$0xff]  }
 0x514   : > { %4392 = vmatpush1.bf16.msra.mxu0 %v21827_v43  ;;  %4423 = vmatprep.mubr.bf16.mxu0 %v25492_v49  ;;  %v21844_v49 = vld [vmem:[%s31127_s2 + $0xac] ss:$16 sps:$4 sm:$0xff]  }
 0x515   : > { %4295 = vmatmul.mubr.bf16.vlgmr.msra.gmra.mxu1 %v25223_v30  ;;  %4393 = vmatprep.subr.bf16.mxu0 %v21835_v10  ;;  %v21880_v43 = vld [vmem:[%s31127_s2 + $0x1ec] ss:$16 sps:$4 sm:$0xff]   ;;  %v21875_v10 = vld [vmem:[%s31127_s2 + $0x3e8] ss:$16 sps:$4 sm:$0xff]  }
 0x516   : > { %4349 = vmatpush1.bf16.msra.mxu1 %v21830_v56  ;;  %4380 = vmatprep.mubr.bf16.mxu1 %v25454_v16  ;;  %v21842_v16 = vld [vmem:[%s31127_s2 + $0xa8] ss:$16 sps:$4 sm:$0xff]   ;;  %v21883_v56 = vld [vmem:[%s31127_s2 + $0x3cc] ss:$16 sps:$4 sm:$0xff]  }
 0x517   : > { %4350 = vmatprep.subr.bf16.mxu1 %v21838_v50  ;;  %v21878_v50 = vld [vmem:[%s31127_s2 + $0x1e8] ss:$16 sps:$4 sm:$0xff]  }
 0x518   : > { %4394 = vmatpush1.bf16.msra.mxu0 %v21833_v9  ;;  %v21886_v9 = vld [vmem:[%s31127_s2 + $0x1cc] ss:$16 sps:$4 sm:$0xff]  }
 0x519   : > { %4395 = vmatprep.subr.bf16.mxu0 %v21841_v63  ;;  %v21881_v63 = vld [vmem:[%s31127_s2 + $0x3c8] ss:$16 sps:$4 sm:$0xff]  }
 0x51a   : > { %4351 = vmatpush1.bf16.msra.mxu1 %v21836_v38  ;;  %v21889_v38 = vld [vmem:[%s31127_s2 + $0x3ac] ss:$16 sps:$4 sm:$0xff]  }
 0x51b   : > { %4352 = vmatprep.subr.bf16.mxu1 %v21844_v49  ;;  %v21884_v49 = vld [vmem:[%s31127_s2 + $0x1c8] ss:$16 sps:$4 sm:$0xff]  }
 0x51c   : > { %4396 = vmatpush1.bf16.msra.mxu0 %v21839_v8  ;;  %v21892_v8 = vld [vmem:[%s31127_s2 + $0x1ac] ss:$16 sps:$4 sm:$0xff]  }
 0x51d   : > { %4397 = vmatprep.subr.bf16.mxu0 %v21847_v3  ;;  %v21887_v3 = vld [vmem:[%s31127_s2 + $0x3a8] ss:$16 sps:$4 sm:$0xff]  }
 0x51e   : > { %4353 = vmatpush1.bf16.msra.mxu1 %v21842_v16  ;;  %v21895_v16 = vld [vmem:[%s31127_s2 + $0x38c] ss:$16 sps:$4 sm:$0xff]  }
 0x51f   : > { %4354 = vmatprep.subr.bf16.mxu1 %v21850_v42  ;;  %v21890_v42 = vld [vmem:[%s31127_s2 + $0x1a8] ss:$16 sps:$4 sm:$0xff]  }
 0x520   : > { %4398 = vmatpush1.bf16.msra.mxu0 %v21845_v28  ;;  %v21898_v28 = vld [vmem:[%s31127_s2 + $0x18c] ss:$16 sps:$4 sm:$0xff]  }
 0x521   : > { %4399 = vmatprep.subr.bf16.mxu0 %v21853_v23  ;;  %v21893_v23 = vld [vmem:[%s31127_s2 + $0x388] ss:$16 sps:$4 sm:$0xff]  }
 0x522   : > { %4355 = vmatpush1.bf16.msra.mxu1 %v21848_v24  ;;  %v21901_v24 = vld [vmem:[%s31127_s2 + $0x36c] ss:$16 sps:$4 sm:$0xff]  }
 0x523   : > { %4356 = vmatprep.subr.bf16.mxu1 %v21856_v37  ;;  %v21896_v37 = vld [vmem:[%s31127_s2 + $0x188] ss:$16 sps:$4 sm:$0xff]  }
 0x524   : > { %4400 = vmatpush1.bf16.msra.mxu0 %v21851_v6  ;;  %v21904_v6 = vld [vmem:[%s31127_s2 + $0x16c] ss:$16 sps:$4 sm:$0xff]  }
 0x525   : > { %4401 = vmatprep.subr.bf16.mxu0 %v21859_v36  ;;  %v21899_v36 = vld [vmem:[%s31127_s2 + $0x368] ss:$16 sps:$4 sm:$0xff]  }
 0x526   : > { %4357 = vmatpush1.bf16.msra.mxu1 %v21854_v13  ;;  %v21907_v13 = vld [vmem:[%s31127_s2 + $0x34c] ss:$16 sps:$4 sm:$0xff]  }
 0x527   : > { %4358 = vmatprep.subr.bf16.mxu1 %v21862_v61 }
 0x528   : > { %4402 = vmatpush1.bf16.msra.mxu0 %v21857_v45  ;;  %v21902_v45 = vld [vmem:[%s31127_s2 + $0x168] ss:$16 sps:$4 sm:$0xff]  }
 0x529   : > { %4403 = vmatprep.subr.bf16.mxu0 %v21865_v29  ;;  %v21910_v29 = vld [vmem:[%s31127_s2 + $0x14c] ss:$16 sps:$4 sm:$0xff]  }
 0x52a   : > { %4359 = vmatpush1.bf16.msra.mxu1 %v21860_v20 }
 0x52b   : > { %4360 = vmatprep.subr.bf16.mxu1 %v21868_v2  ;;  %v21905_v2 = vld [vmem:[%s31127_s2 + $0x348] ss:$16 sps:$4 sm:$0xff]  }
 0x52c   : > { %4404 = vmatpush1.bf16.msra.mxu0 %v21863_v33  ;;  %v21913_v33 = vld [vmem:[%s31127_s2 + $0x32c] ss:$16 sps:$4 sm:$0xff]  }
 0x52d   : > { %4405 = vmatprep.subr.bf16.mxu0 %v21871_v5 }
 0x52e   : > { %4361 = vmatpush1.bf16.msra.mxu1 %v21866_v51  ;;  %v21908_v51 = vld [vmem:[%s31127_s2 + $0x148] ss:$16 sps:$4 sm:$0xff]  }
 0x52f   : > { %4362 = vmatprep.subr.bf16.mxu1 %v21874_v1  ;;  %v21916_v1 = vld [vmem:[%s31127_s2 + $0x12c] ss:$16 sps:$4 sm:$0xff]  }
 0x530   : > { %4406 = vmatpush1.bf16.msra.mxu0 %v21869_v26 }
 0x531   : > { %4407 = vmatprep.subr.bf16.mxu0 %v21877_v55  ;;  %v21911_v55 = vld [vmem:[%s31127_s2 + $0x328] ss:$16 sps:$4 sm:$0xff]  }
 0x532   : > { %4363 = vmatpush1.bf16.msra.mxu1 %v21872_v27  ;;  %v21919_v27 = vld [vmem:[%s31127_s2 + $0x30c] ss:$16 sps:$4 sm:$0xff]  }
 0x533   : > { %4364 = vmatprep.subr.bf16.mxu1 %v21880_v43  ;;  %v21914_v43 = vld [vmem:[%s31127_s2 + $0x128] ss:$16 sps:$4 sm:$0xff]  }
 0x534   : > { %4408 = vmatpush2.bf16.msra.mxu0 %v21875_v10 }
 0x535   : > { %4409 = vmatprep.subr.bf16.mxu0 %v21883_v56  ;;  %v21922_v56 = vld [vmem:[%s31127_s2 + $0x10c] ss:$16 sps:$4 sm:$0xff]  }
 0x536   : > { %4365 = vmatpush2.bf16.msra.mxu1 %v21878_v50  ;;  %v21917_v50 = vld [vmem:[%s31127_s2 + $0x308] ss:$16 sps:$4 sm:$0xff]  }
 0x537   : > { %4366 = vmatprep.subr.bf16.mxu1 %v21886_v9 }
 0x538   : > { %4410 = vmatpush2.bf16.msra.mxu0 %v21881_v63 }
 0x539   : > { %4411 = vmatprep.subr.bf16.mxu0 %v21889_v38  ;;  %v21920_v38 = vld [vmem:[%s31127_s2 + $0x108] ss:$16 sps:$4 sm:$0xff]  }
 0x53a   : > { %4367 = vmatpush2.bf16.msra.mxu1 %v21884_v49 }
 0x53b   : > { %4368 = vmatprep.subr.bf16.mxu1 %v21892_v8 }
 0x53c   : > { %4412 = vmatpush2.bf16.msra.mxu0 %v21887_v3  ;;  %v21925_v3 = vld [vmem:[%s31127_s2 + $0x42c] ss:$16 sps:$4 sm:$0xff]  }
 0x53d   : > { %4413 = vmatprep.subr.bf16.mxu0 %v21895_v16  ;;  %v4479_v16 = vsel %vm4477_vm9, 33, %v24581_v48  ;;  %vm7083_vm9 = vcmask 146432  }
 0x53e   : > { %4369 = vmatpush2.bf16.msra.mxu1 %v21890_v42 }
 0x53f   : > { %4370 = vmatprep.subr.bf16.mxu1 %v21898_v28 }
 0x540   : > { %4414 = vmatpush2.bf16.msra.mxu0 %v21893_v23 }
 0x541   : > { %4415 = vmatprep.subr.bf16.mxu0 %v21901_v24 }
 0x542   : > { %v3312_v61 = vpop.f32.mrf.mxu0  ;;  %4371 = vmatpush2.bf16.msra.mxu1 %v21896_v37  ;;  %v21923_v37 = vld [vmem:[%s31127_s2 + $0x428] ss:$16 sps:$4 sm:$0xff]  }
 0x543   : > { %4372 = vmatprep.subr.bf16.mxu1 %v21904_v6  ;;  %v4481_v6 = vsel %vm1102_vm2, 32, %v4479_v16  ;;  %v21964_v16 = vld [vmem:[%s31127_s2 + $0xae4] ss:$16 sps:$4 sm:$0xff]  }
 0x544   : > { %4416 = vmatpush2.bf16.msra.mxu0 %v21899_v36  ;;  %v3314_v20 = vpop.f32.mrf.mxu0  ;;  %vm4483_vm10 = vcmp.eq.s32.totalorder %v24315_v25, %v4481_v6  ;;  %v21953_v6 = vld [vmem:[%s31127_s2 + $0x8c0] ss:$16 sps:$4 sm:$0xff]  }
 0x545   : > { %4417 = vmatprep.subr.bf16.mxu0 %v21907_v13 }
 0x546   : > { %v3316_v5 = vpop.f32.mrf.mxu0  ;;  %4373 = vmatpush2.bf16.msra.mxu1 %v21902_v45 }
 0x547   : > { %4374 = vmatprep.subr.bf16.mxu1 %v21910_v29  ;;  %v18370_v29 = vsel %vm4483_vm10, 1.0, %v31136_v41 }
 0x548   : > { %4418 = vmatpush2.bf16.msra.mxu0 %v21905_v2  ;;  %v25852_v26 = vpop.f32.mrf.mxu0  ;;  %v21940_v2 = vld [vmem:[%s31127_s2 + $0xb64] ss:$16 sps:$4 sm:$0xff]  }
 0x549   : > { %4419 = vmatprep.subr.bf16.mxu0 %v21913_v33  ;;  %v21929_v33 = vld [vmem:[%s31127_s2 + $0x960] ss:$16 sps:$4 sm:$0xff]  }
 0x54a   : > { %4375 = vmatpush2.bf16.msra.mxu1 %v21908_v51  ;;  %v25942_v51 = vld [vmem:[#allocation3 + $0x10] ss:$20 sps:$4 sm:$0xff]  }
 0x54b   : > { %v3398_v10 = vpop.f32.mrf.mxu0  ;;  %4376 = vmatprep.subr.bf16.mxu1 %v21916_v1  ;;  %v21938_v1 = vld [vmem:[%s31127_s2 + $0xb60] ss:$16 sps:$4 sm:$0xff]  }
 0x54c   : > { %4420 = vmatpush2.bf16.msra.mxu0 %v21911_v55  ;;  %v21946_v55 = vld [vmem:[%s31127_s2 + $0xb44] ss:$16 sps:$4 sm:$0xff]  }
 0x54d   : > { %v3355_v9 = vpop.f32.mrf.mxu1  ;;  %4421 = vmatprep.subr.bf16.mxu0 %v21919_v27  ;;  %v3400_v49 = vpop.f32.mrf.mxu0  ;;  %v21932_v27 = vld [vmem:[%s31127_s2 + $0x940] ss:$16 sps:$4 sm:$0xff]  }
 0x54e   : > { %v3356_v63 = vadd.f32 %v3355_v9, %v3312_v61  ;;  %4377 = vmatpush2.bf16.msra.mxu1 %v21914_v43  ;;  %v21928_v61 = vld [vmem:[%s31127_s2 + $0x40c] ss:$16 sps:$4 sm:$0xff]   ;;  %v21937_v43 = vld [vmem:[%s31127_s2 + $0x924] ss:$16 sps:$4 sm:$0xff]  }
 0x54f   : > { %v3357_v8 = vpop.f32.mrf.mxu1  ;;  %4378 = vmatprep.subr.bf16.mxu1 %v21922_v56  ;;  %v3402_v13 = vpop.f32.mrf.mxu0  ;;  %v21952_v56 = vld [vmem:[%s31127_s2 + $0xb24] ss:$16 sps:$4 sm:$0xff]  }
 0x550   : > { %4422 = vmatpush2.bf16.msra.mxu0 %v21917_v50  ;;  %v3358_v42 = vadd.f32 %v3357_v8, %v3314_v20  ;;  %v25877_v28 = vadd.f32 %v3398_v10, %v3356_v63  ;;  %v25928_v20 = vld [vmem:[#allocation3 + $0x38] ss:$20 sps:$4 sm:$0xff]   ;;  %v21943_v9 = vld [vmem:[%s31127_s2 + $0x904] ss:$16 sps:$4 sm:$0xff]  }
 0x551   : > { %v3359_v23 = vpop.f32.mrf.mxu1  ;;  %18372 = vmatprep.subr.msk.bf16.mxu0 %vm487_vm3, %v24850_v59  ;;  %v21944_v10 = vld [vmem:[%s31127_s2 + $0xb40] ss:$16 sps:$4 sm:$0xff]   ;;  %v21949_v8 = vld [vmem:[%s31127_s2 + $0x8e4] ss:$16 sps:$4 sm:$0xff]  }
 0x552   : > { %v3360_v24 = vadd.f32 %v3359_v23, %v3316_v5  ;;  %4379 = vmatpush2.bf16.msra.mxu1 %v21920_v38  ;;  %v25886_v36 = vadd.f32 %v3400_v49, %v3358_v42  ;;  %v21934_v5 = vld [vmem:[%s31127_s2 + $0x944] ss:$16 sps:$4 sm:$0xff]   ;;  %v21935_v50 = vld [vmem:[%s31127_s2 + $0x920] ss:$16 sps:$4 sm:$0xff]  }
 0x553   : > { %4424 = vmatmul.mubr.bf16.vlgmr.msra.gmra.mxu0 %v25223_v30  ;;  %4446 = vmatprep.subr.bf16.mxu1 %v21925_v3  ;;  %v21926_v30 = vld [vmem:[%s31127_s2 + $0x408] ss:$16 sps:$4 sm:$0xff]   ;;  %v21950_v63 = vld [vmem:[%s31127_s2 + $0xb20] ss:$16 sps:$4 sm:$0xff]   ;;  %v21958_v38 = vld [vmem:[%s31127_s2 + $0xb04] ss:$16 sps:$4 sm:$0xff]  }
 0x554   : > { %4504 = vmatpush1.bf16.msra.mxu0 %v24859_v58  ;;  %4525 = vmatprep.mubr.bf16.mxu0 %v31139_v52  ;;  %v25894_v45 = vadd.f32 %v3402_v13, %v3360_v24  ;;  %v21941_v49 = vld [vmem:[%s31127_s2 + $0x900] ss:$16 sps:$4 sm:$0xff]   ;;  %v21955_v23 = vld [vmem:[%s31127_s2 + $0x8c4] ss:$16 sps:$4 sm:$0xff]  }
 0x555   : > { %4505 = vmatprep.subr.bf16.mxu0 %v24960_v7  ;;  %4381 = vmatmul.mubr.bf16.vlgmr.msra.gmra.mxu1 %v25221_v22  ;;  %v4489_v22 = vpack.c.bf16 %v18371_v11, %v18370_v29  ;;  %v21956_v3 = vld [vmem:[%s31127_s2 + $0xb00] ss:$16 sps:$4 sm:$0xff]   ;;  %v21961_v13 = vld [vmem:[%s31127_s2 + $0x8a4] ss:$16 sps:$4 sm:$0xff]  }
 0x556   : > { %4447 = vmatpush1.bf16.msra.mxu1 %v21923_v37  ;;  %4466 = vmatprep.mubr.bf16.mxu1 %v31139_v52  ;;  %v21947_v42 = vld [vmem:[%s31127_s2 + $0x8e0] ss:$16 sps:$4 sm:$0xff]   ;;  %v21970_v37 = vld [vmem:[%s31127_s2 + $0xac4] ss:$16 sps:$4 sm:$0xff]  }
 0x557   : > { %4448 = vmatprep.subr.bf16.mxu1 %v21928_v61  ;;  %v21962_v24 = vld [vmem:[%s31127_s2 + $0xae0] ss:$16 sps:$4 sm:$0xff]   ;;  %v21967_v11 = vld [vmem:[%s31127_s2 + $0x884] ss:$16 sps:$4 sm:$0xff]  }
 0x558   : > { %4506 = vmatpush1.bf16.msra.mxu0 %v24962_v46  ;;  %v21968_v61 = vld [vmem:[%s31127_s2 + $0xac0] ss:$16 sps:$4 sm:$0xff]  }
 0x559   : > { %4507 = vmatprep.subr.bf16.mxu0 %v24948_v17  ;;  %v21959_v29 = vld [vmem:[%s31127_s2 + $0x8a0] ss:$16 sps:$4 sm:$0xff]  }
 0x55a   : > { %4449 = vmatpush1.bf16.msra.mxu1 %v21926_v30  ;;  %v21976_v30 = vld [vmem:[%s31127_s2 + $0xaa4] ss:$16 sps:$4 sm:$0xff]  }
 0x55b   : > { %18374 = vmatprep.subr.msk.bf16.mxu1 %vm487_vm3, %v24852_v15 }
 0x55c   : > { %4508 = vmatpush1.bf16.msra.mxu0 %v24955_v14 }
 0x55d   : > { %18369 = vmatmul.mubr.msk.bf16.vlgmr.msra.gmra.mxu1 %vm3274_vm8, %v25229_v31  ;;  %21304 = vmatprep.subr.bf16.mxu0 %v31136_v41  ;;  %v21931_v31 = vld [vmem:[%s31127_s2 + $0x964] ss:$16 sps:$4 sm:$0xff]  }
 0x55e   : > { %4547 = vmatpush1.bf16.msra.mxu1 %v24862_v19  ;;  %4568 = vmatprep.mubr.bf16.mxu1 %v31139_v52 }
 0x55f   : > { %18373 = vmatmul.mubr.msk.bf16.vlgmr.msra.gmra.mxu0 %vm2022_vm6, %v4489_v22  ;;  %4548 = vmatprep.subr.bf16.mxu1 %v24965_v18 }
 0x560   : > { %21305 = vmatpush3.bf16.msra.mxu0 %v24977_v44  ;;  %21310 = vmatprep.mubr.msk.bf16.mxu0 %vm24204_vm7, %v31136_v41 }
 0x561   : > { %21306 = vmatprep.subr.bf16.mxu0 %v31136_v41 }
 0x562   : > { %4549 = vmatpush1.bf16.msra.mxu1 %v24967_v34 }
 0x563   : > { %4550 = vmatprep.subr.bf16.mxu1 %v24950_v4 }
 0x564   : > { %21307 = vmatpush3.bf16.msra.mxu0 %v25928_v20 }
 0x565   : > { %21308 = vmatprep.subr.bf16.mxu0 %v31136_v41 }
 0x566   : > { %4551 = vmatpush1.bf16.msra.mxu1 %v24958_v39 }
 0x567   : > { %5445 = vmatprep.subr.bf16.mxu1 %v21931_v31  ;;  %v21982_v31 = vld [vmem:[%s31127_s2 + $0xa84] ss:$16 sps:$4 sm:$0xff]  }
 0x568   : > { %21309 = vmatpush3.bf16.msra.mxu0 %v25942_v51 }
 0x569   : > { %18375 = vmatmul.mubr.msk.bf16.vlgmr.msra.gmra.mxu1 %vm2022_vm6, %v4489_v22  ;;  %5488 = vmatprep.subr.bf16.mxu0 %v21940_v2  ;;  %v21965_v2 = vld [vmem:[%s31127_s2 + $0x880] ss:$16 sps:$4 sm:$0xff]  }
 0x56a   : > { %5446 = vmatpush1.bf16.msra.mxu1 %v21929_v33  ;;  %v21973_v33 = vld [vmem:[%s31127_s2 + $0xa64] ss:$16 sps:$4 sm:$0xff]  }
 0x56b   : > { %21311 = vmatmul.mubr.msk.bf16.vlgmr.msra.gmra.mxu0 %vm2022_vm6, %v4489_v22  ;;  %5447 = vmatprep.subr.bf16.mxu1 %v21934_v5  ;;  %v21974_v22 = vld [vmem:[%s31127_s2 + $0xaa0] ss:$16 sps:$4 sm:$0xff]  }
 0x56c   : > { %5489 = vmatpush1.bf16.msra.mxu0 %v21938_v1  ;;  %v21980_v5 = vld [vmem:[%s31127_s2 + $0xa80] ss:$16 sps:$4 sm:$0xff]  }
 0x56d   : > { %5490 = vmatprep.subr.bf16.mxu0 %v21946_v55  ;;  %v21971_v1 = vld [vmem:[%s31127_s2 + $0xa60] ss:$16 sps:$4 sm:$0xff]   ;;  %v21979_v55 = vld [vmem:[%s31127_s2 + $0xa44] ss:$16 sps:$4 sm:$0xff]  }
 0x56e   : > { %5448 = vmatpush1.bf16.msra.mxu1 %v21932_v27  ;;  %v26040_v27 = vpop.f32.mrf.mxu0 }
 0x56f   : > { %5449 = vmatprep.subr.bf16.mxu1 %v21937_v43  ;;  %v21977_v43 = vld [vmem:[%s31127_s2 + $0xa40] ss:$16 sps:$4 sm:$0xff]  }
 0x570   : > { %5491 = vmatpush1.bf16.msra.mxu0 %v21944_v10  ;;  %v26045_v10 = vpop.f32.mrf.mxu1 }
 0x571   : > { %5492 = vmatprep.subr.bf16.mxu0 %v21952_v56 }
 0x572   : > { %5450 = vmatpush1.bf16.msra.mxu1 %v21935_v50  ;;  %v21985_v50 = vld [vmem:[%s31127_s2 + $0xa24] ss:$16 sps:$4 sm:$0xff]  }
 0x573   : > { %5451 = vmatprep.subr.bf16.mxu1 %v21943_v9 }
 0x574   : > { %5493 = vmatpush1.bf16.msra.mxu0 %v21950_v63 }
 0x575   : > { %5494 = vmatprep.subr.bf16.mxu0 %v21958_v38 }
 0x576   : > { %5452 = vmatpush1.bf16.msra.mxu1 %v21941_v49  ;;  %v21983_v49 = vld [vmem:[%s31127_s2 + $0xa20] ss:$16 sps:$4 sm:$0xff]  }
 0x577   : > { %5453 = vmatprep.subr.bf16.mxu1 %v21949_v8 }
 0x578   : > { %5495 = vmatpush1.bf16.msra.mxu0 %v21956_v3 }
 0x579   : > { %5496 = vmatprep.subr.bf16.mxu0 %v21964_v16 }
 0x57a   : > { %5454 = vmatpush1.bf16.msra.mxu1 %v21947_v42 }
 0x57b   : > { %5455 = vmatprep.subr.bf16.mxu1 %v21955_v23 }
 0x57c   : > { %5497 = vmatpush1.bf16.msra.mxu0 %v21962_v24  ;;  %v21988_v24 = vld [vmem:[%s31127_s2 + $0xc64] ss:$16 sps:$4 sm:$0xff]  }
 0x57d   : > { %5498 = vmatprep.subr.bf16.mxu0 %v21970_v37 }
 0x57e   : > { %5456 = vmatpush1.bf16.msra.mxu1 %v21953_v6  ;;  %v21986_v6 = vld [vmem:[%s31127_s2 + $0xc60] ss:$16 sps:$4 sm:$0xff]  }
 0x57f   : > { %5457 = vmatprep.subr.bf16.mxu1 %v21961_v13  ;;  %v21991_v13 = vld [vmem:[%s31127_s2 + $0xa04] ss:$16 sps:$4 sm:$0xff]  }
 0x580   : > { %5499 = vmatpush1.bf16.msra.mxu0 %v21968_v61 }
 0x581   : > { %5500 = vmatprep.subr.bf16.mxu0 %v21976_v30  ;;  %v21989_v30 = vld [vmem:[%s31127_s2 + $0xa00] ss:$16 sps:$4 sm:$0xff]  }
 0x582   : > { %5458 = vmatpush1.bf16.msra.mxu1 %v21959_v29 }
 0x583   : > { %5459 = vmatprep.subr.bf16.mxu1 %v21967_v11  ;;  %v21994_v11 = vld [vmem:[%s31127_s2 + $0xc44] ss:$16 sps:$4 sm:$0xff]  }
 0x584   : > { %5501 = vmatpush1.bf16.msra.mxu0 %v21974_v22 }
 0x585   : > { %5502 = vmatprep.subr.bf16.mxu0 %v21982_v31  ;;  %v21992_v31 = vld [vmem:[%s31127_s2 + $0xc40] ss:$16 sps:$4 sm:$0xff]  }
 0x586   : > { %5460 = vmatpush1.bf16.msra.mxu1 %v21965_v2 }
 0x587   : > { %5461 = vmatprep.subr.bf16.mxu1 %v21973_v33  ;;  %v21997_v33 = vld [vmem:[%s31127_s2 + $0x9e4] ss:$16 sps:$4 sm:$0xff]  }
 0x588   : > { %5503 = vmatpush1.bf16.msra.mxu0 %v21980_v5 }
 0x589   : > { %5504 = vmatprep.subr.bf16.mxu0 %v21988_v24  ;;  %v22016_v24 = vld [vmem:[%s31127_s2 + $0xbc0] ss:$16 sps:$4 sm:$0xff]  }
 0x58a   : > { %5462 = vmatpush2.bf16.msra.mxu1 %v21971_v1  ;;  %v21995_v1 = vld [vmem:[%s31127_s2 + $0x9e0] ss:$16 sps:$4 sm:$0xff]  }
 0x58b   : > { %v3484_v56 = vpop.f32.mrf.mxu0  ;;  %5463 = vmatprep.subr.bf16.mxu1 %v21979_v55 }
 0x58c   : > { %5505 = vmatpush2.bf16.msra.mxu0 %v21986_v6  ;;  %v22018_v6 = vld [vmem:[%s31127_s2 + $0xbc4] ss:$16 sps:$4 sm:$0xff]  }
 0x58d   : > { %v3486_v9 = vpop.f32.mrf.mxu0  ;;  %v3441_v63 = vpop.f32.mrf.mxu1  ;;  %5506 = vmatprep.subr.bf16.mxu0 %v21994_v11  ;;  %v22030_v11 = vld [vmem:[%s31127_s2 + $0xb84] ss:$16 sps:$4 sm:$0xff]  }
 0x58e   : > { %v3485_v38 = vadd.f32 %v3484_v56, %v3441_v63  ;;  %5464 = vmatpush2.bf16.msra.mxu1 %v21977_v43  ;;  %v21998_v43 = vld [vmem:[%s31127_s2 + $0xc20] ss:$16 sps:$4 sm:$0xff]   ;;  %v22000_v56 = vld [vmem:[%s31127_s2 + $0xc24] ss:$16 sps:$4 sm:$0xff]  }
 0x58f   : > { %v3443_v8 = vpop.f32.mrf.mxu1  ;;  %5465 = vmatprep.subr.bf16.mxu1 %v21985_v50  ;;  %v3488_v16 = vpop.f32.mrf.mxu0  ;;  %v22001_v50 = vld [vmem:[%s31127_s2 + $0x9c0] ss:$16 sps:$4 sm:$0xff]   ;;  %v22006_v63 = vld [vmem:[%s31127_s2 + $0xc04] ss:$16 sps:$4 sm:$0xff]  }
 0x590   : > { %v3487_v3 = vadd.f32 %v3486_v9, %v3443_v8  ;;  %5507 = vmatpush2.bf16.msra.mxu0 %v21992_v31  ;;  %v22003_v9 = vld [vmem:[%s31127_s2 + $0x9c4] ss:$16 sps:$4 sm:$0xff]   ;;  %v22007_v8 = vld [vmem:[%s31127_s2 + $0x9a0] ss:$16 sps:$4 sm:$0xff]   ;;  %v22036_v31 = vld [vmem:[%s31127_s2 + $0xb6c] ss:$16 sps:$4 sm:$0xff]  }
 0x591   : > { %v3445_v42 = vpop.f32.mrf.mxu1  ;;  %5508 = vmatprep.subr.bf16.mxu0 %v22000_v56 }
 0x592   : > { %v3489_v23 = vadd.f32 %v3488_v16, %v3445_v42  ;;  %5466 = vmatpush2.bf16.msra.mxu1 %v21983_v49  ;;  %v22009_v49 = vld [vmem:[%s31127_s2 + $0x9a4] ss:$16 sps:$4 sm:$0xff]   ;;  %v22010_v16 = vld [vmem:[%s31127_s2 + $0xbe0] ss:$16 sps:$4 sm:$0xff]  }
 0x593   : > { %v26056_v37 = vpop.f32.mrf.mxu1  ;;  %5467 = vmatprep.subr.bf16.mxu1 %v21991_v13  ;;  %v22015_v42 = vld [vmem:[%s31127_s2 + $0x984] ss:$16 sps:$4 sm:$0xff]  }
 0x594   : > { %5509 = vmatpush2.bf16.msra.mxu0 %v21998_v43  ;;  %v22021_v13 = vld [vmem:[%s31127_s2 + $0xca4] ss:$16 sps:$4 sm:$0xff]  }
 0x595   : > { %v3527_v61 = vpop.f32.mrf.mxu1  ;;  %5510 = vmatprep.subr.bf16.mxu0 %v22006_v63 }
 0x596   : > { %v26067_v29 = vadd.f32 %v3527_v61, %v3485_v38  ;;  %5468 = vmatpush2.bf16.msra.mxu1 %v21989_v30  ;;  %v22004_v38 = vld [vmem:[%s31127_s2 + $0xc00] ss:$16 sps:$4 sm:$0xff]   ;;  %v22024_v61 = vld [vmem:[%s31127_s2 + $0xba4] ss:$16 sps:$4 sm:$0xff]  }
 0x597   : > { %v3529_v22 = vpop.f32.mrf.mxu1  ;;  %5469 = vmatprep.subr.bf16.mxu1 %v21997_v33  ;;  %v22022_v30 = vld [vmem:[%s31127_s2 + $0xba0] ss:$16 sps:$4 sm:$0xff]   ;;  %v26145_v33 = vpop.f32.mrf.mxu0 }
 0x598   : > { %v26075_v2 = vadd.f32 %v3529_v22, %v3487_v3  ;;  %5511 = vmatpush2.bf16.msra.mxu0 %v22004_v38  ;;  %v22012_v3 = vld [vmem:[%s31127_s2 + $0xbe4] ss:$16 sps:$4 sm:$0xff]   ;;  %v22028_v22 = vld [vmem:[%s31127_s2 + $0xb80] ss:$16 sps:$4 sm:$0xff]  }
 0x599   : > { %v3531_v5 = vpop.f32.mrf.mxu1  ;;  %5512 = vmatprep.subr.bf16.mxu0 %v22012_v3 }
 0x59a   : > { %v26083_v55 = vadd.f32 %v3531_v5, %v3489_v23  ;;  %5470 = vmatpush2.bf16.msra.mxu1 %v21995_v1  ;;  %v22013_v23 = vld [vmem:[%s31127_s2 + $0x980] ss:$16 sps:$4 sm:$0xff]  }
 0x59b   : > { %5471 = vmatprep.subr.bf16.mxu1 %v22003_v9  ;;  %v26152_v38 = vpop.f32.mrf.mxu1 }
 0x59c   : > { %5513 = vmatpush2.bf16.msra.mxu0 %v22010_v16 }
 0x59d   : > { %5514 = vmatprep.subr.bf16.mxu0 %v22018_v6 }
 0x59e   : > { %5472 = vmatpush2.bf16.msra.mxu1 %v22001_v50 }
 0x59f   : > { %5473 = vmatprep.subr.bf16.mxu1 %v22009_v49 }
 0x5a0   : > { %5515 = vmatpush2.bf16.msra.mxu0 %v22016_v24 }
 0x5a1   : > { %5516 = vmatprep.subr.bf16.mxu0 %v22024_v61 }
 0x5a2   : > { %5474 = vmatpush2.bf16.msra.mxu1 %v22007_v8 }
 0x5a3   : > { %5475 = vmatprep.subr.bf16.mxu1 %v22015_v42 }
 0x5a4   : > { %5517 = vmatpush2.bf16.msra.mxu0 %v22022_v30 }
 0x5a5   : > { %5518 = vmatprep.subr.bf16.mxu0 %v22030_v11 }
 0x5a6   : > { %5476 = vmatpush2.bf16.msra.mxu1 %v22013_v23 }
 0x5a7   : > { %5543 = vmatprep.subr.bf16.mxu1 %v22021_v13 }
 0x5a8   : > { %5519 = vmatpush2.bf16.msra.mxu0 %v22028_v22 }
 0x5a9   : > { %5617 = vmatprep.subr.bf16.mxu0 %v22036_v31 }
 0x5cb   : > { %v4253_v5 = vpop.f32.mrf.mxu0 }
 0x5cc   : > { %v4254_v1 = vadd.f32 %v4253_v5, %v25877_v28 }
 0x5cd   : > { %v4255_v43 = vpop.f32.mrf.mxu0 }
 0x5ce   : > { %v4256_v56 = vadd.f32 %v4255_v43, %v25886_v36 }
 0x5cf   : > { %v4257_v50 = vpop.f32.mrf.mxu0 }
 0x5d0   : > { %v4258_v9 = vadd.f32 %v4257_v50, %v25894_v45 }
 0x5d1   : > { %v26150_v63 = vpop.f32.mrf.mxu0 }
 0x5d3   : > { %v4339_v49 = vpop.f32.mrf.mxu0 }
 0x5d5   : > { %v4296_v8 = vpop.f32.mrf.mxu1  ;;  %v4341_v16 = vpop.f32.mrf.mxu0 }
 0x5d6   : > { %v4297_v3 = vadd.f32 %v4296_v8, %v4254_v1 }
 0x5d7   : > { %v4298_v42 = vpop.f32.mrf.mxu1  ;;  %v4343_v36 = vpop.f32.mrf.mxu0 }
 0x5d8   : > { %v26154_v23 = vadd.f32 %v4339_v49, %v4297_v3  ;;  %v4299_v24 = vadd.f32 %v4298_v42, %v4256_v56 }
 0x5d9   : > { %v4300_v6 = vpop.f32.mrf.mxu1  ;;  %v26160_v45 = vpop.f32.mrf.mxu0 }
 0x5da   : > { %v26156_v28 = vadd.f32 %v4341_v16, %v4299_v24  ;;  %v4301_v13 = vadd.f32 %v4300_v6, %v4258_v9 }
 0x5db   : > { %v26162_v30 = vpop.f32.mrf.mxu1 }
 0x5dc   : > { %v26158_v61 = vadd.f32 %v4343_v36, %v4301_v13 }
 0x613   : > { %v4425_v11 = vpop.f32.mrf.mxu0 }
 0x615   : > { %v4427_v22 = vpop.f32.mrf.mxu0  ;;  %v4382_v31 = vpop.f32.mrf.mxu1 }
 0x616   : > { %v4383_v5 = vadd.f32 %v4382_v31, %v26067_v29 }
 0x617   : > { %v4384_v1 = vpop.f32.mrf.mxu1  ;;  %v4429_v50 = vpop.f32.mrf.mxu0 }
 0x618   : > { %v4385_v43 = vadd.f32 %v4384_v1, %v26075_v2  ;;  %v4426_v56 = vadd.f32 %v4425_v11, %v4383_v5 }
 0x619   : > { %v4386_v49 = vpop.f32.mrf.mxu1  ;;  %v26169_v42 = vpop.f32.mrf.mxu0 }
 0x61a   : > { %v4387_v9 = vadd.f32 %v4386_v49, %v26083_v55  ;;  %v4428_v8 = vadd.f32 %v4427_v22, %v4385_v43  ;;  %v22019_v22 = vld [vmem:[%s31127_s2 + $0xca0] ss:$16 sps:$4 sm:$0xff]  }
 0x61b   : > { %v26167_v3 = vpop.f32.mrf.mxu1 }
 0x61c   : > { %v4430_v16 = vadd.f32 %v4429_v50, %v4387_v9  ;;  %v22025_v9 = vld [vmem:[%s31127_s2 + $0xc80] ss:$16 sps:$4 sm:$0xff]  }
 0x61d   : > { %v4468_v24 = vpop.f32.mrf.mxu1 }
 0x61e   : > { %v26171_v6 = vadd.f32 %v4468_v24, %v4426_v56  ;;  %v22027_v56 = vld [vmem:[%s31127_s2 + $0xc84] ss:$16 sps:$4 sm:$0xff]   ;;  %v22033_v24 = vld [vmem:[%s31127_s2 + $0x96c] ss:$16 sps:$4 sm:$0xff]  }
 0x61f   : > { %v4527_v13 = vpop.f32.mrf.mxu0  ;;  %v4470_v36 = vpop.f32.mrf.mxu1 }
 0x620   : > { %v26173_v29 = vadd.f32 %v4470_v36, %v4428_v8 }
 0x621   : > { %v4529_v31 = vpop.f32.mrf.mxu0  ;;  %v4472_v2 = vpop.f32.mrf.mxu1 }
 0x622   : > { %v26175_v11 = vadd.f32 %v4472_v2, %v4430_v16 }
 0x623   : > { %v4531_v5 = vpop.f32.mrf.mxu0  ;;  %v26182_v50 = vpop.f32.mrf.mxu1 }
 0x624   : > { %v26180_v43 = vpack.c.bf16 %v4531_v5, %v4527_v13  ;;  %v22031_v5 = vld [vmem:[%s31127_s2 + $0x968] ss:$16 sps:$4 sm:$0xff]  }
 0x625   : > { %v4533_v1 = vpop.f32.mrf.mxu0 }
 0x626   : > { %v4621_v55 = vpack.c.bf16 %v4533_v1, %v4529_v31 }
 0x628   : > { %5477 = vmatprep.mubr.bf16.mxu1 %v4621_v55 }
 0x629   : > { %5478 = vmatmul.mubr.bf16.vlgmr.msra.gmra.mxu1 %v26180_v43  ;;  %v4570_v49 = vpop.f32.mrf.mxu1 }
 0x62a   : > { %5544 = vmatpush1.bf16.msra.mxu1 %v22019_v22  ;;  %5563 = vmatprep.mubr.bf16.mxu1 %v31139_v52 }
 0x62b   : > { %v4613_v8 = vpop.f32.mrf.mxu0  ;;  %v4572_v16 = vpop.f32.mrf.mxu1  ;;  %5545 = vmatprep.subr.bf16.mxu1 %v22027_v56  ;;  %v22039_v56 = vld [vmem:[%s31127_s2 + $0x94c] ss:$16 sps:$4 sm:$0xff]  }
 0x62d   : > { %v21312_v13 = vpop.f32.mrf.mxu0  ;;  %v4574_v36 = vpop.f32.mrf.mxu1 }
 0x62e   : > { %5546 = vmatpush1.bf16.msra.mxu1 %v22025_v9  ;;  %v22034_v13 = vld [vmem:[%s31127_s2 + $0xb68] ss:$16 sps:$4 sm:$0xff]   ;;  %v26206_v9 = vpack.c.bf16 %v4574_v36, %v4570_v49  ;;  %v22045_v49 = vld [vmem:[%s31127_s2 + $0x92c] ss:$16 sps:$4 sm:$0xff]  }
 0x62f   : > { %v4616_v31 = vpop.f32.mrf.mxu0  ;;  %v4576_v2 = vpop.f32.mrf.mxu1  ;;  %5574 = vmatprep.subr.bf16.mxu1 %v22033_v24  ;;  %v22043_v24 = vld [vmem:[%s31127_s2 + $0x928] ss:$16 sps:$4 sm:$0xff]   ;;  %v22051_v36 = vld [vmem:[%s31127_s2 + $0x90c] ss:$16 sps:$4 sm:$0xff]  }
 0x630   : > { %v26198_v1 = vpack.c.bf16 %v4616_v31, %v4613_v8  ;;  %v4623_v22 = vpack.c.bf16 %v4576_v2, %v4572_v16  ;;  %v22042_v8 = vld [vmem:[%s31127_s2 + $0xb4c] ss:$16 sps:$4 sm:$0xff]   ;;  %v22040_v16 = vld [vmem:[%s31127_s2 + $0xb48] ss:$16 sps:$4 sm:$0xff]  }
 0x631   : > { %v21313_v41 = vpop.f32.mrf.mxu0  ;;  %v22046_v31 = vld [vmem:[%s31127_s2 + $0xb28] ss:$16 sps:$4 sm:$0xff]   ;;  %v22054_v2 = vld [vmem:[%s31127_s2 + $0xb0c] ss:$16 sps:$4 sm:$0xff]  }
 0x632   : > { %18649 = vmatmul.mubr.msk.bf16.vlgmr.msra.gmra.mxu1 %vm3274_vm8, %v26198_v1  ;;  %5520 = vmatprep.mubr.bf16.mxu0 %v4623_v22  ;;  %v22037_v41 = vld [vmem:[%s31127_s2 + $0x948] ss:$16 sps:$4 sm:$0xff]  }
 0x633   : > { %5575 = vmatpush1.bf16.msra.mxu1 %v22031_v5  ;;  %5606 = vmatprep.mubr.bf16.mxu1 %v4621_v55  ;;  %v22048_v55 = vld [vmem:[%s31127_s2 + $0xb2c] ss:$16 sps:$4 sm:$0xff]   ;;  %v22049_v5 = vld [vmem:[%s31127_s2 + $0x908] ss:$16 sps:$4 sm:$0xff]  }
 0x634   : > { %5521 = vmatmul.mubr.bf16.vlgmr.msra.gmra.mxu0 %v26206_v9  ;;  %5576 = vmatprep.subr.bf16.mxu1 %v22039_v56  ;;  %v22052_v56 = vld [vmem:[%s31127_s2 + $0xb08] ss:$16 sps:$4 sm:$0xff]  }
 0x635   : > { %5618 = vmatpush1.bf16.msra.mxu0 %v22034_v13  ;;  %5649 = vmatprep.mubr.bf16.mxu0 %v4623_v22  ;;  %v22057_v22 = vld [vmem:[%s31127_s2 + $0x8ec] ss:$16 sps:$4 sm:$0xff]  }
 0x636   : > { %5619 = vmatprep.subr.bf16.mxu0 %v22042_v8  ;;  %v22060_v13 = vld [vmem:[%s31127_s2 + $0xaec] ss:$16 sps:$4 sm:$0xff]   ;;  %v22055_v8 = vld [vmem:[%s31127_s2 + $0x8e8] ss:$16 sps:$4 sm:$0xff]  }
 0x637   : > { %5577 = vmatpush1.bf16.msra.mxu1 %v22037_v41  ;;  %v22063_v41 = vld [vmem:[%s31127_s2 + $0x8cc] ss:$16 sps:$4 sm:$0xff]  }
 0x638   : > { %5578 = vmatprep.subr.bf16.mxu1 %v22045_v49  ;;  %v22058_v49 = vld [vmem:[%s31127_s2 + $0xae8] ss:$16 sps:$4 sm:$0xff]  }
 0x639   : > { %5620 = vmatpush1.bf16.msra.mxu0 %v22040_v16  ;;  %v22066_v16 = vld [vmem:[%s31127_s2 + $0xacc] ss:$16 sps:$4 sm:$0xff]  }
 0x63a   : > { %5621 = vmatprep.subr.bf16.mxu0 %v22048_v55  ;;  %v22061_v55 = vld [vmem:[%s31127_s2 + $0x8c8] ss:$16 sps:$4 sm:$0xff]  }
 0x63b   : > { %5579 = vmatpush1.bf16.msra.mxu1 %v22043_v24  ;;  %v22069_v24 = vld [vmem:[%s31127_s2 + $0x8ac] ss:$16 sps:$4 sm:$0xff]  }
 0x63c   : > { %5580 = vmatprep.subr.bf16.mxu1 %v22051_v36  ;;  %v22064_v36 = vld [vmem:[%s31127_s2 + $0xac8] ss:$16 sps:$4 sm:$0xff]  }
 0x63d   : > { %5622 = vmatpush1.bf16.msra.mxu0 %v22046_v31  ;;  %v22072_v31 = vld [vmem:[%s31127_s2 + $0xaac] ss:$16 sps:$4 sm:$0xff]  }
 0x63e   : > { %5623 = vmatprep.subr.bf16.mxu0 %v22054_v2  ;;  %v22067_v2 = vld [vmem:[%s31127_s2 + $0x8a8] ss:$16 sps:$4 sm:$0xff]  }
 0x63f   : > { %5581 = vmatpush1.bf16.msra.mxu1 %v22049_v5  ;;  %v22075_v5 = vld [vmem:[%s31127_s2 + $0x88c] ss:$16 sps:$4 sm:$0xff]  }
 0x640   : > { %5582 = vmatprep.subr.bf16.mxu1 %v22057_v22  ;;  %v22070_v22 = vld [vmem:[%s31127_s2 + $0xaa8] ss:$16 sps:$4 sm:$0xff]  }
 0x641   : > { %5624 = vmatpush1.bf16.msra.mxu0 %v22052_v56  ;;  %v22078_v56 = vld [vmem:[%s31127_s2 + $0xa8c] ss:$16 sps:$4 sm:$0xff]  }
 0x642   : > { %5625 = vmatprep.subr.bf16.mxu0 %v22060_v13  ;;  %v22073_v13 = vld [vmem:[%s31127_s2 + $0x888] ss:$16 sps:$4 sm:$0xff]  }
 0x643   : > { %5583 = vmatpush1.bf16.msra.mxu1 %v22055_v8  ;;  %v22081_v8 = vld [vmem:[%s31127_s2 + $0xa6c] ss:$16 sps:$4 sm:$0xff]  }
 0x644   : > { %5584 = vmatprep.subr.bf16.mxu1 %v22063_v41  ;;  %v22076_v41 = vld [vmem:[%s31127_s2 + $0xa88] ss:$16 sps:$4 sm:$0xff]  }
 0x645   : > { %5626 = vmatpush1.bf16.msra.mxu0 %v22058_v49  ;;  %v22084_v49 = vld [vmem:[%s31127_s2 + $0xc6c] ss:$16 sps:$4 sm:$0xff]  }
 0x646   : > { %5627 = vmatprep.subr.bf16.mxu0 %v22066_v16  ;;  %v22079_v16 = vld [vmem:[%s31127_s2 + $0xa68] ss:$16 sps:$4 sm:$0xff]  }
 0x647   : > { %5585 = vmatpush1.bf16.msra.mxu1 %v22061_v55  ;;  %v22087_v55 = vld [vmem:[%s31127_s2 + $0xa4c] ss:$16 sps:$4 sm:$0xff]  }
 0x648   : > { %5586 = vmatprep.subr.bf16.mxu1 %v22069_v24  ;;  %v22082_v24 = vld [vmem:[%s31127_s2 + $0xc68] ss:$16 sps:$4 sm:$0xff]  }
 0x649   : > { %5628 = vmatpush1.bf16.msra.mxu0 %v22064_v36  ;;  %v22090_v36 = vld [vmem:[%s31127_s2 + $0xc4c] ss:$16 sps:$4 sm:$0xff]  }
 0x64a   : > { %5629 = vmatprep.subr.bf16.mxu0 %v22072_v31  ;;  %v22085_v31 = vld [vmem:[%s31127_s2 + $0xa48] ss:$16 sps:$4 sm:$0xff]  }
 0x64b   : > { %5587 = vmatpush1.bf16.msra.mxu1 %v22067_v2  ;;  %v22093_v2 = vld [vmem:[%s31127_s2 + $0xa2c] ss:$16 sps:$4 sm:$0xff]  }
 0x64c   : > { %5588 = vmatprep.subr.bf16.mxu1 %v22075_v5  ;;  %v22088_v5 = vld [vmem:[%s31127_s2 + $0xc48] ss:$16 sps:$4 sm:$0xff]  }
 0x64d   : > { %5630 = vmatpush1.bf16.msra.mxu0 %v22070_v22  ;;  %v22096_v22 = vld [vmem:[%s31127_s2 + $0xc2c] ss:$16 sps:$4 sm:$0xff]  }
 0x64e   : > { %5631 = vmatprep.subr.bf16.mxu0 %v22078_v56  ;;  %v22091_v56 = vld [vmem:[%s31127_s2 + $0xa28] ss:$16 sps:$4 sm:$0xff]  }
 0x64f   : > { %5589 = vmatpush1.bf16.msra.mxu1 %v22073_v13  ;;  %v22099_v13 = vld [vmem:[%s31127_s2 + $0xa0c] ss:$16 sps:$4 sm:$0xff]  }
 0x650   : > { %5590 = vmatprep.subr.bf16.mxu1 %v22081_v8  ;;  %v22094_v8 = vld [vmem:[%s31127_s2 + $0xc28] ss:$16 sps:$4 sm:$0xff]  }
 0x651   : > { %5632 = vmatpush1.bf16.msra.mxu0 %v22076_v41  ;;  %v22102_v41 = vld [vmem:[%s31127_s2 + $0xc0c] ss:$16 sps:$4 sm:$0xff]  }
 0x652   : > { %5633 = vmatprep.subr.bf16.mxu0 %v22084_v49  ;;  %v22097_v49 = vld [vmem:[%s31127_s2 + $0xa08] ss:$16 sps:$4 sm:$0xff]  }
 0x653   : > { %5591 = vmatpush2.bf16.msra.mxu1 %v22079_v16  ;;  %v22105_v16 = vld [vmem:[%s31127_s2 + $0x9ec] ss:$16 sps:$4 sm:$0xff]  }
 0x654   : > { %5592 = vmatprep.subr.bf16.mxu1 %v22087_v55  ;;  %v22100_v55 = vld [vmem:[%s31127_s2 + $0xc08] ss:$16 sps:$4 sm:$0xff]  }
 0x655   : > { %5634 = vmatpush2.bf16.msra.mxu0 %v22082_v24  ;;  %v22108_v24 = vld [vmem:[%s31127_s2 + $0xbec] ss:$16 sps:$4 sm:$0xff]  }
 0x656   : > { %5635 = vmatprep.subr.bf16.mxu0 %v22090_v36  ;;  %v22103_v36 = vld [vmem:[%s31127_s2 + $0x9e8] ss:$16 sps:$4 sm:$0xff]  }
 0x657   : > { %5593 = vmatpush2.bf16.msra.mxu1 %v22085_v31  ;;  %v22111_v31 = vld [vmem:[%s31127_s2 + $0x9cc] ss:$16 sps:$4 sm:$0xff]  }
 0x658   : > { %5594 = vmatprep.subr.bf16.mxu1 %v22093_v2  ;;  %v22106_v2 = vld [vmem:[%s31127_s2 + $0xbe8] ss:$16 sps:$4 sm:$0xff]  }
 0x659   : > { %5636 = vmatpush2.bf16.msra.mxu0 %v22088_v5  ;;  %v22114_v5 = vld [vmem:[%s31127_s2 + $0xbcc] ss:$16 sps:$4 sm:$0xff]  }
 0x65a   : > { %5637 = vmatprep.subr.bf16.mxu0 %v22096_v22  ;;  %v22109_v22 = vld [vmem:[%s31127_s2 + $0x9c8] ss:$16 sps:$4 sm:$0xff]  }
 0x65b   : > { %5595 = vmatpush2.bf16.msra.mxu1 %v22091_v56  ;;  %v22117_v56 = vld [vmem:[%s31127_s2 + $0x9ac] ss:$16 sps:$4 sm:$0xff]  }
 0x65c   : > { %5596 = vmatprep.subr.bf16.mxu1 %v22099_v13  ;;  %v22112_v13 = vld [vmem:[%s31127_s2 + $0xbc8] ss:$16 sps:$4 sm:$0xff]  }
 0x65d   : > { %5638 = vmatpush2.bf16.msra.mxu0 %v22094_v8  ;;  %v22120_v8 = vld [vmem:[%s31127_s2 + $0xbac] ss:$16 sps:$4 sm:$0xff]  }
 0x65e   : > { %5639 = vmatprep.subr.bf16.mxu0 %v22102_v41  ;;  %v22115_v41 = vld [vmem:[%s31127_s2 + $0x9a8] ss:$16 sps:$4 sm:$0xff]  }
 0x65f   : > { %5597 = vmatpush2.bf16.msra.mxu1 %v22097_v49  ;;  %v22123_v49 = vld [vmem:[%s31127_s2 + $0x98c] ss:$16 sps:$4 sm:$0xff]  }
 0x660   : > { %5598 = vmatprep.subr.bf16.mxu1 %v22105_v16  ;;  %v22118_v16 = vld [vmem:[%s31127_s2 + $0xba8] ss:$16 sps:$4 sm:$0xff]  }
 0x661   : > { %5640 = vmatpush2.bf16.msra.mxu0 %v22100_v55  ;;  %v22126_v55 = vld [vmem:[%s31127_s2 + $0xb8c] ss:$16 sps:$4 sm:$0xff]  }
 0x662   : > { %5641 = vmatprep.subr.bf16.mxu0 %v22108_v24  ;;  %v22121_v24 = vld [vmem:[%s31127_s2 + $0x988] ss:$16 sps:$4 sm:$0xff]  }
 0x663   : > { %5599 = vmatpush2.bf16.msra.mxu1 %v22103_v36  ;;  %v22129_v36 = vld [vmem:[%s31127_s2 + $0xcac] ss:$16 sps:$4 sm:$0xff]  }
 0x664   : > { %5600 = vmatprep.subr.bf16.mxu1 %v22111_v31  ;;  %v22124_v31 = vld [vmem:[%s31127_s2 + $0xb88] ss:$16 sps:$4 sm:$0xff]  }
 0x665   : > { %5642 = vmatpush2.bf16.msra.mxu0 %v22106_v2  ;;  %v22127_v2 = vld [vmem:[%s31127_s2 + $0xca8] ss:$16 sps:$4 sm:$0xff]  }
 0x666   : > { %5643 = vmatprep.subr.bf16.mxu0 %v22114_v5  ;;  %v22132_v5 = vld [vmem:[%s31127_s2 + $0xc8c] ss:$16 sps:$4 sm:$0xff]  }
 0x667   : > { %5601 = vmatpush2.bf16.msra.mxu1 %v22109_v22  ;;  %v5713_v22 = vsel %vm5711_vm11, 33, %v24731_v0 }
 0x668   : > { %5602 = vmatprep.subr.bf16.mxu1 %v22117_v56  ;;  %v22130_v56 = vld [vmem:[%s31127_s2 + $0xc88] ss:$16 sps:$4 sm:$0xff]  }
 0x669   : > { %5644 = vmatpush2.bf16.msra.mxu0 %v22112_v13  ;;  %v5715_v13 = vsel %vm1446_vm0, 32, %v5713_v22  ;;  %v22174_v22 = vld [vmem:[%s31127_s2 + $0xcc4] ss:$16 sps:$4 sm:$0xff]  }
 0x66a   : > { %5645 = vmatprep.subr.bf16.mxu0 %v22120_v8  ;;  %vm5717_vm4 = vcmp.eq.s32.totalorder %v24315_v25, %v5715_v13  ;;  %v22159_v8 = vld [vmem:[%s31127_s2 + $0xf44] ss:$16 sps:$4 sm:$0xff]  }
 0x66b   : > { %5603 = vmatpush2.bf16.msra.mxu1 %v22115_v41  ;;  %v22154_v41 = vld [vmem:[%s31127_s2 + $0xd20] ss:$16 sps:$4 sm:$0xff]   ;;  %v22177_v13 = vld [vmem:[%s31127_s2 + $0xee4] ss:$16 sps:$4 sm:$0xff]  }
 0x66c   : > { %5604 = vmatprep.subr.bf16.mxu1 %v22123_v49  ;;  %v22162_v49 = vld [vmem:[%s31127_s2 + $0xd04] ss:$16 sps:$4 sm:$0xff]  }
 0x66d   : > { %5646 = vmatpush2.bf16.msra.mxu0 %v22118_v16  ;;  %v22157_v16 = vld [vmem:[%s31127_s2 + $0xf40] ss:$16 sps:$4 sm:$0xff]  }
 0x66e   : > { %5647 = vmatprep.subr.bf16.mxu0 %v22126_v55  ;;  %v22165_v55 = vld [vmem:[%s31127_s2 + $0xf24] ss:$16 sps:$4 sm:$0xff]  }
 0x66f   : > { %5605 = vmatpush2.bf16.msra.mxu1 %v22121_v24  ;;  %v22160_v24 = vld [vmem:[%s31127_s2 + $0xd00] ss:$16 sps:$4 sm:$0xff]  }
 0x670   : > { %5672 = vmatprep.subr.bf16.mxu1 %v22129_v36  ;;  %v22168_v36 = vld [vmem:[%s31127_s2 + $0xce4] ss:$16 sps:$4 sm:$0xff]  }
 0x671   : > { %5648 = vmatpush2.bf16.msra.mxu0 %v22124_v31  ;;  %v22163_v31 = vld [vmem:[%s31127_s2 + $0xf20] ss:$16 sps:$4 sm:$0xff]  }
 0x672   : > { %5607 = vmatmul.mubr.bf16.vlgmr.msra.gmra.mxu1 %v26180_v43  ;;  %18653 = vmatprep.subr.msk.bf16.mxu0 %vm487_vm3, %v24850_v59  ;;  %v31140_v59 = vmov 0.0  }
 0x673   : > { %5673 = vmatpush1.bf16.msra.mxu1 %v22127_v2  ;;  %5692 = vmatprep.mubr.bf16.mxu1 %v31139_v52  ;;  %v18651_v43 = vsel %vm5717_vm4, 1.0, %v31140_v59  ;;  %v22171_v2 = vld [vmem:[%s31127_s2 + $0xf04] ss:$16 sps:$4 sm:$0xff]   ;;  %vm7376_vm4 = vcmp.eq.s32.totalorder %v24315_v25, %v24377_v54  ;;  %v22349_v54 = vld [vmem:[%s31128_s3 + $0x560] ss:$16 sps:$4 sm:$0xff]  }
 0x674   : > { %5650 = vmatmul.mubr.bf16.vlgmr.msra.gmra.mxu0 %v26206_v9  ;;  %5674 = vmatprep.subr.bf16.mxu1 %v22132_v5  ;;  %v18652_v9 = vsel %vm5718_vm1, 1.0, %v31140_v59  ;;  %v22166_v5 = vld [vmem:[%s31127_s2 + $0xce0] ss:$16 sps:$4 sm:$0xff]  }
 0x675   : > { %5738 = vmatpush1.bf16.msra.mxu0 %v24859_v58  ;;  %5759 = vmatprep.mubr.bf16.mxu0 %v31139_v52  ;;  %v5723_v62 = vpack.c.bf16 %v18652_v9, %v18651_v43  ;;  %v22133_v58 = vld [vmem:[%s31127_s2 + $0xda0] ss:$16 sps:$4 sm:$0xff]   ;;  %v22180_v9 = vld [vmem:[%s31127_s2 + $0xea4] ss:$16 sps:$4 sm:$0xff]  }
 0x676   : > { %5739 = vmatprep.subr.bf16.mxu0 %v24960_v7  ;;  %v22147_v7 = vld [vmem:[%s31127_s2 + $0xf84] ss:$16 sps:$4 sm:$0xff]   ;;  %v22172_v43 = vld [vmem:[%s31127_s2 + $0xcc0] ss:$16 sps:$4 sm:$0xff]  }
 0x677   : > { %5675 = vmatpush1.bf16.msra.mxu1 %v22130_v56  ;;  %v22169_v56 = vld [vmem:[%s31127_s2 + $0xf00] ss:$16 sps:$4 sm:$0xff]  }
 0x678   : > { %18655 = vmatprep.subr.msk.bf16.mxu1 %vm487_vm3, %v24852_v15  ;;  %v22135_v15 = vld [vmem:[%s31127_s2 + $0xda4] ss:$16 sps:$4 sm:$0xff]  }
 0x679   : > { %5740 = vmatpush1.bf16.msra.mxu0 %v24962_v46  ;;  %v22142_v46 = vld [vmem:[%s31127_s2 + $0xd60] ss:$16 sps:$4 sm:$0xff]  }
 0x67a   : > { %18650 = vmatmul.mubr.msk.bf16.vlgmr.msra.gmra.mxu1 %vm3274_vm8, %v26198_v1  ;;  %5741 = vmatprep.subr.bf16.mxu0 %v24948_v17  ;;  %v22141_v17 = vld [vmem:[%s31127_s2 + $0xfa4] ss:$16 sps:$4 sm:$0xff]   ;;  %v22151_v1 = vld [vmem:[%s31127_s2 + $0xf60] ss:$16 sps:$4 sm:$0xff]  }
 0x67b   : > { %5781 = vmatpush1.bf16.msra.mxu1 %v24862_v19  ;;  %5802 = vmatprep.mubr.bf16.mxu1 %v31139_v52  ;;  %v22138_v19 = vld [vmem:[%s31127_s2 + $0xd84] ss:$16 sps:$4 sm:$0xff]  }
 0x67c   : > { %5782 = vmatprep.subr.bf16.mxu1 %v24965_v18  ;;  %v22150_v18 = vld [vmem:[%s31127_s2 + $0xd44] ss:$16 sps:$4 sm:$0xff]  }
 0x67d   : > { %5742 = vmatpush1.bf16.msra.mxu0 %v24955_v14  ;;  %v22144_v14 = vld [vmem:[%s31127_s2 + $0xd64] ss:$16 sps:$4 sm:$0xff]  }
 0x67e   : > { %21314 = vmatprep.subr.bf16.mxu0 %v31140_v59 }
 0x67f   : > { %5783 = vmatpush1.bf16.msra.mxu1 %v24967_v34  ;;  %v22145_v34 = vld [vmem:[%s31127_s2 + $0xf80] ss:$16 sps:$4 sm:$0xff]  }
 0x680   : > { %18654 = vmatmul.mubr.msk.bf16.vlgmr.msra.gmra.mxu0 %vm2022_vm6, %v5723_v62  ;;  %5784 = vmatprep.subr.bf16.mxu1 %v24950_v4  ;;  %v22136_v4 = vld [vmem:[%s31127_s2 + $0xd80] ss:$16 sps:$4 sm:$0xff]  }
 0x681   : > { %21315 = vmatpush3.bf16.msra.mxu0 %v24977_v44  ;;  %21320 = vmatprep.mubr.msk.bf16.mxu0 %vm24204_vm7, %v31140_v59  ;;  %v22153_v44 = vld [vmem:[%s31127_s2 + $0xf64] ss:$16 sps:$4 sm:$0xff]  }
 0x682   : > { %21316 = vmatprep.subr.bf16.mxu0 %v31140_v59 }
 0x683   : > { %5785 = vmatpush1.bf16.msra.mxu1 %v24958_v39  ;;  %v22139_v39 = vld [vmem:[%s31127_s2 + $0xfa0] ss:$16 sps:$4 sm:$0xff]  }
 0x684   : > { %6679 = vmatprep.subr.bf16.mxu1 %v22135_v15  ;;  %v22183_v15 = vld [vmem:[%s31127_s2 + $0xec4] ss:$16 sps:$4 sm:$0xff]  }
 0x685   : > { %21317 = vmatpush3.bf16.msra.mxu0 %v25928_v20  ;;  %v22148_v20 = vld [vmem:[%s31127_s2 + $0xd40] ss:$16 sps:$4 sm:$0xff]  }
 0x686   : > { %18656 = vmatmul.mubr.msk.bf16.vlgmr.msra.gmra.mxu1 %vm2022_vm6, %v5723_v62  ;;  %21318 = vmatprep.subr.bf16.mxu0 %v31140_v59 }
 0x687   : > { %6680 = vmatpush1.bf16.msra.mxu1 %v22133_v58  ;;  %v22178_v58 = vld [vmem:[%s31127_s2 + $0xea0] ss:$16 sps:$4 sm:$0xff]  }
 0x688   : > { %6681 = vmatprep.subr.bf16.mxu1 %v22138_v19  ;;  %v22186_v19 = vld [vmem:[%s31127_s2 + $0xe84] ss:$16 sps:$4 sm:$0xff]  }
 0x689   : > { %21319 = vmatpush3.bf16.msra.mxu0 %v25942_v51  ;;  %v22156_v51 = vld [vmem:[%s31127_s2 + $0xd24] ss:$16 sps:$4 sm:$0xff]  }
 0x68a   : > { %6722 = vmatprep.subr.bf16.mxu0 %v22141_v17  ;;  %v22181_v17 = vld [vmem:[%s31127_s2 + $0xec0] ss:$16 sps:$4 sm:$0xff]  }
 0x68b   : > { %6682 = vmatpush1.bf16.msra.mxu1 %v22136_v4  ;;  %v22189_v4 = vld [vmem:[%s31127_s2 + $0x10a4] ss:$16 sps:$4 sm:$0xff]  }
 0x68c   : > { %21321 = vmatmul.mubr.msk.bf16.vlgmr.msra.gmra.mxu0 %vm2022_vm6, %v5723_v62  ;;  %6683 = vmatprep.subr.bf16.mxu1 %v22144_v14  ;;  %v22175_v62 = vld [vmem:[%s31127_s2 + $0xee0] ss:$16 sps:$4 sm:$0xff]  }
 0x68d   : > { %6723 = vmatpush1.bf16.msra.mxu0 %v22139_v39  ;;  %v22184_v14 = vld [vmem:[%s31127_s2 + $0xe80] ss:$16 sps:$4 sm:$0xff]  }
 0x68e   : > { %6724 = vmatprep.subr.bf16.mxu0 %v22147_v7  ;;  %v22187_v39 = vld [vmem:[%s31127_s2 + $0x10a0] ss:$16 sps:$4 sm:$0xff]   ;;  %v22192_v7 = vld [vmem:[%s31127_s2 + $0xe64] ss:$16 sps:$4 sm:$0xff]  }
 0x68f   : > { %6684 = vmatpush1.bf16.msra.mxu1 %v22142_v46  ;;  %v22190_v46 = vld [vmem:[%s31127_s2 + $0xe60] ss:$16 sps:$4 sm:$0xff]  }
 0x690   : > { %6685 = vmatprep.subr.bf16.mxu1 %v22150_v18  ;;  %v22195_v18 = vld [vmem:[%s31127_s2 + $0x1084] ss:$16 sps:$4 sm:$0xff]  }
 0x691   : > { %6725 = vmatpush1.bf16.msra.mxu0 %v22145_v34  ;;  %v22193_v34 = vld [vmem:[%s31127_s2 + $0x1080] ss:$16 sps:$4 sm:$0xff]  }
 0x692   : > { %6726 = vmatprep.subr.bf16.mxu0 %v22153_v44  ;;  %v22198_v44 = vld [vmem:[%s31127_s2 + $0xe44] ss:$16 sps:$4 sm:$0xff]  }
 0x693   : > { %6686 = vmatpush1.bf16.msra.mxu1 %v22148_v20  ;;  %v22196_v20 = vld [vmem:[%s31127_s2 + $0xe40] ss:$16 sps:$4 sm:$0xff]  }
 0x694   : > { %6687 = vmatprep.subr.bf16.mxu1 %v22156_v51  ;;  %v22201_v51 = vld [vmem:[%s31127_s2 + $0x1064] ss:$16 sps:$4 sm:$0xff]  }
 0x695   : > { %6727 = vmatpush1.bf16.msra.mxu0 %v22151_v1  ;;  %v22199_v1 = vld [vmem:[%s31127_s2 + $0x1060] ss:$16 sps:$4 sm:$0xff]  }
 0x696   : > { %6728 = vmatprep.subr.bf16.mxu0 %v22159_v8  ;;  %v22204_v8 = vld [vmem:[%s31127_s2 + $0xe24] ss:$16 sps:$4 sm:$0xff]  }
 0x697   : > { %6688 = vmatpush1.bf16.msra.mxu1 %v22154_v41  ;;  %v22202_v41 = vld [vmem:[%s31127_s2 + $0xe20] ss:$16 sps:$4 sm:$0xff]  }
 0x698   : > { %6689 = vmatprep.subr.bf16.mxu1 %v22162_v49  ;;  %v22207_v49 = vld [vmem:[%s31127_s2 + $0x1044] ss:$16 sps:$4 sm:$0xff]  }
 0x699   : > { %6729 = vmatpush1.bf16.msra.mxu0 %v22157_v16  ;;  %v22205_v16 = vld [vmem:[%s31127_s2 + $0x1040] ss:$16 sps:$4 sm:$0xff]  }
 0x69a   : > { %6730 = vmatprep.subr.bf16.mxu0 %v22165_v55  ;;  %v22210_v55 = vld [vmem:[%s31127_s2 + $0xe04] ss:$16 sps:$4 sm:$0xff]  }
 0x69b   : > { %6690 = vmatpush1.bf16.msra.mxu1 %v22160_v24  ;;  %v22208_v24 = vld [vmem:[%s31127_s2 + $0xe00] ss:$16 sps:$4 sm:$0xff]  }
 0x69c   : > { %6691 = vmatprep.subr.bf16.mxu1 %v22168_v36  ;;  %v22213_v36 = vld [vmem:[%s31127_s2 + $0x1024] ss:$16 sps:$4 sm:$0xff]  }
 0x69d   : > { %6731 = vmatpush1.bf16.msra.mxu0 %v22163_v31  ;;  %v22211_v31 = vld [vmem:[%s31127_s2 + $0x1020] ss:$16 sps:$4 sm:$0xff]  }
 0x69e   : > { %6732 = vmatprep.subr.bf16.mxu0 %v22171_v2  ;;  %v22216_v2 = vld [vmem:[%s31127_s2 + $0xde4] ss:$16 sps:$4 sm:$0xff]  }
 0x69f   : > { %6692 = vmatpush1.bf16.msra.mxu1 %v22166_v5  ;;  %v22214_v5 = vld [vmem:[%s31127_s2 + $0xde0] ss:$16 sps:$4 sm:$0xff]  }
 0x6a0   : > { %6693 = vmatprep.subr.bf16.mxu1 %v22174_v22  ;;  %v22219_v22 = vld [vmem:[%s31127_s2 + $0x1004] ss:$16 sps:$4 sm:$0xff]  }
 0x6a1   : > { %6733 = vmatpush1.bf16.msra.mxu0 %v22169_v56  ;;  %v22217_v56 = vld [vmem:[%s31127_s2 + $0x1000] ss:$16 sps:$4 sm:$0xff]  }
 0x6a2   : > { %6734 = vmatprep.subr.bf16.mxu0 %v22177_v13  ;;  %v22222_v13 = vld [vmem:[%s31127_s2 + $0xdc4] ss:$16 sps:$4 sm:$0xff]  }
 0x6a3   : > { %6694 = vmatpush1.bf16.msra.mxu1 %v22172_v43  ;;  %v22220_v43 = vld [vmem:[%s31127_s2 + $0xdc0] ss:$16 sps:$4 sm:$0xff]  }
 0x6a4   : > { %6695 = vmatprep.subr.bf16.mxu1 %v22180_v9  ;;  %v22225_v9 = vld [vmem:[%s31127_s2 + $0xfe4] ss:$16 sps:$4 sm:$0xff]  }
 0x6a5   : > { %6735 = vmatpush1.bf16.msra.mxu0 %v22175_v62  ;;  %v22223_v62 = vld [vmem:[%s31127_s2 + $0xfe0] ss:$16 sps:$4 sm:$0xff]  }
 0x6a6   : > { %6736 = vmatprep.subr.bf16.mxu0 %v22183_v15  ;;  %v22228_v15 = vld [vmem:[%s31127_s2 + $0x10e4] ss:$16 sps:$4 sm:$0xff]  }
 0x6a7   : > { %6696 = vmatpush2.bf16.msra.mxu1 %v22178_v58  ;;  %v22231_v58 = vld [vmem:[%s31127_s2 + $0xfc4] ss:$16 sps:$4 sm:$0xff]  }
 0x6a8   : > { %6697 = vmatprep.subr.bf16.mxu1 %v22186_v19  ;;  %v22229_v19 = vld [vmem:[%s31127_s2 + $0xfc0] ss:$16 sps:$4 sm:$0xff]  }
 0x6a9   : > { %6737 = vmatpush1.bf16.msra.mxu0 %v22181_v17  ;;  %v22237_v17 = vld [vmem:[%s31127_s2 + $0xdac] ss:$16 sps:$4 sm:$0xff]  }
 0x6aa   : > { %6738 = vmatprep.subr.bf16.mxu0 %v22189_v4 }
 0x6ab   : > { %6698 = vmatpush2.bf16.msra.mxu1 %v22184_v14 }
 0x6ac   : > { %6699 = vmatprep.subr.bf16.mxu1 %v22192_v7 }
 0x6ad   : > { %6739 = vmatpush2.bf16.msra.mxu0 %v22187_v39 }
 0x6ae   : > { %6740 = vmatprep.subr.bf16.mxu0 %v22195_v18 }
 0x6af   : > { %6700 = vmatpush2.bf16.msra.mxu1 %v22190_v46 }
 0x6b0   : > { %6701 = vmatprep.subr.bf16.mxu1 %v22198_v44 }
 0x6b1   : > { %6741 = vmatpush2.bf16.msra.mxu0 %v22193_v34 }
 0x6b2   : > { %6742 = vmatprep.subr.bf16.mxu0 %v22201_v51 }
 0x6b3   : > { %6702 = vmatpush2.bf16.msra.mxu1 %v22196_v20 }
 0x6b4   : > { %6703 = vmatprep.subr.bf16.mxu1 %v22204_v8 }
 0x6b5   : > { %6743 = vmatpush2.bf16.msra.mxu0 %v22199_v1 }
 0x6b6   : > { %6744 = vmatprep.subr.bf16.mxu0 %v22207_v49 }
 0x6b7   : > { %6704 = vmatpush2.bf16.msra.mxu1 %v22202_v41 }
 0x6b8   : > { %6705 = vmatprep.subr.bf16.mxu1 %v22210_v55 }
 0x6b9   : > { %6745 = vmatpush2.bf16.msra.mxu0 %v22205_v16 }
 0x6ba   : > { %6746 = vmatprep.subr.bf16.mxu0 %v22213_v36 }
 0x6bb   : > { %6706 = vmatpush2.bf16.msra.mxu1 %v22208_v24 }
 0x6bc   : > { %6707 = vmatprep.subr.bf16.mxu1 %v22216_v2 }
 0x6bd   : > { %6747 = vmatpush2.bf16.msra.mxu0 %v22211_v31 }
 0x6be   : > { %6748 = vmatprep.subr.bf16.mxu0 %v22219_v22 }
 0x6bf   : > { %6708 = vmatpush2.bf16.msra.mxu1 %v22214_v5 }
 0x6c0   : > { %6709 = vmatprep.subr.bf16.mxu1 %v22222_v13 }
 0x6c1   : > { %6749 = vmatpush2.bf16.msra.mxu0 %v22217_v56 }
 0x6c2   : > { %6750 = vmatprep.subr.bf16.mxu0 %v22225_v9 }
 0x6c3   : > { %6710 = vmatpush2.bf16.msra.mxu1 %v22220_v43 }
 0x6c4   : > { %6777 = vmatprep.subr.bf16.mxu1 %v22228_v15 }
 0x6c5   : > { %6751 = vmatpush2.bf16.msra.mxu0 %v22223_v62 }
 0x6c6   : > { %6752 = vmatprep.subr.bf16.mxu0 %v22231_v58 }
 0x6c9   : > { %6753 = vmatpush2.bf16.msra.mxu0 %v22229_v19 }
 0x6ca   : > { %6808 = vmatprep.subr.bf16.mxu0 %v22237_v17 }
 0x6e9   : > { %v5479_v4 = vpop.f32.mrf.mxu1 }
 0x6eb   : > { %v5481_v14 = vpop.f32.mrf.mxu1 }
 0x6ed   : > { %v5483_v39 = vpop.f32.mrf.mxu1 }
 0x6ef   : > { %v26639_v7 = vpop.f32.mrf.mxu1 }
 0x6f2   : > { %v5565_v46 = vpop.f32.mrf.mxu1 }
 0x6f4   : > { %v5522_v18 = vpop.f32.mrf.mxu0  ;;  %v5567_v44 = vpop.f32.mrf.mxu1 }
 0x6f5   : > { %v5523_v34 = vadd.f32 %v5522_v18, %v5479_v4 }
 0x6f6   : > { %v5524_v20 = vpop.f32.mrf.mxu0  ;;  %v5569_v55 = vpop.f32.mrf.mxu1 }
 0x6f7   : > { %v5566_v51 = vadd.f32 %v5565_v46, %v5523_v34  ;;  %v5525_v1 = vadd.f32 %v5524_v20, %v5481_v14 }
 0x6f8   : > { %v5526_v8 = vpop.f32.mrf.mxu0  ;;  %v26650_v2 = vpop.f32.mrf.mxu1 }
 0x6f9   : > { %v5568_v41 = vadd.f32 %v5567_v44, %v5525_v1  ;;  %v5527_v49 = vadd.f32 %v5526_v8, %v5483_v39  ;;  %v26642_v16 = vadd.f32 %v5566_v51, %v26154_v23 }
 0x6fa   : > { %v26652_v5 = vpop.f32.mrf.mxu0 }
 0x6fb   : > { %v5570_v24 = vadd.f32 %v5569_v55, %v5527_v49  ;;  %v26645_v36 = vadd.f32 %v5568_v41, %v26156_v28  ;;  %v22226_v55 = vld [vmem:[%s31127_s2 + $0x10e0] ss:$16 sps:$4 sm:$0xff]  }
 0x6fd   : > { %v26648_v31 = vadd.f32 %v5570_v24, %v26158_v61 }
 0x732   : > { %v5608_v22 = vpop.f32.mrf.mxu1 }
 0x734   : > { %v5610_v56 = vpop.f32.mrf.mxu1  ;;  %v5651_v13 = vpop.f32.mrf.mxu0 }
 0x735   : > { %v5652_v43 = vadd.f32 %v5651_v13, %v5608_v22  ;;  %v22234_v22 = vld [vmem:[%s31127_s2 + $0x10c4] ss:$16 sps:$4 sm:$0xff]  }
 0x736   : > { %v5612_v9 = vpop.f32.mrf.mxu1  ;;  %v5653_v62 = vpop.f32.mrf.mxu0 }
 0x737   : > { %v5654_v23 = vadd.f32 %v5653_v62, %v5610_v56  ;;  %v22232_v56 = vld [vmem:[%s31127_s2 + $0x10c0] ss:$16 sps:$4 sm:$0xff]  }
 0x738   : > { %v26654_v15 = vpop.f32.mrf.mxu1  ;;  %v5655_v58 = vpop.f32.mrf.mxu0 }
 0x739   : > { %v5656_v19 = vadd.f32 %v5655_v58, %v5612_v9  ;;  %v22240_v9 = vld [vmem:[%s31127_s2 + $0xfac] ss:$16 sps:$4 sm:$0xff]  }
 0x73a   : > { %v5694_v28 = vpop.f32.mrf.mxu1  ;;  %v26659_v39 = vpop.f32.mrf.mxu0 }
 0x73b   : > { %v5695_v17 = vadd.f32 %v5694_v28, %v5652_v43  ;;  %v22243_v28 = vld [vmem:[%s31127_s2 + $0xd8c] ss:$16 sps:$4 sm:$0xff]  }
 0x73c   : > { %v5696_v4 = vpop.f32.mrf.mxu1 }
 0x73d   : > { %v26657_v61 = vadd.f32 %v5695_v17, %v26171_v6  ;;  %v5697_v14 = vadd.f32 %v5696_v4, %v5654_v23  ;;  %v22235_v23 = vld [vmem:[%s31127_s2 + $0xda8] ss:$16 sps:$4 sm:$0xff]  }
 0x73e   : > { %v5698_v46 = vpop.f32.mrf.mxu1  ;;  %v22238_v4 = vld [vmem:[%s31127_s2 + $0xfa8] ss:$16 sps:$4 sm:$0xff]  }
 0x73f   : > { %v26662_v18 = vadd.f32 %v5697_v14, %v26173_v29  ;;  %v5699_v34 = vadd.f32 %v5698_v46, %v5656_v19  ;;  %v22241_v46 = vld [vmem:[%s31127_s2 + $0xd88] ss:$16 sps:$4 sm:$0xff]  }
 0x740   : > { %v5761_v44 = vpop.f32.mrf.mxu0  ;;  %v26667_v1 = vpop.f32.mrf.mxu1 }
 0x741   : > { %v26665_v20 = vadd.f32 %v5699_v34, %v26175_v11  ;;  %v22246_v34 = vld [vmem:[%s31127_s2 + $0xf8c] ss:$16 sps:$4 sm:$0xff]  }
 0x742   : > { %v5763_v51 = vpop.f32.mrf.mxu0 }
 0x744   : > { %v5765_v8 = vpop.f32.mrf.mxu0 }
 0x745   : > { %v26672_v24 = vpack.c.bf16 %v5765_v8, %v5761_v44  ;;  %v22244_v8 = vld [vmem:[%s31127_s2 + $0xf88] ss:$16 sps:$4 sm:$0xff]  }
 0x746   : > { %v5767_v41 = vpop.f32.mrf.mxu0  ;;  %v5804_v49 = vpop.f32.mrf.mxu1 }
 0x747   : > { %v5855_v6 = vpack.c.bf16 %v5767_v41, %v5763_v51  ;;  %v22249_v51 = vld [vmem:[%s31127_s2 + $0xd6c] ss:$16 sps:$4 sm:$0xff]   ;;  %v22247_v41 = vld [vmem:[%s31127_s2 + $0xd68] ss:$16 sps:$4 sm:$0xff]  }
 0x748   : > { %v5806_v29 = vpop.f32.mrf.mxu1 }
 0x749   : > { %6711 = vmatprep.mubr.bf16.mxu1 %v5855_v6 }
 0x74a   : > { %v5808_v11 = vpop.f32.mrf.mxu1  ;;  %6712 = vmatmul.mubr.bf16.vlgmr.msra.gmra.mxu1 %v26672_v24 }
 0x74b   : > { %6778 = vmatpush1.bf16.msra.mxu1 %v22226_v55  ;;  %6797 = vmatprep.mubr.bf16.mxu1 %v31139_v52  ;;  %v26688_v58 = vpack.c.bf16 %v5808_v11, %v5804_v49  ;;  %v22252_v49 = vld [vmem:[%s31127_s2 + $0xf6c] ss:$16 sps:$4 sm:$0xff]   ;;  %v22250_v55 = vld [vmem:[%s31127_s2 + $0xf68] ss:$16 sps:$4 sm:$0xff]  }
 0x74c   : > { %v5810_v13 = vpop.f32.mrf.mxu1  ;;  %v5847_v43 = vpop.f32.mrf.mxu0  ;;  %6779 = vmatprep.subr.bf16.mxu1 %v22234_v22  ;;  %v22258_v22 = vld [vmem:[%s31127_s2 + $0xf4c] ss:$16 sps:$4 sm:$0xff]  }
 0x74d   : > { %v5857_v62 = vpack.c.bf16 %v5810_v13, %v5806_v29  ;;  %v22253_v29 = vld [vmem:[%s31127_s2 + $0xd48] ss:$16 sps:$4 sm:$0xff]   ;;  %v22261_v11 = vld [vmem:[%s31127_s2 + $0xd2c] ss:$16 sps:$4 sm:$0xff]  }
 0x74e   : > { %v21322_v19 = vpop.f32.mrf.mxu0  ;;  %v22259_v13 = vld [vmem:[%s31127_s2 + $0xd28] ss:$16 sps:$4 sm:$0xff]  }
 0x74f   : > { %6754 = vmatprep.mubr.bf16.mxu0 %v5857_v62  ;;  %6780 = vmatpush1.bf16.msra.mxu1 %v22232_v56  ;;  %v22256_v56 = vld [vmem:[%s31127_s2 + $0xf48] ss:$16 sps:$4 sm:$0xff]   ;;  %v22270_v19 = vld [vmem:[%s31127_s2 + $0xf0c] ss:$16 sps:$4 sm:$0xff]  }
 0x750   : > { %v5850_v17 = vpop.f32.mrf.mxu0  ;;  %6755 = vmatmul.mubr.bf16.vlgmr.msra.gmra.mxu0 %v26688_v58  ;;  %6851 = vmatprep.subr.bf16.mxu1 %v22240_v9  ;;  %v22267_v9 = vld [vmem:[%s31127_s2 + $0xd0c] ss:$16 sps:$4 sm:$0xff]  }
 0x751   : > { %v26697_v14 = vpack.c.bf16 %v5850_v17, %v5847_v43  ;;  %6809 = vmatpush1.bf16.msra.mxu0 %v22235_v23  ;;  %6840 = vmatprep.mubr.bf16.mxu0 %v5855_v6  ;;  %v22255_v6 = vld [vmem:[%s31127_s2 + $0xd4c] ss:$16 sps:$4 sm:$0xff]   ;;  %v22265_v23 = vld [vmem:[%s31127_s2 + $0xd08] ss:$16 sps:$4 sm:$0xff]  }
 0x752   : > { %v21323_v44 = vpop.f32.mrf.mxu0  ;;  %6810 = vmatprep.subr.bf16.mxu0 %v22243_v28  ;;  %v22264_v43 = vld [vmem:[%s31127_s2 + $0xf2c] ss:$16 sps:$4 sm:$0xff]   ;;  %v22268_v17 = vld [vmem:[%s31127_s2 + $0xf08] ss:$16 sps:$4 sm:$0xff]  }
 0x753   : > { %18930 = vmatmul.mubr.msk.bf16.vlgmr.msra.gmra.mxu1 %vm3274_vm8, %v26697_v14  ;;  %v22273_v28 = vld [vmem:[%s31127_s2 + $0xcec] ss:$16 sps:$4 sm:$0xff]   ;;  %v22274_v44 = vld [vmem:[%s31127_s2 + $0xee8] ss:$16 sps:$4 sm:$0xff]  }
 0x754   : > { %6852 = vmatpush1.bf16.msra.mxu1 %v22238_v4  ;;  %6883 = vmatprep.mubr.bf16.mxu1 %v5857_v62  ;;  %v22262_v62 = vld [vmem:[%s31127_s2 + $0xf28] ss:$16 sps:$4 sm:$0xff]  }
 0x755   : > { %6811 = vmatpush1.bf16.msra.mxu0 %v22241_v46  ;;  %6853 = vmatprep.subr.bf16.mxu1 %v22246_v34  ;;  %v22271_v4 = vld [vmem:[%s31127_s2 + $0xce8] ss:$16 sps:$4 sm:$0xff]   ;;  %v22276_v46 = vld [vmem:[%s31127_s2 + $0xeec] ss:$16 sps:$4 sm:$0xff]  }
 0x756   : > { %6812 = vmatprep.subr.bf16.mxu0 %v22249_v51  ;;  %v22279_v34 = vld [vmem:[%s31127_s2 + $0xccc] ss:$16 sps:$4 sm:$0xff]   ;;  %v22277_v51 = vld [vmem:[%s31127_s2 + $0xcc8] ss:$16 sps:$4 sm:$0xff]  }
 0x758   : > { %6854 = vmatpush1.bf16.msra.mxu1 %v22244_v8  ;;  %v22282_v8 = vld [vmem:[%s31127_s2 + $0xecc] ss:$16 sps:$4 sm:$0xff]  }
 0x759   : > { %6813 = vmatpush1.bf16.msra.mxu0 %v22247_v41  ;;  %6855 = vmatprep.subr.bf16.mxu1 %v22252_v49  ;;  %v22285_v41 = vld [vmem:[%s31127_s2 + $0xeac] ss:$16 sps:$4 sm:$0xff]   ;;  %v22280_v49 = vld [vmem:[%s31127_s2 + $0xec8] ss:$16 sps:$4 sm:$0xff]  }
 0x75a   : > { %6814 = vmatprep.subr.bf16.mxu0 %v22255_v6  ;;  %v22283_v6 = vld [vmem:[%s31127_s2 + $0xea8] ss:$16 sps:$4 sm:$0xff]  }
 0x75c   : > { %6856 = vmatpush1.bf16.msra.mxu1 %v22250_v55  ;;  %v22288_v55 = vld [vmem:[%s31127_s2 + $0x10ac] ss:$16 sps:$4 sm:$0xff]  }
 0x75d   : > { %6815 = vmatpush1.bf16.msra.mxu0 %v22253_v29  ;;  %6857 = vmatprep.subr.bf16.mxu1 %v22258_v22  ;;  %v22291_v29 = vld [vmem:[%s31127_s2 + $0xe8c] ss:$16 sps:$4 sm:$0xff]   ;;  %v22286_v22 = vld [vmem:[%s31127_s2 + $0x10a8] ss:$16 sps:$4 sm:$0xff]  }
 0x75e   : > { %6816 = vmatprep.subr.bf16.mxu0 %v22261_v11  ;;  %v22289_v11 = vld [vmem:[%s31127_s2 + $0xe88] ss:$16 sps:$4 sm:$0xff]  }
 0x760   : > { %6858 = vmatpush1.bf16.msra.mxu1 %v22256_v56  ;;  %v22294_v56 = vld [vmem:[%s31127_s2 + $0x108c] ss:$16 sps:$4 sm:$0xff]  }
 0x761   : > { %6817 = vmatpush1.bf16.msra.mxu0 %v22259_v13  ;;  %6859 = vmatprep.subr.bf16.mxu1 %v22264_v43  ;;  %v22297_v13 = vld [vmem:[%s31127_s2 + $0xe6c] ss:$16 sps:$4 sm:$0xff]   ;;  %v22292_v43 = vld [vmem:[%s31127_s2 + $0x1088] ss:$16 sps:$4 sm:$0xff]  }
 0x762   : > { %6818 = vmatprep.subr.bf16.mxu0 %v22267_v9  ;;  %v22295_v9 = vld [vmem:[%s31127_s2 + $0xe68] ss:$16 sps:$4 sm:$0xff]  }
 0x764   : > { %6860 = vmatpush1.bf16.msra.mxu1 %v22262_v62  ;;  %v22300_v62 = vld [vmem:[%s31127_s2 + $0x106c] ss:$16 sps:$4 sm:$0xff]  }
 0x765   : > { %6819 = vmatpush1.bf16.msra.mxu0 %v22265_v23  ;;  %6861 = vmatprep.subr.bf16.mxu1 %v22270_v19  ;;  %v22303_v23 = vld [vmem:[%s31127_s2 + $0xe4c] ss:$16 sps:$4 sm:$0xff]   ;;  %v22298_v19 = vld [vmem:[%s31127_s2 + $0x1068] ss:$16 sps:$4 sm:$0xff]  }
 0x766   : > { %6820 = vmatprep.subr.bf16.mxu0 %v22273_v28  ;;  %v22301_v28 = vld [vmem:[%s31127_s2 + $0xe48] ss:$16 sps:$4 sm:$0xff]  }
 0x768   : > { %6862 = vmatpush1.bf16.msra.mxu1 %v22268_v17  ;;  %v22306_v17 = vld [vmem:[%s31127_s2 + $0x104c] ss:$16 sps:$4 sm:$0xff]  }
 0x769   : > { %6821 = vmatpush1.bf16.msra.mxu0 %v22271_v4  ;;  %6863 = vmatprep.subr.bf16.mxu1 %v22276_v46  ;;  %v22309_v4 = vld [vmem:[%s31127_s2 + $0xe2c] ss:$16 sps:$4 sm:$0xff]   ;;  %v22304_v46 = vld [vmem:[%s31127_s2 + $0x1048] ss:$16 sps:$4 sm:$0xff]  }
 0x76a   : > { %6822 = vmatprep.subr.bf16.mxu0 %v22279_v34  ;;  %v22307_v34 = vld [vmem:[%s31127_s2 + $0xe28] ss:$16 sps:$4 sm:$0xff]  }
 0x76c   : > { %6864 = vmatpush1.bf16.msra.mxu1 %v22274_v44  ;;  %v22312_v44 = vld [vmem:[%s31127_s2 + $0x102c] ss:$16 sps:$4 sm:$0xff]  }
 0x76d   : > { %6823 = vmatpush1.bf16.msra.mxu0 %v22277_v51  ;;  %6865 = vmatprep.subr.bf16.mxu1 %v22282_v8  ;;  %v22315_v51 = vld [vmem:[%s31127_s2 + $0xe0c] ss:$16 sps:$4 sm:$0xff]   ;;  %v22310_v8 = vld [vmem:[%s31127_s2 + $0x1028] ss:$16 sps:$4 sm:$0xff]  }
 0x76e   : > { %6824 = vmatprep.subr.bf16.mxu0 %v22285_v41  ;;  %v22313_v41 = vld [vmem:[%s31127_s2 + $0xe08] ss:$16 sps:$4 sm:$0xff]  }
 0x770   : > { %6866 = vmatpush1.bf16.msra.mxu1 %v22280_v49  ;;  %v22318_v49 = vld [vmem:[%s31127_s2 + $0x100c] ss:$16 sps:$4 sm:$0xff]  }
 0x771   : > { %6825 = vmatpush2.bf16.msra.mxu0 %v22283_v6  ;;  %6867 = vmatprep.subr.bf16.mxu1 %v22288_v55  ;;  %v22321_v6 = vld [vmem:[%s31127_s2 + $0xdec] ss:$16 sps:$4 sm:$0xff]   ;;  %v22316_v55 = vld [vmem:[%s31127_s2 + $0x1008] ss:$16 sps:$4 sm:$0xff]  }
 0x772   : > { %6826 = vmatprep.subr.bf16.mxu0 %v22291_v29  ;;  %v22319_v29 = vld [vmem:[%s31127_s2 + $0xde8] ss:$16 sps:$4 sm:$0xff]  }
 0x774   : > { %6868 = vmatpush2.bf16.msra.mxu1 %v22286_v22  ;;  %v22324_v22 = vld [vmem:[%s31127_s2 + $0xfec] ss:$16 sps:$4 sm:$0xff]  }
 0x775   : > { %6827 = vmatpush2.bf16.msra.mxu0 %v22289_v11  ;;  %6869 = vmatprep.subr.bf16.mxu1 %v22294_v56  ;;  %v22327_v11 = vld [vmem:[%s31127_s2 + $0xdcc] ss:$16 sps:$4 sm:$0xff]   ;;  %v22322_v56 = vld [vmem:[%s31127_s2 + $0xfe8] ss:$16 sps:$4 sm:$0xff]  }
 0x776   : > { %6828 = vmatprep.subr.bf16.mxu0 %v22297_v13  ;;  %v22325_v13 = vld [vmem:[%s31127_s2 + $0xdc8] ss:$16 sps:$4 sm:$0xff]  }
 0x778   : > { %6870 = vmatpush2.bf16.msra.mxu1 %v22292_v43  ;;  %v22330_v43 = vld [vmem:[%s31127_s2 + $0xfcc] ss:$16 sps:$4 sm:$0xff]  }
 0x779   : > { %6829 = vmatpush2.bf16.msra.mxu0 %v22295_v9  ;;  %6871 = vmatprep.subr.bf16.mxu1 %v22300_v62  ;;  %v22333_v9 = vld [vmem:[%s31127_s2 + $0x10ec] ss:$16 sps:$4 sm:$0xff]   ;;  %v22328_v62 = vld [vmem:[%s31127_s2 + $0xfc8] ss:$16 sps:$4 sm:$0xff]  }
 0x77a   : > { %6830 = vmatprep.subr.bf16.mxu0 %v22303_v23  ;;  %v22331_v23 = vld [vmem:[%s31127_s2 + $0x10e8] ss:$16 sps:$4 sm:$0xff]  }
 0x77c   : > { %6872 = vmatpush2.bf16.msra.mxu1 %v22298_v19  ;;  %v22336_v19 = vld [vmem:[%s31127_s2 + $0x10cc] ss:$16 sps:$4 sm:$0xff]  }
 0x77d   : > { %6831 = vmatpush2.bf16.msra.mxu0 %v22301_v28  ;;  %6873 = vmatprep.subr.bf16.mxu1 %v22306_v17  ;;  %v22334_v28 = vld [vmem:[%s31127_s2 + $0x10c8] ss:$16 sps:$4 sm:$0xff]  }
 0x77e   : > { %6832 = vmatprep.subr.bf16.mxu0 %v22309_v4 }
 0x780   : > { %6874 = vmatpush2.bf16.msra.mxu1 %v22304_v46 }
 0x781   : > { %6833 = vmatpush2.bf16.msra.mxu0 %v22307_v34  ;;  %6875 = vmatprep.subr.bf16.mxu1 %v22312_v44 }
 0x782   : > { %6834 = vmatprep.subr.bf16.mxu0 %v22315_v51 }
 0x784   : > { %6876 = vmatpush2.bf16.msra.mxu1 %v22310_v8 }
 0x785   : > { %6835 = vmatpush2.bf16.msra.mxu0 %v22313_v41  ;;  %6877 = vmatprep.subr.bf16.mxu1 %v22318_v49  ;;  %v3362_v41 = vadd.f32 %v26045_v10, %v25852_v26 }
 0x786   : > { %6836 = vmatprep.subr.bf16.mxu0 %v22321_v6 }
 0x788   : > { %6878 = vmatpush2.bf16.msra.mxu1 %v22316_v55 }
 0x789   : > { %6837 = vmatpush2.bf16.msra.mxu0 %v22319_v29  ;;  %6879 = vmatprep.subr.bf16.mxu1 %v22324_v22  ;;  %v3405_v29 = vadd.f32 %v26040_v27, %v3362_v41 }
 0x78a   : > { %6838 = vmatprep.subr.bf16.mxu0 %v22327_v11  ;;  %v26920_v11 = vld [vmem:[%s31131_s6 + $0x1] ss:$4 sm:$0xf] }
 0x78b   : > { %v6949_v10 = vrot.slane %v26920_v11, %v24872_v47 }
 0x78c   : > { %6880 = vmatpush2.bf16.msra.mxu1 %v22322_v56 }
 0x78d   : > { %6839 = vmatpush2.bf16.msra.mxu0 %v22325_v13  ;;  %6881 = vmatprep.subr.bf16.mxu1 %v22330_v43  ;;  %v4260_v13 = vadd.f32 %v26150_v63, %v3405_v29  ;;  %v5529_v43 = vadd.f32 %v26652_v5, %v26639_v7  ;;  %v6953_v63 = vrot.slane %v26920_v11, %v24883_v21 }
 0x78e   : > { %6906 = vmatprep.subr.bf16.mxu0 %v22333_v9 }
 0x78f   : > { %v4303_v27 = vadd.f32 %v26162_v30, %v4260_v13  ;;  %v5572_v7 = vadd.f32 %v26650_v2, %v5529_v43 }
 0x790   : > { %6841 = vmatmul.mubr.bf16.vlgmr.msra.gmra.mxu0 %v26672_v24  ;;  %6882 = vmatpush2.bf16.msra.mxu1 %v22328_v62  ;;  %v7034_v24 = vld [vmem:[#allocation4 + $0x28] sm:$0x11] }
 0x791   : > { %6907 = vmatpush1.bf16.msra.mxu0 %v22331_v23  ;;  %6926 = vmatprep.mubr.bf16.mxu0 %v31139_v52  ;;  %v26897_v17 = vcombine.high %v7034_v24, %v7034_v24  ;;  %v18943_v4 = vcombine.low %v7034_v24, %v7034_v24 }
 0x792   : > { %6908 = vmatprep.subr.bf16.mxu0 %v22336_v19 }
 0x793   : > { %6884 = vmatmul.mubr.bf16.vlgmr.msra.gmra.mxu1 %v26688_v58  ;;  %18948 = vmatprep.subr.msk.bf16.mxu1 %vm487_vm3, %v26897_v17  ;;  %v26902_v46 = vsel %vm487_vm3, %v18943_v4, 0  ;;  %v7035_v58 = vld [vmem:[#allocation4 + $0x30] sm:$0x11] }
 0x794   : > { %7134 = vmatprep.mubr.bf16.mxu1 %v31139_v52  ;;  %7115 = vmatpush1.bf16.msra.mxu1 %v26902_v46  ;;  %v26906_v34 = vcombine.high %v7035_v58, %v7035_v58 }
 0x795   : > { %6909 = vmatpush1.bf16.msra.mxu0 %v22334_v28 }
 0x796   : > { %18950 = vmatprep.subr.msk.bf16.mxu0 %vm487_vm3, %v26906_v34 }
 0x798   : > { %18931 = vmatmul.mubr.msk.bf16.vlgmr.msra.gmra.mxu0 %vm3274_vm8, %v26697_v14  ;;  %v18945_v14 = vcombine.low %v7035_v58, %v7035_v58  ;;  %vm7040_vm8 = vcmp.eq.s32.totalorder %v24315_v25, %v24437_v32 }
 0x799   : > { %7175 = vmatprep.mubr.bf16.mxu0 %v31139_v52 }
 0x79a   : > { %v26911_v44 = vsel %vm487_vm3, %v18945_v14, 0 }
 0x79b   : > { %7156 = vmatpush1.bf16.msra.mxu0 %v26911_v44 }
 0x80a   : > { %v6713_v51 = vpop.f32.mrf.mxu1 }
 0x80c   : > { %v6715_v8 = vpop.f32.mrf.mxu1 }
 0x80e   : > { %v6717_v49 = vpop.f32.mrf.mxu1 }
 0x810   : > { %v6719_v6 = vpop.f32.mrf.mxu1  ;;  %v6756_v55 = vpop.f32.mrf.mxu0 }
 0x811   : > { %v6757_v22 = vadd.f32 %v6756_v55, %v6713_v51  ;;  %v4346_v55 = vadd.f32 %v26160_v45, %v4303_v27 }
 0x812   : > { %v6758_v56 = vpop.f32.mrf.mxu0 }
 0x813   : > { %v6759_v9 = vadd.f32 %v6758_v56, %v6715_v8  ;;  %v6799_v62 = vpop.f32.mrf.mxu1 }
 0x814   : > { %v6800_v26 = vadd.f32 %v6799_v62, %v6757_v22  ;;  %v6760_v23 = vpop.f32.mrf.mxu0  ;;  %v5708_v22 = vadd.f32 %v5572_v7, %v4346_v55  ;;  %v3491_v7 = vadd.f32 %v26145_v33, %v26056_v37 }
 0x815   : > { %v6761_v19 = vadd.f32 %v6760_v23, %v6717_v49  ;;  %v6801_v28 = vpop.f32.mrf.mxu1 }
 0x816   : > { %v6937_v24 = vadd.f32 %v6800_v26, %v26642_v16  ;;  %v6802_v4 = vadd.f32 %v6801_v28, %v6759_v9  ;;  %v6762_v58 = vpop.f32.mrf.mxu0 }
 0x817   : > { %v6763_v5 = vadd.f32 %v6762_v58, %v6719_v6  ;;  %v6803_v14 = vpop.f32.mrf.mxu1 }
 0x818   : > { %v6966_v51 = vadd.f32 %v6949_v10, %v6937_v24  ;;  %v6938_v8 = vadd.f32 %v6802_v4, %v26645_v36  ;;  %v6804_v41 = vadd.f32 %v6803_v14, %v6761_v19  ;;  %v26953_v24 = vld [vmem:[#allocation4 + $0x10] ss:$20 sps:$4 sm:$0xff]  }
 0x819   : > { %v6805_v30 = vpop.f32.mrf.mxu1 }
 0x81a   : > { %v6982_v49 = vmul.f32 0.1, %v6966_v51  ;;  %v6967_v29 = vadd.f32 %v6953_v63, %v6938_v8  ;;  %v6941_v16 = vadd.f32 %v6804_v41, %v26648_v31  ;;  %vm6974_vm13 = vcmp.gt.f32.partialorder %v6966_v51, 0.0 }
 0x81b   : > { %v6806_v56 = vadd.f32 %v6805_v30, %v6763_v5  ;;  %v18937_v31 = vsel %vm7040_vm8, 1.0, %v31140_v59 }
 0x81c   : > { %vm6975_vm14 = vcmp.gt.f32.partialorder %v6967_v29, 0.0  ;;  %v6983_v13 = vmul.f32 0.1, %v6967_v29  ;;  %v6970_v9 = vadd.f32 %v6949_v10, %v6941_v16  ;;  %v6990_v6 = vsel %vm6974_vm13, %v6966_v51, %v6982_v49  ;;  %v22339_v10 = vld [vmem:[#allocation4 + $0x38] ss:$0 sps:$4 sm:$0x11]  }
 0x81d   : > { %v6942_v2 = vadd.f32 %v6806_v56, %v5708_v22  ;;  %v26942_v28 = vpack.c.bf16 %v18937_v31, %v18937_v31  ;;  %v26948_v32 = vsel %vm487_vm3, %v22339_v10, 0  ;;  %v3534_v51 = vadd.f32 %v26152_v38, %v3491_v7 }
 0x81e   : > { %v6991_v43 = vsel %vm6975_vm14, %v6967_v29, %v6983_v13  ;;  %v6986_v62 = vmul.f32 0.1, %v6970_v9  ;;  %vm6978_vm15 = vcmp.gt.f32.partialorder %v6970_v9, 0.0  ;;  %v6957_v22 = vrot.slane %v26920_v11, %v24875_v53 }
 0x81f   : > { %v6971_v26 = vadd.f32 %v6953_v63, %v6942_v2  ;;  %v4389_v30 = vadd.f32 %v26167_v3, %v3534_v51  ;;  %v5658_v56 = vadd.f32 %v26659_v39, %v26654_v15  ;;  %v6961_v2 = vrot.slane %v26920_v11, %v24886_v12 }
 0x820   : > { %v6994_v45 = vsel %vm6978_vm15, %v6970_v9, %v6986_v62  ;;  %vm9594_vm13 = vcmp.eq.s32.totalorder %v24564_v40, 17  ;;  %vm10849_vm15 = vcmp.eq.s32.totalorder %v24726_v57, 17 }
 0x821   : > { %vm6979_vm6 = vcmp.gt.f32.partialorder %v6971_v26, 0.0  ;;  %v6987_v36 = vmul.f32 0.1, %v6971_v26  ;;  %v26940_v19 = vpack.c.bf16 %v6994_v45, %v6990_v6  ;;  %v4432_v3 = vadd.f32 %v26169_v42, %v4389_v30  ;;  %v22357_v30 = vld [vmem:[%s31128_s3 + $0x544] ss:$16 sps:$4 sm:$0xff]  }
 0x822   : > { %v5701_v6 = vadd.f32 %v26667_v1, %v5658_v56  ;;  %v22367_v56 = vld [vmem:[%s31128_s3 + $0x500] ss:$16 sps:$4 sm:$0xff]  }
 0x823   : > { %v6995_v23 = vsel %vm6979_vm6, %v6971_v26, %v6987_v36  ;;  %v4475_v15 = vadd.f32 %v26182_v50, %v4432_v3  ;;  %v22379_v3 = vld [vmem:[%s31128_s3 + $0x4c0] ss:$16 sps:$4 sm:$0xff]  }
 0x824   : > { %v26938_v27 = vpack.c.bf16 %v6995_v23, %v6991_v43 }
 0x825   : > { %v5710_v10 = vadd.f32 %v5701_v6, %v4475_v15  ;;  %v22387_v6 = vld [vmem:[%s31128_s3 + $0x4a4] ss:$16 sps:$4 sm:$0xff]   ;;  %v22358_v15 = vld [vmem:[%s31128_s3 + $0x700] ss:$16 sps:$4 sm:$0xff]  }
 0x826   : > { %7116 = vmatprep.subr.bf16.mxu1 %v26938_v27 }
 0x827   : > { %7117 = vmatpush1.bf16.msra.mxu1 %v26940_v19 }
 0x828   : > { %21324 = vmatprep.subr.bf16.mxu1 %v31140_v59 }
 0x82a   : > { %18949 = vmatmul.mubr.msk.bf16.vlgmr.msra.gmra.mxu1 %vm7083_vm9, %v26942_v28 }
 0x82b   : > { %21325 = vmatpush3.bf16.msra.mxu1 %v26948_v32  ;;  %21328 = vmatprep.mubr.msk.bf16.mxu1 %vm24204_vm7, %v31140_v59 }
 0x82c   : > { %21326 = vmatprep.subr.bf16.mxu1 %v31140_v59 }
 0x82f   : > { %21327 = vmatpush3.bf16.msra.mxu1 %v26953_v24 }
 0x830   : > { %18956 = vmatprep.subr.msk.bf16.mxu1 %vm487_vm3, %v26906_v34 }
 0x832   : > { %21329 = vmatmul.mubr.msk.bf16.vlgmr.msra.gmra.mxu1 %vm7083_vm9, %v26942_v28 }
 0x833   : > { %7437 = vmatpush1.bf16.msra.mxu1 %v26911_v44  ;;  %7456 = vmatprep.mubr.bf16.mxu1 %v31139_v52 }
 0x850   : > { %v6842_v4 = vpop.f32.mrf.mxu0 }
 0x852   : > { %v6844_v63 = vpop.f32.mrf.mxu0 }
 0x853   : > { %v6885_v58 = vpop.f32.mrf.mxu1 }
 0x854   : > { %v6846_v5 = vpop.f32.mrf.mxu0  ;;  %v6886_v41 = vadd.f32 %v6885_v58, %v6842_v4 }
 0x855   : > { %v6887_v14 = vpop.f32.mrf.mxu1 }
 0x856   : > { %v6848_v8 = vpop.f32.mrf.mxu0  ;;  %v6888_v29 = vadd.f32 %v6887_v14, %v6844_v63 }
 0x857   : > { %v6889_v55 = vpop.f32.mrf.mxu1 }
 0x858   : > { %v6928_v49 = vpop.f32.mrf.mxu0  ;;  %v6890_v37 = vadd.f32 %v6889_v55, %v6846_v5 }
 0x859   : > { %v6929_v16 = vadd.f32 %v6928_v49, %v6886_v41  ;;  %v6891_v9 = vpop.f32.mrf.mxu1  ;;  %v22351_v41 = vld [vmem:[%s31128_s3 + $0x564] ss:$16 sps:$4 sm:$0xff]   ;;  %v22355_v49 = vld [vmem:[%s31128_s3 + $0x540] ss:$16 sps:$4 sm:$0xff]  }
 0x85a   : > { %v6930_v13 = vpop.f32.mrf.mxu0  ;;  %v6892_v39 = vadd.f32 %v6891_v9, %v6848_v8  ;;  %v22373_v9 = vld [vmem:[%s31128_s3 + $0x4e0] ss:$16 sps:$4 sm:$0xff]  }
 0x85b   : > { %v6939_v33 = vadd.f32 %v6929_v16, %v26657_v61  ;;  %v6931_v38 = vadd.f32 %v6930_v13, %v6888_v29  ;;  %v22363_v29 = vld [vmem:[%s31128_s3 + $0x524] ss:$16 sps:$4 sm:$0xff]  }
 0x85c   : > { %v6932_v43 = vpop.f32.mrf.mxu0  ;;  %v22369_v16 = vld [vmem:[%s31128_s3 + $0x504] ss:$16 sps:$4 sm:$0xff]  }
 0x85d   : > { %v6968_v62 = vadd.f32 %v6957_v22, %v6939_v33  ;;  %v6940_v26 = vadd.f32 %v6931_v38, %v26662_v18  ;;  %v6933_v36 = vadd.f32 %v6932_v43, %v6890_v37  ;;  %v22375_v13 = vld [vmem:[%s31128_s3 + $0x4e4] ss:$16 sps:$4 sm:$0xff]   ;;  %v22343_v37 = vld [vmem:[%s31128_s3 + $0x760] ss:$16 sps:$4 sm:$0xff]  }
 0x85e   : > { %v6934_v45 = vpop.f32.mrf.mxu0  ;;  %v22348_v33 = vld [vmem:[%s31128_s3 + $0x744] ss:$16 sps:$4 sm:$0xff]   ;;  %v22352_v43 = vld [vmem:[%s31128_s3 + $0x720] ss:$16 sps:$4 sm:$0xff]  }
 0x85f   : > { %v6984_v23 = vmul.f32 0.1, %v6968_v62  ;;  %v6969_v61 = vadd.f32 %v6961_v2, %v6940_v26  ;;  %v6943_v31 = vadd.f32 %v6933_v36, %v26665_v20  ;;  %vm6976_vm5 = vcmp.gt.f32.partialorder %v6968_v62, 0.0  ;;  %v22381_v38 = vld [vmem:[%s31128_s3 + $0x4c4] ss:$16 sps:$4 sm:$0xff]  }
 0x860   : > { %v6935_v11 = vadd.f32 %v6934_v45, %v6892_v39  ;;  %v18953_v20 = vsel %vm7376_vm4, 1.0, %v31140_v59  ;;  %v22385_v26 = vld [vmem:[%s31128_s3 + $0x4a0] ss:$16 sps:$4 sm:$0xff]   ;;  %v22393_v36 = vld [vmem:[%s31128_s3 + $0x484] ss:$16 sps:$4 sm:$0xff]   ;;  %vm12505_vm4 = vcmp.eq.s32.totalorder %v24315_v25, %v24389_v60 }
 0x861   : > { %vm6977_vm10 = vcmp.gt.f32.partialorder %v6969_v61, 0.0  ;;  %v6985_v42 = vmul.f32 0.1, %v6969_v61  ;;  %v6972_v4 = vadd.f32 %v6957_v22, %v6943_v31  ;;  %v6992_v63 = vsel %vm6976_vm5, %v6968_v62, %v6984_v23  ;;  %v22345_v22 = vld [vmem:[%s31128_s3 + $0x764] ss:$16 sps:$4 sm:$0xff]  }
 0x862   : > { %v6944_v1 = vadd.f32 %v6935_v11, %v5710_v10  ;;  %v7379_v55 = vpack.c.bf16 %v18953_v20, %v18953_v20  ;;  %v22360_v62 = vld [vmem:[%s31128_s3 + $0x704] ss:$16 sps:$4 sm:$0xff]   ;;  %v22391_v45 = vld [vmem:[%s31128_s3 + $0x480] ss:$16 sps:$4 sm:$0xff]   ;;  %vm12199_vm5 = vcmask 1044480  }
 0x863   : > { %v6993_v58 = vsel %vm6977_vm10, %v6969_v61, %v6985_v42  ;;  %v6988_v7 = vmul.f32 0.1, %v6972_v4  ;;  %vm6980_vm11 = vcmp.gt.f32.partialorder %v6972_v4, 0.0  ;;  %v22366_v39 = vld [vmem:[%s31128_s3 + $0x6e4] ss:$16 sps:$4 sm:$0xff]   ;;  %vm12195_vm10 = vcmask 80896  }
 0x864   : > { %v6973_v18 = vadd.f32 %v6961_v2, %v6944_v1  ;;  %v22354_v2 = vld [vmem:[%s31128_s3 + $0x724] ss:$16 sps:$4 sm:$0xff]   ;;  %v22364_v61 = vld [vmem:[%s31128_s3 + $0x6e0] ss:$16 sps:$4 sm:$0xff]  }
 0x865   : > { %v6996_v5 = vsel %vm6980_vm11, %v6972_v4, %v6988_v7  ;;  %v22399_v23 = vld [vmem:[%s31128_s3 + $0x664] ss:$16 sps:$4 sm:$0xff]   ;;  %v22397_v10 = vld [vmem:[%s31128_s3 + $0x660] ss:$16 sps:$4 sm:$0xff]  }
 0x866   : > { %vm6981_vm1 = vcmp.gt.f32.partialorder %v6973_v18, 0.0  ;;  %v6989_v50 = vmul.f32 0.1, %v6973_v18  ;;  %v26986_v8 = vpack.c.bf16 %v6996_v5, %v6992_v63  ;;  %v22372_v31 = vld [vmem:[%s31128_s3 + $0x6c4] ss:$16 sps:$4 sm:$0xff]  }
 0x867   : > { %v22405_v11 = vld [vmem:[%s31128_s3 + $0x644] ss:$16 sps:$4 sm:$0xff]   ;;  %v22370_v42 = vld [vmem:[%s31128_s3 + $0x6c0] ss:$16 sps:$4 sm:$0xff]  }
 0x868   : > { %v6997_v14 = vsel %vm6981_vm1, %v6973_v18, %v6989_v50  ;;  %v22378_v4 = vld [vmem:[%s31128_s3 + $0x6a4] ss:$16 sps:$4 sm:$0xff]   ;;  %v22403_v1 = vld [vmem:[%s31128_s3 + $0x640] ss:$16 sps:$4 sm:$0xff]  }
 0x869   : > { %v26984_v51 = vpack.c.bf16 %v6997_v14, %v6993_v58  ;;  %v22411_v63 = vld [vmem:[%s31128_s3 + $0x624] ss:$16 sps:$4 sm:$0xff]   ;;  %v22376_v58 = vld [vmem:[%s31128_s3 + $0x6a0] ss:$16 sps:$4 sm:$0xff]  }
 0x86a   : > { %v22384_v7 = vld [vmem:[%s31128_s3 + $0x684] ss:$16 sps:$4 sm:$0xff]   ;;  %v22409_v18 = vld [vmem:[%s31128_s3 + $0x620] ss:$16 sps:$4 sm:$0xff]  }
 0x86b   : > { %7157 = vmatprep.subr.bf16.mxu0 %v26984_v51  ;;  %7438 = vmatprep.subr.bf16.mxu1 %v26984_v51  ;;  %v22417_v50 = vld [vmem:[%s31128_s3 + $0x604] ss:$16 sps:$4 sm:$0xff]   ;;  %v22382_v5 = vld [vmem:[%s31128_s3 + $0x680] ss:$16 sps:$4 sm:$0xff]  }
 0x86c   : > { %7158 = vmatpush1.bf16.msra.mxu0 %v26986_v8  ;;  %7439 = vmatpush1.bf16.msra.mxu1 %v26986_v8  ;;  %v22390_v14 = vld [vmem:[%s31128_s3 + $0x864] ss:$16 sps:$4 sm:$0xff]   ;;  %v22415_v20 = vld [vmem:[%s31128_s3 + $0x600] ss:$16 sps:$4 sm:$0xff]  }
 0x86d   : > { %18954 = vmatprep.subr.msk.bf16.mxu0 %vm487_vm3, %v26897_v17  ;;  %8379 = vmatprep.subr.bf16.mxu1 %v22351_v41  ;;  %v22423_v41 = vld [vmem:[%s31128_s3 + $0x5e4] ss:$16 sps:$4 sm:$0xff]  }
 0x86f   : > { %18951 = vmatmul.mubr.msk.bf16.vlgmr.msra.gmra.mxu0 %vm7083_vm9, %v26942_v28  ;;  %18957 = vmatmul.mubr.msk.bf16.vlgmr.msra.gmra.mxu1 %vm7083_vm9, %v7379_v55  ;;  %v22361_v28 = vld [vmem:[%s31128_s3 + $0x520] ss:$16 sps:$4 sm:$0xff]  }
 0x870   : > { %7396 = vmatpush1.bf16.msra.mxu0 %v26902_v46  ;;  %7415 = vmatprep.mubr.bf16.mxu0 %v31139_v52 }
 0x871   : > { %7397 = vmatprep.subr.bf16.mxu0 %v26938_v27  ;;  %8380 = vmatpush1.bf16.msra.mxu1 %v22349_v54  ;;  %v22396_v54 = vld [vmem:[%s31128_s3 + $0x844] ss:$16 sps:$4 sm:$0xff]  }
 0x872   : > { %8381 = vmatprep.subr.bf16.mxu1 %v22357_v30  ;;  %v22421_v30 = vld [vmem:[%s31128_s3 + $0x5e0] ss:$16 sps:$4 sm:$0xff]  }
 0x874   : > { %7398 = vmatpush1.bf16.msra.mxu0 %v26940_v19 }
 0x875   : > { %21332 = vmatprep.subr.bf16.mxu0 %v31140_v59  ;;  %8382 = vmatpush1.bf16.msra.mxu1 %v22355_v49  ;;  %v22394_v49 = vld [vmem:[%s31128_s3 + $0x840] ss:$16 sps:$4 sm:$0xff]  }
 0x876   : > { %8383 = vmatprep.subr.bf16.mxu1 %v22363_v29  ;;  %v22402_v29 = vld [vmem:[%s31128_s3 + $0x824] ss:$16 sps:$4 sm:$0xff]  }
 0x877   : > { %18955 = vmatmul.mubr.msk.bf16.vlgmr.msra.gmra.mxu0 %vm7083_vm9, %v7379_v55 }
 0x878   : > { %21333 = vmatpush3.bf16.msra.mxu0 %v26948_v32  ;;  %21336 = vmatprep.mubr.msk.bf16.mxu0 %vm24204_vm7, %v31140_v59 }
 0x879   : > { %21334 = vmatprep.subr.bf16.mxu0 %v31140_v59  ;;  %8384 = vmatpush1.bf16.msra.mxu1 %v22361_v28  ;;  %v22400_v28 = vld [vmem:[%s31128_s3 + $0x820] ss:$16 sps:$4 sm:$0xff]  }
 0x87a   : > { %8385 = vmatprep.subr.bf16.mxu1 %v22369_v16  ;;  %v22408_v16 = vld [vmem:[%s31128_s3 + $0x804] ss:$16 sps:$4 sm:$0xff]  }
 0x87c   : > { %21335 = vmatpush3.bf16.msra.mxu0 %v26953_v24  ;;  %v22346_v24 = vld [vmem:[%s31128_s3 + $0x740] ss:$16 sps:$4 sm:$0xff]  }
 0x87d   : > { %8420 = vmatprep.subr.bf16.mxu0 %v22345_v22  ;;  %8386 = vmatpush1.bf16.msra.mxu1 %v22367_v56  ;;  %v22406_v22 = vld [vmem:[%s31128_s3 + $0x800] ss:$16 sps:$4 sm:$0xff]   ;;  %v22414_v56 = vld [vmem:[%s31128_s3 + $0x7e4] ss:$16 sps:$4 sm:$0xff]  }
 0x87e   : > { %8387 = vmatprep.subr.bf16.mxu1 %v22375_v13  ;;  %v22412_v13 = vld [vmem:[%s31128_s3 + $0x7e0] ss:$16 sps:$4 sm:$0xff]  }
 0x87f   : > { %21337 = vmatmul.mubr.msk.bf16.vlgmr.msra.gmra.mxu0 %vm7083_vm9, %v7379_v55  ;;  %v22388_v55 = vld [vmem:[%s31128_s3 + $0x860] ss:$16 sps:$4 sm:$0xff]  }
 0x880   : > { %8421 = vmatpush1.bf16.msra.mxu0 %v22343_v37  ;;  %v22420_v37 = vld [vmem:[%s31128_s3 + $0x7c4] ss:$16 sps:$4 sm:$0xff]  }
 0x881   : > { %8422 = vmatprep.subr.bf16.mxu0 %v22348_v33  ;;  %8388 = vmatpush1.bf16.msra.mxu1 %v22373_v9  ;;  %v22429_v33 = vld [vmem:[%s31128_s3 + $0x5c4] ss:$16 sps:$4 sm:$0xff]   ;;  %v22427_v9 = vld [vmem:[%s31128_s3 + $0x5c0] ss:$16 sps:$4 sm:$0xff]  }
 0x882   : > { %8389 = vmatprep.subr.bf16.mxu1 %v22381_v38  ;;  %v22418_v38 = vld [vmem:[%s31128_s3 + $0x7c0] ss:$16 sps:$4 sm:$0xff]  }
 0x884   : > { %8423 = vmatpush1.bf16.msra.mxu0 %v22346_v24  ;;  %v22426_v24 = vld [vmem:[%s31128_s3 + $0x7a4] ss:$16 sps:$4 sm:$0xff]  }
 0x885   : > { %8424 = vmatprep.subr.bf16.mxu0 %v22354_v2  ;;  %8390 = vmatpush1.bf16.msra.mxu1 %v22379_v3  ;;  %v22435_v2 = vld [vmem:[%s31128_s3 + $0x5a4] ss:$16 sps:$4 sm:$0xff]   ;;  %v22433_v3 = vld [vmem:[%s31128_s3 + $0x5a0] ss:$16 sps:$4 sm:$0xff]  }
 0x886   : > { %8391 = vmatprep.subr.bf16.mxu1 %v22387_v6  ;;  %v22424_v6 = vld [vmem:[%s31128_s3 + $0x7a0] ss:$16 sps:$4 sm:$0xff]  }
 0x888   : > { %8425 = vmatpush1.bf16.msra.mxu0 %v22352_v43  ;;  %v22432_v43 = vld [vmem:[%s31128_s3 + $0x784] ss:$16 sps:$4 sm:$0xff]  }
 0x889   : > { %8426 = vmatprep.subr.bf16.mxu0 %v22360_v62  ;;  %8392 = vmatpush1.bf16.msra.mxu1 %v22385_v26  ;;  %v22441_v62 = vld [vmem:[%s31128_s3 + $0x584] ss:$16 sps:$4 sm:$0xff]   ;;  %v22430_v26 = vld [vmem:[%s31128_s3 + $0x780] ss:$16 sps:$4 sm:$0xff]  }
 0x88a   : > { %8393 = vmatprep.subr.bf16.mxu1 %v22393_v36  ;;  %v22439_v36 = vld [vmem:[%s31128_s3 + $0x580] ss:$16 sps:$4 sm:$0xff]  }
 0x88c   : > { %8427 = vmatpush1.bf16.msra.mxu0 %v22358_v15  ;;  %v22438_v15 = vld [vmem:[%s31128_s3 + $0x56c] ss:$16 sps:$4 sm:$0xff]  }
 0x88d   : > { %8428 = vmatprep.subr.bf16.mxu0 %v22366_v39  ;;  %8394 = vmatpush1.bf16.msra.mxu1 %v22391_v45  ;;  %v22447_v39 = vld [vmem:[%s31128_s3 + $0x8e4] ss:$16 sps:$4 sm:$0xff]  }
 0x88e   : > { %8395 = vmatprep.subr.bf16.mxu1 %v22399_v23 }
 0x890   : > { %8429 = vmatpush1.bf16.msra.mxu0 %v22364_v61 }
 0x891   : > { %8430 = vmatprep.subr.bf16.mxu0 %v22372_v31  ;;  %8396 = vmatpush2.bf16.msra.mxu1 %v22397_v10 }
 0x892   : > { %8397 = vmatprep.subr.bf16.mxu1 %v22405_v11 }
 0x894   : > { %8431 = vmatpush1.bf16.msra.mxu0 %v22370_v42 }
 0x895   : > { %8432 = vmatprep.subr.bf16.mxu0 %v22378_v4  ;;  %8398 = vmatpush2.bf16.msra.mxu1 %v22403_v1 }
 0x896   : > { %8399 = vmatprep.subr.bf16.mxu1 %v22411_v63 }
 0x898   : > { %8433 = vmatpush1.bf16.msra.mxu0 %v22376_v58 }
 0x899   : > { %8434 = vmatprep.subr.bf16.mxu0 %v22384_v7  ;;  %8400 = vmatpush2.bf16.msra.mxu1 %v22409_v18 }
 0x89a   : > { %8401 = vmatprep.subr.bf16.mxu1 %v22417_v50 }
 0x89c   : > { %8435 = vmatpush1.bf16.msra.mxu0 %v22382_v5  ;;  %v22436_v5 = vld [vmem:[%s31128_s3 + $0x568] ss:$16 sps:$4 sm:$0xff]  }
 0x89d   : > { %8436 = vmatprep.subr.bf16.mxu0 %v22390_v14  ;;  %8402 = vmatpush2.bf16.msra.mxu1 %v22415_v20 }
 0x89e   : > { %8403 = vmatprep.subr.bf16.mxu1 %v22423_v41  ;;  %v22444_v41 = vld [vmem:[%s31128_s3 + $0x54c] ss:$16 sps:$4 sm:$0xff]  }
 0x8a0   : > { %8437 = vmatpush2.bf16.msra.mxu0 %v22388_v55 }
 0x8a1   : > { %8438 = vmatprep.subr.bf16.mxu0 %v22396_v54  ;;  %8404 = vmatpush2.bf16.msra.mxu1 %v22421_v30  ;;  %v22442_v30 = vld [vmem:[%s31128_s3 + $0x548] ss:$16 sps:$4 sm:$0xff]  }
 0x8a2   : > { %8405 = vmatprep.subr.bf16.mxu1 %v22429_v33  ;;  %v22453_v33 = vld [vmem:[%s31128_s3 + $0x8c4] ss:$16 sps:$4 sm:$0xff]  }
 0x8a4   : > { %8439 = vmatpush2.bf16.msra.mxu0 %v22394_v49 }
 0x8a5   : > { %8440 = vmatprep.subr.bf16.mxu0 %v22402_v29  ;;  %8406 = vmatpush2.bf16.msra.mxu1 %v22427_v9  ;;  %v22450_v29 = vld [vmem:[%s31128_s3 + $0x52c] ss:$16 sps:$4 sm:$0xff]  }
 0x8a6   : > { %8407 = vmatprep.subr.bf16.mxu1 %v22435_v2  ;;  %v22456_v9 = vld [vmem:[%s31128_s3 + $0x50c] ss:$16 sps:$4 sm:$0xff]   ;;  %v22454_v2 = vld [vmem:[%s31128_s3 + $0x508] ss:$16 sps:$4 sm:$0xff]  }
 0x8a8   : > { %8441 = vmatpush2.bf16.msra.mxu0 %v22400_v28 }
 0x8a9   : > { %8442 = vmatprep.subr.bf16.mxu0 %v22408_v16  ;;  %8408 = vmatpush2.bf16.msra.mxu1 %v22433_v3 }
 0x8aa   : > { %8409 = vmatprep.subr.bf16.mxu1 %v22441_v62 }
 0x8ac   : > { %8443 = vmatpush2.bf16.msra.mxu0 %v22406_v22  ;;  %v22445_v22 = vld [vmem:[%s31128_s3 + $0x8e0] ss:$16 sps:$4 sm:$0xff]  }
 0x8ad   : > { %8444 = vmatprep.subr.bf16.mxu0 %v22414_v56  ;;  %8410 = vmatpush2.bf16.msra.mxu1 %v22439_v36  ;;  %v22448_v56 = vld [vmem:[%s31128_s3 + $0x528] ss:$16 sps:$4 sm:$0xff]  }
 0x8ae   : > { %8469 = vmatprep.subr.bf16.mxu1 %v22447_v39  ;;  %v22460_v36 = vld [vmem:[%s31128_s3 + $0x4e8] ss:$16 sps:$4 sm:$0xff]   ;;  %v22465_v39 = vld [vmem:[%s31128_s3 + $0x884] ss:$16 sps:$4 sm:$0xff]  }
 0x8b0   : > { %8445 = vmatpush2.bf16.msra.mxu0 %v22412_v13 }
 0x8b1   : > { %8446 = vmatprep.subr.bf16.mxu0 %v22420_v37 }
 0x8b4   : > { %8447 = vmatpush2.bf16.msra.mxu0 %v22418_v38 }
 0x8b5   : > { %8448 = vmatprep.subr.bf16.mxu0 %v22426_v24  ;;  %v22451_v24 = vld [vmem:[%s31128_s3 + $0x8c0] ss:$16 sps:$4 sm:$0xff]  }
 0x8b8   : > { %8449 = vmatpush2.bf16.msra.mxu0 %v22424_v6  ;;  %v22459_v6 = vld [vmem:[%s31128_s3 + $0x8a4] ss:$16 sps:$4 sm:$0xff]  }
 0x8b9   : > { %8450 = vmatprep.subr.bf16.mxu0 %v22432_v43  ;;  %v22462_v43 = vld [vmem:[%s31128_s3 + $0x4ec] ss:$16 sps:$4 sm:$0xff]  }
 0x8bc   : > { %8451 = vmatpush2.bf16.msra.mxu0 %v22430_v26  ;;  %v22457_v26 = vld [vmem:[%s31128_s3 + $0x8a0] ss:$16 sps:$4 sm:$0xff]  }
 0x8bd   : > { %8502 = vmatprep.subr.bf16.mxu0 %v22438_v15 }
 0x8ea   : > { %v27207_v45 = vpop.f32.mrf.mxu1 }
 0x8ec   : > { %v27209_v23 = vpop.f32.mrf.mxu1 }
 0x8ee   : > { %v7140_v61 = vpop.f32.mrf.mxu1 }
 0x8ef   : > { %v22468_v61 = vld [vmem:[%s31128_s3 + $0x4cc] ss:$16 sps:$4 sm:$0xff]  }
 0x8f0   : > { %v7141_v31 = vpop.f32.mrf.mxu1 }
 0x8f2   : > { %v27211_v10 = vpop.f32.mrf.mxu1 }
 0x8f4   : > { %v21330_v11 = vpop.f32.mrf.mxu1 }
 0x8f5   : > { %v22463_v11 = vld [vmem:[%s31128_s3 + $0x880] ss:$16 sps:$4 sm:$0xff]  }
 0x8f6   : > { %v7221_v42 = vpop.f32.mrf.mxu1 }
 0x8f7   : > { %v22466_v42 = vld [vmem:[%s31128_s3 + $0x4c8] ss:$16 sps:$4 sm:$0xff]  }
 0x8f8   : > { %v21331_v4 = vpop.f32.mrf.mxu1 }
 0x8f9   : > { %v22471_v4 = vld [vmem:[%s31128_s3 + $0x4ac] ss:$16 sps:$4 sm:$0xff]  }
 0x92f   : > { %v27213_v1 = vpop.f32.mrf.mxu0  ;;  %v7458_v63 = vpop.f32.mrf.mxu1 }
 0x930   : > { %v27215_v58 = vpack.c.bf16 %v7458_v63, %v7458_v63  ;;  %v22474_v63 = vld [vmem:[%s31128_s3 + $0x76c] ss:$16 sps:$4 sm:$0xff]  }
 0x931   : > { %v27217_v7 = vpop.f32.mrf.mxu0  ;;  %v7460_v18 = vpop.f32.mrf.mxu1 }
 0x932   : > { %v27219_v50 = vpack.c.bf16 %v7460_v18, %v7460_v18 }
 0x933   : > { %v7181_v14 = vpop.f32.mrf.mxu0  ;;  %v7462_v20 = vpop.f32.mrf.mxu1 }
 0x934   : > { %8452 = vmatprep.mubr.bf16.mxu0 %v27219_v50  ;;  %v22472_v14 = vld [vmem:[%s31128_s3 + $0x768] ss:$16 sps:$4 sm:$0xff]   ;;  %v22477_v20 = vld [vmem:[%s31128_s3 + $0x48c] ss:$16 sps:$4 sm:$0xff]  }
 0x935   : > { %v7182_v55 = vpop.f32.mrf.mxu0  ;;  %8453 = vmatmul.mubr.bf16.vlgmr.msra.gmra.mxu0 %v27215_v58  ;;  %v7463_v54 = vpop.f32.mrf.mxu1 }
 0x936   : > { %8503 = vmatpush1.bf16.msra.mxu0 %v22436_v5  ;;  %v22469_v5 = vld [vmem:[%s31128_s3 + $0x4a8] ss:$16 sps:$4 sm:$0xff]  }
 0x937   : > { %v7417_v49 = vpop.f32.mrf.mxu0  ;;  %8504 = vmatprep.subr.bf16.mxu0 %v22444_v41  ;;  %v22480_v41 = vld [vmem:[%s31128_s3 + $0x74c] ss:$16 sps:$4 sm:$0xff]   ;;  %v22475_v55 = vld [vmem:[%s31128_s3 + $0x488] ss:$16 sps:$4 sm:$0xff]  }
 0x938   : > { %v27241_v13 = vpack.c.bf16 %v7417_v49, %v7417_v49  ;;  %v22478_v54 = vld [vmem:[%s31128_s3 + $0x748] ss:$16 sps:$4 sm:$0xff]   ;;  %v22486_v49 = vld [vmem:[%s31128_s3 + $0x72c] ss:$16 sps:$4 sm:$0xff]  }
 0x939   : > { %v7419_v28 = vpop.f32.mrf.mxu0 }
 0x93a   : > { %v7506_v16 = vpack.c.bf16 %v7419_v28, %v7419_v28  ;;  %8505 = vmatpush1.bf16.msra.mxu0 %v22442_v30  ;;  %v22483_v30 = vld [vmem:[%s31128_s3 + $0x66c] ss:$16 sps:$4 sm:$0xff]  }
 0x93b   : > { %v7421_v37 = vpop.f32.mrf.mxu0  ;;  %8506 = vmatprep.subr.bf16.mxu0 %v22450_v29  ;;  %v22481_v29 = vld [vmem:[%s31128_s3 + $0x668] ss:$16 sps:$4 sm:$0xff]   ;;  %v22489_v28 = vld [vmem:[%s31128_s3 + $0x64c] ss:$16 sps:$4 sm:$0xff]  }
 0x93c   : > { %8411 = vmatprep.mubr.bf16.mxu1 %v7506_v16  ;;  %8534 = vmatprep.mubr.bf16.mxu0 %v7506_v16  ;;  %v22492_v16 = vld [vmem:[%s31128_s3 + $0x70c] ss:$16 sps:$4 sm:$0xff]  }
 0x93d   : > { %v7422_v38 = vpop.f32.mrf.mxu0  ;;  %8412 = vmatmul.mubr.bf16.vlgmr.msra.gmra.mxu1 %v27241_v13  ;;  %v22495_v37 = vld [vmem:[%s31128_s3 + $0x62c] ss:$16 sps:$4 sm:$0xff]  }
 0x93e   : > { %8470 = vmatpush1.bf16.msra.mxu1 %v22445_v22  ;;  %8507 = vmatpush1.bf16.msra.mxu0 %v22448_v56  ;;  %v22487_v22 = vld [vmem:[%s31128_s3 + $0x648] ss:$16 sps:$4 sm:$0xff]  }
 0x93f   : > { %8471 = vmatprep.subr.bf16.mxu1 %v22453_v33  ;;  %8508 = vmatprep.subr.bf16.mxu0 %v22456_v9  ;;  %v7499_v3 = vpop.f32.mrf.mxu0  ;;  %v22490_v56 = vld [vmem:[%s31128_s3 + $0x708] ss:$16 sps:$4 sm:$0xff]   ;;  %v22498_v33 = vld [vmem:[%s31128_s3 + $0x6ec] ss:$16 sps:$4 sm:$0xff]  }
 0x940   : > { %8493 = vmatprep.mubr.bf16.mxu1 %v31139_v52  ;;  %v27287_v18 = vpack.c.bf16 %v7499_v3, %v7499_v3  ;;  %v22493_v9 = vld [vmem:[%s31128_s3 + $0x628] ss:$16 sps:$4 sm:$0xff]  }
 0x941   : > { %v21338_v62 = vpop.f32.mrf.mxu0  ;;  %v22496_v38 = vld [vmem:[%s31128_s3 + $0x6e8] ss:$16 sps:$4 sm:$0xff]  }
 0x942   : > { %8472 = vmatpush1.bf16.msra.mxu1 %v22451_v24  ;;  %8509 = vmatpush1.bf16.msra.mxu0 %v22454_v2  ;;  %v22501_v24 = vld [vmem:[%s31128_s3 + $0x60c] ss:$16 sps:$4 sm:$0xff]   ;;  %v22499_v3 = vld [vmem:[%s31128_s3 + $0x608] ss:$16 sps:$4 sm:$0xff]  }
 0x943   : > { %8473 = vmatprep.subr.bf16.mxu1 %v22459_v6  ;;  %8510 = vmatprep.subr.bf16.mxu0 %v22462_v43  ;;  %v7502_v15 = vpop.f32.mrf.mxu0  ;;  %v22504_v2 = vld [vmem:[%s31128_s3 + $0x6cc] ss:$16 sps:$4 sm:$0xff]   ;;  %v22502_v6 = vld [vmem:[%s31128_s3 + $0x6c8] ss:$16 sps:$4 sm:$0xff]  }
 0x944   : > { %v22507_v43 = vld [vmem:[%s31128_s3 + $0x5ec] ss:$16 sps:$4 sm:$0xff]  }
 0x945   : > { %v21339_v31 = vpop.f32.mrf.mxu0  ;;  %v22510_v62 = vld [vmem:[%s31128_s3 + $0x6ac] ss:$16 sps:$4 sm:$0xff]  }
 0x946   : > { %8474 = vmatpush1.bf16.msra.mxu1 %v22457_v26  ;;  %8511 = vmatpush1.bf16.msra.mxu0 %v22460_v36  ;;  %v22505_v26 = vld [vmem:[%s31128_s3 + $0x5e8] ss:$16 sps:$4 sm:$0xff]   ;;  %v22513_v15 = vld [vmem:[%s31128_s3 + $0x5cc] ss:$16 sps:$4 sm:$0xff]  }
 0x947   : > { %8475 = vmatprep.subr.bf16.mxu1 %v22465_v39  ;;  %8512 = vmatprep.subr.bf16.mxu0 %v22468_v61  ;;  %v22508_v36 = vld [vmem:[%s31128_s3 + $0x6a8] ss:$16 sps:$4 sm:$0xff]   ;;  %v22516_v39 = vld [vmem:[%s31128_s3 + $0x68c] ss:$16 sps:$4 sm:$0xff]  }
 0x948   : > { %v22511_v61 = vld [vmem:[%s31128_s3 + $0x5c8] ss:$16 sps:$4 sm:$0xff]  }
 0x949   : > { %v22514_v31 = vld [vmem:[%s31128_s3 + $0x688] ss:$16 sps:$4 sm:$0xff]  }
 0x94a   : > { %8476 = vmatpush1.bf16.msra.mxu1 %v22463_v11  ;;  %8513 = vmatpush1.bf16.msra.mxu0 %v22466_v42  ;;  %v22519_v11 = vld [vmem:[%s31128_s3 + $0x5ac] ss:$16 sps:$4 sm:$0xff]  }
 0x94b   : > { %8514 = vmatprep.subr.bf16.mxu0 %v22471_v4  ;;  %8543 = vmatprep.subr.bf16.mxu1 %v22474_v63  ;;  %v22522_v42 = vld [vmem:[%s31128_s3 + $0x86c] ss:$16 sps:$4 sm:$0xff]   ;;  %v22517_v4 = vld [vmem:[%s31128_s3 + $0x5a8] ss:$16 sps:$4 sm:$0xff]  }
 0x94c   : > { %v22520_v63 = vld [vmem:[%s31128_s3 + $0x868] ss:$16 sps:$4 sm:$0xff]  }
 0x94d   : > { %19247 = vmatmul.mubr.msk.bf16.vlgmr.msra.gmra.mxu1 %vm8375_vm12, %v27287_v18 }
 0x94e   : > { %8515 = vmatpush1.bf16.msra.mxu0 %v22469_v5  ;;  %8544 = vmatpush1.bf16.msra.mxu1 %v22472_v14  ;;  %v22525_v5 = vld [vmem:[%s31128_s3 + $0x58c] ss:$16 sps:$4 sm:$0xff]  }
 0x94f   : > { %8575 = vmatprep.mubr.bf16.mxu1 %v27219_v50  ;;  %8516 = vmatprep.subr.bf16.mxu0 %v22477_v20  ;;  %v22484_v50 = vld [vmem:[%s31128_s3 + $0x728] ss:$16 sps:$4 sm:$0xff]   ;;  %v22528_v14 = vld [vmem:[%s31128_s3 + $0x84c] ss:$16 sps:$4 sm:$0xff]  }
 0x950   : > { %8545 = vmatprep.subr.bf16.mxu1 %v22480_v41  ;;  %v22523_v20 = vld [vmem:[%s31128_s3 + $0x588] ss:$16 sps:$4 sm:$0xff]  }
 0x951   : > { %v22526_v41 = vld [vmem:[%s31128_s3 + $0x848] ss:$16 sps:$4 sm:$0xff]  }
 0x952   : > { %8517 = vmatpush1.bf16.msra.mxu0 %v22475_v55  ;;  %8546 = vmatpush1.bf16.msra.mxu1 %v22478_v54  ;;  %v22531_v55 = vld [vmem:[%s31128_s3 + $0x82c] ss:$16 sps:$4 sm:$0xff]  }
 0x953   : > { %8518 = vmatprep.subr.bf16.mxu0 %v22483_v30  ;;  %8547 = vmatprep.subr.bf16.mxu1 %v22486_v49  ;;  %v22534_v54 = vld [vmem:[%s31128_s3 + $0x8ec] ss:$16 sps:$4 sm:$0xff]   ;;  %v22529_v30 = vld [vmem:[%s31128_s3 + $0x828] ss:$16 sps:$4 sm:$0xff]  }
 0x954   : > { %v22532_v49 = vld [vmem:[%s31128_s3 + $0x8e8] ss:$16 sps:$4 sm:$0xff]  }
 0x956   : > { %8519 = vmatpush2.bf16.msra.mxu0 %v22481_v29  ;;  %8548 = vmatpush1.bf16.msra.mxu1 %v22484_v50  ;;  %v22537_v29 = vld [vmem:[%s31128_s3 + $0x80c] ss:$16 sps:$4 sm:$0xff]  }
 0x957   : > { %8520 = vmatprep.subr.bf16.mxu0 %v22489_v28  ;;  %8549 = vmatprep.subr.bf16.mxu1 %v22492_v16  ;;  %v22540_v50 = vld [vmem:[%s31128_s3 + $0x8cc] ss:$16 sps:$4 sm:$0xff]   ;;  %v22535_v28 = vld [vmem:[%s31128_s3 + $0x808] ss:$16 sps:$4 sm:$0xff]  }
 0x958   : > { %v22538_v16 = vld [vmem:[%s31128_s3 + $0x8c8] ss:$16 sps:$4 sm:$0xff]  }
 0x95a   : > { %8521 = vmatpush2.bf16.msra.mxu0 %v22487_v22  ;;  %8550 = vmatpush1.bf16.msra.mxu1 %v22490_v56  ;;  %v22543_v22 = vld [vmem:[%s31128_s3 + $0x7ec] ss:$16 sps:$4 sm:$0xff]   ;;  %v22541_v56 = vld [vmem:[%s31128_s3 + $0x7e8] ss:$16 sps:$4 sm:$0xff]  }
 0x95b   : > { %8522 = vmatprep.subr.bf16.mxu0 %v22495_v37  ;;  %8551 = vmatprep.subr.bf16.mxu1 %v22498_v33  ;;  %v22544_v37 = vld [vmem:[%s31128_s3 + $0x8a8] ss:$16 sps:$4 sm:$0xff]   ;;  %v22549_v33 = vld [vmem:[%s31128_s3 + $0x7cc] ss:$16 sps:$4 sm:$0xff]  }
 0x95e   : > { %8523 = vmatpush2.bf16.msra.mxu0 %v22493_v9  ;;  %8552 = vmatpush1.bf16.msra.mxu1 %v22496_v38  ;;  %v22552_v9 = vld [vmem:[%s31128_s3 + $0x88c] ss:$16 sps:$4 sm:$0xff]   ;;  %v22547_v38 = vld [vmem:[%s31128_s3 + $0x7c8] ss:$16 sps:$4 sm:$0xff]  }
 0x95f   : > { %8524 = vmatprep.subr.bf16.mxu0 %v22501_v24  ;;  %8553 = vmatprep.subr.bf16.mxu1 %v22504_v2  ;;  %v22550_v24 = vld [vmem:[%s31128_s3 + $0x888] ss:$16 sps:$4 sm:$0xff]   ;;  %v22555_v2 = vld [vmem:[%s31128_s3 + $0x7ac] ss:$16 sps:$4 sm:$0xff]  }
 0x962   : > { %8525 = vmatpush2.bf16.msra.mxu0 %v22499_v3  ;;  %8554 = vmatpush1.bf16.msra.mxu1 %v22502_v6  ;;  %v22558_v3 = vld [vmem:[%s31128_s3 + $0x2e4] ss:$16 sps:$4 sm:$0xff]   ;;  %v22553_v6 = vld [vmem:[%s31128_s3 + $0x7a8] ss:$16 sps:$4 sm:$0xff]  }
 0x963   : > { %8526 = vmatprep.subr.bf16.mxu0 %v22507_v43  ;;  %8555 = vmatprep.subr.bf16.mxu1 %v22510_v62  ;;  %v22556_v43 = vld [vmem:[%s31128_s3 + $0x2e0] ss:$16 sps:$4 sm:$0xff]   ;;  %v22561_v62 = vld [vmem:[%s31128_s3 + $0x78c] ss:$16 sps:$4 sm:$0xff]  }
 0x966   : > { %8527 = vmatpush2.bf16.msra.mxu0 %v22505_v26  ;;  %8556 = vmatpush1.bf16.msra.mxu1 %v22508_v36  ;;  %v22564_v26 = vld [vmem:[%s31128_s3 + $0x2c4] ss:$16 sps:$4 sm:$0xff]   ;;  %v27476_v36 = vpack.c.bf16 %v27217_v7, %v27217_v7 }
 0x967   : > { %8528 = vmatprep.subr.bf16.mxu0 %v22513_v15  ;;  %8557 = vmatprep.subr.bf16.mxu1 %v22516_v39  ;;  %v22559_v15 = vld [vmem:[%s31128_s3 + $0x788] ss:$16 sps:$4 sm:$0xff]   ;;  %v22562_v39 = vld [vmem:[%s31128_s3 + $0x2c0] ss:$16 sps:$4 sm:$0xff]   ;;  %v22567_v7 = vld [vmem:[%s31128_s3 + $0xe4] ss:$16 sps:$4 sm:$0xff]  }
 0x96a   : > { %8529 = vmatpush2.bf16.msra.mxu0 %v22511_v61  ;;  %8558 = vmatpush1.bf16.msra.mxu1 %v22514_v31  ;;  %v22565_v61 = vld [vmem:[%s31128_s3 + $0xe0] ss:$16 sps:$4 sm:$0xff]  }
 0x96b   : > { %8530 = vmatprep.subr.bf16.mxu0 %v22519_v11  ;;  %8559 = vmatprep.subr.bf16.mxu1 %v22522_v42  ;;  %v22568_v31 = vld [vmem:[%s31128_s3 + $0x2a0] ss:$16 sps:$4 sm:$0xff]   ;;  %v22573_v11 = vld [vmem:[%s31128_s3 + $0xc4] ss:$16 sps:$4 sm:$0xff]   ;;  %v27504_v42 = vpack.c.bf16 %v27209_v23, %v27209_v23 }
 0x96c   : > { %v22574_v23 = vld [vmem:[%s31128_s3 + $0x280] ss:$16 sps:$4 sm:$0xff]  }
 0x96e   : > { %8531 = vmatpush2.bf16.msra.mxu0 %v22517_v4  ;;  %8560 = vmatpush2.bf16.msra.mxu1 %v22520_v63  ;;  %v22576_v4 = vld [vmem:[%s31128_s3 + $0x284] ss:$16 sps:$4 sm:$0xff]   ;;  %v22571_v63 = vld [vmem:[%s31128_s3 + $0xc0] ss:$16 sps:$4 sm:$0xff]  }
 0x96f   : > { %8532 = vmatprep.subr.bf16.mxu0 %v22525_v5  ;;  %8561 = vmatprep.subr.bf16.mxu1 %v22528_v14  ;;  %v22579_v5 = vld [vmem:[%s31128_s3 + $0xa4] ss:$16 sps:$4 sm:$0xff]   ;;  %v22577_v14 = vld [vmem:[%s31128_s3 + $0xa0] ss:$16 sps:$4 sm:$0xff]  }
 0x972   : > { %8533 = vmatpush2.bf16.msra.mxu0 %v22523_v20  ;;  %8562 = vmatpush2.bf16.msra.mxu1 %v22526_v41  ;;  %v22580_v20 = vld [vmem:[%s31128_s3 + $0x260] ss:$16 sps:$4 sm:$0xff]   ;;  %v22585_v41 = vld [vmem:[%s31128_s3 + $0x84] ss:$16 sps:$4 sm:$0xff]  }
 0x973   : > { %8563 = vmatprep.subr.bf16.mxu1 %v22531_v55  ;;  %8592 = vmatprep.subr.bf16.mxu0 %v22534_v54  ;;  %v22588_v55 = vld [vmem:[%s31128_s3 + $0x244] ss:$16 sps:$4 sm:$0xff]   ;;  %v22583_v54 = vld [vmem:[%s31128_s3 + $0x80] ss:$16 sps:$4 sm:$0xff]  }
 0x975   : > { %8535 = vmatmul.mubr.bf16.vlgmr.msra.gmra.mxu0 %v27241_v13  ;;  %v22546_v13 = vld [vmem:[%s31128_s3 + $0x8ac] ss:$16 sps:$4 sm:$0xff]  }
 0x976   : > { %8564 = vmatpush2.bf16.msra.mxu1 %v22529_v30  ;;  %8593 = vmatpush1.bf16.msra.mxu0 %v22532_v49  ;;  %v22586_v30 = vld [vmem:[%s31128_s3 + $0x240] ss:$16 sps:$4 sm:$0xff]   ;;  %v22591_v49 = vld [vmem:[%s31128_s3 + $0x64] ss:$16 sps:$4 sm:$0xff]  }
 0x977   : > { %8565 = vmatprep.subr.bf16.mxu1 %v22537_v29  ;;  %8594 = vmatprep.subr.bf16.mxu0 %v22540_v50  ;;  %v22594_v29 = vld [vmem:[%s31128_s3 + $0x224] ss:$16 sps:$4 sm:$0xff]   ;;  %v22589_v50 = vld [vmem:[%s31128_s3 + $0x60] ss:$16 sps:$4 sm:$0xff]  }
 0x978   : > { %8616 = vmatprep.mubr.bf16.mxu0 %v31139_v52 }
 0x97a   : > { %8566 = vmatpush2.bf16.msra.mxu1 %v22535_v28  ;;  %8595 = vmatpush1.bf16.msra.mxu0 %v22538_v16  ;;  %v22592_v28 = vld [vmem:[%s31128_s3 + $0x220] ss:$16 sps:$4 sm:$0xff]   ;;  %v22597_v16 = vld [vmem:[%s31128_s3 + $0x44] ss:$16 sps:$4 sm:$0xff]  }
 0x97b   : > { %8567 = vmatprep.subr.bf16.mxu1 %v22543_v22  ;;  %8596 = vmatprep.subr.bf16.mxu0 %v22546_v13  ;;  %v22600_v22 = vld [vmem:[%s31128_s3 + $0x204] ss:$16 sps:$4 sm:$0xff]   ;;  %v22595_v13 = vld [vmem:[%s31128_s3 + $0x40] ss:$16 sps:$4 sm:$0xff]  }
 0x97e   : > { %8568 = vmatpush2.bf16.msra.mxu1 %v22541_v56  ;;  %8597 = vmatpush1.bf16.msra.mxu0 %v22544_v37  ;;  %v22598_v56 = vld [vmem:[%s31128_s3 + $0x200] ss:$16 sps:$4 sm:$0xff]   ;;  %v22603_v37 = vld [vmem:[%s31128_s3 + $0x24] ss:$16 sps:$4 sm:$0xff]  }
 0x97f   : > { %8569 = vmatprep.subr.bf16.mxu1 %v22549_v33  ;;  %8598 = vmatprep.subr.bf16.mxu0 %v22552_v9  ;;  %v22606_v33 = vld [vmem:[%s31128_s3 + $0x3e4] ss:$16 sps:$4 sm:$0xff]   ;;  %v22601_v9 = vld [vmem:[%s31128_s3 + $0x20] ss:$16 sps:$4 sm:$0xff]  }
 0x982   : > { %8570 = vmatpush2.bf16.msra.mxu1 %v22547_v38  ;;  %8599 = vmatpush1.bf16.msra.mxu0 %v22550_v24  ;;  %v22604_v38 = vld [vmem:[%s31128_s3 + $0x3e0] ss:$16 sps:$4 sm:$0xff]   ;;  %v22609_v24 = vld [vmem:[%s31128_s3 + $0x4] ss:$16 sps:$4 sm:$0xff]  }
 0x983   : > { %8571 = vmatprep.subr.bf16.mxu1 %v22555_v2  ;;  %9389 = vmatprep.subr.bf16.mxu0 %v22558_v3  ;;  %v22612_v2 = vld [vmem:[%s31128_s3 + $0x3c4] ss:$16 sps:$4 sm:$0xff]   ;;  %v22607_v3 = vld [vmem:[%s31128_s3] ss:$16 sps:$4 sm:$0xff]  }
 0x985   : > { %19248 = vmatmul.mubr.msk.bf16.vlgmr.msra.gmra.mxu0 %vm8375_vm12, %v27287_v18  ;;  %v22570_v18 = vld [vmem:[%s31128_s3 + $0x2a4] ss:$16 sps:$4 sm:$0xff]  }
 0x986   : > { %8572 = vmatpush2.bf16.msra.mxu1 %v22553_v6  ;;  %9390 = vmatpush1.bf16.msra.mxu0 %v22556_v43  ;;  %v22610_v6 = vld [vmem:[%s31128_s3 + $0x3c0] ss:$16 sps:$4 sm:$0xff]   ;;  %v22615_v43 = vld [vmem:[%s31128_s3 + $0x1e4] ss:$16 sps:$4 sm:$0xff]  }
 0x987   : > { %9421 = vmatprep.mubr.bf16.mxu0 %v27476_v36  ;;  %8573 = vmatprep.subr.bf16.mxu1 %v22561_v62  ;;  %v22618_v62 = vld [vmem:[%s31128_s3 + $0x3a4] ss:$16 sps:$4 sm:$0xff]  }
 0x988   : > { %9391 = vmatprep.subr.bf16.mxu0 %v22564_v26  ;;  %v22613_v26 = vld [vmem:[%s31128_s3 + $0x1e0] ss:$16 sps:$4 sm:$0xff]  }
 0x98a   : > { %8574 = vmatpush2.bf16.msra.mxu1 %v22559_v15  ;;  %9392 = vmatpush1.bf16.msra.mxu0 %v22562_v39  ;;  %v22616_v15 = vld [vmem:[%s31128_s3 + $0x3a0] ss:$16 sps:$4 sm:$0xff]   ;;  %v22621_v39 = vld [vmem:[%s31128_s3 + $0x1c4] ss:$16 sps:$4 sm:$0xff]  }
 0x98b   : > { %9348 = vmatprep.subr.bf16.mxu1 %v22567_v7  ;;  %9393 = vmatprep.subr.bf16.mxu0 %v22570_v18  ;;  %v22624_v7 = vld [vmem:[%s31128_s3 + $0x384] ss:$16 sps:$4 sm:$0xff]   ;;  %v22619_v18 = vld [vmem:[%s31128_s3 + $0x1c0] ss:$16 sps:$4 sm:$0xff]  }
 0x98d   : > { %8576 = vmatmul.mubr.bf16.vlgmr.msra.gmra.mxu1 %v27215_v58  ;;  %v22582_v58 = vld [vmem:[%s31128_s3 + $0x264] ss:$16 sps:$4 sm:$0xff]  }
 0x98e   : > { %9349 = vmatpush1.bf16.msra.mxu1 %v22565_v61  ;;  %9380 = vmatprep.mubr.bf16.mxu1 %v27504_v42  ;;  %v22622_v61 = vld [vmem:[%s31128_s3 + $0x380] ss:$16 sps:$4 sm:$0xff]  }
 0x98f   : > { %9394 = vmatpush1.bf16.msra.mxu0 %v22568_v31  ;;  %9350 = vmatprep.subr.bf16.mxu1 %v22573_v11  ;;  %v22627_v31 = vld [vmem:[%s31128_s3 + $0x1a4] ss:$16 sps:$4 sm:$0xff]  }
 0x990   : > { %9395 = vmatprep.subr.bf16.mxu0 %v22576_v4  ;;  %v22630_v11 = vld [vmem:[%s31128_s3 + $0x364] ss:$16 sps:$4 sm:$0xff]   ;;  %v22625_v4 = vld [vmem:[%s31128_s3 + $0x1a0] ss:$16 sps:$4 sm:$0xff]  }
 0x992   : > { %9351 = vmatpush1.bf16.msra.mxu1 %v22571_v63  ;;  %v22628_v63 = vld [vmem:[%s31128_s3 + $0x360] ss:$16 sps:$4 sm:$0xff]  }
 0x993   : > { %9396 = vmatpush1.bf16.msra.mxu0 %v22574_v23  ;;  %9352 = vmatprep.subr.bf16.mxu1 %v22579_v5  ;;  %v22633_v23 = vld [vmem:[%s31128_s3 + $0x184] ss:$16 sps:$4 sm:$0xff]  }
 0x994   : > { %9397 = vmatprep.subr.bf16.mxu0 %v22582_v58  ;;  %v22636_v5 = vld [vmem:[%s31128_s3 + $0x344] ss:$16 sps:$4 sm:$0xff]   ;;  %v22631_v58 = vld [vmem:[%s31128_s3 + $0x180] ss:$16 sps:$4 sm:$0xff]  }
 0x996   : > { %9353 = vmatpush1.bf16.msra.mxu1 %v22577_v14  ;;  %v22634_v14 = vld [vmem:[%s31128_s3 + $0x340] ss:$16 sps:$4 sm:$0xff]  }
 0x997   : > { %9398 = vmatpush1.bf16.msra.mxu0 %v22580_v20  ;;  %9354 = vmatprep.subr.bf16.mxu1 %v22585_v41  ;;  %v22639_v20 = vld [vmem:[%s31128_s3 + $0x164] ss:$16 sps:$4 sm:$0xff]  }
 0x998   : > { %9399 = vmatprep.subr.bf16.mxu0 %v22588_v55  ;;  %v22642_v41 = vld [vmem:[%s31128_s3 + $0x324] ss:$16 sps:$4 sm:$0xff]   ;;  %v22637_v55 = vld [vmem:[%s31128_s3 + $0x160] ss:$16 sps:$4 sm:$0xff]  }
 0x99a   : > { %9355 = vmatpush1.bf16.msra.mxu1 %v22583_v54  ;;  %v22640_v54 = vld [vmem:[%s31128_s3 + $0x320] ss:$16 sps:$4 sm:$0xff]  }
 0x99b   : > { %9400 = vmatpush1.bf16.msra.mxu0 %v22586_v30  ;;  %9356 = vmatprep.subr.bf16.mxu1 %v22591_v49  ;;  %v22645_v30 = vld [vmem:[%s31128_s3 + $0x144] ss:$16 sps:$4 sm:$0xff]  }
 0x99c   : > { %9401 = vmatprep.subr.bf16.mxu0 %v22594_v29  ;;  %v22648_v49 = vld [vmem:[%s31128_s3 + $0x304] ss:$16 sps:$4 sm:$0xff]   ;;  %v22643_v29 = vld [vmem:[%s31128_s3 + $0x140] ss:$16 sps:$4 sm:$0xff]  }
 0x99e   : > { %9357 = vmatpush1.bf16.msra.mxu1 %v22589_v50  ;;  %v22646_v50 = vld [vmem:[%s31128_s3 + $0x300] ss:$16 sps:$4 sm:$0xff]  }
 0x99f   : > { %9402 = vmatpush1.bf16.msra.mxu0 %v22592_v28  ;;  %9358 = vmatprep.subr.bf16.mxu1 %v22597_v16  ;;  %v22651_v28 = vld [vmem:[%s31128_s3 + $0x124] ss:$16 sps:$4 sm:$0xff]   ;;  %v22654_v16 = vld [vmem:[%s31128_s3 + $0xec] ss:$16 sps:$4 sm:$0xff]  }
 0x9a0   : > { %9403 = vmatprep.subr.bf16.mxu0 %v22600_v22  ;;  %v22649_v22 = vld [vmem:[%s31128_s3 + $0x120] ss:$16 sps:$4 sm:$0xff]  }
 0x9a2   : > { %9359 = vmatpush1.bf16.msra.mxu1 %v22595_v13  ;;  %v22652_v13 = vld [vmem:[%s31128_s3 + $0xe8] ss:$16 sps:$4 sm:$0xff]  }
 0x9a3   : > { %9404 = vmatpush1.bf16.msra.mxu0 %v22598_v56  ;;  %9360 = vmatprep.subr.bf16.mxu1 %v22603_v37  ;;  %v27675_v56 = vpack.c.bf16 %v27213_v1, %v27213_v1  ;;  %v22657_v37 = vld [vmem:[%s31128_s3 + $0x104] ss:$16 sps:$4 sm:$0xff]   ;;  %v22658_v1 = vld [vmem:[%s31128_s3 + $0xc8] ss:$16 sps:$4 sm:$0xff]  }
 0x9a4   : > { %9405 = vmatprep.subr.bf16.mxu0 %v22606_v33  ;;  %v22660_v33 = vld [vmem:[%s31128_s3 + $0xcc] ss:$16 sps:$4 sm:$0xff]  }
 0x9a6   : > { %9361 = vmatpush1.bf16.msra.mxu1 %v22601_v9  ;;  %v22655_v9 = vld [vmem:[%s31128_s3 + $0x100] ss:$16 sps:$4 sm:$0xff]  }
 0x9a7   : > { %9406 = vmatpush2.bf16.msra.mxu0 %v22604_v38  ;;  %9362 = vmatprep.subr.bf16.mxu1 %v22609_v24  ;;  %v22663_v38 = vld [vmem:[%s31128_s3 + $0x464] ss:$16 sps:$4 sm:$0xff]   ;;  %v22666_v24 = vld [vmem:[%s31128_s3 + $0xac] ss:$16 sps:$4 sm:$0xff]  }
 0x9a8   : > { %9407 = vmatprep.subr.bf16.mxu0 %v22612_v2  ;;  %v22661_v2 = vld [vmem:[%s31128_s3 + $0x460] ss:$16 sps:$4 sm:$0xff]  }
 0x9aa   : > { %9363 = vmatpush1.bf16.msra.mxu1 %v22607_v3  ;;  %v22664_v3 = vld [vmem:[%s31128_s3 + $0xa8] ss:$16 sps:$4 sm:$0xff]  }
 0x9ab   : > { %9408 = vmatpush2.bf16.msra.mxu0 %v22610_v6  ;;  %9364 = vmatprep.subr.bf16.mxu1 %v22615_v43  ;;  %v22669_v6 = vld [vmem:[%s31128_s3 + $0x444] ss:$16 sps:$4 sm:$0xff]   ;;  %v22672_v43 = vld [vmem:[%s31128_s3 + $0x8c] ss:$16 sps:$4 sm:$0xff]  }
 0x9ac   : > { %9409 = vmatprep.subr.bf16.mxu0 %v22618_v62  ;;  %v22670_v62 = vld [vmem:[%s31128_s3 + $0x88] ss:$16 sps:$4 sm:$0xff]  }
 0x9ae   : > { %9365 = vmatpush2.bf16.msra.mxu1 %v22613_v26  ;;  %v22675_v26 = vld [vmem:[%s31128_s3 + $0x424] ss:$16 sps:$4 sm:$0xff]  }
 0x9af   : > { %9410 = vmatpush2.bf16.msra.mxu0 %v22616_v15  ;;  %9366 = vmatprep.subr.bf16.mxu1 %v22621_v39  ;;  %v22678_v15 = vld [vmem:[%s31128_s3 + $0x6c] ss:$16 sps:$4 sm:$0xff]   ;;  %v22673_v39 = vld [vmem:[%s31128_s3 + $0x420] ss:$16 sps:$4 sm:$0xff]  }
 0x9b0   : > { %9411 = vmatprep.subr.bf16.mxu0 %v22624_v7  ;;  %v22676_v7 = vld [vmem:[%s31128_s3 + $0x68] ss:$16 sps:$4 sm:$0xff]  }
 0x9b2   : > { %9367 = vmatpush2.bf16.msra.mxu1 %v22619_v18  ;;  %v22681_v18 = vld [vmem:[%s31128_s3 + $0x404] ss:$16 sps:$4 sm:$0xff]  }
 0x9b3   : > { %9412 = vmatpush2.bf16.msra.mxu0 %v22622_v61  ;;  %9368 = vmatprep.subr.bf16.mxu1 %v22627_v31  ;;  %v22684_v61 = vld [vmem:[%s31128_s3 + $0x4c] ss:$16 sps:$4 sm:$0xff]   ;;  %v22679_v31 = vld [vmem:[%s31128_s3 + $0x400] ss:$16 sps:$4 sm:$0xff]  }
 0x9b4   : > { %9413 = vmatprep.subr.bf16.mxu0 %v22630_v11  ;;  %v22682_v11 = vld [vmem:[%s31128_s3 + $0x48] ss:$16 sps:$4 sm:$0xff]  }
 0x9b6   : > { %9369 = vmatpush2.bf16.msra.mxu1 %v22625_v4  ;;  %v22690_v4 = vld [vmem:[%s31128_s3 + $0x2ec] ss:$16 sps:$4 sm:$0xff]  }
 0x9b7   : > { %9414 = vmatpush2.bf16.msra.mxu0 %v22628_v63  ;;  %9370 = vmatprep.subr.bf16.mxu1 %v22633_v23  ;;  %v22687_v63 = vld [vmem:[%s31128_s3 + $0x2c] ss:$16 sps:$4 sm:$0xff]   ;;  %v22688_v23 = vld [vmem:[%s31128_s3 + $0x2e8] ss:$16 sps:$4 sm:$0xff]  }
 0x9b8   : > { %9415 = vmatprep.subr.bf16.mxu0 %v22636_v5  ;;  %v27756_v5 = vpack.c.bf16 %v27211_v10, %v27211_v10  ;;  %v22694_v10 = vld [vmem:[%s31128_s3 + $0x2c8] ss:$16 sps:$4 sm:$0xff]  }
 0x9ba   : > { %9371 = vmatpush2.bf16.msra.mxu1 %v22631_v58  ;;  %v22685_v58 = vld [vmem:[%s31128_s3 + $0x28] ss:$16 sps:$4 sm:$0xff]  }
 0x9bb   : > { %9416 = vmatpush2.bf16.msra.mxu0 %v22634_v14  ;;  %9372 = vmatprep.subr.bf16.mxu1 %v22639_v20  ;;  %v22696_v14 = vld [vmem:[%s31128_s3 + $0x2cc] ss:$16 sps:$4 sm:$0xff]  }
 0x9bc   : > { %9417 = vmatprep.subr.bf16.mxu0 %v22642_v41  ;;  %v22693_v20 = vld [vmem:[%s31128_s3 + $0xc] ss:$16 sps:$4 sm:$0xff]   ;;  %v22691_v41 = vld [vmem:[%s31128_s3 + $0x8] ss:$16 sps:$4 sm:$0xff]  }
 0x9be   : > { %9373 = vmatpush2.bf16.msra.mxu1 %v22637_v55  ;;  %v22702_v55 = vld [vmem:[%s31128_s3 + $0x2ac] ss:$16 sps:$4 sm:$0xff]  }
 0x9bf   : > { %9418 = vmatpush2.bf16.msra.mxu0 %v22640_v54  ;;  %9374 = vmatprep.subr.bf16.mxu1 %v22645_v30  ;;  %v22699_v54 = vld [vmem:[%s31128_s3 + $0x1ec] ss:$16 sps:$4 sm:$0xff]   ;;  %v22697_v30 = vld [vmem:[%s31128_s3 + $0x1e8] ss:$16 sps:$4 sm:$0xff]  }
 0x9c0   : > { %9419 = vmatprep.subr.bf16.mxu0 %v22648_v49  ;;  %v22708_v49 = vld [vmem:[%s31128_s3 + $0x28c] ss:$16 sps:$4 sm:$0xff]  }
 0x9c2   : > { %9375 = vmatpush2.bf16.msra.mxu1 %v22643_v29  ;;  %v22705_v29 = vld [vmem:[%s31128_s3 + $0x1cc] ss:$16 sps:$4 sm:$0xff]  }
 0x9c3   : > { %9420 = vmatpush2.bf16.msra.mxu0 %v22646_v50  ;;  %9376 = vmatprep.subr.bf16.mxu1 %v22651_v28  ;;  %v22706_v50 = vld [vmem:[%s31128_s3 + $0x288] ss:$16 sps:$4 sm:$0xff]  }
 0x9c4   : > { %9471 = vmatprep.subr.bf16.mxu0 %v22654_v16  ;;  %v22703_v28 = vld [vmem:[%s31128_s3 + $0x1c8] ss:$16 sps:$4 sm:$0xff]   ;;  %v22714_v16 = vld [vmem:[%s31128_s3 + $0x26c] ss:$16 sps:$4 sm:$0xff]  }
 0x9c6   : > { %9422 = vmatmul.mubr.bf16.vlgmr.msra.gmra.mxu0 %v27675_v56  ;;  %9377 = vmatpush2.bf16.msra.mxu1 %v22649_v22  ;;  %v22711_v22 = vld [vmem:[%s31128_s3 + $0x1ac] ss:$16 sps:$4 sm:$0xff]  }
 0x9c7   : > { %9472 = vmatpush1.bf16.msra.mxu0 %v22652_v13  ;;  %9503 = vmatprep.mubr.bf16.mxu0 %v27504_v42  ;;  %v27702_v42 = vpack.c.bf16 %v27207_v45, %v27207_v45  ;;  %v22667_v45 = vld [vmem:[%s31128_s3 + $0x440] ss:$16 sps:$4 sm:$0xff]   ;;  %v22712_v13 = vld [vmem:[%s31128_s3 + $0x268] ss:$16 sps:$4 sm:$0xff]  }
 0x9c8   : > { %9378 = vmatprep.subr.bf16.mxu1 %v22657_v37  ;;  %9473 = vmatprep.subr.bf16.mxu0 %v22660_v33  ;;  %v22709_v37 = vld [vmem:[%s31128_s3 + $0x1a8] ss:$16 sps:$4 sm:$0xff]   ;;  %v22720_v33 = vld [vmem:[%s31128_s3 + $0x24c] ss:$16 sps:$4 sm:$0xff]  }
 0x9ca   : > { %9379 = vmatpush2.bf16.msra.mxu1 %v22655_v9  ;;  %v22717_v9 = vld [vmem:[%s31128_s3 + $0x18c] ss:$16 sps:$4 sm:$0xff]  }
 0x9cb   : > { %9474 = vmatpush1.bf16.msra.mxu0 %v22658_v1  ;;  %9438 = vmatprep.subr.bf16.mxu1 %v22663_v38  ;;  %v22718_v1 = vld [vmem:[%s31128_s3 + $0x248] ss:$16 sps:$4 sm:$0xff]  }
 0x9cc   : > { %9475 = vmatprep.subr.bf16.mxu0 %v22666_v24  ;;  %v22715_v38 = vld [vmem:[%s31128_s3 + $0x188] ss:$16 sps:$4 sm:$0xff]   ;;  %v22726_v24 = vld [vmem:[%s31128_s3 + $0x22c] ss:$16 sps:$4 sm:$0xff]  }
 0x9cd   : > { %9381 = vmatmul.mubr.bf16.vlgmr.msra.gmra.mxu1 %v27702_v42 }
 0x9ce   : > { %9439 = vmatpush1.bf16.msra.mxu1 %v22661_v2  ;;  %9462 = vmatprep.mubr.bf16.mxu1 %v31139_v52  ;;  %v22723_v2 = vld [vmem:[%s31128_s3 + $0x16c] ss:$16 sps:$4 sm:$0xff]  }
 0x9cf   : > { %9476 = vmatpush1.bf16.msra.mxu0 %v22664_v3  ;;  %9440 = vmatprep.subr.bf16.mxu1 %v22669_v6  ;;  %v22724_v3 = vld [vmem:[%s31128_s3 + $0x228] ss:$16 sps:$4 sm:$0xff]  }
 0x9d0   : > { %9477 = vmatprep.subr.bf16.mxu0 %v22672_v43  ;;  %v22721_v6 = vld [vmem:[%s31128_s3 + $0x168] ss:$16 sps:$4 sm:$0xff]   ;;  %v22732_v43 = vld [vmem:[%s31128_s3 + $0x20c] ss:$16 sps:$4 sm:$0xff]  }
 0x9d2   : > { %9441 = vmatpush1.bf16.msra.mxu1 %v22667_v45  ;;  %v22729_v45 = vld [vmem:[%s31128_s3 + $0x14c] ss:$16 sps:$4 sm:$0xff]  }
 0x9d3   : > { %9478 = vmatpush1.bf16.msra.mxu0 %v22670_v62  ;;  %9442 = vmatprep.subr.bf16.mxu1 %v22675_v26  ;;  %v22730_v26 = vld [vmem:[%s31128_s3 + $0x208] ss:$16 sps:$4 sm:$0xff]  }
 0x9d4   : > { %9479 = vmatprep.subr.bf16.mxu0 %v22678_v15 }
 0x9d6   : > { %9443 = vmatpush1.bf16.msra.mxu1 %v22673_v39  ;;  %v22727_v39 = vld [vmem:[%s31128_s3 + $0x148] ss:$16 sps:$4 sm:$0xff]  }
 0x9d7   : > { %9480 = vmatpush1.bf16.msra.mxu0 %v22676_v7  ;;  %9444 = vmatprep.subr.bf16.mxu1 %v22681_v18  ;;  %v22738_v7 = vld [vmem:[%s31128_s3 + $0x3ec] ss:$16 sps:$4 sm:$0xff]  }
 0x9d8   : > { %9481 = vmatprep.subr.bf16.mxu0 %v22684_v61  ;;  %v22735_v18 = vld [vmem:[%s31128_s3 + $0x12c] ss:$16 sps:$4 sm:$0xff]  }
 0x9da   : > { %9445 = vmatpush1.bf16.msra.mxu1 %v22679_v31  ;;  %v22736_v31 = vld [vmem:[%s31128_s3 + $0x3e8] ss:$16 sps:$4 sm:$0xff]  }
 0x9db   : > { %9482 = vmatpush1.bf16.msra.mxu0 %v22682_v11  ;;  %9512 = vmatprep.subr.bf16.mxu1 %v22690_v4  ;;  %v22733_v4 = vld [vmem:[%s31128_s3 + $0x128] ss:$16 sps:$4 sm:$0xff]  }
 0x9dc   : > { %9483 = vmatprep.subr.bf16.mxu0 %v22687_v63  ;;  %v22744_v63 = vld [vmem:[%s31128_s3 + $0x3cc] ss:$16 sps:$4 sm:$0xff]  }
 0x9dd   : > { %19393 = vmatmul.mubr.msk.bf16.vlgmr.msra.gmra.mxu1 %vm8375_vm12, %v27756_v5 }
 0x9de   : > { %9513 = vmatpush1.bf16.msra.mxu1 %v22688_v23  ;;  %9544 = vmatprep.mubr.bf16.mxu1 %v27476_v36  ;;  %v22700_v36 = vld [vmem:[%s31128_s3 + $0x2a8] ss:$16 sps:$4 sm:$0xff]   ;;  %v22741_v23 = vld [vmem:[%s31128_s3 + $0x10c] ss:$16 sps:$4 sm:$0xff]  }
 0x9df   : > { %9484 = vmatpush1.bf16.msra.mxu0 %v22685_v58  ;;  %9514 = vmatprep.subr.bf16.mxu1 %v22696_v14 }
 0x9e0   : > { %9485 = vmatprep.subr.bf16.mxu0 %v22693_v20  ;;  %v22742_v20 = vld [vmem:[%s31128_s3 + $0x3c8] ss:$16 sps:$4 sm:$0xff]  }
 0x9e2   : > { %9515 = vmatpush1.bf16.msra.mxu1 %v22694_v10 }
 0x9e3   : > { %9486 = vmatpush1.bf16.msra.mxu0 %v22691_v41  ;;  %9516 = vmatprep.subr.bf16.mxu1 %v22702_v55  ;;  %v22739_v41 = vld [vmem:[%s31128_s3 + $0x108] ss:$16 sps:$4 sm:$0xff]   ;;  %v22747_v55 = vld [vmem:[%s31128_s3 + $0x3ac] ss:$16 sps:$4 sm:$0xff]  }
 0x9e4   : > { %9487 = vmatprep.subr.bf16.mxu0 %v22699_v54 }
 0x9e6   : > { %9517 = vmatpush1.bf16.msra.mxu1 %v22700_v36  ;;  %v22750_v36 = vld [vmem:[%s31128_s3 + $0x46c] ss:$16 sps:$4 sm:$0xff]  }
 0x9e7   : > { %9488 = vmatpush2.bf16.msra.mxu0 %v22697_v30  ;;  %9518 = vmatprep.subr.bf16.mxu1 %v22708_v49  ;;  %v22745_v49 = vld [vmem:[%s31128_s3 + $0x3a8] ss:$16 sps:$4 sm:$0xff]  }
 0x9e8   : > { %9489 = vmatprep.subr.bf16.mxu0 %v22705_v29 }
 0x9ea   : > { %9519 = vmatpush1.bf16.msra.mxu1 %v22706_v50  ;;  %v22748_v50 = vld [vmem:[%s31128_s3 + $0x468] ss:$16 sps:$4 sm:$0xff]  }
 0x9eb   : > { %9490 = vmatpush2.bf16.msra.mxu0 %v22703_v28  ;;  %9520 = vmatprep.subr.bf16.mxu1 %v22714_v16  ;;  %v22753_v28 = vld [vmem:[%s31128_s3 + $0x38c] ss:$16 sps:$4 sm:$0xff]  }
 0x9ec   : > { %9491 = vmatprep.subr.bf16.mxu0 %v22711_v22  ;;  %v22756_v16 = vld [vmem:[%s31128_s3 + $0x44c] ss:$16 sps:$4 sm:$0xff]   ;;  %v22751_v22 = vld [vmem:[%s31128_s3 + $0x388] ss:$16 sps:$4 sm:$0xff]  }
 0x9ee   : > { %9521 = vmatpush1.bf16.msra.mxu1 %v22712_v13  ;;  %v22754_v13 = vld [vmem:[%s31128_s3 + $0x448] ss:$16 sps:$4 sm:$0xff]  }
 0x9ef   : > { %9492 = vmatpush2.bf16.msra.mxu0 %v22709_v37  ;;  %9522 = vmatprep.subr.bf16.mxu1 %v22720_v33  ;;  %v22759_v37 = vld [vmem:[%s31128_s3 + $0x36c] ss:$16 sps:$4 sm:$0xff]   ;;  %v22757_v33 = vld [vmem:[%s31128_s3 + $0x368] ss:$16 sps:$4 sm:$0xff]  }
 0x9f0   : > { %9493 = vmatprep.subr.bf16.mxu0 %v22717_v9  ;;  %v22760_v9 = vld [vmem:[%s31128_s3 + $0x428] ss:$16 sps:$4 sm:$0xff]  }
 0x9f2   : > { %9523 = vmatpush1.bf16.msra.mxu1 %v22718_v1  ;;  %v22765_v1 = vld [vmem:[%s31128_s3 + $0x34c] ss:$16 sps:$4 sm:$0xff]  }
 0x9f3   : > { %9494 = vmatpush2.bf16.msra.mxu0 %v22715_v38  ;;  %9524 = vmatprep.subr.bf16.mxu1 %v22726_v24  ;;  %v22768_v38 = vld [vmem:[%s31128_s3 + $0x40c] ss:$16 sps:$4 sm:$0xff]  }
 0x9f4   : > { %9495 = vmatprep.subr.bf16.mxu0 %v22723_v2  ;;  %v9595_v2 = vsel %vm9594_vm13, 17, %v24581_v48 }
 0x9f5   : > { %v8454_v62 = vpop.f32.mrf.mxu0 }
 0x9f6   : > { %9525 = vmatpush1.bf16.msra.mxu1 %v22724_v3 }
 0x9f7   : > { %9496 = vmatpush2.bf16.msra.mxu0 %v22721_v6  ;;  %v8456_v15 = vpop.f32.mrf.mxu0  ;;  %9526 = vmatprep.subr.bf16.mxu1 %v22732_v43  ;;  %v22763_v6 = vld [vmem:[%s31128_s3 + $0x348] ss:$16 sps:$4 sm:$0xff]  }
 0x9f8   : > { %9497 = vmatprep.subr.bf16.mxu0 %v22729_v45  ;;  %v22766_v45 = vld [vmem:[%s31128_s3 + $0x408] ss:$16 sps:$4 sm:$0xff]  }
 0x9f9   : > { %v8458_v61 = vpop.f32.mrf.mxu0 }
 0x9fa   : > { %9527 = vmatpush1.bf16.msra.mxu1 %v22730_v26  ;;  %v22774_v61 = vld [vmem:[%s31128_s3 + $0x30c] ss:$16 sps:$4 sm:$0xff]  }
 0x9fb   : > { %9498 = vmatpush2.bf16.msra.mxu0 %v22727_v39  ;;  %v8459_v11 = vpop.f32.mrf.mxu0  ;;  %9528 = vmatprep.subr.bf16.mxu1 %v22738_v7  ;;  %v22769_v7 = vld [vmem:[%s31128_s3 + $0x328] ss:$16 sps:$4 sm:$0xff]  }
 0x9fc   : > { %9499 = vmatprep.subr.bf16.mxu0 %v22735_v18 }
 0x9fd   : > { %v8413_v58 = vpop.f32.mrf.mxu1 }
 0x9fe   : > { %v8455_v14 = vadd.f32 %v8454_v62, %v8413_v58  ;;  %9529 = vmatpush2.bf16.msra.mxu1 %v22736_v31  ;;  %v22771_v62 = vld [vmem:[%s31128_s3 + $0x32c] ss:$16 sps:$4 sm:$0xff]   ;;  %v22772_v31 = vld [vmem:[%s31128_s3 + $0x308] ss:$16 sps:$4 sm:$0xff]   ;;  %v22787_v58 = vld [vmem:[%s31128_s3 + $0x9c0] ss:$16 sps:$4 sm:$0xff]  }
 0x9ff   : > { %9500 = vmatpush2.bf16.msra.mxu0 %v22733_v4  ;;  %v8415_v10 = vpop.f32.mrf.mxu1  ;;  %9530 = vmatprep.subr.bf16.mxu1 %v22744_v63  ;;  %v22789_v63 = vld [vmem:[%s31128_s3 + $0x9c4] ss:$16 sps:$4 sm:$0xff]  }
 0xa00   : > { %v8457_v54 = vadd.f32 %v8456_v15, %v8415_v10  ;;  %9501 = vmatprep.subr.bf16.mxu0 %v22741_v23  ;;  %v9596_v15 = vsel %vm1102_vm2, 16, %v9595_v2  ;;  %v22777_v23 = vld [vmem:[%s31128_s3 + $0xbe4] ss:$16 sps:$4 sm:$0xff]   ;;  %v22775_v10 = vld [vmem:[%s31128_s3 + $0xbe0] ss:$16 sps:$4 sm:$0xff]  }
 0xa01   : > { %v8417_v30 = vpop.f32.mrf.mxu1  ;;  %vm9597_vm14 = vcmp.eq.s32.totalorder %v24315_v25, %v9596_v15  ;;  %v22808_v15 = vld [vmem:[%s31128_s3 + $0xb20] ss:$16 sps:$4 sm:$0xff]  }
 0xa02   : > { %9531 = vmatpush2.bf16.msra.mxu1 %v22742_v20  ;;  %v19395_v11 = vsel %vm9597_vm14, 1.0, %v31140_v59  ;;  %v27984_v20 = vld [vmem:[#allocation4 + $0x10] ss:$20 sps:$4 sm:$0xff]   ;;  %v22786_v30 = vld [vmem:[%s31128_s3 + $0xba4] ss:$16 sps:$4 sm:$0xff]  }
 0xa03   : > { %9502 = vmatpush2.bf16.msra.mxu0 %v22739_v41  ;;  %v8418_v29 = vpop.f32.mrf.mxu1  ;;  %9532 = vmatprep.subr.bf16.mxu1 %v22747_v55  ;;  %v9600_v4 = vpack.c.bf16 %v19395_v11, %v19395_v11  ;;  %v22780_v41 = vld [vmem:[%s31128_s3 + $0xbc4] ss:$16 sps:$4 sm:$0xff]   ;;  %v22793_v55 = vld [vmem:[%s31128_s3 + $0x9a0] ss:$16 sps:$4 sm:$0xff]  }
 0xa04   : > { %9561 = vmatprep.subr.bf16.mxu0 %v22750_v36  ;;  %v22778_v36 = vld [vmem:[%s31128_s3 + $0xbc0] ss:$16 sps:$4 sm:$0xff]   ;;  %v22807_v29 = vld [vmem:[%s31128_s3 + $0x964] ss:$16 sps:$4 sm:$0xff]  }
 0xa06   : > { %9504 = vmatmul.mubr.bf16.vlgmr.msra.gmra.mxu0 %v27702_v42  ;;  %9533 = vmatpush2.bf16.msra.mxu1 %v22745_v49  ;;  %v22762_v42 = vld [vmem:[%s31128_s3 + $0x42c] ss:$16 sps:$4 sm:$0xff]   ;;  %v22799_v49 = vld [vmem:[%s31128_s3 + $0x980] ss:$16 sps:$4 sm:$0xff]  }
 0xa07   : > { %9562 = vmatpush1.bf16.msra.mxu0 %v22748_v50  ;;  %9534 = vmatprep.subr.bf16.mxu1 %v22753_v28  ;;  %v22784_v50 = vld [vmem:[%s31128_s3 + $0xba0] ss:$16 sps:$4 sm:$0xff]   ;;  %v22792_v28 = vld [vmem:[%s31128_s3 + $0xb84] ss:$16 sps:$4 sm:$0xff]  }
 0xa08   : > { %9563 = vmatprep.subr.bf16.mxu0 %v22756_v16  ;;  %9585 = vmatprep.mubr.bf16.mxu0 %v31139_v52  ;;  %v22805_v16 = vld [vmem:[%s31128_s3 + $0x960] ss:$16 sps:$4 sm:$0xff]  }
 0xa0a   : > { %9535 = vmatpush2.bf16.msra.mxu1 %v22751_v22 }
 0xa0b   : > { %9564 = vmatpush1.bf16.msra.mxu0 %v22754_v13  ;;  %9536 = vmatprep.subr.bf16.mxu1 %v22759_v37  ;;  %v22813_v13 = vld [vmem:[%s31128_s3 + $0x944] ss:$16 sps:$4 sm:$0xff]   ;;  %v22790_v37 = vld [vmem:[%s31128_s3 + $0xb80] ss:$16 sps:$4 sm:$0xff]  }
 0xa0c   : > { %9565 = vmatprep.subr.bf16.mxu0 %v22762_v42 }
 0xa0d   : > { %v8495_v24 = vpop.f32.mrf.mxu1 }
 0xa0e   : > { %v27918_v3 = vadd.f32 %v8495_v24, %v8455_v14  ;;  %9537 = vmatpush2.bf16.msra.mxu1 %v22757_v33  ;;  %v22795_v14 = vld [vmem:[%s31128_s3 + $0x9a4] ss:$16 sps:$4 sm:$0xff]   ;;  %v22796_v24 = vld [vmem:[%s31128_s3 + $0xb60] ss:$16 sps:$4 sm:$0xff]  }
 0xa0f   : > { %9566 = vmatpush1.bf16.msra.mxu0 %v22760_v9  ;;  %v8497_v43 = vpop.f32.mrf.mxu1  ;;  %9538 = vmatprep.subr.bf16.mxu1 %v22765_v1  ;;  %v22798_v33 = vld [vmem:[%s31128_s3 + $0xb64] ss:$16 sps:$4 sm:$0xff]   ;;  %v22811_v9 = vld [vmem:[%s31128_s3 + $0x940] ss:$16 sps:$4 sm:$0xff]  }
 0xa10   : > { %v27929_v26 = vadd.f32 %v8497_v43, %v8457_v54  ;;  %9567 = vmatprep.subr.bf16.mxu0 %v22768_v38  ;;  %v22801_v54 = vld [vmem:[%s31128_s3 + $0x984] ss:$16 sps:$4 sm:$0xff]   ;;  %v22817_v43 = vld [vmem:[%s31128_s3 + $0x920] ss:$16 sps:$4 sm:$0xff]  }
 0xa11   : > { %v8499_v39 = vpop.f32.mrf.mxu1  ;;  %v22819_v38 = vld [vmem:[%s31128_s3 + $0x924] ss:$16 sps:$4 sm:$0xff]  }
 0xa12   : > { %9539 = vmatpush2.bf16.msra.mxu1 %v22763_v6  ;;  %v22804_v6 = vld [vmem:[%s31128_s3 + $0xb44] ss:$16 sps:$4 sm:$0xff]  }
 0xa13   : > { %9568 = vmatpush1.bf16.msra.mxu0 %v22766_v45  ;;  %v8500_v18 = vpop.f32.mrf.mxu1  ;;  %9540 = vmatprep.subr.bf16.mxu1 %v22771_v62  ;;  %v22802_v45 = vld [vmem:[%s31128_s3 + $0xb40] ss:$16 sps:$4 sm:$0xff]   ;;  %v22810_v62 = vld [vmem:[%s31128_s3 + $0xb24] ss:$16 sps:$4 sm:$0xff]  }
 0xa14   : > { %19398 = vmatprep.subr.msk.bf16.mxu0 %vm487_vm3, %v26906_v34  ;;  %v22816_v39 = vld [vmem:[%s31128_s3 + $0xb04] ss:$16 sps:$4 sm:$0xff]  }
 0xa15   : > { %v22825_v18 = vld [vmem:[%s31128_s3 + $0x904] ss:$16 sps:$4 sm:$0xff]  }
 0xa16   : > { %19394 = vmatmul.mubr.msk.bf16.vlgmr.msra.gmra.mxu0 %vm8375_vm12, %v27756_v5  ;;  %9541 = vmatpush2.bf16.msra.mxu1 %v22769_v7  ;;  %v22781_v5 = vld [vmem:[%s31128_s3 + $0x9e0] ss:$16 sps:$4 sm:$0xff]  }
 0xa17   : > { %9658 = vmatpush1.bf16.msra.mxu0 %v26911_v44  ;;  %9542 = vmatprep.subr.bf16.mxu1 %v22774_v61  ;;  %v22814_v61 = vld [vmem:[%s31128_s3 + $0xb00] ss:$16 sps:$4 sm:$0xff]  }
 0xa18   : > { %9659 = vmatprep.subr.bf16.mxu0 %v26984_v51  ;;  %9677 = vmatprep.mubr.bf16.mxu0 %v31139_v52 }
 0xa1a   : > { %9543 = vmatpush2.bf16.msra.mxu1 %v22772_v31  ;;  %v22823_v31 = vld [vmem:[%s31128_s3 + $0x900] ss:$16 sps:$4 sm:$0xff]  }
 0xa1b   : > { %9660 = vmatpush1.bf16.msra.mxu0 %v26986_v8  ;;  %19396 = vmatprep.subr.msk.bf16.mxu1 %vm487_vm3, %v26897_v17 }
 0xa1d   : > { %9545 = vmatmul.mubr.bf16.vlgmr.msra.gmra.mxu1 %v27675_v56  ;;  %v22783_v56 = vld [vmem:[%s31128_s3 + $0x9e4] ss:$16 sps:$4 sm:$0xff]  }
 0xa1e   : > { %19399 = vmatmul.mubr.msk.bf16.vlgmr.msra.gmra.mxu0 %vm7083_vm9, %v9600_v4  ;;  %9617 = vmatpush1.bf16.msra.mxu1 %v26902_v46 }
 0xa1f   : > { %9618 = vmatprep.subr.bf16.mxu1 %v26938_v27  ;;  %9636 = vmatprep.mubr.bf16.mxu1 %v31139_v52 }
 0xa20   : > { %10599 = vmatprep.subr.bf16.mxu0 %v22783_v56  ;;  %v22831_v56 = vld [vmem:[%s31128_s3 + $0xae4] ss:$16 sps:$4 sm:$0xff]  }
 0xa21   : > { %10600 = vmatpush1.bf16.msra.mxu0 %v22781_v5 }
 0xa22   : > { %9619 = vmatpush1.bf16.msra.mxu1 %v26940_v19  ;;  %10601 = vmatprep.subr.bf16.mxu0 %v22789_v63  ;;  %v22820_v63 = vld [vmem:[%s31128_s3 + $0xce0] ss:$16 sps:$4 sm:$0xff]  }
 0xa23   : > { %21340 = vmatprep.subr.bf16.mxu1 %v31140_v59 }
 0xa25   : > { %19397 = vmatmul.mubr.msk.bf16.vlgmr.msra.gmra.mxu1 %vm7083_vm9, %v9600_v4  ;;  %10602 = vmatpush1.bf16.msra.mxu0 %v22787_v58 }
 0xa26   : > { %21341 = vmatpush3.bf16.msra.mxu1 %v26948_v32  ;;  %21344 = vmatprep.mubr.msk.bf16.mxu1 %vm24204_vm7, %v31140_v59 }
 0xa27   : > { %21342 = vmatprep.subr.bf16.mxu1 %v31140_v59  ;;  %10603 = vmatprep.subr.bf16.mxu0 %v22795_v14  ;;  %v22828_v14 = vld [vmem:[%s31128_s3 + $0xcc4] ss:$16 sps:$4 sm:$0xff]  }
 0xa29   : > { %10604 = vmatpush1.bf16.msra.mxu0 %v22793_v55 }
 0xa2a   : > { %21343 = vmatpush3.bf16.msra.mxu1 %v27984_v20  ;;  %10605 = vmatprep.subr.bf16.mxu0 %v22801_v54  ;;  %v22843_v54 = vld [vmem:[%s31128_s3 + $0xaa4] ss:$16 sps:$4 sm:$0xff]  }
 0xa2b   : > { %10640 = vmatprep.subr.bf16.mxu1 %v22777_v23  ;;  %v22829_v23 = vld [vmem:[%s31128_s3 + $0xae0] ss:$16 sps:$4 sm:$0xff]  }
 0xa2d   : > { %21345 = vmatmul.mubr.msk.bf16.vlgmr.msra.gmra.mxu1 %vm7083_vm9, %v9600_v4  ;;  %10606 = vmatpush1.bf16.msra.mxu0 %v22799_v49  ;;  %v22822_v4 = vld [vmem:[%s31128_s3 + $0xce4] ss:$16 sps:$4 sm:$0xff]  }
 0xa2e   : > { %10641 = vmatpush1.bf16.msra.mxu1 %v22775_v10  ;;  %10607 = vmatprep.subr.bf16.mxu0 %v22807_v29  ;;  %v22835_v10 = vld [vmem:[%s31128_s3 + $0xac0] ss:$16 sps:$4 sm:$0xff]   ;;  %v22834_v29 = vld [vmem:[%s31128_s3 + $0xca4] ss:$16 sps:$4 sm:$0xff]  }
 0xa2f   : > { %10642 = vmatprep.subr.bf16.mxu1 %v22780_v41  ;;  %v22837_v41 = vld [vmem:[%s31128_s3 + $0xac4] ss:$16 sps:$4 sm:$0xff]  }
 0xa31   : > { %10608 = vmatpush1.bf16.msra.mxu0 %v22805_v16  ;;  %v22841_v16 = vld [vmem:[%s31128_s3 + $0xaa0] ss:$16 sps:$4 sm:$0xff]  }
 0xa32   : > { %10643 = vmatpush1.bf16.msra.mxu1 %v22778_v36  ;;  %10609 = vmatprep.subr.bf16.mxu0 %v22813_v13 }
 0xa33   : > { %10644 = vmatprep.subr.bf16.mxu1 %v22786_v30  ;;  %v22826_v30 = vld [vmem:[%s31128_s3 + $0xcc0] ss:$16 sps:$4 sm:$0xff]  }
 0xa35   : > { %v8536_v22 = vpop.f32.mrf.mxu0  ;;  %10610 = vmatpush1.bf16.msra.mxu0 %v22811_v9  ;;  %v22849_v9 = vld [vmem:[%s31128_s3 + $0xa84] ss:$16 sps:$4 sm:$0xff]  }
 0xa36   : > { %10645 = vmatpush1.bf16.msra.mxu1 %v22784_v50  ;;  %10611 = vmatprep.subr.bf16.mxu0 %v22819_v38  ;;  %v22847_v38 = vld [vmem:[%s31128_s3 + $0xa80] ss:$16 sps:$4 sm:$0xff]  }
 0xa37   : > { %v8538_v42 = vpop.f32.mrf.mxu0  ;;  %10646 = vmatprep.subr.bf16.mxu1 %v22792_v28 }
 0xa39   : > { %v8540_v1 = vpop.f32.mrf.mxu0  ;;  %10612 = vmatpush1.bf16.msra.mxu0 %v22817_v43  ;;  %v22853_v43 = vld [vmem:[%s31128_s3 + $0xa60] ss:$16 sps:$4 sm:$0xff]  }
 0xa3a   : > { %10647 = vmatpush1.bf16.msra.mxu1 %v22790_v37  ;;  %10613 = vmatprep.subr.bf16.mxu0 %v22825_v18  ;;  %v22832_v37 = vld [vmem:[%s31128_s3 + $0xca0] ss:$16 sps:$4 sm:$0xff]   ;;  %v22867_v18 = vld [vmem:[%s31128_s3 + $0xa24] ss:$16 sps:$4 sm:$0xff]  }
 0xa3b   : > { %v8541_v2 = vpop.f32.mrf.mxu0  ;;  %10648 = vmatprep.subr.bf16.mxu1 %v22798_v33  ;;  %v22838_v1 = vld [vmem:[%s31128_s3 + $0xc80] ss:$16 sps:$4 sm:$0xff]  }
 0xa3c   : > { %v22855_v2 = vld [vmem:[%s31128_s3 + $0xa64] ss:$16 sps:$4 sm:$0xff]  }
 0xa3d   : > { %10614 = vmatpush1.bf16.msra.mxu0 %v22823_v31  ;;  %v22865_v31 = vld [vmem:[%s31128_s3 + $0xa20] ss:$16 sps:$4 sm:$0xff]  }
 0xa3e   : > { %10649 = vmatpush1.bf16.msra.mxu1 %v22796_v24  ;;  %10615 = vmatprep.subr.bf16.mxu0 %v22831_v56  ;;  %v22846_v24 = vld [vmem:[%s31128_s3 + $0xc64] ss:$16 sps:$4 sm:$0xff]  }
 0xa3f   : > { %10650 = vmatprep.subr.bf16.mxu1 %v22804_v6  ;;  %v22844_v6 = vld [vmem:[%s31128_s3 + $0xc60] ss:$16 sps:$4 sm:$0xff]   ;;  %v22873_v56 = vld [vmem:[%s31128_s3 + $0xa04] ss:$16 sps:$4 sm:$0xff]  }
 0xa41   : > { %10616 = vmatpush2.bf16.msra.mxu0 %v22829_v23  ;;  %v22879_v23 = vld [vmem:[%s31128_s3 + $0xd64] ss:$16 sps:$4 sm:$0xff]  }
 0xa42   : > { %10651 = vmatpush1.bf16.msra.mxu1 %v22802_v45  ;;  %10617 = vmatprep.subr.bf16.mxu0 %v22837_v41  ;;  %v22852_v45 = vld [vmem:[%s31128_s3 + $0xc44] ss:$16 sps:$4 sm:$0xff]  }
 0xa43   : > { %10652 = vmatprep.subr.bf16.mxu1 %v22810_v62  ;;  %v22861_v62 = vld [vmem:[%s31128_s3 + $0xa44] ss:$16 sps:$4 sm:$0xff]  }
 0xa45   : > { %v8618_v7 = vpop.f32.mrf.mxu0  ;;  %10618 = vmatpush2.bf16.msra.mxu0 %v22835_v10 }
 0xa46   : > { %10653 = vmatpush1.bf16.msra.mxu1 %v22808_v15  ;;  %10619 = vmatprep.subr.bf16.mxu0 %v22843_v54  ;;  %v22850_v15 = vld [vmem:[%s31128_s3 + $0xc40] ss:$16 sps:$4 sm:$0xff]  }
 0xa47   : > { %v8620_v11 = vpop.f32.mrf.mxu0  ;;  %10654 = vmatprep.subr.bf16.mxu1 %v22816_v39  ;;  %v22859_v39 = vld [vmem:[%s31128_s3 + $0xa40] ss:$16 sps:$4 sm:$0xff]  }
 0xa49   : > { %v8622_v5 = vpop.f32.mrf.mxu0  ;;  %10620 = vmatpush2.bf16.msra.mxu0 %v22841_v16 }
 0xa4a   : > { %10655 = vmatpush1.bf16.msra.mxu1 %v22814_v61  ;;  %10621 = vmatprep.subr.bf16.mxu0 %v22849_v9  ;;  %v22856_v61 = vld [vmem:[%s31128_s3 + $0xc20] ss:$16 sps:$4 sm:$0xff]  }
 0xa4b   : > { %v8623_v58 = vpop.f32.mrf.mxu0  ;;  %10656 = vmatprep.subr.bf16.mxu1 %v22822_v4  ;;  %v22862_v4 = vld [vmem:[%s31128_s3 + $0xc00] ss:$16 sps:$4 sm:$0xff]  }
 0xa4c   : > { %v22871_v5 = vld [vmem:[%s31128_s3 + $0xa00] ss:$16 sps:$4 sm:$0xff]  }
 0xa4d   : > { %v8577_v55 = vpop.f32.mrf.mxu1  ;;  %10622 = vmatpush2.bf16.msra.mxu0 %v22847_v38 }
 0xa4e   : > { %v8578_v36 = vadd.f32 %v8577_v55, %v8536_v22  ;;  %10657 = vmatpush2.bf16.msra.mxu1 %v22820_v63  ;;  %10623 = vmatprep.subr.bf16.mxu0 %v22855_v2  ;;  %v22870_v63 = vld [vmem:[%s31128_s3 + $0x9ec] ss:$16 sps:$4 sm:$0xff]  }
 0xa4f   : > { %v8579_v49 = vpop.f32.mrf.mxu1  ;;  %10658 = vmatprep.subr.bf16.mxu1 %v22828_v14 }
 0xa50   : > { %v8580_v50 = vadd.f32 %v8579_v49, %v8538_v42  ;;  %v28096_v28 = vadd.f32 %v8618_v7, %v8578_v36  ;;  %v22840_v42 = vld [vmem:[%s31128_s3 + $0xc84] ss:$16 sps:$4 sm:$0xff]  }
 0xa51   : > { %v8581_v22 = vpop.f32.mrf.mxu1  ;;  %10624 = vmatpush2.bf16.msra.mxu0 %v22853_v43  ;;  %v22858_v7 = vld [vmem:[%s31128_s3 + $0xc24] ss:$16 sps:$4 sm:$0xff]  }
 0xa52   : > { %v28101_v13 = vadd.f32 %v8620_v11, %v8580_v50  ;;  %10659 = vmatpush2.bf16.msra.mxu1 %v22826_v30  ;;  %10625 = vmatprep.subr.bf16.mxu0 %v22861_v62  ;;  %v22864_v11 = vld [vmem:[%s31128_s3 + $0xc04] ss:$16 sps:$4 sm:$0xff]  }
 0xa53   : > { %v8582_v33 = vpop.f32.mrf.mxu1  ;;  %10660 = vmatprep.subr.bf16.mxu1 %v22834_v29 }
 0xa55   : > { %10626 = vmatpush2.bf16.msra.mxu0 %v22859_v39 }
 0xa56   : > { %10661 = vmatpush2.bf16.msra.mxu1 %v22832_v37  ;;  %10627 = vmatprep.subr.bf16.mxu0 %v22867_v18 }
 0xa57   : > { %10662 = vmatprep.subr.bf16.mxu1 %v22840_v42 }
 0xa59   : > { %10628 = vmatpush2.bf16.msra.mxu0 %v22865_v31 }
 0xa5a   : > { %10663 = vmatpush2.bf16.msra.mxu1 %v22838_v1  ;;  %10629 = vmatprep.subr.bf16.mxu0 %v22873_v56 }
 0xa5b   : > { %10664 = vmatprep.subr.bf16.mxu1 %v22846_v24 }
 0xa5d   : > { %10630 = vmatpush2.bf16.msra.mxu0 %v22871_v5 }
 0xa5e   : > { %10665 = vmatpush2.bf16.msra.mxu1 %v22844_v6  ;;  %10689 = vmatprep.subr.bf16.mxu0 %v22879_v23 }
 0xa5f   : > { %10666 = vmatprep.subr.bf16.mxu1 %v22852_v45 }
 0xa62   : > { %10667 = vmatpush2.bf16.msra.mxu1 %v22850_v15 }
 0xa63   : > { %10668 = vmatprep.subr.bf16.mxu1 %v22858_v7 }
 0xa66   : > { %10669 = vmatpush2.bf16.msra.mxu1 %v22856_v61 }
 0xa67   : > { %10670 = vmatprep.subr.bf16.mxu1 %v22864_v11 }
 0xa6a   : > { %10671 = vmatpush2.bf16.msra.mxu1 %v22862_v4 }
 0xa6b   : > { %10722 = vmatprep.subr.bf16.mxu1 %v22870_v63 }
 0xa86   : > { %v9423_v58 = vpop.f32.mrf.mxu0 }
 0xa88   : > { %v9425_v14 = vpop.f32.mrf.mxu0 }
 0xa8a   : > { %v9427_v10 = vpop.f32.mrf.mxu0 }
 0xa8c   : > { %v9428_v41 = vpop.f32.mrf.mxu0 }
 0xa8d   : > { %v9382_v55 = vpop.f32.mrf.mxu1 }
 0xa8e   : > { %v9383_v54 = vadd.f32 %v9382_v55, %v27918_v3  ;;  %v22874_v55 = vld [vmem:[%s31128_s3 + $0x9c8] ss:$16 sps:$4 sm:$0xff]  }
 0xa8f   : > { %v9384_v36 = vpop.f32.mrf.mxu1 }
 0xa90   : > { %v9385_v30 = vadd.f32 %v9384_v36, %v27929_v26  ;;  %v9424_v49 = vadd.f32 %v9423_v58, %v9383_v54  ;;  %v22876_v58 = vld [vmem:[%s31128_s3 + $0x9cc] ss:$16 sps:$4 sm:$0xff]  }
 0xa91   : > { %v9386_v29 = vpop.f32.mrf.mxu1  ;;  %v22882_v54 = vld [vmem:[%s31128_s3 + $0x9ac] ss:$16 sps:$4 sm:$0xff]  }
 0xa92   : > { %v9426_v50 = vadd.f32 %v9425_v14, %v9385_v30 }
 0xa93   : > { %v9387_v16 = vpop.f32.mrf.mxu1 }
 0xa94   : > { %v22880_v16 = vld [vmem:[%s31128_s3 + $0x9a8] ss:$16 sps:$4 sm:$0xff]  }
 0xa9d   : > { %v9464_v22 = vpop.f32.mrf.mxu1 }
 0xa9e   : > { %v28174_v37 = vadd.f32 %v9464_v22, %v9424_v49  ;;  %v22877_v49 = vld [vmem:[%s31128_s3 + $0xd60] ss:$16 sps:$4 sm:$0xff]   ;;  %v22885_v22 = vld [vmem:[%s31128_s3 + $0xd44] ss:$16 sps:$4 sm:$0xff]  }
 0xa9f   : > { %v9466_v33 = vpop.f32.mrf.mxu1 }
 0xaa0   : > { %v28176_v42 = vadd.f32 %v9466_v33, %v9426_v50  ;;  %v22888_v33 = vld [vmem:[%s31128_s3 + $0x98c] ss:$16 sps:$4 sm:$0xff]  }
 0xaa1   : > { %v9468_v9 = vpop.f32.mrf.mxu1 }
 0xaa3   : > { %v9469_v1 = vpop.f32.mrf.mxu1 }
 0xaa4   : > { %v22883_v1 = vld [vmem:[%s31128_s3 + $0xd40] ss:$16 sps:$4 sm:$0xff]  }
 0xac6   : > { %v9505_v38 = vpop.f32.mrf.mxu0 }
 0xac7   : > { %v9506_v24 = vadd.f32 %v9505_v38, %v28096_v28  ;;  %v22886_v38 = vld [vmem:[%s31128_s3 + $0x988] ss:$16 sps:$4 sm:$0xff]  }
 0xac8   : > { %v9507_v2 = vpop.f32.mrf.mxu0 }
 0xac9   : > { %v9508_v3 = vadd.f32 %v9507_v2, %v28101_v13  ;;  %v22868_v13 = vld [vmem:[%s31128_s3 + $0x9e8] ss:$16 sps:$4 sm:$0xff]   ;;  %v22891_v2 = vld [vmem:[%s31128_s3 + $0xd24] ss:$16 sps:$4 sm:$0xff]  }
 0xaca   : > { %v9509_v6 = vpop.f32.mrf.mxu0 }
 0xacc   : > { %v9510_v26 = vpop.f32.mrf.mxu0 }
 0xacd   : > { %v22889_v26 = vld [vmem:[%s31128_s3 + $0xd20] ss:$16 sps:$4 sm:$0xff]  }
 0xad6   : > { %v9587_v43 = vpop.f32.mrf.mxu0 }
 0xad8   : > { %v9589_v45 = vpop.f32.mrf.mxu0 }
 0xada   : > { %v9591_v62 = vpop.f32.mrf.mxu0 }
 0xadb   : > { %v22897_v62 = vld [vmem:[%s31128_s3 + $0xd04] ss:$16 sps:$4 sm:$0xff]  }
 0xadc   : > { %v9592_v15 = vpop.f32.mrf.mxu0 }
 0xadd   : > { %v9546_v39 = vpop.f32.mrf.mxu1  ;;  %v22900_v15 = vld [vmem:[%s31128_s3 + $0x94c] ss:$16 sps:$4 sm:$0xff]  }
 0xade   : > { %v9547_v7 = vadd.f32 %v9546_v39, %v9506_v24  ;;  %v9679_v18 = vpop.f32.mrf.mxu0 }
 0xadf   : > { %v9548_v61 = vpop.f32.mrf.mxu1  ;;  %v28182_v11 = vpack.c.bf16 %v9679_v18, %v9679_v18  ;;  %v22898_v18 = vld [vmem:[%s31128_s3 + $0x948] ss:$16 sps:$4 sm:$0xff]  }
 0xae0   : > { %v28180_v31 = vadd.f32 %v9587_v43, %v9547_v7  ;;  %v9549_v4 = vadd.f32 %v9548_v61, %v9508_v3  ;;  %v9681_v5 = vpop.f32.mrf.mxu0  ;;  %v22894_v3 = vld [vmem:[%s31128_s3 + $0x96c] ss:$16 sps:$4 sm:$0xff]   ;;  %v22892_v43 = vld [vmem:[%s31128_s3 + $0x968] ss:$16 sps:$4 sm:$0xff]   ;;  %v22895_v7 = vld [vmem:[%s31128_s3 + $0xd00] ss:$16 sps:$4 sm:$0xff]  }
 0xae1   : > { %v28184_v28 = vpack.c.bf16 %v9681_v5, %v9681_v5  ;;  %v9550_v56 = vpop.f32.mrf.mxu1  ;;  %v22906_v61 = vld [vmem:[%s31128_s3 + $0xbec] ss:$16 sps:$4 sm:$0xff]  }
 0xae2   : > { %v28189_v63 = vadd.f32 %v9589_v45, %v9549_v4  ;;  %v9683_v23 = vpop.f32.mrf.mxu0  ;;  %v22903_v4 = vld [vmem:[%s31128_s3 + $0x92c] ss:$16 sps:$4 sm:$0xff]   ;;  %v22904_v56 = vld [vmem:[%s31128_s3 + $0xbe8] ss:$16 sps:$4 sm:$0xff]  }
 0xae3   : > { %10672 = vmatprep.mubr.bf16.mxu1 %v28184_v28  ;;  %v9551_v14 = vpop.f32.mrf.mxu1  ;;  %v22912_v23 = vld [vmem:[%s31128_s3 + $0xbcc] ss:$16 sps:$4 sm:$0xff]  }
 0xae4   : > { %10673 = vmatmul.mubr.bf16.vlgmr.msra.gmra.mxu1 %v28182_v11  ;;  %v9684_v10 = vpop.f32.mrf.mxu0  ;;  %v22910_v14 = vld [vmem:[%s31128_s3 + $0xbc8] ss:$16 sps:$4 sm:$0xff]  }
 0xae5   : > { %10723 = vmatpush1.bf16.msra.mxu1 %v22868_v13  ;;  %v9638_v41 = vpop.f32.mrf.mxu1  ;;  %v22901_v13 = vld [vmem:[%s31128_s3 + $0x928] ss:$16 sps:$4 sm:$0xff]  }
 0xae6   : > { %10724 = vmatprep.subr.bf16.mxu1 %v22876_v58  ;;  %v28205_v29 = vpack.c.bf16 %v9638_v41, %v9638_v41  ;;  %v22909_v58 = vld [vmem:[%s31128_s3 + $0x90c] ss:$16 sps:$4 sm:$0xff]   ;;  %v22907_v10 = vld [vmem:[%s31128_s3 + $0x908] ss:$16 sps:$4 sm:$0xff]  }
 0xae7   : > { %v9640_v36 = vpop.f32.mrf.mxu1  ;;  %v22918_v41 = vld [vmem:[%s31128_s3 + $0xbac] ss:$16 sps:$4 sm:$0xff]  }
 0xae8   : > { %v9727_v30 = vpack.c.bf16 %v9640_v36, %v9640_v36  ;;  %v22924_v36 = vld [vmem:[%s31128_s3 + $0xb8c] ss:$16 sps:$4 sm:$0xff]  }
 0xae9   : > { %10725 = vmatpush1.bf16.msra.mxu1 %v22874_v55  ;;  %v9642_v50 = vpop.f32.mrf.mxu1  ;;  %v22915_v55 = vld [vmem:[%s31128_s3 + $0xaec] ss:$16 sps:$4 sm:$0xff]  }
 0xaea   : > { %10631 = vmatprep.mubr.bf16.mxu0 %v9727_v30  ;;  %10726 = vmatprep.subr.bf16.mxu1 %v22882_v54  ;;  %v22913_v54 = vld [vmem:[%s31128_s3 + $0xae8] ss:$16 sps:$4 sm:$0xff]  }
 0xaeb   : > { %10754 = vmatprep.mubr.bf16.mxu1 %v9727_v30  ;;  %v9643_v9 = vpop.f32.mrf.mxu1  ;;  %10632 = vmatmul.mubr.bf16.vlgmr.msra.gmra.mxu0 %v28205_v29  ;;  %v22921_v30 = vld [vmem:[%s31128_s3 + $0xacc] ss:$16 sps:$4 sm:$0xff]   ;;  %v22919_v50 = vld [vmem:[%s31128_s3 + $0xac8] ss:$16 sps:$4 sm:$0xff]  }
 0xaec   : > { %10690 = vmatpush1.bf16.msra.mxu0 %v22877_v49  ;;  %10713 = vmatprep.mubr.bf16.mxu0 %v31139_v52  ;;  %v22922_v49 = vld [vmem:[%s31128_s3 + $0xb88] ss:$16 sps:$4 sm:$0xff]  }
 0xaed   : > { %10727 = vmatpush1.bf16.msra.mxu1 %v22880_v16  ;;  %10691 = vmatprep.subr.bf16.mxu0 %v22885_v22  ;;  %v9720_v24 = vpop.f32.mrf.mxu1  ;;  %v22930_v16 = vld [vmem:[%s31128_s3 + $0xb6c] ss:$16 sps:$4 sm:$0xff]   ;;  %v22925_v9 = vld [vmem:[%s31128_s3 + $0xaa8] ss:$16 sps:$4 sm:$0xff]  }
 0xaee   : > { %10728 = vmatprep.subr.bf16.mxu1 %v22888_v33  ;;  %v28254_v5 = vpack.c.bf16 %v9720_v24, %v9720_v24  ;;  %v22927_v22 = vld [vmem:[%s31128_s3 + $0xaac] ss:$16 sps:$4 sm:$0xff]   ;;  %v22928_v33 = vld [vmem:[%s31128_s3 + $0xb68] ss:$16 sps:$4 sm:$0xff]  }
 0xaef   : > { %v21346_v6 = vpop.f32.mrf.mxu1  ;;  %v22934_v24 = vld [vmem:[%s31128_s3 + $0xb48] ss:$16 sps:$4 sm:$0xff]  }
 0xaf0   : > { %10692 = vmatpush1.bf16.msra.mxu0 %v22883_v1  ;;  %v22936_v1 = vld [vmem:[%s31128_s3 + $0xb4c] ss:$16 sps:$4 sm:$0xff]  }
 0xaf1   : > { %10729 = vmatpush1.bf16.msra.mxu1 %v22886_v38  ;;  %10693 = vmatprep.subr.bf16.mxu0 %v22891_v2  ;;  %v9723_v45 = vpop.f32.mrf.mxu1  ;;  %v22933_v38 = vld [vmem:[%s31128_s3 + $0xa8c] ss:$16 sps:$4 sm:$0xff]   ;;  %v22931_v2 = vld [vmem:[%s31128_s3 + $0xa88] ss:$16 sps:$4 sm:$0xff]  }
 0xaf2   : > { %10730 = vmatprep.subr.bf16.mxu1 %v22894_v3  ;;  %v22942_v3 = vld [vmem:[%s31128_s3 + $0xb2c] ss:$16 sps:$4 sm:$0xff]  }
 0xaf3   : > { %v21347_v39 = vpop.f32.mrf.mxu1  ;;  %v22939_v6 = vld [vmem:[%s31128_s3 + $0xa6c] ss:$16 sps:$4 sm:$0xff]  }
 0xaf4   : > { %10694 = vmatpush1.bf16.msra.mxu0 %v22889_v26  ;;  %v22940_v26 = vld [vmem:[%s31128_s3 + $0xb28] ss:$16 sps:$4 sm:$0xff]   ;;  %v22948_v45 = vld [vmem:[%s31128_s3 + $0xb0c] ss:$16 sps:$4 sm:$0xff]  }
 0xaf5   : > { %10731 = vmatpush1.bf16.msra.mxu1 %v22892_v43  ;;  %10695 = vmatprep.subr.bf16.mxu0 %v22897_v62  ;;  %v22937_v43 = vld [vmem:[%s31128_s3 + $0xa68] ss:$16 sps:$4 sm:$0xff]   ;;  %v22945_v62 = vld [vmem:[%s31128_s3 + $0xa4c] ss:$16 sps:$4 sm:$0xff]  }
 0xaf6   : > { %10732 = vmatprep.subr.bf16.mxu1 %v22900_v15  ;;  %v22946_v15 = vld [vmem:[%s31128_s3 + $0xb08] ss:$16 sps:$4 sm:$0xff]  }
 0xaf7   : > { %v22943_v39 = vld [vmem:[%s31128_s3 + $0xa48] ss:$16 sps:$4 sm:$0xff]  }
 0xaf8   : > { %10696 = vmatpush1.bf16.msra.mxu0 %v22895_v7  ;;  %v22954_v7 = vld [vmem:[%s31128_s3 + $0xcec] ss:$16 sps:$4 sm:$0xff]  }
 0xaf9   : > { %10733 = vmatpush1.bf16.msra.mxu1 %v22898_v18  ;;  %10763 = vmatprep.subr.bf16.mxu0 %v22906_v61  ;;  %v22951_v18 = vld [vmem:[%s31128_s3 + $0xa2c] ss:$16 sps:$4 sm:$0xff]   ;;  %v22952_v61 = vld [vmem:[%s31128_s3 + $0xce8] ss:$16 sps:$4 sm:$0xff]  }
 0xafa   : > { %10734 = vmatprep.subr.bf16.mxu1 %v22903_v4  ;;  %v22949_v4 = vld [vmem:[%s31128_s3 + $0xa28] ss:$16 sps:$4 sm:$0xff]  }
 0xafb   : > { %19689 = vmatmul.mubr.msk.bf16.vlgmr.msra.gmra.mxu0 %vm8375_vm12, %v28254_v5 }
 0xafc   : > { %10764 = vmatpush1.bf16.msra.mxu0 %v22904_v56  ;;  %10795 = vmatprep.mubr.bf16.mxu0 %v28184_v28  ;;  %v22916_v28 = vld [vmem:[%s31128_s3 + $0xba8] ss:$16 sps:$4 sm:$0xff]   ;;  %v22960_v56 = vld [vmem:[%s31128_s3 + $0xccc] ss:$16 sps:$4 sm:$0xff]  }
 0xafd   : > { %10735 = vmatpush1.bf16.msra.mxu1 %v22901_v13  ;;  %10765 = vmatprep.subr.bf16.mxu0 %v22912_v23  ;;  %v22957_v13 = vld [vmem:[%s31128_s3 + $0xa0c] ss:$16 sps:$4 sm:$0xff]   ;;  %v22958_v23 = vld [vmem:[%s31128_s3 + $0xcc8] ss:$16 sps:$4 sm:$0xff]  }
 0xafe   : > { %10736 = vmatprep.subr.bf16.mxu1 %v22909_v58  ;;  %v22955_v58 = vld [vmem:[%s31128_s3 + $0xa08] ss:$16 sps:$4 sm:$0xff]  }
 0xb00   : > { %10766 = vmatpush1.bf16.msra.mxu0 %v22910_v14  ;;  %v22963_v14 = vld [vmem:[%s31128_s3 + $0xcac] ss:$16 sps:$4 sm:$0xff]  }
 0xb01   : > { %10737 = vmatpush1.bf16.msra.mxu1 %v22907_v10  ;;  %10767 = vmatprep.subr.bf16.mxu0 %v22918_v41  ;;  %v22966_v10 = vld [vmem:[%s31128_s3 + $0xd6c] ss:$16 sps:$4 sm:$0xff]   ;;  %v22961_v41 = vld [vmem:[%s31128_s3 + $0xca8] ss:$16 sps:$4 sm:$0xff]  }
 0xb02   : > { %10738 = vmatprep.subr.bf16.mxu1 %v22915_v55  ;;  %v22964_v55 = vld [vmem:[%s31128_s3 + $0xd68] ss:$16 sps:$4 sm:$0xff]  }
 0xb04   : > { %10768 = vmatpush1.bf16.msra.mxu0 %v22916_v28  ;;  %v22969_v28 = vld [vmem:[%s31128_s3 + $0xc8c] ss:$16 sps:$4 sm:$0xff]  }
 0xb05   : > { %10739 = vmatpush2.bf16.msra.mxu1 %v22913_v54  ;;  %10769 = vmatprep.subr.bf16.mxu0 %v22924_v36  ;;  %v22972_v54 = vld [vmem:[%s31128_s3 + $0xd4c] ss:$16 sps:$4 sm:$0xff]   ;;  %v22967_v36 = vld [vmem:[%s31128_s3 + $0xc88] ss:$16 sps:$4 sm:$0xff]  }
 0xb06   : > { %10740 = vmatprep.subr.bf16.mxu1 %v22921_v30  ;;  %v22970_v30 = vld [vmem:[%s31128_s3 + $0xd48] ss:$16 sps:$4 sm:$0xff]  }
 0xb08   : > { %10770 = vmatpush1.bf16.msra.mxu0 %v22922_v49  ;;  %v22975_v49 = vld [vmem:[%s31128_s3 + $0xc6c] ss:$16 sps:$4 sm:$0xff]  }
 0xb09   : > { %10741 = vmatpush2.bf16.msra.mxu1 %v22919_v50  ;;  %10771 = vmatprep.subr.bf16.mxu0 %v22930_v16  ;;  %v22973_v50 = vld [vmem:[%s31128_s3 + $0xc68] ss:$16 sps:$4 sm:$0xff]  }
 0xb0a   : > { %10742 = vmatprep.subr.bf16.mxu1 %v22927_v22  ;;  %v22976_v16 = vld [vmem:[%s31128_s3 + $0xd28] ss:$16 sps:$4 sm:$0xff]   ;;  %v22981_v22 = vld [vmem:[%s31128_s3 + $0xc4c] ss:$16 sps:$4 sm:$0xff]  }
 0xb0c   : > { %10772 = vmatpush1.bf16.msra.mxu0 %v22928_v33  ;;  %v22984_v33 = vld [vmem:[%s31128_s3 + $0xd0c] ss:$16 sps:$4 sm:$0xff]  }
 0xb0d   : > { %10743 = vmatpush2.bf16.msra.mxu1 %v22925_v9  ;;  %10773 = vmatprep.subr.bf16.mxu0 %v22936_v1  ;;  %v10850_v9 = vsel %vm10849_vm15, 17, %v24731_v0  ;;  %v22979_v1 = vld [vmem:[%s31128_s3 + $0xc48] ss:$16 sps:$4 sm:$0xff]   ;;  %vm17637_vm15 = vcmask 1043456  }
 0xb0e   : > { %10744 = vmatprep.subr.bf16.mxu1 %v22933_v38  ;;  %v22982_v38 = vld [vmem:[%s31128_s3 + $0xd08] ss:$16 sps:$4 sm:$0xff]  }
 0xb10   : > { %10774 = vmatpush1.bf16.msra.mxu0 %v22934_v24  ;;  %v22987_v24 = vld [vmem:[%s31128_s3 + $0xc2c] ss:$16 sps:$4 sm:$0xff]  }
 0xb11   : > { %10745 = vmatpush2.bf16.msra.mxu1 %v22931_v2  ;;  %10775 = vmatprep.subr.bf16.mxu0 %v22942_v3  ;;  %v10851_v2 = vsel %vm1446_vm0, 16, %v10850_v9  ;;  %v22985_v3 = vld [vmem:[%s31128_s3 + $0xc28] ss:$16 sps:$4 sm:$0xff]   ;;  %v23051_v9 = vld [vmem:[%s31128_s3 + $0xf40] ss:$16 sps:$4 sm:$0xff]  }
 0xb12   : > { %10746 = vmatprep.subr.bf16.mxu1 %v22939_v6  ;;  %v22990_v6 = vld [vmem:[%s31128_s3 + $0xc0c] ss:$16 sps:$4 sm:$0xff]   ;;  %vm10852_vm6 = vcmp.eq.s32.totalorder %v24315_v25, %v10851_v2  ;;  %v23050_v2 = vld [vmem:[%s31128_s3 + $0x1124] ss:$16 sps:$4 sm:$0xff]  }
 0xb14   : > { %10776 = vmatpush1.bf16.msra.mxu0 %v22940_v26  ;;  %v22988_v26 = vld [vmem:[%s31128_s3 + $0xc08] ss:$16 sps:$4 sm:$0xff]  }
 0xb15   : > { %10747 = vmatpush2.bf16.msra.mxu1 %v22937_v43  ;;  %10777 = vmatprep.subr.bf16.mxu0 %v22948_v45  ;;  %v19691_v43 = vsel %vm10852_vm6, 1.0, %v31140_v59  ;;  %v23002_v45 = vld [vmem:[%s31128_s3 + $0x1024] ss:$16 sps:$4 sm:$0xff]  }
 0xb16   : > { %10748 = vmatprep.subr.bf16.mxu1 %v22945_v62  ;;  %v23015_v62 = vld [vmem:[%s31128_s3 + $0xe00] ss:$16 sps:$4 sm:$0xff]  }
 0xb18   : > { %10778 = vmatpush1.bf16.msra.mxu0 %v22946_v15  ;;  %v23023_v15 = vld [vmem:[%s31128_s3 + $0xde4] ss:$16 sps:$4 sm:$0xff]  }
 0xb19   : > { %10749 = vmatpush2.bf16.msra.mxu1 %v22943_v39  ;;  %10779 = vmatprep.subr.bf16.mxu0 %v22954_v7  ;;  %v23000_v39 = vld [vmem:[%s31128_s3 + $0x1020] ss:$16 sps:$4 sm:$0xff]   ;;  %v23008_v7 = vld [vmem:[%s31128_s3 + $0x1004] ss:$16 sps:$4 sm:$0xff]  }
 0xb1a   : > { %10750 = vmatprep.subr.bf16.mxu1 %v22951_v18  ;;  %v23021_v18 = vld [vmem:[%s31128_s3 + $0xde0] ss:$16 sps:$4 sm:$0xff]  }
 0xb1c   : > { %10780 = vmatpush2.bf16.msra.mxu0 %v22952_v61  ;;  %v23029_v61 = vld [vmem:[%s31128_s3 + $0xdc4] ss:$16 sps:$4 sm:$0xff]  }
 0xb1d   : > { %10751 = vmatpush2.bf16.msra.mxu1 %v22949_v4  ;;  %10781 = vmatprep.subr.bf16.mxu0 %v22960_v56  ;;  %v23006_v4 = vld [vmem:[%s31128_s3 + $0x1000] ss:$16 sps:$4 sm:$0xff]   ;;  %v23014_v56 = vld [vmem:[%s31128_s3 + $0xfe4] ss:$16 sps:$4 sm:$0xff]  }
 0xb1e   : > { %10752 = vmatprep.subr.bf16.mxu1 %v22957_v13  ;;  %v23027_v13 = vld [vmem:[%s31128_s3 + $0xdc0] ss:$16 sps:$4 sm:$0xff]  }
 0xb20   : > { %10782 = vmatpush2.bf16.msra.mxu0 %v22958_v23  ;;  %v23035_v23 = vld [vmem:[%s31128_s3 + $0xda4] ss:$16 sps:$4 sm:$0xff]  }
 0xb21   : > { %10753 = vmatpush2.bf16.msra.mxu1 %v22955_v58  ;;  %10783 = vmatprep.subr.bf16.mxu0 %v22963_v14  ;;  %v23012_v58 = vld [vmem:[%s31128_s3 + $0xfe0] ss:$16 sps:$4 sm:$0xff]   ;;  %v23020_v14 = vld [vmem:[%s31128_s3 + $0xfc4] ss:$16 sps:$4 sm:$0xff]  }
 0xb22   : > { %10812 = vmatprep.subr.bf16.mxu1 %v22966_v10  ;;  %v23033_v10 = vld [vmem:[%s31128_s3 + $0xda0] ss:$16 sps:$4 sm:$0xff]  }
 0xb24   : > { %10755 = vmatmul.mubr.bf16.vlgmr.msra.gmra.mxu1 %v28205_v29  ;;  %10784 = vmatpush2.bf16.msra.mxu0 %v22961_v41  ;;  %v22978_v29 = vld [vmem:[%s31128_s3 + $0xd2c] ss:$16 sps:$4 sm:$0xff]   ;;  %v23018_v41 = vld [vmem:[%s31128_s3 + $0xfc0] ss:$16 sps:$4 sm:$0xff]  }
 0xb25   : > { %10813 = vmatpush1.bf16.msra.mxu1 %v22964_v55  ;;  %10785 = vmatprep.subr.bf16.mxu0 %v22969_v28  ;;  %v23026_v55 = vld [vmem:[%s31128_s3 + $0xfa4] ss:$16 sps:$4 sm:$0xff]   ;;  %v23024_v28 = vld [vmem:[%s31128_s3 + $0xfa0] ss:$16 sps:$4 sm:$0xff]  }
 0xb26   : > { %10814 = vmatprep.subr.bf16.mxu1 %v22972_v54  ;;  %10836 = vmatprep.mubr.bf16.mxu1 %v31139_v52  ;;  %v23032_v54 = vld [vmem:[%s31128_s3 + $0xf84] ss:$16 sps:$4 sm:$0xff]  }
 0xb28   : > { %10786 = vmatpush2.bf16.msra.mxu0 %v22967_v36  ;;  %v23041_v36 = vld [vmem:[%s31128_s3 + $0xd84] ss:$16 sps:$4 sm:$0xff]  }
 0xb29   : > { %10815 = vmatpush1.bf16.msra.mxu1 %v22970_v30  ;;  %10787 = vmatprep.subr.bf16.mxu0 %v22975_v49  ;;  %v23030_v30 = vld [vmem:[%s31128_s3 + $0xf80] ss:$16 sps:$4 sm:$0xff]  }
 0xb2a   : > { %10816 = vmatprep.subr.bf16.mxu1 %v22978_v29  ;;  %v23039_v49 = vld [vmem:[%s31128_s3 + $0xd80] ss:$16 sps:$4 sm:$0xff]   ;;  %v23038_v29 = vld [vmem:[%s31128_s3 + $0x1164] ss:$16 sps:$4 sm:$0xff]  }
 0xb2c   : > { %10788 = vmatpush2.bf16.msra.mxu0 %v22973_v50  ;;  %v23047_v50 = vld [vmem:[%s31128_s3 + $0xf64] ss:$16 sps:$4 sm:$0xff]  }
 0xb2d   : > { %10817 = vmatpush1.bf16.msra.mxu1 %v22976_v16  ;;  %10789 = vmatprep.subr.bf16.mxu0 %v22981_v22  ;;  %v23036_v16 = vld [vmem:[%s31128_s3 + $0x1160] ss:$16 sps:$4 sm:$0xff]  }
 0xb2e   : > { %10818 = vmatprep.subr.bf16.mxu1 %v22984_v33  ;;  %v23045_v22 = vld [vmem:[%s31128_s3 + $0xf60] ss:$16 sps:$4 sm:$0xff]   ;;  %v23044_v33 = vld [vmem:[%s31128_s3 + $0x1144] ss:$16 sps:$4 sm:$0xff]  }
 0xb30   : > { %10790 = vmatpush2.bf16.msra.mxu0 %v22979_v1  ;;  %v23053_v1 = vld [vmem:[%s31128_s3 + $0xf44] ss:$16 sps:$4 sm:$0xff]  }
 0xb31   : > { %10819 = vmatpush1.bf16.msra.mxu1 %v22982_v38  ;;  %10791 = vmatprep.subr.bf16.mxu0 %v22987_v24  ;;  %v23059_v38 = vld [vmem:[%s31128_s3 + $0xf24] ss:$16 sps:$4 sm:$0xff]   ;;  %v23042_v24 = vld [vmem:[%s31128_s3 + $0x1140] ss:$16 sps:$4 sm:$0xff]  }
 0xb32   : > { %19694 = vmatprep.subr.msk.bf16.mxu1 %vm487_vm3, %v26906_v34  ;;  %v10855_v34 = vpack.c.bf16 %v19691_v43, %v19691_v43  ;;  %v23065_v43 = vld [vmem:[%s31128_s3 + $0xf04] ss:$16 sps:$4 sm:$0xff]  }
 0xb34   : > { %19690 = vmatmul.mubr.msk.bf16.vlgmr.msra.gmra.mxu1 %vm8375_vm12, %v28254_v5  ;;  %10792 = vmatpush2.bf16.msra.mxu0 %v22985_v3  ;;  %v22994_v5 = vld [vmem:[%s31128_s3 + $0x1040] ss:$16 sps:$4 sm:$0xff]  }
 0xb35   : > { %10913 = vmatpush1.bf16.msra.mxu1 %v26911_v44  ;;  %10793 = vmatprep.subr.bf16.mxu0 %v22990_v6  ;;  %v22997_v44 = vld [vmem:[%s31128_s3 + $0xe60] ss:$16 sps:$4 sm:$0xff]  }
 0xb36   : > { %10914 = vmatprep.subr.bf16.mxu1 %v26984_v51  ;;  %10932 = vmatprep.mubr.bf16.mxu1 %v31139_v52  ;;  %v22991_v51 = vld [vmem:[%s31128_s3 + $0x1060] ss:$16 sps:$4 sm:$0xff]  }
 0xb37   : > { %v23057_v3 = vld [vmem:[%s31128_s3 + $0xf20] ss:$16 sps:$4 sm:$0xff]  }
 0xb38   : > { %10794 = vmatpush2.bf16.msra.mxu0 %v22988_v26  ;;  %v23048_v6 = vld [vmem:[%s31128_s3 + $0x1120] ss:$16 sps:$4 sm:$0xff]   ;;  %v23056_v26 = vld [vmem:[%s31128_s3 + $0x1104] ss:$16 sps:$4 sm:$0xff]  }
 0xb39   : > { %10915 = vmatpush1.bf16.msra.mxu1 %v26986_v8  ;;  %19692 = vmatprep.subr.msk.bf16.mxu0 %vm487_vm3, %v26897_v17  ;;  %v22999_v17 = vld [vmem:[%s31128_s3 + $0xe64] ss:$16 sps:$4 sm:$0xff]  }
 0xb3a   : > { %11854 = vmatprep.subr.bf16.mxu1 %v22999_v17  ;;  %v22996_v8 = vld [vmem:[%s31128_s3 + $0x1044] ss:$16 sps:$4 sm:$0xff]  }
 0xb3b   : > { %10796 = vmatmul.mubr.bf16.vlgmr.msra.gmra.mxu0 %v28182_v11  ;;  %v23009_v11 = vld [vmem:[%s31128_s3 + $0xe20] ss:$16 sps:$4 sm:$0xff]   ;;  %v23062_v17 = vld [vmem:[%s31128_s3 + $0x10e4] ss:$16 sps:$4 sm:$0xff]  }
 0xb3c   : > { %19695 = vmatmul.mubr.msk.bf16.vlgmr.msra.gmra.mxu1 %vm7083_vm9, %v10855_v34  ;;  %10872 = vmatpush1.bf16.msra.mxu0 %v26902_v46  ;;  %v23005_v46 = vld [vmem:[%s31128_s3 + $0xe44] ss:$16 sps:$4 sm:$0xff]  }
 0xb3d   : > { %10873 = vmatprep.subr.bf16.mxu0 %v26938_v27  ;;  %10891 = vmatprep.mubr.bf16.mxu0 %v31139_v52  ;;  %v22993_v27 = vld [vmem:[%s31128_s3 + $0x1064] ss:$16 sps:$4 sm:$0xff]  }
 0xb3e   : > { %11855 = vmatpush1.bf16.msra.mxu1 %v22997_v44  ;;  %v23063_v44 = vld [vmem:[%s31128_s3 + $0xf00] ss:$16 sps:$4 sm:$0xff]  }
 0xb3f   : > { %11856 = vmatprep.subr.bf16.mxu1 %v23005_v46  ;;  %v23071_v46 = vld [vmem:[%s31128_s3 + $0xee4] ss:$16 sps:$4 sm:$0xff]  }
 0xb40   : > { %10874 = vmatpush1.bf16.msra.mxu0 %v26940_v19  ;;  %v23003_v19 = vld [vmem:[%s31128_s3 + $0xe40] ss:$16 sps:$4 sm:$0xff]  }
 0xb41   : > { %21348 = vmatprep.subr.bf16.mxu0 %v31140_v59 }
 0xb42   : > { %11857 = vmatpush1.bf16.msra.mxu1 %v23003_v19  ;;  %v23069_v19 = vld [vmem:[%s31128_s3 + $0xee0] ss:$16 sps:$4 sm:$0xff]  }
 0xb43   : > { %19693 = vmatmul.mubr.msk.bf16.vlgmr.msra.gmra.mxu0 %vm7083_vm9, %v10855_v34 }
 0xb44   : > { %21349 = vmatpush3.bf16.msra.mxu0 %v26948_v32  ;;  %21352 = vmatprep.mubr.msk.bf16.mxu0 %vm24204_vm7, %v31140_v59  ;;  %v23011_v32 = vld [vmem:[%s31128_s3 + $0xe24] ss:$16 sps:$4 sm:$0xff]  }
 0xb45   : > { %21350 = vmatprep.subr.bf16.mxu0 %v31140_v59  ;;  %11858 = vmatprep.subr.bf16.mxu1 %v23011_v32  ;;  %v23068_v32 = vld [vmem:[%s31128_s3 + $0x10c4] ss:$16 sps:$4 sm:$0xff]  }
 0xb46   : > { %11859 = vmatpush1.bf16.msra.mxu1 %v23009_v11  ;;  %v23075_v11 = vld [vmem:[%s31128_s3 + $0xec0] ss:$16 sps:$4 sm:$0xff]  }
 0xb48   : > { %21351 = vmatpush3.bf16.msra.mxu0 %v27984_v20  ;;  %v23017_v20 = vld [vmem:[%s31128_s3 + $0xe04] ss:$16 sps:$4 sm:$0xff]  }
 0xb49   : > { %11895 = vmatprep.subr.bf16.mxu0 %v22993_v27  ;;  %11860 = vmatprep.subr.bf16.mxu1 %v23017_v20  ;;  %v23060_v27 = vld [vmem:[%s31128_s3 + $0x10e0] ss:$16 sps:$4 sm:$0xff]   ;;  %v23074_v20 = vld [vmem:[%s31128_s3 + $0x10a4] ss:$16 sps:$4 sm:$0xff]  }
 0xb4a   : > { %11861 = vmatpush1.bf16.msra.mxu1 %v23015_v62  ;;  %v23081_v62 = vld [vmem:[%s31128_s3 + $0xea0] ss:$16 sps:$4 sm:$0xff]  }
 0xb4b   : > { %21353 = vmatmul.mubr.msk.bf16.vlgmr.msra.gmra.mxu0 %vm7083_vm9, %v10855_v34  ;;  %11862 = vmatprep.subr.bf16.mxu1 %v23023_v15  ;;  %v23054_v34 = vld [vmem:[%s31128_s3 + $0x1100] ss:$16 sps:$4 sm:$0xff]   ;;  %v23080_v15 = vld [vmem:[%s31128_s3 + $0x1084] ss:$16 sps:$4 sm:$0xff]   ;;  %vm12170_vm9 = vcmp.eq.s32.totalorder %v24315_v25, %v24446_v35 }
 0xb4c   : > { %11896 = vmatpush1.bf16.msra.mxu0 %v22991_v51  ;;  %v23077_v51 = vld [vmem:[%s31128_s3 + $0xec4] ss:$16 sps:$4 sm:$0xff]  }
 0xb4d   : > { %11897 = vmatprep.subr.bf16.mxu0 %v22996_v8  ;;  %v23066_v8 = vld [vmem:[%s31128_s3 + $0x10c0] ss:$16 sps:$4 sm:$0xff]  }
 0xb4e   : > { %11863 = vmatpush1.bf16.msra.mxu1 %v23021_v18  ;;  %v23089_v18 = vld [vmem:[%s31128_s3 + $0xe84] ss:$16 sps:$4 sm:$0xff]  }
 0xb4f   : > { %11864 = vmatprep.subr.bf16.mxu1 %v23029_v61  ;;  %v23086_v61 = vld [vmem:[%s31128_s3 + $0xe6c] ss:$16 sps:$4 sm:$0xff]  }
 0xb50   : > { %11898 = vmatpush1.bf16.msra.mxu0 %v22994_v5  ;;  %v23083_v5 = vld [vmem:[%s31128_s3 + $0xea4] ss:$16 sps:$4 sm:$0xff]  }
 0xb51   : > { %11899 = vmatprep.subr.bf16.mxu0 %v23002_v45  ;;  %v23072_v45 = vld [vmem:[%s31128_s3 + $0x10a0] ss:$16 sps:$4 sm:$0xff]  }
 0xb52   : > { %11865 = vmatpush1.bf16.msra.mxu1 %v23027_v13 }
 0xb53   : > { %11866 = vmatprep.subr.bf16.mxu1 %v23035_v23 }
 0xb54   : > { %11900 = vmatpush1.bf16.msra.mxu0 %v23000_v39  ;;  %v23078_v39 = vld [vmem:[%s31128_s3 + $0x1080] ss:$16 sps:$4 sm:$0xff]  }
 0xb55   : > { %11901 = vmatprep.subr.bf16.mxu0 %v23008_v7  ;;  %v23087_v7 = vld [vmem:[%s31128_s3 + $0xe80] ss:$16 sps:$4 sm:$0xff]  }
 0xb56   : > { %11867 = vmatpush1.bf16.msra.mxu1 %v23033_v10 }
 0xb57   : > { %11868 = vmatprep.subr.bf16.mxu1 %v23041_v36 }
 0xb58   : > { %11902 = vmatpush1.bf16.msra.mxu0 %v23006_v4  ;;  %v23095_v4 = vld [vmem:[%s31128_s3 + $0x11e4] ss:$16 sps:$4 sm:$0xff]  }
 0xb59   : > { %11903 = vmatprep.subr.bf16.mxu0 %v23014_v56 }
 0xb5a   : > { %11869 = vmatpush1.bf16.msra.mxu1 %v23039_v49 }
 0xb5b   : > { %11870 = vmatprep.subr.bf16.mxu1 %v23047_v50 }
 0xb5c   : > { %11904 = vmatpush1.bf16.msra.mxu0 %v23012_v58 }
 0xb5d   : > { %11905 = vmatprep.subr.bf16.mxu0 %v23020_v14 }
 0xb5e   : > { %11871 = vmatpush2.bf16.msra.mxu1 %v23045_v22 }
 0xb5f   : > { %11872 = vmatprep.subr.bf16.mxu1 %v23053_v1 }
 0xb60   : > { %11906 = vmatpush1.bf16.msra.mxu0 %v23018_v41 }
 0xb61   : > { %11907 = vmatprep.subr.bf16.mxu0 %v23026_v55 }
 0xb62   : > { %11873 = vmatpush2.bf16.msra.mxu1 %v23051_v9 }
 0xb63   : > { %11874 = vmatprep.subr.bf16.mxu1 %v23059_v38 }
 0xb64   : > { %11908 = vmatpush1.bf16.msra.mxu0 %v23024_v28 }
 0xb65   : > { %11909 = vmatprep.subr.bf16.mxu0 %v23032_v54 }
 0xb66   : > { %11875 = vmatpush2.bf16.msra.mxu1 %v23057_v3 }
 0xb67   : > { %11876 = vmatprep.subr.bf16.mxu1 %v23065_v43 }
 0xb68   : > { %11910 = vmatpush1.bf16.msra.mxu0 %v23030_v30 }
 0xb69   : > { %11911 = vmatprep.subr.bf16.mxu0 %v23038_v29 }
 0xb6a   : > { %11877 = vmatpush2.bf16.msra.mxu1 %v23063_v44 }
 0xb6b   : > { %11878 = vmatprep.subr.bf16.mxu1 %v23071_v46 }
 0xb6c   : > { %11912 = vmatpush2.bf16.msra.mxu0 %v23036_v16 }
 0xb6d   : > { %11913 = vmatprep.subr.bf16.mxu0 %v23044_v33 }
 0xb6e   : > { %11879 = vmatpush2.bf16.msra.mxu1 %v23069_v19 }
 0xb6f   : > { %11880 = vmatprep.subr.bf16.mxu1 %v23077_v51  ;;  %v23084_v51 = vld [vmem:[%s31128_s3 + $0xe68] ss:$16 sps:$4 sm:$0xff]  }
 0xb70   : > { %11914 = vmatpush2.bf16.msra.mxu0 %v23042_v24 }
 0xb71   : > { %11915 = vmatprep.subr.bf16.mxu0 %v23050_v2 }
 0xb72   : > { %11881 = vmatpush2.bf16.msra.mxu1 %v23075_v11 }
 0xb73   : > { %11882 = vmatprep.subr.bf16.mxu1 %v23083_v5  ;;  %v23092_v5 = vld [vmem:[%s31128_s3 + $0xe4c] ss:$16 sps:$4 sm:$0xff]  }
 0xb74   : > { %11916 = vmatpush2.bf16.msra.mxu0 %v23048_v6 }
 0xb75   : > { %11917 = vmatprep.subr.bf16.mxu0 %v23056_v26 }
 0xb76   : > { %11883 = vmatpush2.bf16.msra.mxu1 %v23081_v62 }
 0xb77   : > { %11884 = vmatprep.subr.bf16.mxu1 %v23089_v18 }
 0xb78   : > { %11918 = vmatpush2.bf16.msra.mxu0 %v23054_v34 }
 0xb79   : > { %11919 = vmatprep.subr.bf16.mxu0 %v23062_v17 }
 0xb7a   : > { %11885 = vmatpush2.bf16.msra.mxu1 %v23087_v7  ;;  %v23098_v7 = vld [vmem:[%s31128_s3 + $0xe2c] ss:$16 sps:$4 sm:$0xff]  }
 0xb7b   : > { %11944 = vmatprep.subr.bf16.mxu1 %v23095_v4 }
 0xb7c   : > { %11920 = vmatpush2.bf16.msra.mxu0 %v23060_v27 }
 0xb7d   : > { %11921 = vmatprep.subr.bf16.mxu0 %v23068_v32 }
 0xb80   : > { %11922 = vmatpush2.bf16.msra.mxu0 %v23066_v8 }
 0xb81   : > { %11923 = vmatprep.subr.bf16.mxu0 %v23074_v20 }
 0xb84   : > { %11924 = vmatpush2.bf16.msra.mxu0 %v23072_v45 }
 0xb85   : > { %11925 = vmatprep.subr.bf16.mxu0 %v23080_v15 }
 0xb88   : > { %11926 = vmatpush2.bf16.msra.mxu0 %v23078_v39 }
 0xb89   : > { %11977 = vmatprep.subr.bf16.mxu0 %v23086_v61 }
 0xba4   : > { %v10674_v56 = vpop.f32.mrf.mxu1 }
 0xba6   : > { %v10676_v13 = vpop.f32.mrf.mxu1 }
 0xba8   : > { %v10678_v23 = vpop.f32.mrf.mxu1 }
 0xba9   : > { %v23101_v23 = vld [vmem:[%s31128_s3 + $0x11c4] ss:$16 sps:$4 sm:$0xff]  }
 0xbaa   : > { %v10679_v58 = vpop.f32.mrf.mxu1 }
 0xbab   : > { %v10633_v14 = vpop.f32.mrf.mxu0  ;;  %v23104_v58 = vld [vmem:[%s31128_s3 + $0xe0c] ss:$16 sps:$4 sm:$0xff]  }
 0xbac   : > { %v10675_v10 = vadd.f32 %v10674_v56, %v10633_v14 }
 0xbad   : > { %v10635_v41 = vpop.f32.mrf.mxu0 }
 0xbae   : > { %v10677_v55 = vadd.f32 %v10676_v13, %v10635_v41  ;;  %v23096_v13 = vld [vmem:[%s31128_s3 + $0xe28] ss:$16 sps:$4 sm:$0xff]  }
 0xbaf   : > { %v10637_v28 = vpop.f32.mrf.mxu0  ;;  %v23102_v41 = vld [vmem:[%s31128_s3 + $0xe08] ss:$16 sps:$4 sm:$0xff]  }
 0xbb0   : > { %v23107_v28 = vld [vmem:[%s31128_s3 + $0x11a4] ss:$16 sps:$4 sm:$0xff]  }
 0xbb1   : > { %v10638_v54 = vpop.f32.mrf.mxu0 }
 0xbb2   : > { %v23110_v54 = vld [vmem:[%s31128_s3 + $0xdec] ss:$16 sps:$4 sm:$0xff]  }
 0xbbb   : > { %v10715_v36 = vpop.f32.mrf.mxu0 }
 0xbbc   : > { %v10716_v30 = vadd.f32 %v10715_v36, %v10675_v10  ;;  %v23099_v10 = vld [vmem:[%s31128_s3 + $0x11c0] ss:$16 sps:$4 sm:$0xff]  }
 0xbbd   : > { %v10717_v49 = vpop.f32.mrf.mxu0 }
 0xbbe   : > { %v28664_v29 = vadd.f32 %v10716_v30, %v28174_v37  ;;  %v10718_v50 = vadd.f32 %v10717_v49, %v10677_v55  ;;  %v23105_v30 = vld [vmem:[%s31128_s3 + $0x11a0] ss:$16 sps:$4 sm:$0xff]   ;;  %v23108_v49 = vld [vmem:[%s31128_s3 + $0xde8] ss:$16 sps:$4 sm:$0xff]  }
 0xbbf   : > { %v10719_v16 = vpop.f32.mrf.mxu0 }
 0xbc0   : > { %v28667_v22 = vadd.f32 %v10718_v50, %v28176_v42  ;;  %v23113_v16 = vld [vmem:[%s31128_s3 + $0x1184] ss:$16 sps:$4 sm:$0xff]  }
 0xbc1   : > { %v10720_v33 = vpop.f32.mrf.mxu0 }
 0xbc2   : > { %v23116_v33 = vld [vmem:[%s31128_s3 + $0xdcc] ss:$16 sps:$4 sm:$0xff]  }
 0xbe4   : > { %v10756_v9 = vpop.f32.mrf.mxu1 }
 0xbe6   : > { %v10758_v1 = vpop.f32.mrf.mxu1 }
 0xbe8   : > { %v10760_v38 = vpop.f32.mrf.mxu1 }
 0xbe9   : > { %v23114_v38 = vld [vmem:[%s31128_s3 + $0xdc8] ss:$16 sps:$4 sm:$0xff]  }
 0xbea   : > { %v10761_v24 = vpop.f32.mrf.mxu1 }
 0xbeb   : > { %v23122_v24 = vld [vmem:[%s31128_s3 + $0x106c] ss:$16 sps:$4 sm:$0xff]  }
 0xbf4   : > { %v10838_v2 = vpop.f32.mrf.mxu1 }
 0xbf6   : > { %v10840_v3 = vpop.f32.mrf.mxu1 }
 0xbf8   : > { %v10842_v6 = vpop.f32.mrf.mxu1 }
 0xbf9   : > { %v23120_v6 = vld [vmem:[%s31128_s3 + $0x1068] ss:$16 sps:$4 sm:$0xff]  }
 0xbfa   : > { %v10843_v26 = vpop.f32.mrf.mxu1 }
 0xbfb   : > { %v10797_v43 = vpop.f32.mrf.mxu0  ;;  %v23117_v26 = vld [vmem:[%s31128_s3 + $0xda8] ss:$16 sps:$4 sm:$0xff]  }
 0xbfc   : > { %v10798_v34 = vadd.f32 %v10797_v43, %v10756_v9  ;;  %v10934_v44 = vpop.f32.mrf.mxu1  ;;  %v23128_v43 = vld [vmem:[%s31128_s3 + $0x104c] ss:$16 sps:$4 sm:$0xff]  }
 0xbfd   : > { %v10799_v17 = vpop.f32.mrf.mxu0  ;;  %v28669_v46 = vpack.c.bf16 %v10934_v44, %v10934_v44  ;;  %v23126_v44 = vld [vmem:[%s31128_s3 + $0x1048] ss:$16 sps:$4 sm:$0xff]  }
 0xbfe   : > { %v10839_v37 = vadd.f32 %v10838_v2, %v10798_v34  ;;  %v10800_v27 = vadd.f32 %v10799_v17, %v10758_v1  ;;  %v10936_v19 = vpop.f32.mrf.mxu1  ;;  %v23111_v1 = vld [vmem:[%s31128_s3 + $0x1180] ss:$16 sps:$4 sm:$0xff]   ;;  %v23119_v2 = vld [vmem:[%s31128_s3 + $0xdac] ss:$16 sps:$4 sm:$0xff]   ;;  %v23123_v17 = vld [vmem:[%s31128_s3 + $0xd88] ss:$16 sps:$4 sm:$0xff]  }
 0xbff   : > { %v28671_v42 = vpack.c.bf16 %v10936_v19, %v10936_v19  ;;  %v10801_v32 = vpop.f32.mrf.mxu0  ;;  %v23125_v34 = vld [vmem:[%s31128_s3 + $0xd8c] ss:$16 sps:$4 sm:$0xff]   ;;  %v23132_v19 = vld [vmem:[%s31128_s3 + $0x1028] ss:$16 sps:$4 sm:$0xff]  }
 0xc00   : > { %v28677_v8 = vadd.f32 %v10839_v37, %v28180_v31  ;;  %v10841_v11 = vadd.f32 %v10840_v3, %v10800_v27  ;;  %v10938_v20 = vpop.f32.mrf.mxu1  ;;  %v23090_v31 = vld [vmem:[%s31128_s3 + $0xe48] ss:$16 sps:$4 sm:$0xff]   ;;  %v23134_v37 = vld [vmem:[%s31128_s3 + $0x102c] ss:$16 sps:$4 sm:$0xff]  }
 0xc01   : > { %11927 = vmatprep.mubr.bf16.mxu0 %v28671_v42  ;;  %v10802_v45 = vpop.f32.mrf.mxu0  ;;  %v23131_v27 = vld [vmem:[%s31128_s3 + $0xf6c] ss:$16 sps:$4 sm:$0xff]   ;;  %v23135_v20 = vld [vmem:[%s31128_s3 + $0xf48] ss:$16 sps:$4 sm:$0xff]  }
 0xc02   : > { %v28684_v62 = vadd.f32 %v10841_v11, %v28189_v63  ;;  %11928 = vmatmul.mubr.bf16.vlgmr.msra.gmra.mxu0 %v28669_v46  ;;  %v10939_v15 = vpop.f32.mrf.mxu1  ;;  %v23093_v63 = vld [vmem:[%s31128_s3 + $0x11e0] ss:$16 sps:$4 sm:$0xff]   ;;  %v23140_v32 = vld [vmem:[%s31128_s3 + $0x100c] ss:$16 sps:$4 sm:$0xff]   ;;  %v23138_v11 = vld [vmem:[%s31128_s3 + $0x1008] ss:$16 sps:$4 sm:$0xff]  }
 0xc03   : > { %11978 = vmatpush1.bf16.msra.mxu0 %v23084_v51  ;;  %v10893_v39 = vpop.f32.mrf.mxu0  ;;  %v23137_v51 = vld [vmem:[%s31128_s3 + $0xf4c] ss:$16 sps:$4 sm:$0xff]   ;;  %v23144_v15 = vld [vmem:[%s31128_s3 + $0xfe8] ss:$16 sps:$4 sm:$0xff]  }
 0xc04   : > { %11979 = vmatprep.subr.bf16.mxu0 %v23092_v5  ;;  %v28696_v4 = vpack.c.bf16 %v10893_v39, %v10893_v39  ;;  %v23146_v5 = vld [vmem:[%s31128_s3 + $0xfec] ss:$16 sps:$4 sm:$0xff]   ;;  %v23141_v39 = vld [vmem:[%s31128_s3 + $0xf28] ss:$16 sps:$4 sm:$0xff]  }
 0xc05   : > { %v10895_v18 = vpop.f32.mrf.mxu0  ;;  %v23143_v45 = vld [vmem:[%s31128_s3 + $0xf2c] ss:$16 sps:$4 sm:$0xff]  }
 0xc06   : > { %v10982_v61 = vpack.c.bf16 %v10895_v18, %v10895_v18  ;;  %v23150_v18 = vld [vmem:[%s31128_s3 + $0xfc8] ss:$16 sps:$4 sm:$0xff]  }
 0xc07   : > { %11980 = vmatpush1.bf16.msra.mxu0 %v23090_v31  ;;  %v10897_v56 = vpop.f32.mrf.mxu0  ;;  %v23152_v31 = vld [vmem:[%s31128_s3 + $0xfcc] ss:$16 sps:$4 sm:$0xff]  }
 0xc08   : > { %11886 = vmatprep.mubr.bf16.mxu1 %v10982_v61  ;;  %11981 = vmatprep.subr.bf16.mxu0 %v23098_v7  ;;  %v23149_v7 = vld [vmem:[%s31128_s3 + $0xf0c] ss:$16 sps:$4 sm:$0xff]  }
 0xc09   : > { %12009 = vmatprep.mubr.bf16.mxu0 %v10982_v61  ;;  %v10898_v14 = vpop.f32.mrf.mxu0  ;;  %11887 = vmatmul.mubr.bf16.vlgmr.msra.gmra.mxu1 %v28696_v4  ;;  %v23147_v61 = vld [vmem:[%s31128_s3 + $0xf08] ss:$16 sps:$4 sm:$0xff]   ;;  %v23155_v56 = vld [vmem:[%s31128_s3 + $0xeec] ss:$16 sps:$4 sm:$0xff]  }
 0xc0a   : > { %11945 = vmatpush1.bf16.msra.mxu1 %v23093_v63  ;;  %11968 = vmatprep.mubr.bf16.mxu1 %v31139_v52  ;;  %v23158_v63 = vld [vmem:[%s31128_s3 + $0xfac] ss:$16 sps:$4 sm:$0xff]  }
 0xc0b   : > { %11982 = vmatpush1.bf16.msra.mxu0 %v23096_v13  ;;  %11946 = vmatprep.subr.bf16.mxu1 %v23101_v23  ;;  %v10975_v55 = vpop.f32.mrf.mxu0  ;;  %v23156_v13 = vld [vmem:[%s31128_s3 + $0xfa8] ss:$16 sps:$4 sm:$0xff]   ;;  %v23161_v14 = vld [vmem:[%s31128_s3 + $0xecc] ss:$16 sps:$4 sm:$0xff]  }
 0xc0c   : > { %11983 = vmatprep.subr.bf16.mxu0 %v23104_v58  ;;  %v28745_v3 = vpack.c.bf16 %v10975_v55, %v10975_v55  ;;  %v23153_v23 = vld [vmem:[%s31128_s3 + $0xee8] ss:$16 sps:$4 sm:$0xff]   ;;  %v23164_v58 = vld [vmem:[%s31128_s3 + $0xf8c] ss:$16 sps:$4 sm:$0xff]  }
 0xc0d   : > { %v21354_v36 = vpop.f32.mrf.mxu0  ;;  %v23170_v55 = vld [vmem:[%s31128_s3 + $0x116c] ss:$16 sps:$4 sm:$0xff]  }
 0xc0e   : > { %11947 = vmatpush1.bf16.msra.mxu1 %v23099_v10  ;;  %v23162_v10 = vld [vmem:[%s31128_s3 + $0xf88] ss:$16 sps:$4 sm:$0xff]  }
 0xc0f   : > { %11984 = vmatpush1.bf16.msra.mxu0 %v23102_v41  ;;  %11948 = vmatprep.subr.bf16.mxu1 %v23107_v28  ;;  %v10978_v50 = vpop.f32.mrf.mxu0  ;;  %v23159_v41 = vld [vmem:[%s31128_s3 + $0xec8] ss:$16 sps:$4 sm:$0xff]   ;;  %v23167_v28 = vld [vmem:[%s31128_s3 + $0xeac] ss:$16 sps:$4 sm:$0xff]  }
 0xc10   : > { %11985 = vmatprep.subr.bf16.mxu0 %v23110_v54  ;;  %v23168_v54 = vld [vmem:[%s31128_s3 + $0x1168] ss:$16 sps:$4 sm:$0xff]  }
 0xc11   : > { %v21355_v9 = vpop.f32.mrf.mxu0  ;;  %v23165_v36 = vld [vmem:[%s31128_s3 + $0xea8] ss:$16 sps:$4 sm:$0xff]  }
 0xc12   : > { %11949 = vmatpush1.bf16.msra.mxu1 %v23105_v30  ;;  %v23176_v30 = vld [vmem:[%s31128_s3 + $0x114c] ss:$16 sps:$4 sm:$0xff]   ;;  %v23174_v50 = vld [vmem:[%s31128_s3 + $0x1148] ss:$16 sps:$4 sm:$0xff]  }
 0xc13   : > { %11986 = vmatpush1.bf16.msra.mxu0 %v23108_v49  ;;  %11950 = vmatprep.subr.bf16.mxu1 %v23113_v16  ;;  %v23173_v49 = vld [vmem:[%s31128_s3 + $0xe8c] ss:$16 sps:$4 sm:$0xff]   ;;  %v23171_v16 = vld [vmem:[%s31128_s3 + $0xe88] ss:$16 sps:$4 sm:$0xff]  }
 0xc14   : > { %11987 = vmatprep.subr.bf16.mxu0 %v23116_v33  ;;  %v23179_v33 = vld [vmem:[%s31128_s3 + $0x112c] ss:$16 sps:$4 sm:$0xff]  }
 0xc15   : > { %v23182_v9 = vld [vmem:[%s31128_s3 + $0x11ec] ss:$16 sps:$4 sm:$0xff]  }
 0xc16   : > { %11951 = vmatpush1.bf16.msra.mxu1 %v23111_v1  ;;  %v23177_v1 = vld [vmem:[%s31128_s3 + $0x1128] ss:$16 sps:$4 sm:$0xff]  }
 0xc17   : > { %11988 = vmatpush1.bf16.msra.mxu0 %v23114_v38  ;;  %12018 = vmatprep.subr.bf16.mxu1 %v23122_v24  ;;  %v23180_v38 = vld [vmem:[%s31128_s3 + $0x11e8] ss:$16 sps:$4 sm:$0xff]   ;;  %v23185_v24 = vld [vmem:[%s31128_s3 + $0x110c] ss:$16 sps:$4 sm:$0xff]  }
 0xc18   : > { %11989 = vmatprep.subr.bf16.mxu0 %v23119_v2  ;;  %v23188_v2 = vld [vmem:[%s31128_s3 + $0x11cc] ss:$16 sps:$4 sm:$0xff]  }
 0xc19   : > { %19985 = vmatmul.mubr.msk.bf16.vlgmr.msra.gmra.mxu1 %vm8375_vm12, %v28745_v3 }
 0xc1a   : > { %12019 = vmatpush1.bf16.msra.mxu1 %v23120_v6  ;;  %12050 = vmatprep.mubr.bf16.mxu1 %v28671_v42  ;;  %v23129_v42 = vld [vmem:[%s31128_s3 + $0xf68] ss:$16 sps:$4 sm:$0xff]  }
 0xc1b   : > { %11990 = vmatpush1.bf16.msra.mxu0 %v23117_v26  ;;  %12020 = vmatprep.subr.bf16.mxu1 %v23128_v43  ;;  %v23183_v6 = vld [vmem:[%s31128_s3 + $0x1108] ss:$16 sps:$4 sm:$0xff]   ;;  %v23191_v43 = vld [vmem:[%s31128_s3 + $0x10ec] ss:$16 sps:$4 sm:$0xff]  }
 0xc1c   : > { %11991 = vmatprep.subr.bf16.mxu0 %v23125_v34  ;;  %v23186_v26 = vld [vmem:[%s31128_s3 + $0x11c8] ss:$16 sps:$4 sm:$0xff]  }
 0xc1d   : > { %v23189_v34 = vld [vmem:[%s31128_s3 + $0x10e8] ss:$16 sps:$4 sm:$0xff]  }
 0xc1e   : > { %12021 = vmatpush1.bf16.msra.mxu1 %v23126_v44  ;;  %v23192_v44 = vld [vmem:[%s31128_s3 + $0x11a8] ss:$16 sps:$4 sm:$0xff]  }
 0xc1f   : > { %11992 = vmatpush1.bf16.msra.mxu0 %v23123_v17  ;;  %12022 = vmatprep.subr.bf16.mxu1 %v23134_v37  ;;  %v23197_v17 = vld [vmem:[%s31128_s3 + $0x10cc] ss:$16 sps:$4 sm:$0xff]  }
 0xc20   : > { %11993 = vmatprep.subr.bf16.mxu0 %v23131_v27  ;;  %v23200_v37 = vld [vmem:[%s31128_s3 + $0x118c] ss:$16 sps:$4 sm:$0xff]   ;;  %v23195_v27 = vld [vmem:[%s31128_s3 + $0x10c8] ss:$16 sps:$4 sm:$0xff]  }
 0xc22   : > { %12023 = vmatpush1.bf16.msra.mxu1 %v23132_v19  ;;  %v23198_v19 = vld [vmem:[%s31128_s3 + $0x1188] ss:$16 sps:$4 sm:$0xff]  }
 0xc23   : > { %11994 = vmatpush2.bf16.msra.mxu0 %v23129_v42  ;;  %12024 = vmatprep.subr.bf16.mxu1 %v23140_v32  ;;  %v23203_v42 = vld [vmem:[%s31128_s3 + $0x10ac] ss:$16 sps:$4 sm:$0xff]   ;;  %v23201_v32 = vld [vmem:[%s31128_s3 + $0x10a8] ss:$16 sps:$4 sm:$0xff]  }
 0xc24   : > { %11995 = vmatprep.subr.bf16.mxu0 %v23137_v51  ;;  %v23206_v51 = vld [vmem:[%s31128_s3 + $0x108c] ss:$16 sps:$4 sm:$0xff]  }
 0xc26   : > { %12025 = vmatpush1.bf16.msra.mxu1 %v23138_v11  ;;  %v23204_v11 = vld [vmem:[%s31128_s3 + $0x1088] ss:$16 sps:$4 sm:$0xff]  }
 0xc27   : > { %11996 = vmatpush2.bf16.msra.mxu0 %v23135_v20  ;;  %12026 = vmatprep.subr.bf16.mxu1 %v23146_v5 }
 0xc28   : > { %11997 = vmatprep.subr.bf16.mxu0 %v23143_v45 }
 0xc2a   : > { %12027 = vmatpush1.bf16.msra.mxu1 %v23144_v15 }
 0xc2b   : > { %11998 = vmatpush2.bf16.msra.mxu0 %v23141_v39  ;;  %12028 = vmatprep.subr.bf16.mxu1 %v23152_v31 }
 0xc2c   : > { %11999 = vmatprep.subr.bf16.mxu0 %v23149_v7 }
 0xc2e   : > { %12029 = vmatpush1.bf16.msra.mxu1 %v23150_v18  ;;  %v28934_v18 = vld [vmem:[%s31131_s6 + $0x2] ss:$4 sm:$0xf] }
 0xc2f   : > { %12000 = vmatpush2.bf16.msra.mxu0 %v23147_v61  ;;  %12030 = vmatprep.subr.bf16.mxu1 %v23158_v63 }
 0xc30   : > { %12001 = vmatprep.subr.bf16.mxu0 %v23155_v56 }
 0xc32   : > { %12031 = vmatpush1.bf16.msra.mxu1 %v23156_v13 }
 0xc33   : > { %12002 = vmatpush2.bf16.msra.mxu0 %v23153_v23  ;;  %12032 = vmatprep.subr.bf16.mxu1 %v23164_v58 }
 0xc34   : > { %12003 = vmatprep.subr.bf16.mxu0 %v23161_v14 }
 0xc36   : > { %12033 = vmatpush1.bf16.msra.mxu1 %v23162_v10  ;;  %v12112_v10 = vrot.slane %v28934_v18, %v24883_v21 }
 0xc37   : > { %12004 = vmatpush2.bf16.msra.mxu0 %v23159_v41  ;;  %12034 = vmatprep.subr.bf16.mxu1 %v23170_v55 }
 0xc38   : > { %12005 = vmatprep.subr.bf16.mxu0 %v23167_v28 }
 0xc3a   : > { %12035 = vmatpush2.bf16.msra.mxu1 %v23168_v54 }
 0xc3b   : > { %12006 = vmatpush2.bf16.msra.mxu0 %v23165_v36  ;;  %12036 = vmatprep.subr.bf16.mxu1 %v23176_v30 }
 0xc3c   : > { %12007 = vmatprep.subr.bf16.mxu0 %v23173_v49 }
 0xc3e   : > { %12037 = vmatpush2.bf16.msra.mxu1 %v23174_v50 }
 0xc3f   : > { %12008 = vmatpush2.bf16.msra.mxu0 %v23171_v16  ;;  %12038 = vmatprep.subr.bf16.mxu1 %v23179_v33 }
 0xc40   : > { %12067 = vmatprep.subr.bf16.mxu0 %v23182_v9  ;;  %v19990_v9 = vsel %vm12170_vm9, 1.0, %v31140_v59 }
 0xc42   : > { %12010 = vmatmul.mubr.bf16.vlgmr.msra.gmra.mxu0 %v28696_v4  ;;  %12039 = vmatpush2.bf16.msra.mxu1 %v23177_v1  ;;  %v23194_v4 = vld [vmem:[%s31128_s3 + $0x11ac] ss:$16 sps:$4 sm:$0xff]  }
 0xc43   : > { %12068 = vmatpush1.bf16.msra.mxu0 %v23180_v38  ;;  %12040 = vmatprep.subr.bf16.mxu1 %v23185_v24  ;;  %v12173_v24 = vpack.c.bf16 %v19990_v9, %v19990_v9  ;;  %v23246_v9 = vld [vmem:[%s31129_s4 + $0x544] ss:$16 sps:$4 sm:$0xff]  }
 0xc44   : > { %12069 = vmatprep.subr.bf16.mxu0 %v23188_v2  ;;  %12091 = vmatprep.mubr.bf16.mxu0 %v31139_v52 }
 0xc46   : > { %12041 = vmatpush2.bf16.msra.mxu1 %v23183_v6 }
 0xc47   : > { %12070 = vmatpush1.bf16.msra.mxu0 %v23186_v26  ;;  %12042 = vmatprep.subr.bf16.mxu1 %v23191_v43 }
 0xc48   : > { %12071 = vmatprep.subr.bf16.mxu0 %v23194_v4 }
 0xc4a   : > { %12043 = vmatpush2.bf16.msra.mxu1 %v23189_v34 }
 0xc4b   : > { %12072 = vmatpush1.bf16.msra.mxu0 %v23192_v44  ;;  %12044 = vmatprep.subr.bf16.mxu1 %v23197_v17 }
 0xc4c   : > { %12073 = vmatprep.subr.bf16.mxu0 %v23200_v37 }
 0xc4e   : > { %12045 = vmatpush2.bf16.msra.mxu1 %v23195_v27 }
 0xc4f   : > { %12074 = vmatpush1.bf16.msra.mxu0 %v23198_v19  ;;  %12046 = vmatprep.subr.bf16.mxu1 %v23203_v42 }
 0xc52   : > { %19986 = vmatmul.mubr.msk.bf16.vlgmr.msra.gmra.mxu0 %vm8375_vm12, %v28745_v3  ;;  %12047 = vmatpush2.bf16.msra.mxu1 %v23201_v32  ;;  %vm14892_vm12 = vcmp.eq.s32.totalorder %v24564_v40, 9  ;;  %v23685_v40 = vld [vmem:[%s31129_s4 + $0x308] ss:$16 sps:$4 sm:$0xff]  }
 0xc53   : > { %12048 = vmatprep.subr.bf16.mxu1 %v23206_v51  ;;  %12288 = vmatprep.mubr.bf16.mxu0 %v31139_v52  ;;  %v12116_v51 = vrot.slane %v28934_v18, %v24875_v53 }
 0xc56   : > { %12049 = vmatpush2.bf16.msra.mxu1 %v23204_v11 }
 0xc59   : > { %12051 = vmatmul.mubr.bf16.vlgmr.msra.gmra.mxu1 %v28669_v46  ;;  %v12108_v46 = vrot.slane %v28934_v18, %v24872_v47 }
 0xc5a   : > { %12247 = vmatprep.mubr.bf16.mxu1 %v31139_v52 }
 0xcc2   : > { %v11929_v20 = vpop.f32.mrf.mxu0 }
 0xcc4   : > { %v11931_v5 = vpop.f32.mrf.mxu0 }
 0xcc6   : > { %v11933_v45 = vpop.f32.mrf.mxu0 }
 0xcc8   : > { %v11934_v15 = vpop.f32.mrf.mxu0 }
 0xcc9   : > { %v11888_v39 = vpop.f32.mrf.mxu1  ;;  %v12120_v15 = vrot.slane %v28934_v18, %v24886_v12 }
 0xcca   : > { %v11930_v61 = vadd.f32 %v11929_v20, %v11888_v39 }
 0xccb   : > { %v11890_v31 = vpop.f32.mrf.mxu1 }
 0xccc   : > { %v11932_v56 = vadd.f32 %v11931_v5, %v11890_v31 }
 0xccd   : > { %v11892_v3 = vpop.f32.mrf.mxu1 }
 0xccf   : > { %v11893_v7 = vpop.f32.mrf.mxu1 }
 0xcd9   : > { %v11970_v63 = vpop.f32.mrf.mxu1 }
 0xcda   : > { %v11971_v13 = vadd.f32 %v11970_v63, %v11930_v61 }
 0xcdb   : > { %v11972_v23 = vpop.f32.mrf.mxu1 }
 0xcdc   : > { %v12100_v58 = vadd.f32 %v11971_v13, %v28664_v29  ;;  %v11973_v14 = vadd.f32 %v11972_v23, %v11932_v56  ;;  %v12164_v29 = vld [vmem:[#allocation5 + $0x14] sm:$0x11]  ;;  %v20001_v23 = vsel %vm12505_vm4, 1.0, %v31140_v59 }
 0xcdd   : > { %v11974_v41 = vpop.f32.mrf.mxu1 }
 0xcde   : > { %v12125_v55 = vadd.f32 %v12108_v46, %v12100_v58  ;;  %v12101_v28 = vadd.f32 %v11973_v14, %v28667_v22  ;;  %v23207_v22 = vld [vmem:[#allocation5 + $0x10] ss:$20 sps:$4 sm:$0x1f]   ;;  %v12165_v46 = vld [vmem:[#allocation5 + $0x1c] sm:$0x11]  ;;  %v12508_v14 = vpack.c.bf16 %v20001_v23, %v20001_v23 }
 0xcdf   : > { %v11975_v54 = vpop.f32.mrf.mxu1  ;;  %v28955_v35 = vsel %vm12199_vm5, %v23207_v22, 0  ;;  %v23222_v41 = vld [vmem:[%s31129_s4 + $0x5c4] ss:$16 sps:$4 sm:$0xff]   ;;  %v23259_v23 = vld [vmem:[%s31129_s4 + $0x8c0] ss:$16 sps:$4 sm:$0xff]  }
 0xce0   : > { %v12133_v36 = vmul.f32 0.1, %v12125_v55  ;;  %v12126_v30 = vadd.f32 %v12112_v10, %v12101_v28  ;;  %vm12129_vm3 = vcmp.gt.f32.partialorder %v12125_v55, 0.0  ;;  %v23214_v10 = vld [vmem:[%s31129_s4 + $0x5e0] ss:$16 sps:$4 sm:$0xff]  }
 0xce1   : > { %v23228_v28 = vld [vmem:[%s31129_s4 + $0x5a4] ss:$16 sps:$4 sm:$0xff]  }
 0xce2   : > { %vm12130_vm8 = vcmp.gt.f32.partialorder %v12126_v30, 0.0  ;;  %v12134_v49 = vmul.f32 0.1, %v12126_v30  ;;  %v12137_v50 = vsel %vm12129_vm3, %v12125_v55, %v12133_v36  ;;  %v23220_v55 = vld [vmem:[%s31129_s4 + $0x5c0] ss:$16 sps:$4 sm:$0xff]  }
 0xce3   : > { %v23210_v54 = vld [vmem:[%s31129_s4 + $0x7e4] ss:$16 sps:$4 sm:$0xff]   ;;  %v23226_v36 = vld [vmem:[%s31129_s4 + $0x5a0] ss:$16 sps:$4 sm:$0xff]  }
 0xce4   : > { %v12138_v16 = vsel %vm12130_vm8, %v12126_v30, %v12134_v49  ;;  %v23234_v30 = vld [vmem:[%s31129_s4 + $0x584] ss:$16 sps:$4 sm:$0xff]   ;;  %v23232_v49 = vld [vmem:[%s31129_s4 + $0x580] ss:$16 sps:$4 sm:$0xff]   ;;  %vm17657_vm8 = vcmask 0  }
 0xce5   : > { %v21162_v33 = vpack.c.bf16 %v12138_v16, %v12137_v50  ;;  %v23240_v50 = vld [vmem:[%s31129_s4 + $0x564] ss:$16 sps:$4 sm:$0xff]   ;;  %v23208_v16 = vld [vmem:[%s31129_s4 + $0x7e0] ss:$16 sps:$4 sm:$0xff]  }
 0xce6   : > { %v23219_v22 = vld [vmem:[%s31129_s4 + $0x7a4] ss:$16 sps:$4 sm:$0xff]  }
 0xce7   : > { %v28945_v1 = vcombine.high %v21162_v33, %v12164_v29  ;;  %v19991_v38 = vcombine.low %v21162_v33, %v12164_v29  ;;  %v23213_v29 = vld [vmem:[%s31129_s4 + $0x7c4] ss:$16 sps:$4 sm:$0xff]   ;;  %v23238_v33 = vld [vmem:[%s31129_s4 + $0x560] ss:$16 sps:$4 sm:$0xff]  }
 0xce9   : > { %19996 = vmatprep.subr.msk.bf16.mxu1 %vm12199_vm5, %v28945_v1  ;;  %v28950_v2 = vsel %vm12199_vm5, %v19991_v38, 0  ;;  %v23211_v38 = vld [vmem:[%s31129_s4 + $0x7c0] ss:$16 sps:$4 sm:$0xff]  }
 0xcea   : > { %12230 = vmatpush1.bf16.msra.mxu1 %v28950_v2 }
 0xceb   : > { %21356 = vmatprep.subr.bf16.mxu1 %v31140_v59 }
 0xced   : > { %19997 = vmatmul.mubr.msk.bf16.vlgmr.msra.gmra.mxu1 %vm12195_vm10, %v12173_v24 }
 0xcee   : > { %21357 = vmatpush3.bf16.msra.mxu1 %v28955_v35  ;;  %21358 = vmatprep.mubr.msk.bf16.mxu1 %vm24204_vm7, %v31140_v59 }
 0xcf5   : > { %21359 = vmatmul.mubr.msk.bf16.vlgmr.msra.gmra.mxu1 %vm12195_vm10, %v12173_v24 }
 0xcf6   : > { %12585 = vmatprep.mubr.bf16.mxu1 %v31139_v52 }
 0xd02   : > { %v12011_v6 = vpop.f32.mrf.mxu0 }
 0xd04   : > { %v12013_v26 = vpop.f32.mrf.mxu0 }
 0xd06   : > { %v12015_v43 = vpop.f32.mrf.mxu0 }
 0xd07   : > { %v23225_v43 = vld [vmem:[%s31129_s4 + $0x784] ss:$16 sps:$4 sm:$0xff]  }
 0xd08   : > { %v12016_v4 = vpop.f32.mrf.mxu0 }
 0xd09   : > { %v23250_v4 = vld [vmem:[%s31129_s4 + $0x520] ss:$16 sps:$4 sm:$0xff]  }
 0xd12   : > { %v12093_v34 = vpop.f32.mrf.mxu0 }
 0xd14   : > { %v12095_v44 = vpop.f32.mrf.mxu0 }
 0xd16   : > { %v12097_v17 = vpop.f32.mrf.mxu0 }
 0xd17   : > { %v23231_v17 = vld [vmem:[%s31129_s4 + $0x764] ss:$16 sps:$4 sm:$0xff]  }
 0xd18   : > { %v12098_v37 = vpop.f32.mrf.mxu0 }
 0xd19   : > { %v12052_v27 = vpop.f32.mrf.mxu1  ;;  %v23256_v37 = vld [vmem:[%s31129_s4 + $0x500] ss:$16 sps:$4 sm:$0xff]  }
 0xd1a   : > { %v12053_v19 = vadd.f32 %v12052_v27, %v12011_v6  ;;  %v23252_v6 = vld [vmem:[%s31129_s4 + $0x524] ss:$16 sps:$4 sm:$0xff]  }
 0xd1b   : > { %v12054_v42 = vpop.f32.mrf.mxu1  ;;  %v23264_v27 = vld [vmem:[%s31129_s4 + $0x6e4] ss:$16 sps:$4 sm:$0xff]  }
 0xd1c   : > { %v12094_v32 = vadd.f32 %v12093_v34, %v12053_v19  ;;  %v12055_v11 = vadd.f32 %v12054_v42, %v12013_v26  ;;  %v23217_v26 = vld [vmem:[%s31129_s4 + $0x7a0] ss:$16 sps:$4 sm:$0xff]   ;;  %v23258_v34 = vld [vmem:[%s31129_s4 + $0x504] ss:$16 sps:$4 sm:$0xff]  }
 0xd1d   : > { %v12056_v20 = vpop.f32.mrf.mxu1  ;;  %v23229_v19 = vld [vmem:[%s31129_s4 + $0x760] ss:$16 sps:$4 sm:$0xff]   ;;  %v23237_v42 = vld [vmem:[%s31129_s4 + $0x744] ss:$16 sps:$4 sm:$0xff]  }
 0xd1e   : > { %v12102_v5 = vadd.f32 %v12094_v32, %v28677_v8  ;;  %v12096_v45 = vadd.f32 %v12095_v44, %v12055_v11  ;;  %v23223_v44 = vld [vmem:[%s31129_s4 + $0x780] ss:$16 sps:$4 sm:$0xff]   ;;  %v23243_v20 = vld [vmem:[%s31129_s4 + $0x724] ss:$16 sps:$4 sm:$0xff]  }
 0xd1f   : > { %v12057_v39 = vpop.f32.mrf.mxu1  ;;  %v23262_v32 = vld [vmem:[%s31129_s4 + $0x6e0] ss:$16 sps:$4 sm:$0xff]  }
 0xd20   : > { %v12127_v31 = vadd.f32 %v12116_v51, %v12102_v5  ;;  %v12103_v3 = vadd.f32 %v12096_v45, %v28684_v62  ;;  %v23216_v62 = vld [vmem:[%s31129_s4 + $0x5e4] ss:$16 sps:$4 sm:$0xff]   ;;  %v23235_v11 = vld [vmem:[%s31129_s4 + $0x740] ss:$16 sps:$4 sm:$0xff]  }
 0xd21   : > { %v23270_v51 = vld [vmem:[%s31129_s4 + $0x6c4] ss:$16 sps:$4 sm:$0xff]   ;;  %v23268_v5 = vld [vmem:[%s31129_s4 + $0x6c0] ss:$16 sps:$4 sm:$0xff]  }
 0xd22   : > { %v12135_v7 = vmul.f32 0.1, %v12127_v31  ;;  %v12128_v61 = vadd.f32 %v12120_v15, %v12103_v3  ;;  %vm12131_vm11 = vcmp.gt.f32.partialorder %v12127_v31, 0.0  ;;  %v23276_v45 = vld [vmem:[%s31129_s4 + $0x6a4] ss:$16 sps:$4 sm:$0xff]  }
 0xd23   : > { %v23241_v15 = vld [vmem:[%s31129_s4 + $0x720] ss:$16 sps:$4 sm:$0xff]   ;;  %v23249_v39 = vld [vmem:[%s31129_s4 + $0x704] ss:$16 sps:$4 sm:$0xff]  }
 0xd24   : > { %vm12132_vm1 = vcmp.gt.f32.partialorder %v12128_v61, 0.0  ;;  %v12136_v63 = vmul.f32 0.1, %v12128_v61  ;;  %v12139_v56 = vsel %vm12131_vm11, %v12127_v31, %v12135_v7  ;;  %v23274_v31 = vld [vmem:[%s31129_s4 + $0x6a0] ss:$16 sps:$4 sm:$0xff]  }
 0xd25   : > { %v23282_v3 = vld [vmem:[%s31129_s4 + $0x684] ss:$16 sps:$4 sm:$0xff]   ;;  %v23247_v7 = vld [vmem:[%s31129_s4 + $0x700] ss:$16 sps:$4 sm:$0xff]  }
 0xd26   : > { %v12140_v13 = vsel %vm12132_vm1, %v12128_v61, %v12136_v63  ;;  %v23255_v61 = vld [vmem:[%s31129_s4 + $0x8e4] ss:$16 sps:$4 sm:$0xff]   ;;  %v23280_v63 = vld [vmem:[%s31129_s4 + $0x680] ss:$16 sps:$4 sm:$0xff]  }
 0xd27   : > { %v21163_v8 = vpack.c.bf16 %v12140_v13, %v12139_v56  ;;  %v23288_v56 = vld [vmem:[%s31129_s4 + $0x664] ss:$16 sps:$4 sm:$0xff]   ;;  %v23253_v13 = vld [vmem:[%s31129_s4 + $0x8e0] ss:$16 sps:$4 sm:$0xff]  }
 0xd29   : > { %v28972_v58 = vcombine.high %v21163_v8, %v12165_v46  ;;  %v19993_v18 = vcombine.low %v21163_v8, %v12165_v46  ;;  %v23261_v46 = vld [vmem:[%s31129_s4 + $0x8c4] ss:$16 sps:$4 sm:$0xff]   ;;  %v23286_v8 = vld [vmem:[%s31129_s4 + $0x660] ss:$16 sps:$4 sm:$0xff]  }
 0xd2b   : > { %19998 = vmatprep.subr.msk.bf16.mxu0 %vm12199_vm5, %v28972_v58  ;;  %20004 = vmatprep.subr.msk.bf16.mxu1 %vm12199_vm5, %v28972_v58  ;;  %v28982_v60 = vsel %vm12199_vm5, %v19993_v18, 0  ;;  %v23267_v18 = vld [vmem:[%s31129_s4 + $0x8a4] ss:$16 sps:$4 sm:$0xff]  }
 0xd2c   : > { %12271 = vmatpush1.bf16.msra.mxu0 %v28982_v60  ;;  %12568 = vmatpush1.bf16.msra.mxu1 %v28982_v60 }
 0xd2d   : > { %20002 = vmatprep.subr.msk.bf16.mxu0 %vm12199_vm5, %v28945_v1  ;;  %13600 = vmatprep.subr.bf16.mxu1 %v23216_v62  ;;  %v23265_v62 = vld [vmem:[%s31129_s4 + $0x8a0] ss:$16 sps:$4 sm:$0xff]  }
 0xd2f   : > { %19999 = vmatmul.mubr.msk.bf16.vlgmr.msra.gmra.mxu0 %vm12195_vm10, %v12173_v24  ;;  %20005 = vmatmul.mubr.msk.bf16.vlgmr.msra.gmra.mxu1 %vm12195_vm10, %v12508_v14  ;;  %v23244_v24 = vld [vmem:[%s31129_s4 + $0x540] ss:$16 sps:$4 sm:$0xff]  }
 0xd30   : > { %12527 = vmatpush1.bf16.msra.mxu0 %v28950_v2  ;;  %12544 = vmatprep.mubr.bf16.mxu0 %v31139_v52 }
 0xd31   : > { %21362 = vmatprep.subr.bf16.mxu0 %v31140_v59  ;;  %13601 = vmatpush1.bf16.msra.mxu1 %v23214_v10  ;;  %v23271_v10 = vld [vmem:[%s31129_s4 + $0x880] ss:$16 sps:$4 sm:$0xff]  }
 0xd32   : > { %13602 = vmatprep.subr.bf16.mxu1 %v23222_v41  ;;  %v23279_v41 = vld [vmem:[%s31129_s4 + $0x864] ss:$16 sps:$4 sm:$0xff]  }
 0xd35   : > { %13603 = vmatpush1.bf16.msra.mxu1 %v23220_v55  ;;  %v23277_v55 = vld [vmem:[%s31129_s4 + $0x860] ss:$16 sps:$4 sm:$0xff]  }
 0xd36   : > { %13604 = vmatprep.subr.bf16.mxu1 %v23228_v28  ;;  %v23285_v28 = vld [vmem:[%s31129_s4 + $0x844] ss:$16 sps:$4 sm:$0xff]  }
 0xd37   : > { %20003 = vmatmul.mubr.msk.bf16.vlgmr.msra.gmra.mxu0 %vm12195_vm10, %v12508_v14 }
 0xd38   : > { %21363 = vmatpush3.bf16.msra.mxu0 %v28955_v35  ;;  %21364 = vmatprep.mubr.msk.bf16.mxu0 %vm24204_vm7, %v31140_v59 }
 0xd39   : > { %13641 = vmatprep.subr.bf16.mxu0 %v23210_v54  ;;  %13605 = vmatpush1.bf16.msra.mxu1 %v23226_v36  ;;  %v23294_v54 = vld [vmem:[%s31129_s4 + $0x644] ss:$16 sps:$4 sm:$0xff]   ;;  %v23283_v36 = vld [vmem:[%s31129_s4 + $0x840] ss:$16 sps:$4 sm:$0xff]  }
 0xd3a   : > { %13606 = vmatprep.subr.bf16.mxu1 %v23234_v30  ;;  %v23292_v30 = vld [vmem:[%s31129_s4 + $0x640] ss:$16 sps:$4 sm:$0xff]  }
 0xd3d   : > { %13607 = vmatpush1.bf16.msra.mxu1 %v23232_v49  ;;  %v23291_v49 = vld [vmem:[%s31129_s4 + $0x824] ss:$16 sps:$4 sm:$0xff]  }
 0xd3e   : > { %13608 = vmatprep.subr.bf16.mxu1 %v23240_v50  ;;  %v23298_v50 = vld [vmem:[%s31129_s4 + $0x620] ss:$16 sps:$4 sm:$0xff]  }
 0xd3f   : > { %21365 = vmatmul.mubr.msk.bf16.vlgmr.msra.gmra.mxu0 %vm12195_vm10, %v12508_v14  ;;  %v23273_v14 = vld [vmem:[%s31129_s4 + $0x884] ss:$16 sps:$4 sm:$0xff]  }
 0xd40   : > { %13642 = vmatpush1.bf16.msra.mxu0 %v23208_v16  ;;  %v23300_v16 = vld [vmem:[%s31129_s4 + $0x624] ss:$16 sps:$4 sm:$0xff]  }
 0xd41   : > { %13643 = vmatprep.subr.bf16.mxu0 %v23213_v29  ;;  %13609 = vmatpush1.bf16.msra.mxu1 %v23238_v33  ;;  %v23289_v29 = vld [vmem:[%s31129_s4 + $0x820] ss:$16 sps:$4 sm:$0xff]   ;;  %v23297_v33 = vld [vmem:[%s31129_s4 + $0x804] ss:$16 sps:$4 sm:$0xff]  }
 0xd42   : > { %13610 = vmatprep.subr.bf16.mxu1 %v23246_v9  ;;  %v23306_v9 = vld [vmem:[%s31129_s4 + $0x604] ss:$16 sps:$4 sm:$0xff]  }
 0xd44   : > { %13644 = vmatpush1.bf16.msra.mxu0 %v23211_v38  ;;  %v23295_v38 = vld [vmem:[%s31129_s4 + $0x800] ss:$16 sps:$4 sm:$0xff]  }
 0xd45   : > { %13645 = vmatprep.subr.bf16.mxu0 %v23219_v22  ;;  %13611 = vmatpush1.bf16.msra.mxu1 %v23244_v24  ;;  %v23304_v22 = vld [vmem:[%s31129_s4 + $0x600] ss:$16 sps:$4 sm:$0xff]   ;;  %v23303_v24 = vld [vmem:[%s31129_s4 + $0x5ec] ss:$16 sps:$4 sm:$0xff]  }
 0xd46   : > { %13612 = vmatprep.subr.bf16.mxu1 %v23252_v6  ;;  %v23312_v6 = vld [vmem:[%s31129_s4 + $0x9e4] ss:$16 sps:$4 sm:$0xff]  }
 0xd48   : > { %13646 = vmatpush1.bf16.msra.mxu0 %v23217_v26 }
 0xd49   : > { %13647 = vmatprep.subr.bf16.mxu0 %v23225_v43  ;;  %13613 = vmatpush1.bf16.msra.mxu1 %v23250_v4 }
 0xd4a   : > { %13614 = vmatprep.subr.bf16.mxu1 %v23258_v34 }
 0xd4c   : > { %13648 = vmatpush1.bf16.msra.mxu0 %v23223_v44 }
 0xd4d   : > { %13649 = vmatprep.subr.bf16.mxu0 %v23231_v17  ;;  %13615 = vmatpush1.bf16.msra.mxu1 %v23256_v37 }
 0xd4e   : > { %13616 = vmatprep.subr.bf16.mxu1 %v23264_v27 }
 0xd50   : > { %13650 = vmatpush1.bf16.msra.mxu0 %v23229_v19 }
 0xd51   : > { %13651 = vmatprep.subr.bf16.mxu0 %v23237_v42  ;;  %13617 = vmatpush2.bf16.msra.mxu1 %v23262_v32 }
 0xd52   : > { %13618 = vmatprep.subr.bf16.mxu1 %v23270_v51 }
 0xd54   : > { %13652 = vmatpush1.bf16.msra.mxu0 %v23235_v11 }
 0xd55   : > { %13653 = vmatprep.subr.bf16.mxu0 %v23243_v20  ;;  %13619 = vmatpush2.bf16.msra.mxu1 %v23268_v5  ;;  %v23301_v5 = vld [vmem:[%s31129_s4 + $0x5e8] ss:$16 sps:$4 sm:$0xff]  }
 0xd56   : > { %13620 = vmatprep.subr.bf16.mxu1 %v23276_v45 }
 0xd58   : > { %13654 = vmatpush1.bf16.msra.mxu0 %v23241_v15  ;;  %v23309_v15 = vld [vmem:[%s31129_s4 + $0x5cc] ss:$16 sps:$4 sm:$0xff]  }
 0xd59   : > { %13655 = vmatprep.subr.bf16.mxu0 %v23249_v39  ;;  %13621 = vmatpush2.bf16.msra.mxu1 %v23274_v31 }
 0xd5a   : > { %13622 = vmatprep.subr.bf16.mxu1 %v23282_v3 }
 0xd5c   : > { %13656 = vmatpush1.bf16.msra.mxu0 %v23247_v7  ;;  %v23307_v7 = vld [vmem:[%s31129_s4 + $0x5c8] ss:$16 sps:$4 sm:$0xff]  }
 0xd5d   : > { %13657 = vmatprep.subr.bf16.mxu0 %v23255_v61  ;;  %13623 = vmatpush2.bf16.msra.mxu1 %v23280_v63  ;;  %v23315_v63 = vld [vmem:[%s31129_s4 + $0x5ac] ss:$16 sps:$4 sm:$0xff]  }
 0xd5e   : > { %13624 = vmatprep.subr.bf16.mxu1 %v23288_v56 }
 0xd60   : > { %13658 = vmatpush2.bf16.msra.mxu0 %v23253_v13 }
 0xd61   : > { %13659 = vmatprep.subr.bf16.mxu0 %v23261_v46  ;;  %13625 = vmatpush2.bf16.msra.mxu1 %v23286_v8  ;;  %v23310_v46 = vld [vmem:[%s31129_s4 + $0x9e0] ss:$16 sps:$4 sm:$0xff]   ;;  %v23313_v8 = vld [vmem:[%s31129_s4 + $0x5a8] ss:$16 sps:$4 sm:$0xff]  }
 0xd62   : > { %13626 = vmatprep.subr.bf16.mxu1 %v23294_v54  ;;  %v23327_v54 = vld [vmem:[%s31129_s4 + $0x56c] ss:$16 sps:$4 sm:$0xff]  }
 0xd64   : > { %13660 = vmatpush2.bf16.msra.mxu0 %v23259_v23 }
 0xd65   : > { %13661 = vmatprep.subr.bf16.mxu0 %v23267_v18  ;;  %13627 = vmatpush2.bf16.msra.mxu1 %v23292_v30 }
 0xd66   : > { %13628 = vmatprep.subr.bf16.mxu1 %v23300_v16  ;;  %v23330_v16 = vld [vmem:[%s31129_s4 + $0x984] ss:$16 sps:$4 sm:$0xff]  }
 0xd68   : > { %13662 = vmatpush2.bf16.msra.mxu0 %v23265_v62  ;;  %v23318_v62 = vld [vmem:[%s31129_s4 + $0x9c4] ss:$16 sps:$4 sm:$0xff]  }
 0xd69   : > { %13663 = vmatprep.subr.bf16.mxu0 %v23273_v14  ;;  %13629 = vmatpush2.bf16.msra.mxu1 %v23298_v50  ;;  %v23321_v14 = vld [vmem:[%s31129_s4 + $0x58c] ss:$16 sps:$4 sm:$0xff]   ;;  %v23325_v50 = vld [vmem:[%s31129_s4 + $0x568] ss:$16 sps:$4 sm:$0xff]  }
 0xd6a   : > { %13630 = vmatprep.subr.bf16.mxu1 %v23306_v9 }
 0xd6c   : > { %13664 = vmatpush2.bf16.msra.mxu0 %v23271_v10 }
 0xd6d   : > { %13665 = vmatprep.subr.bf16.mxu0 %v23279_v41  ;;  %13631 = vmatpush2.bf16.msra.mxu1 %v23304_v22  ;;  %v23316_v41 = vld [vmem:[%s31129_s4 + $0x9c0] ss:$16 sps:$4 sm:$0xff]   ;;  %v23331_v22 = vld [vmem:[%s31129_s4 + $0x548] ss:$16 sps:$4 sm:$0xff]  }
 0xd6e   : > { %13682 = vmatprep.subr.bf16.mxu1 %v23312_v6  ;;  %v23339_v6 = vld [vmem:[%s31129_s4 + $0x52c] ss:$16 sps:$4 sm:$0xff]  }
 0xd70   : > { %13666 = vmatpush2.bf16.msra.mxu0 %v23277_v55  ;;  %v23319_v55 = vld [vmem:[%s31129_s4 + $0x588] ss:$16 sps:$4 sm:$0xff]  }
 0xd71   : > { %13667 = vmatprep.subr.bf16.mxu0 %v23285_v28  ;;  %v23324_v28 = vld [vmem:[%s31129_s4 + $0x9a4] ss:$16 sps:$4 sm:$0xff]  }
 0xd74   : > { %13668 = vmatpush2.bf16.msra.mxu0 %v23283_v36 }
 0xd75   : > { %13669 = vmatprep.subr.bf16.mxu0 %v23291_v49  ;;  %v23322_v49 = vld [vmem:[%s31129_s4 + $0x9a0] ss:$16 sps:$4 sm:$0xff]  }
 0xd78   : > { %13670 = vmatpush2.bf16.msra.mxu0 %v23289_v29  ;;  %v23333_v29 = vld [vmem:[%s31129_s4 + $0x54c] ss:$16 sps:$4 sm:$0xff]  }
 0xd79   : > { %13671 = vmatprep.subr.bf16.mxu0 %v23297_v33 }
 0xd7c   : > { %13672 = vmatpush2.bf16.msra.mxu0 %v23295_v38  ;;  %v23328_v38 = vld [vmem:[%s31129_s4 + $0x980] ss:$16 sps:$4 sm:$0xff]  }
 0xd7d   : > { %13723 = vmatprep.subr.bf16.mxu0 %v23303_v24  ;;  %v23336_v24 = vld [vmem:[%s31129_s4 + $0x964] ss:$16 sps:$4 sm:$0xff]  }
 0xdad   : > { %v29193_v26 = vpop.f32.mrf.mxu1 }
 0xdaf   : > { %v29195_v43 = vpop.f32.mrf.mxu1 }
 0xdb1   : > { %v12253_v4 = vpop.f32.mrf.mxu1 }
 0xdb2   : > { %v23334_v4 = vld [vmem:[%s31129_s4 + $0x960] ss:$16 sps:$4 sm:$0xff]  }
 0xdb3   : > { %v12254_v34 = vpop.f32.mrf.mxu1 }
 0xdb4   : > { %v23337_v34 = vld [vmem:[%s31129_s4 + $0x528] ss:$16 sps:$4 sm:$0xff]  }
 0xdb5   : > { %v29197_v44 = vpop.f32.mrf.mxu1 }
 0xdb7   : > { %v21360_v17 = vpop.f32.mrf.mxu1 }
 0xdb8   : > { %v23342_v17 = vld [vmem:[%s31129_s4 + $0x944] ss:$16 sps:$4 sm:$0xff]  }
 0xdb9   : > { %v12334_v37 = vpop.f32.mrf.mxu1 }
 0xdba   : > { %v23345_v37 = vld [vmem:[%s31129_s4 + $0x50c] ss:$16 sps:$4 sm:$0xff]  }
 0xdbb   : > { %v21361_v27 = vpop.f32.mrf.mxu1 }
 0xdbc   : > { %v23340_v27 = vld [vmem:[%s31129_s4 + $0x940] ss:$16 sps:$4 sm:$0xff]  }
 0xdef   : > { %v29199_v19 = vpop.f32.mrf.mxu0  ;;  %v12587_v42 = vpop.f32.mrf.mxu1 }
 0xdf0   : > { %v29201_v32 = vpack.c.bf16 %v12587_v42, %v12587_v42  ;;  %v23343_v42 = vld [vmem:[%s31129_s4 + $0x508] ss:$16 sps:$4 sm:$0xff]  }
 0xdf1   : > { %v29203_v51 = vpop.f32.mrf.mxu0  ;;  %v12589_v11 = vpop.f32.mrf.mxu1 }
 0xdf2   : > { %v29205_v20 = vpack.c.bf16 %v12589_v11, %v12589_v11  ;;  %v23348_v11 = vld [vmem:[%s31129_s4 + $0x924] ss:$16 sps:$4 sm:$0xff]  }
 0xdf3   : > { %v12294_v45 = vpop.f32.mrf.mxu0  ;;  %v12591_v39 = vpop.f32.mrf.mxu1 }
 0xdf4   : > { %13673 = vmatprep.mubr.bf16.mxu0 %v29205_v20  ;;  %v23346_v45 = vld [vmem:[%s31129_s4 + $0x920] ss:$16 sps:$4 sm:$0xff]   ;;  %v23354_v39 = vld [vmem:[%s31129_s4 + $0x904] ss:$16 sps:$4 sm:$0xff]  }
 0xdf5   : > { %v12295_v31 = vpop.f32.mrf.mxu0  ;;  %13674 = vmatmul.mubr.bf16.vlgmr.msra.gmra.mxu0 %v29201_v32  ;;  %v12592_v3 = vpop.f32.mrf.mxu1 }
 0xdf6   : > { %13724 = vmatpush1.bf16.msra.mxu0 %v23301_v5  ;;  %v23351_v5 = vld [vmem:[%s31129_s4 + $0x6ec] ss:$16 sps:$4 sm:$0xff]   ;;  %v23352_v3 = vld [vmem:[%s31129_s4 + $0x900] ss:$16 sps:$4 sm:$0xff]  }
 0xdf7   : > { %v12546_v61 = vpop.f32.mrf.mxu0  ;;  %13725 = vmatprep.subr.bf16.mxu0 %v23309_v15  ;;  %v23349_v15 = vld [vmem:[%s31129_s4 + $0x6e8] ss:$16 sps:$4 sm:$0xff]   ;;  %v23357_v31 = vld [vmem:[%s31129_s4 + $0x6cc] ss:$16 sps:$4 sm:$0xff]  }
 0xdf8   : > { %v29227_v23 = vpack.c.bf16 %v12546_v61, %v12546_v61  ;;  %v23360_v61 = vld [vmem:[%s31129_s4 + $0x6ac] ss:$16 sps:$4 sm:$0xff]  }
 0xdf9   : > { %v12548_v56 = vpop.f32.mrf.mxu0 }
 0xdfa   : > { %v12635_v13 = vpack.c.bf16 %v12548_v56, %v12548_v56  ;;  %13726 = vmatpush1.bf16.msra.mxu0 %v23307_v7  ;;  %v23355_v7 = vld [vmem:[%s31129_s4 + $0x6c8] ss:$16 sps:$4 sm:$0xff]  }
 0xdfb   : > { %v12550_v18 = vpop.f32.mrf.mxu0  ;;  %13727 = vmatprep.subr.bf16.mxu0 %v23315_v63  ;;  %v23363_v63 = vld [vmem:[%s31129_s4 + $0x7ec] ss:$16 sps:$4 sm:$0xff]  }
 0xdfc   : > { %13632 = vmatprep.mubr.bf16.mxu1 %v12635_v13  ;;  %13755 = vmatprep.mubr.bf16.mxu0 %v12635_v13  ;;  %v23358_v13 = vld [vmem:[%s31129_s4 + $0x6a8] ss:$16 sps:$4 sm:$0xff]   ;;  %v23369_v18 = vld [vmem:[%s31129_s4 + $0x7cc] ss:$16 sps:$4 sm:$0xff]  }
 0xdfd   : > { %v12551_v10 = vpop.f32.mrf.mxu0  ;;  %13633 = vmatmul.mubr.bf16.vlgmr.msra.gmra.mxu1 %v29227_v23 }
 0xdfe   : > { %13683 = vmatpush1.bf16.msra.mxu1 %v23310_v46  ;;  %13728 = vmatpush1.bf16.msra.mxu0 %v23313_v8  ;;  %v23361_v46 = vld [vmem:[%s31129_s4 + $0x7e8] ss:$16 sps:$4 sm:$0xff]   ;;  %v23366_v8 = vld [vmem:[%s31129_s4 + $0x68c] ss:$16 sps:$4 sm:$0xff]  }
 0xdff   : > { %13684 = vmatprep.subr.bf16.mxu1 %v23318_v62  ;;  %13729 = vmatprep.subr.bf16.mxu0 %v23321_v14  ;;  %v12628_v36 = vpop.f32.mrf.mxu0  ;;  %v23364_v62 = vld [vmem:[%s31129_s4 + $0x688] ss:$16 sps:$4 sm:$0xff]   ;;  %v23372_v10 = vld [vmem:[%s31129_s4 + $0x66c] ss:$16 sps:$4 sm:$0xff]  }
 0xe00   : > { %13714 = vmatprep.mubr.bf16.mxu1 %v31139_v52  ;;  %v29321_v56 = vpack.c.bf16 %v12628_v36, %v12628_v36  ;;  %v23367_v14 = vld [vmem:[%s31129_s4 + $0x7c8] ss:$16 sps:$4 sm:$0xff]  }
 0xe01   : > { %v21366_v30 = vpop.f32.mrf.mxu0  ;;  %v23376_v36 = vld [vmem:[%s31129_s4 + $0x648] ss:$16 sps:$4 sm:$0xff]  }
 0xe02   : > { %13685 = vmatpush1.bf16.msra.mxu1 %v23316_v41  ;;  %13730 = vmatpush1.bf16.msra.mxu0 %v23319_v55  ;;  %v23375_v41 = vld [vmem:[%s31129_s4 + $0x7ac] ss:$16 sps:$4 sm:$0xff]   ;;  %v23370_v55 = vld [vmem:[%s31129_s4 + $0x668] ss:$16 sps:$4 sm:$0xff]  }
 0xe03   : > { %13686 = vmatprep.subr.bf16.mxu1 %v23324_v28  ;;  %13731 = vmatprep.subr.bf16.mxu0 %v23327_v54  ;;  %v12631_v33 = vpop.f32.mrf.mxu0  ;;  %v23378_v28 = vld [vmem:[%s31129_s4 + $0x64c] ss:$16 sps:$4 sm:$0xff]   ;;  %v23379_v30 = vld [vmem:[%s31129_s4 + $0x788] ss:$16 sps:$4 sm:$0xff]  }
 0xe04   : > { %v23381_v54 = vld [vmem:[%s31129_s4 + $0x78c] ss:$16 sps:$4 sm:$0xff]  }
 0xe05   : > { %v21367_v9 = vpop.f32.mrf.mxu0  ;;  %v23390_v33 = vld [vmem:[%s31129_s4 + $0x60c] ss:$16 sps:$4 sm:$0xff]  }
 0xe06   : > { %13687 = vmatpush1.bf16.msra.mxu1 %v23322_v49  ;;  %13732 = vmatpush1.bf16.msra.mxu0 %v23325_v50  ;;  %v23384_v49 = vld [vmem:[%s31129_s4 + $0x62c] ss:$16 sps:$4 sm:$0xff]  }
 0xe07   : > { %13688 = vmatprep.subr.bf16.mxu1 %v23330_v16  ;;  %13733 = vmatprep.subr.bf16.mxu0 %v23333_v29  ;;  %v23387_v50 = vld [vmem:[%s31129_s4 + $0x76c] ss:$16 sps:$4 sm:$0xff]   ;;  %v23382_v16 = vld [vmem:[%s31129_s4 + $0x628] ss:$16 sps:$4 sm:$0xff]  }
 0xe08   : > { %v23385_v29 = vld [vmem:[%s31129_s4 + $0x768] ss:$16 sps:$4 sm:$0xff]   ;;  %v23393_v9 = vld [vmem:[%s31129_s4 + $0x74c] ss:$16 sps:$4 sm:$0xff]  }
 0xe0a   : > { %13689 = vmatpush1.bf16.msra.mxu1 %v23328_v38  ;;  %13734 = vmatpush1.bf16.msra.mxu0 %v23331_v22  ;;  %v23388_v38 = vld [vmem:[%s31129_s4 + $0x608] ss:$16 sps:$4 sm:$0xff]  }
 0xe0b   : > { %13690 = vmatprep.subr.bf16.mxu1 %v23336_v24  ;;  %13735 = vmatprep.subr.bf16.mxu0 %v23339_v6  ;;  %v23391_v22 = vld [vmem:[%s31129_s4 + $0x748] ss:$16 sps:$4 sm:$0xff]   ;;  %v23396_v24 = vld [vmem:[%s31129_s4 + $0x72c] ss:$16 sps:$4 sm:$0xff]  }
 0xe0c   : > { %v23399_v6 = vld [vmem:[%s31129_s4 + $0x9ec] ss:$16 sps:$4 sm:$0xff]  }
 0xe0e   : > { %13691 = vmatpush1.bf16.msra.mxu1 %v23334_v4  ;;  %13736 = vmatpush1.bf16.msra.mxu0 %v23337_v34  ;;  %v23394_v4 = vld [vmem:[%s31129_s4 + $0x728] ss:$16 sps:$4 sm:$0xff]  }
 0xe0f   : > { %13692 = vmatprep.subr.bf16.mxu1 %v23342_v17  ;;  %13737 = vmatprep.subr.bf16.mxu0 %v23345_v37  ;;  %v23397_v34 = vld [vmem:[%s31129_s4 + $0x9e8] ss:$16 sps:$4 sm:$0xff]   ;;  %v23402_v17 = vld [vmem:[%s31129_s4 + $0x70c] ss:$16 sps:$4 sm:$0xff]  }
 0xe10   : > { %v23405_v37 = vld [vmem:[%s31129_s4 + $0x9cc] ss:$16 sps:$4 sm:$0xff]  }
 0xe12   : > { %13693 = vmatpush1.bf16.msra.mxu1 %v23340_v27  ;;  %13738 = vmatpush1.bf16.msra.mxu0 %v23343_v42  ;;  %v23400_v27 = vld [vmem:[%s31129_s4 + $0x708] ss:$16 sps:$4 sm:$0xff]  }
 0xe13   : > { %13694 = vmatprep.subr.bf16.mxu1 %v23348_v11  ;;  %13739 = vmatprep.subr.bf16.mxu0 %v23351_v5  ;;  %v23403_v42 = vld [vmem:[%s31129_s4 + $0x9c8] ss:$16 sps:$4 sm:$0xff]   ;;  %v23408_v11 = vld [vmem:[%s31129_s4 + $0x8ec] ss:$16 sps:$4 sm:$0xff]  }
 0xe14   : > { %v23406_v5 = vld [vmem:[%s31129_s4 + $0x8e8] ss:$16 sps:$4 sm:$0xff]  }
 0xe16   : > { %13695 = vmatpush1.bf16.msra.mxu1 %v23346_v45  ;;  %13740 = vmatpush2.bf16.msra.mxu0 %v23349_v15  ;;  %v23409_v45 = vld [vmem:[%s31129_s4 + $0x9a8] ss:$16 sps:$4 sm:$0xff]   ;;  %v23414_v15 = vld [vmem:[%s31129_s4 + $0x8cc] ss:$16 sps:$4 sm:$0xff]  }
 0xe17   : > { %13696 = vmatprep.subr.bf16.mxu1 %v23354_v39  ;;  %13741 = vmatprep.subr.bf16.mxu0 %v23357_v31  ;;  %v23417_v39 = vld [vmem:[%s31129_s4 + $0x98c] ss:$16 sps:$4 sm:$0xff]   ;;  %v23412_v31 = vld [vmem:[%s31129_s4 + $0x8c8] ss:$16 sps:$4 sm:$0xff]  }
 0xe1a   : > { %13697 = vmatpush1.bf16.msra.mxu1 %v23352_v3  ;;  %13742 = vmatpush2.bf16.msra.mxu0 %v23355_v7  ;;  %v23415_v3 = vld [vmem:[%s31129_s4 + $0x988] ss:$16 sps:$4 sm:$0xff]   ;;  %v23420_v7 = vld [vmem:[%s31129_s4 + $0x8ac] ss:$16 sps:$4 sm:$0xff]  }
 0xe1b   : > { %13743 = vmatprep.subr.bf16.mxu0 %v23360_v61  ;;  %13764 = vmatprep.subr.bf16.mxu1 %v23363_v63  ;;  %v23423_v61 = vld [vmem:[%s31129_s4 + $0x96c] ss:$16 sps:$4 sm:$0xff]   ;;  %v23418_v63 = vld [vmem:[%s31129_s4 + $0x8a8] ss:$16 sps:$4 sm:$0xff]  }
 0xe1d   : > { %13715 = vmatmul.mubr.bf16.vlgmr.msra.gmra.mxu1 %v29321_v56 }
 0xe1e   : > { %13744 = vmatpush2.bf16.msra.mxu0 %v23358_v13  ;;  %13765 = vmatpush1.bf16.msra.mxu1 %v23361_v46  ;;  %v23421_v13 = vld [vmem:[%s31129_s4 + $0x968] ss:$16 sps:$4 sm:$0xff]   ;;  %v23426_v46 = vld [vmem:[%s31129_s4 + $0x88c] ss:$16 sps:$4 sm:$0xff]  }
 0xe1f   : > { %13796 = vmatprep.mubr.bf16.mxu1 %v29205_v20  ;;  %13745 = vmatprep.subr.bf16.mxu0 %v23366_v8  ;;  %v23373_v20 = vld [vmem:[%s31129_s4 + $0x7a8] ss:$16 sps:$4 sm:$0xff]   ;;  %v23429_v8 = vld [vmem:[%s31129_s4 + $0x94c] ss:$16 sps:$4 sm:$0xff]  }
 0xe20   : > { %13766 = vmatprep.subr.bf16.mxu1 %v23369_v18  ;;  %v23424_v18 = vld [vmem:[%s31129_s4 + $0x888] ss:$16 sps:$4 sm:$0xff]  }
 0xe22   : > { %13746 = vmatpush2.bf16.msra.mxu0 %v23364_v62  ;;  %13767 = vmatpush1.bf16.msra.mxu1 %v23367_v14  ;;  %v23427_v62 = vld [vmem:[%s31129_s4 + $0x948] ss:$16 sps:$4 sm:$0xff]   ;;  %v23432_v14 = vld [vmem:[%s31129_s4 + $0x86c] ss:$16 sps:$4 sm:$0xff]  }
 0xe23   : > { %13747 = vmatprep.subr.bf16.mxu0 %v23372_v10  ;;  %13768 = vmatprep.subr.bf16.mxu1 %v23375_v41  ;;  %v23435_v10 = vld [vmem:[%s31129_s4 + $0x92c] ss:$16 sps:$4 sm:$0xff]   ;;  %v23430_v41 = vld [vmem:[%s31129_s4 + $0x868] ss:$16 sps:$4 sm:$0xff]  }
 0xe26   : > { %13748 = vmatpush2.bf16.msra.mxu0 %v23370_v55  ;;  %13769 = vmatpush1.bf16.msra.mxu1 %v23373_v20  ;;  %v23433_v55 = vld [vmem:[%s31129_s4 + $0x928] ss:$16 sps:$4 sm:$0xff]   ;;  %v23438_v20 = vld [vmem:[%s31129_s4 + $0x84c] ss:$16 sps:$4 sm:$0xff]  }
 0xe27   : > { %13749 = vmatprep.subr.bf16.mxu0 %v23378_v28  ;;  %13770 = vmatprep.subr.bf16.mxu1 %v23381_v54  ;;  %v23441_v28 = vld [vmem:[%s31129_s4 + $0x90c] ss:$16 sps:$4 sm:$0xff]   ;;  %v23436_v54 = vld [vmem:[%s31129_s4 + $0x848] ss:$16 sps:$4 sm:$0xff]  }
 0xe2a   : > { %13750 = vmatpush2.bf16.msra.mxu0 %v23376_v36  ;;  %13771 = vmatpush1.bf16.msra.mxu1 %v23379_v30  ;;  %v23439_v36 = vld [vmem:[%s31129_s4 + $0x908] ss:$16 sps:$4 sm:$0xff]   ;;  %v23444_v30 = vld [vmem:[%s31129_s4 + $0x82c] ss:$16 sps:$4 sm:$0xff]  }
 0xe2b   : > { %13751 = vmatprep.subr.bf16.mxu0 %v23384_v49  ;;  %13772 = vmatprep.subr.bf16.mxu1 %v23387_v50  ;;  %v23447_v49 = vld [vmem:[%s31129_s4 + $0x2e4] ss:$16 sps:$4 sm:$0xff]   ;;  %v23442_v50 = vld [vmem:[%s31129_s4 + $0x828] ss:$16 sps:$4 sm:$0xff]  }
 0xe2e   : > { %13752 = vmatpush2.bf16.msra.mxu0 %v23382_v16  ;;  %13773 = vmatpush1.bf16.msra.mxu1 %v23385_v29  ;;  %v23445_v16 = vld [vmem:[%s31129_s4 + $0x2e0] ss:$16 sps:$4 sm:$0xff]   ;;  %v23450_v29 = vld [vmem:[%s31129_s4 + $0x80c] ss:$16 sps:$4 sm:$0xff]  }
 0xe2f   : > { %13753 = vmatprep.subr.bf16.mxu0 %v23390_v33  ;;  %13774 = vmatprep.subr.bf16.mxu1 %v23393_v9  ;;  %v23453_v33 = vld [vmem:[%s31129_s4 + $0x2c4] ss:$16 sps:$4 sm:$0xff]   ;;  %v29509_v9 = vpack.c.bf16 %v29203_v51, %v29203_v51 }
 0xe30   : > { %v23456_v51 = vld [vmem:[%s31129_s4 + $0xe4] ss:$16 sps:$4 sm:$0xff]  }
 0xe32   : > { %13754 = vmatpush2.bf16.msra.mxu0 %v23388_v38  ;;  %13775 = vmatpush1.bf16.msra.mxu1 %v23391_v22  ;;  %v23448_v38 = vld [vmem:[%s31129_s4 + $0x808] ss:$16 sps:$4 sm:$0xff]   ;;  %v23451_v22 = vld [vmem:[%s31129_s4 + $0x2c0] ss:$16 sps:$4 sm:$0xff]  }
 0xe33   : > { %13776 = vmatprep.subr.bf16.mxu1 %v23396_v24  ;;  %13805 = vmatprep.subr.bf16.mxu0 %v23399_v6  ;;  %v23454_v24 = vld [vmem:[%s31129_s4 + $0xe0] ss:$16 sps:$4 sm:$0xff]  }
 0xe34   : > { %v23457_v6 = vld [vmem:[%s31129_s4 + $0x2a0] ss:$16 sps:$4 sm:$0xff]  }
 0xe35   : > { %13756 = vmatmul.mubr.bf16.vlgmr.msra.gmra.mxu0 %v29227_v23  ;;  %v23411_v23 = vld [vmem:[%s31129_s4 + $0x9ac] ss:$16 sps:$4 sm:$0xff]  }
 0xe36   : > { %13777 = vmatpush1.bf16.msra.mxu1 %v23394_v4  ;;  %13806 = vmatpush1.bf16.msra.mxu0 %v23397_v34  ;;  %v23462_v4 = vld [vmem:[%s31129_s4 + $0xc4] ss:$16 sps:$4 sm:$0xff]   ;;  %v29536_v34 = vpack.c.bf16 %v29195_v43, %v29195_v43  ;;  %v23463_v43 = vld [vmem:[%s31129_s4 + $0x280] ss:$16 sps:$4 sm:$0xff]  }
 0xe37   : > { %13778 = vmatprep.subr.bf16.mxu1 %v23402_v17  ;;  %13807 = vmatprep.subr.bf16.mxu0 %v23405_v37  ;;  %v23465_v17 = vld [vmem:[%s31129_s4 + $0x284] ss:$16 sps:$4 sm:$0xff]   ;;  %v23460_v37 = vld [vmem:[%s31129_s4 + $0xc0] ss:$16 sps:$4 sm:$0xff]  }
 0xe38   : > { %13837 = vmatprep.mubr.bf16.mxu0 %v31139_v52 }
 0xe3a   : > { %13779 = vmatpush1.bf16.msra.mxu1 %v23400_v27  ;;  %13808 = vmatpush1.bf16.msra.mxu0 %v23403_v42  ;;  %v23468_v27 = vld [vmem:[%s31129_s4 + $0xa4] ss:$16 sps:$4 sm:$0xff]   ;;  %v23466_v42 = vld [vmem:[%s31129_s4 + $0xa0] ss:$16 sps:$4 sm:$0xff]  }
 0xe3b   : > { %13780 = vmatprep.subr.bf16.mxu1 %v23408_v11  ;;  %13809 = vmatprep.subr.bf16.mxu0 %v23411_v23  ;;  %v23469_v11 = vld [vmem:[%s31129_s4 + $0x260] ss:$16 sps:$4 sm:$0xff]   ;;  %v23474_v23 = vld [vmem:[%s31129_s4 + $0x84] ss:$16 sps:$4 sm:$0xff]  }
 0xe3e   : > { %13781 = vmatpush2.bf16.msra.mxu1 %v23406_v5  ;;  %13810 = vmatpush1.bf16.msra.mxu0 %v23409_v45  ;;  %v23477_v5 = vld [vmem:[%s31129_s4 + $0x244] ss:$16 sps:$4 sm:$0xff]   ;;  %v23472_v45 = vld [vmem:[%s31129_s4 + $0x80] ss:$16 sps:$4 sm:$0xff]  }
 0xe3f   : > { %13782 = vmatprep.subr.bf16.mxu1 %v23414_v15  ;;  %13811 = vmatprep.subr.bf16.mxu0 %v23417_v39  ;;  %v23475_v15 = vld [vmem:[%s31129_s4 + $0x240] ss:$16 sps:$4 sm:$0xff]   ;;  %v23480_v39 = vld [vmem:[%s31129_s4 + $0x64] ss:$16 sps:$4 sm:$0xff]  }
 0xe42   : > { %13783 = vmatpush2.bf16.msra.mxu1 %v23412_v31  ;;  %13812 = vmatpush1.bf16.msra.mxu0 %v23415_v3  ;;  %v23483_v31 = vld [vmem:[%s31129_s4 + $0x224] ss:$16 sps:$4 sm:$0xff]   ;;  %v23478_v3 = vld [vmem:[%s31129_s4 + $0x60] ss:$16 sps:$4 sm:$0xff]  }
 0xe43   : > { %13784 = vmatprep.subr.bf16.mxu1 %v23420_v7  ;;  %13813 = vmatprep.subr.bf16.mxu0 %v23423_v61  ;;  %v23481_v7 = vld [vmem:[%s31129_s4 + $0x220] ss:$16 sps:$4 sm:$0xff]   ;;  %v23486_v61 = vld [vmem:[%s31129_s4 + $0x44] ss:$16 sps:$4 sm:$0xff]  }
 0xe46   : > { %13785 = vmatpush2.bf16.msra.mxu1 %v23418_v63  ;;  %13814 = vmatpush1.bf16.msra.mxu0 %v23421_v13  ;;  %v23489_v63 = vld [vmem:[%s31129_s4 + $0x204] ss:$16 sps:$4 sm:$0xff]   ;;  %v23484_v13 = vld [vmem:[%s31129_s4 + $0x40] ss:$16 sps:$4 sm:$0xff]  }
 0xe47   : > { %13786 = vmatprep.subr.bf16.mxu1 %v23426_v46  ;;  %13815 = vmatprep.subr.bf16.mxu0 %v23429_v8  ;;  %v23487_v46 = vld [vmem:[%s31129_s4 + $0x200] ss:$16 sps:$4 sm:$0xff]   ;;  %v23492_v8 = vld [vmem:[%s31129_s4 + $0x24] ss:$16 sps:$4 sm:$0xff]  }
 0xe4a   : > { %13787 = vmatpush2.bf16.msra.mxu1 %v23424_v18  ;;  %13816 = vmatpush1.bf16.msra.mxu0 %v23427_v62  ;;  %v23495_v18 = vld [vmem:[%s31129_s4 + $0x3e4] ss:$16 sps:$4 sm:$0xff]   ;;  %v23490_v62 = vld [vmem:[%s31129_s4 + $0x20] ss:$16 sps:$4 sm:$0xff]  }
 0xe4b   : > { %13788 = vmatprep.subr.bf16.mxu1 %v23432_v14  ;;  %13817 = vmatprep.subr.bf16.mxu0 %v23435_v10  ;;  %v23493_v14 = vld [vmem:[%s31129_s4 + $0x3e0] ss:$16 sps:$4 sm:$0xff]   ;;  %v23498_v10 = vld [vmem:[%s31129_s4 + $0x4] ss:$16 sps:$4 sm:$0xff]  }
 0xe4e   : > { %13789 = vmatpush2.bf16.msra.mxu1 %v23430_v41  ;;  %13818 = vmatpush1.bf16.msra.mxu0 %v23433_v55  ;;  %v23501_v41 = vld [vmem:[%s31129_s4 + $0x3c4] ss:$16 sps:$4 sm:$0xff]   ;;  %v23496_v55 = vld [vmem:[%s31129_s4] ss:$16 sps:$4 sm:$0xff]  }
 0xe4f   : > { %13790 = vmatprep.subr.bf16.mxu1 %v23438_v20  ;;  %13819 = vmatprep.subr.bf16.mxu0 %v23441_v28  ;;  %v23499_v20 = vld [vmem:[%s31129_s4 + $0x3c0] ss:$16 sps:$4 sm:$0xff]   ;;  %v23504_v28 = vld [vmem:[%s31129_s4 + $0x1e4] ss:$16 sps:$4 sm:$0xff]  }
 0xe52   : > { %13791 = vmatpush2.bf16.msra.mxu1 %v23436_v54  ;;  %13820 = vmatpush1.bf16.msra.mxu0 %v23439_v36  ;;  %v23507_v54 = vld [vmem:[%s31129_s4 + $0x3a4] ss:$16 sps:$4 sm:$0xff]   ;;  %v23502_v36 = vld [vmem:[%s31129_s4 + $0x1e0] ss:$16 sps:$4 sm:$0xff]  }
 0xe53   : > { %13792 = vmatprep.subr.bf16.mxu1 %v23444_v30  ;;  %14687 = vmatprep.subr.bf16.mxu0 %v23447_v49  ;;  %v23505_v30 = vld [vmem:[%s31129_s4 + $0x3a0] ss:$16 sps:$4 sm:$0xff]   ;;  %v23510_v49 = vld [vmem:[%s31129_s4 + $0x1c4] ss:$16 sps:$4 sm:$0xff]  }
 0xe55   : > { %13838 = vmatmul.mubr.bf16.vlgmr.msra.gmra.mxu0 %v29321_v56  ;;  %v23459_v56 = vld [vmem:[%s31129_s4 + $0x2a4] ss:$16 sps:$4 sm:$0xff]  }
 0xe56   : > { %13793 = vmatpush2.bf16.msra.mxu1 %v23442_v50  ;;  %14688 = vmatpush1.bf16.msra.mxu0 %v23445_v16  ;;  %v23513_v50 = vld [vmem:[%s31129_s4 + $0x384] ss:$16 sps:$4 sm:$0xff]   ;;  %v23508_v16 = vld [vmem:[%s31129_s4 + $0x1c0] ss:$16 sps:$4 sm:$0xff]  }
 0xe57   : > { %14719 = vmatprep.mubr.bf16.mxu0 %v29509_v9  ;;  %13794 = vmatprep.subr.bf16.mxu1 %v23450_v29  ;;  %v23511_v29 = vld [vmem:[%s31129_s4 + $0x380] ss:$16 sps:$4 sm:$0xff]  }
 0xe58   : > { %14689 = vmatprep.subr.bf16.mxu0 %v23453_v33  ;;  %v23516_v33 = vld [vmem:[%s31129_s4 + $0x1a4] ss:$16 sps:$4 sm:$0xff]  }
 0xe5a   : > { %13795 = vmatpush2.bf16.msra.mxu1 %v23448_v38  ;;  %14690 = vmatpush1.bf16.msra.mxu0 %v23451_v22  ;;  %v23519_v38 = vld [vmem:[%s31129_s4 + $0x364] ss:$16 sps:$4 sm:$0xff]   ;;  %v23514_v22 = vld [vmem:[%s31129_s4 + $0x1a0] ss:$16 sps:$4 sm:$0xff]  }
 0xe5b   : > { %14646 = vmatprep.subr.bf16.mxu1 %v23456_v51  ;;  %14691 = vmatprep.subr.bf16.mxu0 %v23459_v56  ;;  %v23517_v51 = vld [vmem:[%s31129_s4 + $0x360] ss:$16 sps:$4 sm:$0xff]   ;;  %v23522_v56 = vld [vmem:[%s31129_s4 + $0x184] ss:$16 sps:$4 sm:$0xff]  }
 0xe5d   : > { %13797 = vmatmul.mubr.bf16.vlgmr.msra.gmra.mxu1 %v29201_v32  ;;  %v23471_v32 = vld [vmem:[%s31129_s4 + $0x264] ss:$16 sps:$4 sm:$0xff]  }
 0xe5e   : > { %14647 = vmatpush1.bf16.msra.mxu1 %v23454_v24  ;;  %14678 = vmatprep.mubr.bf16.mxu1 %v29536_v34  ;;  %v23525_v24 = vld [vmem:[%s31129_s4 + $0x344] ss:$16 sps:$4 sm:$0xff]  }
 0xe5f   : > { %14692 = vmatpush1.bf16.msra.mxu0 %v23457_v6  ;;  %14648 = vmatprep.subr.bf16.mxu1 %v23462_v4  ;;  %v23520_v6 = vld [vmem:[%s31129_s4 + $0x180] ss:$16 sps:$4 sm:$0xff]  }
 0xe60   : > { %14693 = vmatprep.subr.bf16.mxu0 %v23465_v17  ;;  %v23523_v4 = vld [vmem:[%s31129_s4 + $0x340] ss:$16 sps:$4 sm:$0xff]   ;;  %v23528_v17 = vld [vmem:[%s31129_s4 + $0x164] ss:$16 sps:$4 sm:$0xff]  }
 0xe62   : > { %14649 = vmatpush1.bf16.msra.mxu1 %v23460_v37  ;;  %v23531_v37 = vld [vmem:[%s31129_s4 + $0x324] ss:$16 sps:$4 sm:$0xff]  }
 0xe63   : > { %14694 = vmatpush1.bf16.msra.mxu0 %v23463_v43  ;;  %14650 = vmatprep.subr.bf16.mxu1 %v23468_v27  ;;  %v23526_v43 = vld [vmem:[%s31129_s4 + $0x160] ss:$16 sps:$4 sm:$0xff]  }
 0xe64   : > { %14695 = vmatprep.subr.bf16.mxu0 %v23471_v32  ;;  %v23529_v27 = vld [vmem:[%s31129_s4 + $0x320] ss:$16 sps:$4 sm:$0xff]   ;;  %v23534_v32 = vld [vmem:[%s31129_s4 + $0x144] ss:$16 sps:$4 sm:$0xff]  }
 0xe66   : > { %14651 = vmatpush1.bf16.msra.mxu1 %v23466_v42  ;;  %v23537_v42 = vld [vmem:[%s31129_s4 + $0x304] ss:$16 sps:$4 sm:$0xff]  }
 0xe67   : > { %14696 = vmatpush1.bf16.msra.mxu0 %v23469_v11  ;;  %14652 = vmatprep.subr.bf16.mxu1 %v23474_v23  ;;  %v23532_v11 = vld [vmem:[%s31129_s4 + $0x140] ss:$16 sps:$4 sm:$0xff]  }
 0xe68   : > { %14697 = vmatprep.subr.bf16.mxu0 %v23477_v5  ;;  %v23535_v23 = vld [vmem:[%s31129_s4 + $0x300] ss:$16 sps:$4 sm:$0xff]   ;;  %v23540_v5 = vld [vmem:[%s31129_s4 + $0x124] ss:$16 sps:$4 sm:$0xff]  }
 0xe6a   : > { %14653 = vmatpush1.bf16.msra.mxu1 %v23472_v45  ;;  %v23543_v45 = vld [vmem:[%s31129_s4 + $0xec] ss:$16 sps:$4 sm:$0xff]  }
 0xe6b   : > { %14698 = vmatpush1.bf16.msra.mxu0 %v23475_v15  ;;  %14654 = vmatprep.subr.bf16.mxu1 %v23480_v39  ;;  %v23538_v15 = vld [vmem:[%s31129_s4 + $0x120] ss:$16 sps:$4 sm:$0xff]   ;;  %v23541_v39 = vld [vmem:[%s31129_s4 + $0xe8] ss:$16 sps:$4 sm:$0xff]  }
 0xe6c   : > { %14699 = vmatprep.subr.bf16.mxu0 %v23483_v31  ;;  %v29707_v31 = vpack.c.bf16 %v29199_v19, %v29199_v19  ;;  %v23547_v19 = vld [vmem:[%s31129_s4 + $0xc8] ss:$16 sps:$4 sm:$0xff]  }
 0xe6e   : > { %14655 = vmatpush1.bf16.msra.mxu1 %v23478_v3  ;;  %v23546_v3 = vld [vmem:[%s31129_s4 + $0x104] ss:$16 sps:$4 sm:$0xff]  }
 0xe6f   : > { %14700 = vmatpush1.bf16.msra.mxu0 %v23481_v7  ;;  %14656 = vmatprep.subr.bf16.mxu1 %v23486_v61  ;;  %v23549_v7 = vld [vmem:[%s31129_s4 + $0xcc] ss:$16 sps:$4 sm:$0xff]   ;;  %v23544_v61 = vld [vmem:[%s31129_s4 + $0x100] ss:$16 sps:$4 sm:$0xff]  }
 0xe70   : > { %14701 = vmatprep.subr.bf16.mxu0 %v23489_v63  ;;  %v23552_v63 = vld [vmem:[%s31129_s4 + $0x4e4] ss:$16 sps:$4 sm:$0xff]  }
 0xe72   : > { %14657 = vmatpush1.bf16.msra.mxu1 %v23484_v13  ;;  %v23555_v13 = vld [vmem:[%s31129_s4 + $0xac] ss:$16 sps:$4 sm:$0xff]  }
 0xe73   : > { %14702 = vmatpush1.bf16.msra.mxu0 %v23487_v46  ;;  %14658 = vmatprep.subr.bf16.mxu1 %v23492_v8  ;;  %v23550_v46 = vld [vmem:[%s31129_s4 + $0x4e0] ss:$16 sps:$4 sm:$0xff]   ;;  %v23553_v8 = vld [vmem:[%s31129_s4 + $0xa8] ss:$16 sps:$4 sm:$0xff]  }
 0xe74   : > { %14703 = vmatprep.subr.bf16.mxu0 %v23495_v18  ;;  %v23558_v18 = vld [vmem:[%s31129_s4 + $0x4c4] ss:$16 sps:$4 sm:$0xff]  }
 0xe76   : > { %14659 = vmatpush1.bf16.msra.mxu1 %v23490_v62  ;;  %v23561_v62 = vld [vmem:[%s31129_s4 + $0x8c] ss:$16 sps:$4 sm:$0xff]  }
 0xe77   : > { %14704 = vmatpush2.bf16.msra.mxu0 %v23493_v14  ;;  %14660 = vmatprep.subr.bf16.mxu1 %v23498_v10  ;;  %v23559_v14 = vld [vmem:[%s31129_s4 + $0x88] ss:$16 sps:$4 sm:$0xff]   ;;  %v23564_v10 = vld [vmem:[%s31129_s4 + $0x4a4] ss:$16 sps:$4 sm:$0xff]  }
 0xe78   : > { %14705 = vmatprep.subr.bf16.mxu0 %v23501_v41  ;;  %v23567_v41 = vld [vmem:[%s31129_s4 + $0x6c] ss:$16 sps:$4 sm:$0xff]  }
 0xe7a   : > { %14661 = vmatpush1.bf16.msra.mxu1 %v23496_v55  ;;  %v23562_v55 = vld [vmem:[%s31129_s4 + $0x4a0] ss:$16 sps:$4 sm:$0xff]  }
 0xe7b   : > { %14706 = vmatpush2.bf16.msra.mxu0 %v23499_v20  ;;  %14662 = vmatprep.subr.bf16.mxu1 %v23504_v28  ;;  %v23565_v20 = vld [vmem:[%s31129_s4 + $0x68] ss:$16 sps:$4 sm:$0xff]   ;;  %v23570_v28 = vld [vmem:[%s31129_s4 + $0x484] ss:$16 sps:$4 sm:$0xff]  }
 0xe7c   : > { %14707 = vmatprep.subr.bf16.mxu0 %v23507_v54  ;;  %v23573_v54 = vld [vmem:[%s31129_s4 + $0x4c] ss:$16 sps:$4 sm:$0xff]  }
 0xe7e   : > { %14663 = vmatpush2.bf16.msra.mxu1 %v23502_v36  ;;  %v23568_v36 = vld [vmem:[%s31129_s4 + $0x480] ss:$16 sps:$4 sm:$0xff]  }
 0xe7f   : > { %14708 = vmatpush2.bf16.msra.mxu0 %v23505_v30  ;;  %14664 = vmatprep.subr.bf16.mxu1 %v23510_v49  ;;  %v23571_v30 = vld [vmem:[%s31129_s4 + $0x48] ss:$16 sps:$4 sm:$0xff]   ;;  %v23576_v49 = vld [vmem:[%s31129_s4 + $0x464] ss:$16 sps:$4 sm:$0xff]  }
 0xe80   : > { %14709 = vmatprep.subr.bf16.mxu0 %v23513_v50  ;;  %v23579_v50 = vld [vmem:[%s31129_s4 + $0x2c] ss:$16 sps:$4 sm:$0xff]  }
 0xe82   : > { %14665 = vmatpush2.bf16.msra.mxu1 %v23508_v16  ;;  %v23574_v16 = vld [vmem:[%s31129_s4 + $0x460] ss:$16 sps:$4 sm:$0xff]  }
 0xe83   : > { %14710 = vmatpush2.bf16.msra.mxu0 %v23511_v29  ;;  %14666 = vmatprep.subr.bf16.mxu1 %v23516_v33  ;;  %v23577_v29 = vld [vmem:[%s31129_s4 + $0x28] ss:$16 sps:$4 sm:$0xff]   ;;  %v23582_v33 = vld [vmem:[%s31129_s4 + $0x444] ss:$16 sps:$4 sm:$0xff]  }
 0xe84   : > { %14711 = vmatprep.subr.bf16.mxu0 %v23519_v38  ;;  %v23585_v38 = vld [vmem:[%s31129_s4 + $0xc] ss:$16 sps:$4 sm:$0xff]  }
 0xe86   : > { %14667 = vmatpush2.bf16.msra.mxu1 %v23514_v22  ;;  %v23580_v22 = vld [vmem:[%s31129_s4 + $0x440] ss:$16 sps:$4 sm:$0xff]  }
 0xe87   : > { %14712 = vmatpush2.bf16.msra.mxu0 %v23517_v51  ;;  %14668 = vmatprep.subr.bf16.mxu1 %v23522_v56  ;;  %v23583_v51 = vld [vmem:[%s31129_s4 + $0x8] ss:$16 sps:$4 sm:$0xff]   ;;  %v23588_v56 = vld [vmem:[%s31129_s4 + $0x424] ss:$16 sps:$4 sm:$0xff]  }
 0xe88   : > { %14713 = vmatprep.subr.bf16.mxu0 %v23525_v24  ;;  %v23591_v24 = vld [vmem:[%s31129_s4 + $0x1ec] ss:$16 sps:$4 sm:$0xff]  }
 0xe8a   : > { %14669 = vmatpush2.bf16.msra.mxu1 %v23520_v6  ;;  %v23586_v6 = vld [vmem:[%s31129_s4 + $0x420] ss:$16 sps:$4 sm:$0xff]  }
 0xe8b   : > { %14714 = vmatpush2.bf16.msra.mxu0 %v23523_v4  ;;  %14670 = vmatprep.subr.bf16.mxu1 %v23528_v17  ;;  %v23589_v4 = vld [vmem:[%s31129_s4 + $0x1e8] ss:$16 sps:$4 sm:$0xff]   ;;  %v23594_v17 = vld [vmem:[%s31129_s4 + $0x404] ss:$16 sps:$4 sm:$0xff]  }
 0xe8c   : > { %14715 = vmatprep.subr.bf16.mxu0 %v23531_v37  ;;  %v23597_v37 = vld [vmem:[%s31129_s4 + $0x1cc] ss:$16 sps:$4 sm:$0xff]  }
 0xe8e   : > { %14671 = vmatpush2.bf16.msra.mxu1 %v23526_v43 }
 0xe8f   : > { %14716 = vmatpush2.bf16.msra.mxu0 %v23529_v27  ;;  %14672 = vmatprep.subr.bf16.mxu1 %v23534_v32  ;;  %v23592_v27 = vld [vmem:[%s31129_s4 + $0x400] ss:$16 sps:$4 sm:$0xff]   ;;  %v23595_v32 = vld [vmem:[%s31129_s4 + $0x1c8] ss:$16 sps:$4 sm:$0xff]  }
 0xe90   : > { %14717 = vmatprep.subr.bf16.mxu0 %v23537_v42 }
 0xe92   : > { %14673 = vmatpush2.bf16.msra.mxu1 %v23532_v11  ;;  %v23603_v11 = vld [vmem:[%s31129_s4 + $0x2ec] ss:$16 sps:$4 sm:$0xff]  }
 0xe93   : > { %14718 = vmatpush2.bf16.msra.mxu0 %v23535_v23  ;;  %14674 = vmatprep.subr.bf16.mxu1 %v23540_v5  ;;  %v23600_v23 = vld [vmem:[%s31129_s4 + $0x1ac] ss:$16 sps:$4 sm:$0xff]  }
 0xe94   : > { %14769 = vmatprep.subr.bf16.mxu0 %v23543_v45  ;;  %v23601_v45 = vld [vmem:[%s31129_s4 + $0x2e8] ss:$16 sps:$4 sm:$0xff]  }
 0xe96   : > { %14720 = vmatmul.mubr.bf16.vlgmr.msra.gmra.mxu0 %v29707_v31  ;;  %14675 = vmatpush2.bf16.msra.mxu1 %v23538_v15  ;;  %v29836_v15 = vpack.c.bf16 %v29197_v44, %v29197_v44 }
 0xe97   : > { %14770 = vmatpush1.bf16.msra.mxu0 %v23541_v39  ;;  %14801 = vmatprep.mubr.bf16.mxu0 %v29536_v34  ;;  %v29734_v34 = vpack.c.bf16 %v29193_v26, %v29193_v26  ;;  %v23556_v26 = vld [vmem:[%s31129_s4 + $0x4c0] ss:$16 sps:$4 sm:$0xff]   ;;  %v23598_v39 = vld [vmem:[%s31129_s4 + $0x1a8] ss:$16 sps:$4 sm:$0xff]  }
 0xe98   : > { %14676 = vmatprep.subr.bf16.mxu1 %v23546_v3  ;;  %14771 = vmatprep.subr.bf16.mxu0 %v23549_v7  ;;  %v23609_v7 = vld [vmem:[%s31129_s4 + $0x2cc] ss:$16 sps:$4 sm:$0xff]  }
 0xe9a   : > { %14677 = vmatpush2.bf16.msra.mxu1 %v23544_v61  ;;  %v23606_v61 = vld [vmem:[%s31129_s4 + $0x18c] ss:$16 sps:$4 sm:$0xff]  }
 0xe9b   : > { %14772 = vmatpush1.bf16.msra.mxu0 %v23547_v19  ;;  %14728 = vmatprep.subr.bf16.mxu1 %v23552_v63  ;;  %v23607_v63 = vld [vmem:[%s31129_s4 + $0x2c8] ss:$16 sps:$4 sm:$0xff]  }
 0xe9c   : > { %14773 = vmatprep.subr.bf16.mxu0 %v23555_v13 }
 0xe9d   : > { %14679 = vmatmul.mubr.bf16.vlgmr.msra.gmra.mxu1 %v29734_v34 }
 0xe9e   : > { %14729 = vmatpush1.bf16.msra.mxu1 %v23550_v46  ;;  %14760 = vmatprep.mubr.bf16.mxu1 %v31139_v52  ;;  %v23604_v46 = vld [vmem:[%s31129_s4 + $0x188] ss:$16 sps:$4 sm:$0xff]  }
 0xe9f   : > { %14774 = vmatpush1.bf16.msra.mxu0 %v23553_v8  ;;  %14730 = vmatprep.subr.bf16.mxu1 %v23558_v18  ;;  %v23615_v8 = vld [vmem:[%s31129_s4 + $0x2ac] ss:$16 sps:$4 sm:$0xff]  }
 0xea0   : > { %14775 = vmatprep.subr.bf16.mxu0 %v23561_v62 }
 0xea2   : > { %14731 = vmatpush1.bf16.msra.mxu1 %v23556_v26  ;;  %v23613_v26 = vld [vmem:[%s31129_s4 + $0x2a8] ss:$16 sps:$4 sm:$0xff]  }
 0xea3   : > { %14776 = vmatpush1.bf16.msra.mxu0 %v23559_v14  ;;  %14732 = vmatprep.subr.bf16.mxu1 %v23564_v10  ;;  %v23610_v10 = vld [vmem:[%s31129_s4 + $0x168] ss:$16 sps:$4 sm:$0xff]  }
 0xea4   : > { %14777 = vmatprep.subr.bf16.mxu0 %v23567_v41  ;;  %v23621_v41 = vld [vmem:[%s31129_s4 + $0x28c] ss:$16 sps:$4 sm:$0xff]  }
 0xea6   : > { %14733 = vmatpush1.bf16.msra.mxu1 %v23562_v55  ;;  %v23618_v55 = vld [vmem:[%s31129_s4 + $0x14c] ss:$16 sps:$4 sm:$0xff]  }
 0xea7   : > { %14778 = vmatpush1.bf16.msra.mxu0 %v23565_v20  ;;  %14734 = vmatprep.subr.bf16.mxu1 %v23570_v28  ;;  %v23619_v20 = vld [vmem:[%s31129_s4 + $0x288] ss:$16 sps:$4 sm:$0xff]  }
 0xea8   : > { %14779 = vmatprep.subr.bf16.mxu0 %v23573_v54  ;;  %v23616_v28 = vld [vmem:[%s31129_s4 + $0x148] ss:$16 sps:$4 sm:$0xff]   ;;  %v23627_v54 = vld [vmem:[%s31129_s4 + $0x26c] ss:$16 sps:$4 sm:$0xff]  }
 0xeaa   : > { %14735 = vmatpush1.bf16.msra.mxu1 %v23568_v36  ;;  %v23624_v36 = vld [vmem:[%s31129_s4 + $0x12c] ss:$16 sps:$4 sm:$0xff]  }
 0xeab   : > { %14780 = vmatpush1.bf16.msra.mxu0 %v23571_v30  ;;  %14736 = vmatprep.subr.bf16.mxu1 %v23576_v49  ;;  %v23625_v30 = vld [vmem:[%s31129_s4 + $0x268] ss:$16 sps:$4 sm:$0xff]  }
 0xeac   : > { %14781 = vmatprep.subr.bf16.mxu0 %v23579_v50  ;;  %v23622_v49 = vld [vmem:[%s31129_s4 + $0x128] ss:$16 sps:$4 sm:$0xff]   ;;  %v23633_v50 = vld [vmem:[%s31129_s4 + $0x24c] ss:$16 sps:$4 sm:$0xff]  }
 0xeae   : > { %14737 = vmatpush1.bf16.msra.mxu1 %v23574_v16  ;;  %v23630_v16 = vld [vmem:[%s31129_s4 + $0x10c] ss:$16 sps:$4 sm:$0xff]  }
 0xeaf   : > { %14782 = vmatpush1.bf16.msra.mxu0 %v23577_v29  ;;  %14738 = vmatprep.subr.bf16.mxu1 %v23582_v33  ;;  %v23631_v29 = vld [vmem:[%s31129_s4 + $0x248] ss:$16 sps:$4 sm:$0xff]  }
 0xeb0   : > { %14783 = vmatprep.subr.bf16.mxu0 %v23585_v38  ;;  %v23628_v33 = vld [vmem:[%s31129_s4 + $0x108] ss:$16 sps:$4 sm:$0xff]   ;;  %v23636_v38 = vld [vmem:[%s31129_s4 + $0x22c] ss:$16 sps:$4 sm:$0xff]  }
 0xeb2   : > { %14739 = vmatpush1.bf16.msra.mxu1 %v23580_v22  ;;  %v23639_v22 = vld [vmem:[%s31129_s4 + $0x4ec] ss:$16 sps:$4 sm:$0xff]  }
 0xeb3   : > { %14784 = vmatpush1.bf16.msra.mxu0 %v23583_v51  ;;  %14740 = vmatprep.subr.bf16.mxu1 %v23588_v56  ;;  %v23634_v51 = vld [vmem:[%s31129_s4 + $0x228] ss:$16 sps:$4 sm:$0xff]  }
 0xeb4   : > { %14785 = vmatprep.subr.bf16.mxu0 %v23591_v24  ;;  %v23637_v56 = vld [vmem:[%s31129_s4 + $0x4e8] ss:$16 sps:$4 sm:$0xff]   ;;  %v23642_v24 = vld [vmem:[%s31129_s4 + $0x20c] ss:$16 sps:$4 sm:$0xff]  }
 0xeb5   : > { %v13675_v43 = vpop.f32.mrf.mxu0 }
 0xeb6   : > { %14741 = vmatpush1.bf16.msra.mxu1 %v23586_v6  ;;  %v23645_v6 = vld [vmem:[%s31129_s4 + $0x4cc] ss:$16 sps:$4 sm:$0xff]  }
 0xeb7   : > { %14786 = vmatpush2.bf16.msra.mxu0 %v23589_v4  ;;  %14742 = vmatprep.subr.bf16.mxu1 %v23594_v17  ;;  %v13677_v42 = vpop.f32.mrf.mxu0  ;;  %v23640_v4 = vld [vmem:[%s31129_s4 + $0x208] ss:$16 sps:$4 sm:$0xff]  }
 0xeb8   : > { %14787 = vmatprep.subr.bf16.mxu0 %v23597_v37  ;;  %v23643_v17 = vld [vmem:[%s31129_s4 + $0x4c8] ss:$16 sps:$4 sm:$0xff]   ;;  %v23648_v37 = vld [vmem:[%s31129_s4 + $0x3ec] ss:$16 sps:$4 sm:$0xff]  }
 0xeb9   : > { %v13679_v5 = vpop.f32.mrf.mxu0 }
 0xeba   : > { %14743 = vmatpush1.bf16.msra.mxu1 %v23592_v27  ;;  %v23649_v27 = vld [vmem:[%s31129_s4 + $0x4a8] ss:$16 sps:$4 sm:$0xff]  }
 0xebb   : > { %14788 = vmatpush2.bf16.msra.mxu0 %v23595_v32  ;;  %14810 = vmatprep.subr.bf16.mxu1 %v23603_v11  ;;  %v13680_v3 = vpop.f32.mrf.mxu0  ;;  %v23654_v32 = vld [vmem:[%s31129_s4 + $0x3cc] ss:$16 sps:$4 sm:$0xff]   ;;  %v23652_v5 = vld [vmem:[%s31129_s4 + $0x3c8] ss:$16 sps:$4 sm:$0xff]  }
 0xebc   : > { %14789 = vmatprep.subr.bf16.mxu0 %v23600_v23  ;;  %v23660_v3 = vld [vmem:[%s31129_s4 + $0x3ac] ss:$16 sps:$4 sm:$0xff]  }
 0xebd   : > { %14761 = vmatmul.mubr.bf16.vlgmr.msra.gmra.mxu1 %v29836_v15  ;;  %v13634_v44 = vpop.f32.mrf.mxu1 }
 0xebe   : > { %v29848_v19 = vadd.f32 %v13675_v43, %v13634_v44  ;;  %14811 = vmatpush1.bf16.msra.mxu1 %v23601_v45  ;;  %14842 = vmatprep.mubr.bf16.mxu1 %v29509_v9  ;;  %v23612_v9 = vld [vmem:[%s31129_s4 + $0x16c] ss:$16 sps:$4 sm:$0xff]   ;;  %v23646_v43 = vld [vmem:[%s31129_s4 + $0x3e8] ss:$16 sps:$4 sm:$0xff]  }
 0xebf   : > { %14790 = vmatpush2.bf16.msra.mxu0 %v23598_v39  ;;  %v13636_v13 = vpop.f32.mrf.mxu1  ;;  %14812 = vmatprep.subr.bf16.mxu1 %v23609_v7  ;;  %v23655_v39 = vld [vmem:[%s31129_s4 + $0x488] ss:$16 sps:$4 sm:$0xff]  }
 0xec0   : > { %v29860_v18 = vadd.f32 %v13677_v42, %v13636_v13  ;;  %14791 = vmatprep.subr.bf16.mxu0 %v23606_v61  ;;  %v23657_v42 = vld [vmem:[%s31129_s4 + $0x48c] ss:$16 sps:$4 sm:$0xff]   ;;  %v23661_v13 = vld [vmem:[%s31129_s4 + $0x468] ss:$16 sps:$4 sm:$0xff]  }
 0xec1   : > { %v13638_v62 = vpop.f32.mrf.mxu1  ;;  %v23663_v61 = vld [vmem:[%s31129_s4 + $0x46c] ss:$16 sps:$4 sm:$0xff]  }
 0xec2   : > { %14813 = vmatpush1.bf16.msra.mxu1 %v23607_v63  ;;  %v23672_v62 = vld [vmem:[%s31129_s4 + $0x36c] ss:$16 sps:$4 sm:$0xff]  }
 0xec3   : > { %14792 = vmatpush2.bf16.msra.mxu0 %v23604_v46  ;;  %v13639_v14 = vpop.f32.mrf.mxu1  ;;  %14814 = vmatprep.subr.bf16.mxu1 %v23615_v8  ;;  %v23666_v46 = vld [vmem:[%s31129_s4 + $0x38c] ss:$16 sps:$4 sm:$0xff]  }
 0xec4   : > { %14793 = vmatprep.subr.bf16.mxu0 %v23612_v9  ;;  %v23669_v8 = vld [vmem:[%s31129_s4 + $0x44c] ss:$16 sps:$4 sm:$0xff]   ;;  %v23667_v9 = vld [vmem:[%s31129_s4 + $0x448] ss:$16 sps:$4 sm:$0xff]  }
 0xec5   : > { %v23670_v14 = vld [vmem:[%s31129_s4 + $0x368] ss:$16 sps:$4 sm:$0xff]  }
 0xec6   : > { %14815 = vmatpush1.bf16.msra.mxu1 %v23613_v26  ;;  %v23675_v26 = vld [vmem:[%s31129_s4 + $0x42c] ss:$16 sps:$4 sm:$0xff]  }
 0xec7   : > { %14794 = vmatpush2.bf16.msra.mxu0 %v23610_v10  ;;  %14816 = vmatprep.subr.bf16.mxu1 %v23621_v41  ;;  %v23673_v10 = vld [vmem:[%s31129_s4 + $0x428] ss:$16 sps:$4 sm:$0xff]   ;;  %v23678_v41 = vld [vmem:[%s31129_s4 + $0x34c] ss:$16 sps:$4 sm:$0xff]  }
 0xec8   : > { %14795 = vmatprep.subr.bf16.mxu0 %v23618_v55  ;;  %v23681_v55 = vld [vmem:[%s31129_s4 + $0x40c] ss:$16 sps:$4 sm:$0xff]  }
 0xeca   : > { %14817 = vmatpush1.bf16.msra.mxu1 %v23619_v20  ;;  %v14893_v20 = vsel %vm14892_vm12, 9, %v24581_v48  ;;  %v23682_v48 = vld [vmem:[%s31129_s4 + $0x328] ss:$16 sps:$4 sm:$0xff]  }
 0xecb   : > { %14796 = vmatpush2.bf16.msra.mxu0 %v23616_v28  ;;  %14818 = vmatprep.subr.bf16.mxu1 %v23627_v54  ;;  %v23676_v28 = vld [vmem:[%s31129_s4 + $0x348] ss:$16 sps:$4 sm:$0xff]  }
 0xecc   : > { %14797 = vmatprep.subr.bf16.mxu0 %v23624_v36  ;;  %v23679_v54 = vld [vmem:[%s31129_s4 + $0x408] ss:$16 sps:$4 sm:$0xff]   ;;  %v23684_v36 = vld [vmem:[%s31129_s4 + $0x32c] ss:$16 sps:$4 sm:$0xff]  }
 0xece   : > { %14819 = vmatpush1.bf16.msra.mxu1 %v23625_v30  ;;  %v14894_v30 = vsel %vm1102_vm2, 8, %v14893_v20  ;;  %vm16240_vm2 = vcmp.eq.s32.totalorder %v24726_v57, 9  ;;  %v23925_v57 = vld [vmem:[%s31129_s4 + $0xd08] ss:$16 sps:$4 sm:$0xff]  }
 0xecf   : > { %14798 = vmatpush2.bf16.msra.mxu0 %v23622_v49  ;;  %14820 = vmatprep.subr.bf16.mxu1 %v23633_v50  ;;  %v23687_v49 = vld [vmem:[%s31129_s4 + $0x30c] ss:$16 sps:$4 sm:$0xff]   ;;  %vm14895_vm13 = vcmp.eq.s32.totalorder %v24315_v25, %v14894_v30 }
 0xed0   : > { %14799 = vmatprep.subr.bf16.mxu0 %v23630_v16 }
 0xed2   : > { %14821 = vmatpush1.bf16.msra.mxu1 %v23631_v29  ;;  %v20487_v29 = vsel %vm14895_vm13, 1.0, %v31140_v59 }
 0xed3   : > { %14800 = vmatpush2.bf16.msra.mxu0 %v23628_v33  ;;  %14822 = vmatprep.subr.bf16.mxu1 %v23636_v38  ;;  %v14898_v38 = vpack.c.bf16 %v20487_v29, %v20487_v29  ;;  %v23727_v29 = vld [vmem:[%s31129_s4 + $0xc00] ss:$16 sps:$4 sm:$0xff]  }
 0xed4   : > { %14851 = vmatprep.subr.bf16.mxu0 %v23639_v22 }
 0xed6   : > { %14802 = vmatmul.mubr.bf16.vlgmr.msra.gmra.mxu0 %v29734_v34  ;;  %14823 = vmatpush1.bf16.msra.mxu1 %v23634_v51  ;;  %v23651_v34 = vld [vmem:[%s31129_s4 + $0x4ac] ss:$16 sps:$4 sm:$0xff]   ;;  %v23694_v51 = vld [vmem:[%s31129_s4 + $0xae0] ss:$16 sps:$4 sm:$0xff]  }
 0xed7   : > { %14852 = vmatpush1.bf16.msra.mxu0 %v23637_v56  ;;  %14824 = vmatprep.subr.bf16.mxu1 %v23642_v24  ;;  %v23702_v56 = vld [vmem:[%s31129_s4 + $0xac4] ss:$16 sps:$4 sm:$0xff]   ;;  %v23700_v24 = vld [vmem:[%s31129_s4 + $0xac0] ss:$16 sps:$4 sm:$0xff]  }
 0xed8   : > { %14853 = vmatprep.subr.bf16.mxu0 %v23645_v6  ;;  %14883 = vmatprep.mubr.bf16.mxu0 %v31139_v52  ;;  %v23708_v6 = vld [vmem:[%s31129_s4 + $0xaa4] ss:$16 sps:$4 sm:$0xff]  }
 0xeda   : > { %14825 = vmatpush1.bf16.msra.mxu1 %v23640_v4  ;;  %v23688_v4 = vld [vmem:[%s31129_s4 + $0xce0] ss:$16 sps:$4 sm:$0xff]  }
 0xedb   : > { %14854 = vmatpush1.bf16.msra.mxu0 %v23643_v17  ;;  %14826 = vmatprep.subr.bf16.mxu1 %v23648_v37  ;;  %v23693_v17 = vld [vmem:[%s31129_s4 + $0xcc4] ss:$16 sps:$4 sm:$0xff]   ;;  %v23706_v37 = vld [vmem:[%s31129_s4 + $0xaa0] ss:$16 sps:$4 sm:$0xff]  }
 0xedc   : > { %14855 = vmatprep.subr.bf16.mxu0 %v23651_v34  ;;  %v23691_v34 = vld [vmem:[%s31129_s4 + $0xcc0] ss:$16 sps:$4 sm:$0xff]  }
 0xedd   : > { %v13716_v11 = vpop.f32.mrf.mxu1 }
 0xede   : > { %v29952_v23 = vadd.f32 %v13716_v11, %v29848_v19  ;;  %14827 = vmatpush2.bf16.msra.mxu1 %v23646_v43  ;;  %v23658_v19 = vld [vmem:[%s31129_s4 + $0x3a8] ss:$16 sps:$4 sm:$0xff]   ;;  %v23699_v43 = vld [vmem:[%s31129_s4 + $0xca4] ss:$16 sps:$4 sm:$0xff]  }
 0xedf   : > { %14856 = vmatpush1.bf16.msra.mxu0 %v23649_v27  ;;  %v13718_v45 = vpop.f32.mrf.mxu1  ;;  %14828 = vmatprep.subr.bf16.mxu1 %v23654_v32  ;;  %v23697_v27 = vld [vmem:[%s31129_s4 + $0xca0] ss:$16 sps:$4 sm:$0xff]   ;;  %v23705_v32 = vld [vmem:[%s31129_s4 + $0xc84] ss:$16 sps:$4 sm:$0xff]  }
 0xee0   : > { %v29964_v7 = vadd.f32 %v13718_v45, %v29860_v18  ;;  %14857 = vmatprep.subr.bf16.mxu0 %v23657_v42  ;;  %v23664_v18 = vld [vmem:[%s31129_s4 + $0x388] ss:$16 sps:$4 sm:$0xff]   ;;  %v23714_v11 = vld [vmem:[%s31129_s4 + $0xa84] ss:$16 sps:$4 sm:$0xff]   ;;  %v23712_v45 = vld [vmem:[%s31129_s4 + $0xa80] ss:$16 sps:$4 sm:$0xff]  }
 0xee1   : > { %v13720_v44 = vpop.f32.mrf.mxu1 }
 0xee2   : > { %14829 = vmatpush2.bf16.msra.mxu1 %v23652_v5  ;;  %v23703_v5 = vld [vmem:[%s31129_s4 + $0xc80] ss:$16 sps:$4 sm:$0xff]   ;;  %v23720_v44 = vld [vmem:[%s31129_s4 + $0xa64] ss:$16 sps:$4 sm:$0xff]  }
 0xee3   : > { %14858 = vmatpush1.bf16.msra.mxu0 %v23655_v39  ;;  %v13721_v63 = vpop.f32.mrf.mxu1  ;;  %14830 = vmatprep.subr.bf16.mxu1 %v23660_v3  ;;  %v23711_v3 = vld [vmem:[%s31129_s4 + $0xc64] ss:$16 sps:$4 sm:$0xff]  }
 0xee4   : > { %14859 = vmatprep.subr.bf16.mxu0 %v23663_v61  ;;  %v23718_v63 = vld [vmem:[%s31129_s4 + $0xa60] ss:$16 sps:$4 sm:$0xff]  }
 0xee6   : > { %14831 = vmatpush2.bf16.msra.mxu1 %v23658_v19  ;;  %v23709_v19 = vld [vmem:[%s31129_s4 + $0xc60] ss:$16 sps:$4 sm:$0xff]  }
 0xee7   : > { %14860 = vmatpush1.bf16.msra.mxu0 %v23661_v13  ;;  %14832 = vmatprep.subr.bf16.mxu1 %v23666_v46  ;;  %v23717_v46 = vld [vmem:[%s31129_s4 + $0xc44] ss:$16 sps:$4 sm:$0xff]  }
 0xee8   : > { %14861 = vmatprep.subr.bf16.mxu0 %v23669_v8  ;;  %v23724_v8 = vld [vmem:[%s31129_s4 + $0xa40] ss:$16 sps:$4 sm:$0xff]  }
 0xeea   : > { %14833 = vmatpush2.bf16.msra.mxu1 %v23664_v18  ;;  %v23726_v18 = vld [vmem:[%s31129_s4 + $0xa44] ss:$16 sps:$4 sm:$0xff]  }
 0xeeb   : > { %14862 = vmatpush1.bf16.msra.mxu0 %v23667_v9  ;;  %14834 = vmatprep.subr.bf16.mxu1 %v23672_v62  ;;  %v23732_v62 = vld [vmem:[%s31129_s4 + $0xa24] ss:$16 sps:$4 sm:$0xff]  }
 0xeec   : > { %14863 = vmatprep.subr.bf16.mxu0 %v23675_v26 }
 0xeee   : > { %14835 = vmatpush2.bf16.msra.mxu1 %v23670_v14  ;;  %v23715_v14 = vld [vmem:[%s31129_s4 + $0xc40] ss:$16 sps:$4 sm:$0xff]  }
 0xeef   : > { %14864 = vmatpush1.bf16.msra.mxu0 %v23673_v10  ;;  %14836 = vmatprep.subr.bf16.mxu1 %v23678_v41  ;;  %v23723_v41 = vld [vmem:[%s31129_s4 + $0xc24] ss:$16 sps:$4 sm:$0xff]  }
 0xef0   : > { %14865 = vmatprep.subr.bf16.mxu0 %v23681_v55 }
 0xef2   : > { %14837 = vmatpush2.bf16.msra.mxu1 %v23676_v28  ;;  %v23730_v28 = vld [vmem:[%s31129_s4 + $0xa20] ss:$16 sps:$4 sm:$0xff]  }
 0xef3   : > { %14866 = vmatpush1.bf16.msra.mxu0 %v23679_v54  ;;  %14838 = vmatprep.subr.bf16.mxu1 %v23684_v36  ;;  %v23738_v36 = vld [vmem:[%s31129_s4 + $0xa04] ss:$16 sps:$4 sm:$0xff]  }
 0xef4   : > { %20490 = vmatprep.subr.msk.bf16.mxu0 %vm12199_vm5, %v28972_v58 }
 0xef5   : > { %v30027_v50 = vpop.f32.mrf.mxu0 }
 0xef6   : > { %14884 = vmatmul.mubr.bf16.vlgmr.msra.gmra.mxu0 %v29836_v15  ;;  %14839 = vmatpush2.bf16.msra.mxu1 %v23682_v48  ;;  %v23690_v15 = vld [vmem:[%s31129_s4 + $0xce4] ss:$16 sps:$4 sm:$0xff]   ;;  %v23721_v48 = vld [vmem:[%s31129_s4 + $0xc20] ss:$16 sps:$4 sm:$0xff]  }
 0xef7   : > { %14958 = vmatpush1.bf16.msra.mxu0 %v28982_v60  ;;  %v30034_v16 = vpop.f32.mrf.mxu0  ;;  %14840 = vmatprep.subr.bf16.mxu1 %v23687_v49 }
 0xef8   : > { %14975 = vmatprep.mubr.bf16.mxu0 %v31139_v52 }
 0xef9   : > { %v13761_v33 = vpop.f32.mrf.mxu0 }
 0xefa   : > { %14841 = vmatpush2.bf16.msra.mxu1 %v23685_v40  ;;  %v23736_v40 = vld [vmem:[%s31129_s4 + $0xa00] ss:$16 sps:$4 sm:$0xff]   ;;  %v23735_v33 = vld [vmem:[%s31129_s4 + $0xde4] ss:$16 sps:$4 sm:$0xff]  }
 0xefb   : > { %v13762_v22 = vpop.f32.mrf.mxu0  ;;  %20488 = vmatprep.subr.msk.bf16.mxu1 %vm12199_vm5, %v28945_v1 }
 0xefc   : > { %v23750_v22 = vld [vmem:[%s31129_s4 + $0xbc4] ss:$16 sps:$4 sm:$0xff]  }
 0xefd   : > { %14843 = vmatmul.mubr.bf16.vlgmr.msra.gmra.mxu1 %v29707_v31  ;;  %v23696_v31 = vld [vmem:[%s31129_s4 + $0xae4] ss:$16 sps:$4 sm:$0xff]  }
 0xefe   : > { %20491 = vmatmul.mubr.msk.bf16.vlgmr.msra.gmra.mxu0 %vm12195_vm10, %v14898_v38  ;;  %14917 = vmatpush1.bf16.msra.mxu1 %v28950_v2 }
 0xeff   : > { %14934 = vmatprep.mubr.bf16.mxu1 %v31139_v52  ;;  %21368 = vmatprep.subr.bf16.mxu1 %v31140_v59 }
 0xf00   : > { %15990 = vmatprep.subr.bf16.mxu0 %v23696_v31  ;;  %v23748_v31 = vld [vmem:[%s31129_s4 + $0xbc0] ss:$16 sps:$4 sm:$0xff]  }
 0xf01   : > { %15991 = vmatpush1.bf16.msra.mxu0 %v23694_v51  ;;  %v23741_v51 = vld [vmem:[%s31129_s4 + $0xdc4] ss:$16 sps:$4 sm:$0xff]  }
 0xf02   : > { %15992 = vmatprep.subr.bf16.mxu0 %v23702_v56  ;;  %v23756_v56 = vld [vmem:[%s31129_s4 + $0xba4] ss:$16 sps:$4 sm:$0xff]  }
 0xf05   : > { %20489 = vmatmul.mubr.msk.bf16.vlgmr.msra.gmra.mxu1 %vm12195_vm10, %v14898_v38  ;;  %15993 = vmatpush1.bf16.msra.mxu0 %v23700_v24  ;;  %v23739_v24 = vld [vmem:[%s31129_s4 + $0xdc0] ss:$16 sps:$4 sm:$0xff]  }
 0xf06   : > { %21369 = vmatpush3.bf16.msra.mxu1 %v28955_v35  ;;  %21370 = vmatprep.mubr.msk.bf16.mxu1 %vm24204_vm7, %v31140_v59 }
 0xf07   : > { %16031 = vmatprep.subr.bf16.mxu1 %v23690_v15  ;;  %15994 = vmatprep.subr.bf16.mxu0 %v23708_v6  ;;  %v23733_v15 = vld [vmem:[%s31129_s4 + $0xde0] ss:$16 sps:$4 sm:$0xff]   ;;  %v23747_v6 = vld [vmem:[%s31129_s4 + $0xda4] ss:$16 sps:$4 sm:$0xff]  }
 0xf09   : > { %15995 = vmatpush1.bf16.msra.mxu0 %v23706_v37  ;;  %v23753_v37 = vld [vmem:[%s31129_s4 + $0xd84] ss:$16 sps:$4 sm:$0xff]  }
 0xf0a   : > { %15996 = vmatprep.subr.bf16.mxu0 %v23714_v11  ;;  %v23757_v11 = vld [vmem:[%s31129_s4 + $0xd60] ss:$16 sps:$4 sm:$0xff]  }
 0xf0d   : > { %21371 = vmatmul.mubr.msk.bf16.vlgmr.msra.gmra.mxu1 %vm12195_vm10, %v14898_v38  ;;  %15997 = vmatpush1.bf16.msra.mxu0 %v23712_v45  ;;  %v23742_v38 = vld [vmem:[%s31129_s4 + $0xbe0] ss:$16 sps:$4 sm:$0xff]   ;;  %v23765_v45 = vld [vmem:[%s31129_s4 + $0xd44] ss:$16 sps:$4 sm:$0xff]  }
 0xf0e   : > { %16032 = vmatpush1.bf16.msra.mxu1 %v23688_v4  ;;  %15998 = vmatprep.subr.bf16.mxu0 %v23720_v44  ;;  %v23754_v4 = vld [vmem:[%s31129_s4 + $0xba0] ss:$16 sps:$4 sm:$0xff]   ;;  %v23771_v44 = vld [vmem:[%s31129_s4 + $0xd24] ss:$16 sps:$4 sm:$0xff]  }
 0xf0f   : > { %16033 = vmatprep.subr.bf16.mxu1 %v23693_v17  ;;  %v23745_v17 = vld [vmem:[%s31129_s4 + $0xda0] ss:$16 sps:$4 sm:$0xff]  }
 0xf11   : > { %15999 = vmatpush1.bf16.msra.mxu0 %v23718_v63  ;;  %v23769_v63 = vld [vmem:[%s31129_s4 + $0xd20] ss:$16 sps:$4 sm:$0xff]  }
 0xf12   : > { %16034 = vmatpush1.bf16.msra.mxu1 %v23691_v34  ;;  %16000 = vmatprep.subr.bf16.mxu0 %v23726_v18  ;;  %v23762_v34 = vld [vmem:[%s31129_s4 + $0xb84] ss:$16 sps:$4 sm:$0xff]   ;;  %v23784_v18 = vld [vmem:[%s31129_s4 + $0xb00] ss:$16 sps:$4 sm:$0xff]  }
 0xf13   : > { %16035 = vmatprep.subr.bf16.mxu1 %v23699_v43  ;;  %v23751_v43 = vld [vmem:[%s31129_s4 + $0xd80] ss:$16 sps:$4 sm:$0xff]  }
 0xf15   : > { %v13839_v42 = vpop.f32.mrf.mxu0  ;;  %16001 = vmatpush1.bf16.msra.mxu0 %v23724_v8  ;;  %v23775_v8 = vld [vmem:[%s31129_s4 + $0xd00] ss:$16 sps:$4 sm:$0xff]  }
 0xf16   : > { %16036 = vmatpush1.bf16.msra.mxu1 %v23697_v27  ;;  %16002 = vmatprep.subr.bf16.mxu0 %v23732_v62  ;;  %v23760_v27 = vld [vmem:[%s31129_s4 + $0xb80] ss:$16 sps:$4 sm:$0xff]   ;;  %v23783_v62 = vld [vmem:[%s31129_s4 + $0xaec] ss:$16 sps:$4 sm:$0xff]  }
 0xf17   : > { %v13841_v39 = vpop.f32.mrf.mxu0  ;;  %16037 = vmatprep.subr.bf16.mxu1 %v23705_v32  ;;  %v23759_v32 = vld [vmem:[%s31129_s4 + $0xd64] ss:$16 sps:$4 sm:$0xff]  }
 0xf19   : > { %v13843_v61 = vpop.f32.mrf.mxu0  ;;  %16003 = vmatpush1.bf16.msra.mxu0 %v23730_v28 }
 0xf1a   : > { %16038 = vmatpush1.bf16.msra.mxu1 %v23703_v5  ;;  %16004 = vmatprep.subr.bf16.mxu0 %v23738_v36  ;;  %v23766_v5 = vld [vmem:[%s31129_s4 + $0xb60] ss:$16 sps:$4 sm:$0xff]  }
 0xf1b   : > { %v13844_v13 = vpop.f32.mrf.mxu0  ;;  %16039 = vmatprep.subr.bf16.mxu1 %v23711_v3  ;;  %v23763_v3 = vld [vmem:[%s31129_s4 + $0xd40] ss:$16 sps:$4 sm:$0xff]  }
 0xf1c   : > { %v23772_v61 = vld [vmem:[%s31129_s4 + $0xb40] ss:$16 sps:$4 sm:$0xff]  }
 0xf1d   : > { %v13798_v9 = vpop.f32.mrf.mxu1  ;;  %16005 = vmatpush1.bf16.msra.mxu0 %v23736_v40  ;;  %v23778_v13 = vld [vmem:[%s31129_s4 + $0xb20] ss:$16 sps:$4 sm:$0xff]  }
 0xf1e   : > { %v13799_v26 = vadd.f32 %v13798_v9, %v30027_v50  ;;  %16040 = vmatpush1.bf16.msra.mxu1 %v23709_v19  ;;  %v23729_v50 = vld [vmem:[%s31129_s4 + $0xc04] ss:$16 sps:$4 sm:$0xff]  }
 0xf1f   : > { %v13800_v10 = vpop.f32.mrf.mxu1  ;;  %16041 = vmatprep.subr.bf16.mxu1 %v23717_v46  ;;  %v23780_v19 = vld [vmem:[%s31129_s4 + $0xb24] ss:$16 sps:$4 sm:$0xff]  }
 0xf20   : > { %v13801_v55 = vadd.f32 %v13800_v10, %v30034_v16  ;;  %v30130_v20 = vadd.f32 %v13839_v42, %v13799_v26  ;;  %v23744_v16 = vld [vmem:[%s31129_s4 + $0xbe4] ss:$16 sps:$4 sm:$0xff]  }
 0xf21   : > { %v13802_v54 = vpop.f32.mrf.mxu1  ;;  %16006 = vmatprep.subr.bf16.mxu0 %v23744_v16  ;;  %v23768_v42 = vld [vmem:[%s31129_s4 + $0xb64] ss:$16 sps:$4 sm:$0xff]  }
 0xf22   : > { %v30138_v30 = vadd.f32 %v13841_v39, %v13801_v55  ;;  %16042 = vmatpush1.bf16.msra.mxu1 %v23715_v14  ;;  %16007 = vmatpush2.bf16.msra.mxu0 %v23742_v38  ;;  %v23774_v39 = vld [vmem:[%s31129_s4 + $0xb44] ss:$16 sps:$4 sm:$0xff]  }
 0xf23   : > { %v13803_v49 = vpop.f32.mrf.mxu1  ;;  %16043 = vmatprep.subr.bf16.mxu1 %v23723_v41  ;;  %16008 = vmatprep.subr.bf16.mxu0 %v23750_v22  ;;  %v23777_v46 = vld [vmem:[%s31129_s4 + $0xd04] ss:$16 sps:$4 sm:$0xff]  }
 0xf24   : > { %v23786_v9 = vld [vmem:[%s31129_s4 + $0xb04] ss:$16 sps:$4 sm:$0xff]  }
 0xf25   : > { %v23792_v26 = vld [vmem:[%s31129_s4 + $0xee4] ss:$16 sps:$4 sm:$0xff]  }
 0xf26   : > { %16044 = vmatpush1.bf16.msra.mxu1 %v23721_v48  ;;  %16009 = vmatpush2.bf16.msra.mxu0 %v23748_v31 }
 0xf27   : > { %16045 = vmatprep.subr.bf16.mxu1 %v23729_v50  ;;  %16010 = vmatprep.subr.bf16.mxu0 %v23756_v56 }
 0xf2a   : > { %16046 = vmatpush1.bf16.msra.mxu1 %v23727_v29  ;;  %16011 = vmatpush2.bf16.msra.mxu0 %v23754_v4 }
 0xf2b   : > { %16047 = vmatprep.subr.bf16.mxu1 %v23735_v33  ;;  %16012 = vmatprep.subr.bf16.mxu0 %v23762_v34 }
 0xf2e   : > { %16048 = vmatpush2.bf16.msra.mxu1 %v23733_v15  ;;  %16013 = vmatpush2.bf16.msra.mxu0 %v23760_v27 }
 0xf2f   : > { %16049 = vmatprep.subr.bf16.mxu1 %v23741_v51  ;;  %16014 = vmatprep.subr.bf16.mxu0 %v23768_v42 }
 0xf32   : > { %16050 = vmatpush2.bf16.msra.mxu1 %v23739_v24  ;;  %16015 = vmatpush2.bf16.msra.mxu0 %v23766_v5 }
 0xf33   : > { %16051 = vmatprep.subr.bf16.mxu1 %v23747_v6  ;;  %16016 = vmatprep.subr.bf16.mxu0 %v23774_v39 }
 0xf36   : > { %16052 = vmatpush2.bf16.msra.mxu1 %v23745_v17  ;;  %16017 = vmatpush2.bf16.msra.mxu0 %v23772_v61 }
 0xf37   : > { %16053 = vmatprep.subr.bf16.mxu1 %v23753_v37  ;;  %16018 = vmatprep.subr.bf16.mxu0 %v23780_v19 }
 0xf3a   : > { %16054 = vmatpush2.bf16.msra.mxu1 %v23751_v43  ;;  %16019 = vmatpush2.bf16.msra.mxu0 %v23778_v13 }
 0xf3b   : > { %16055 = vmatprep.subr.bf16.mxu1 %v23759_v32  ;;  %16020 = vmatprep.subr.bf16.mxu0 %v23786_v9 }
 0xf3e   : > { %16056 = vmatpush2.bf16.msra.mxu1 %v23757_v11  ;;  %16021 = vmatpush2.bf16.msra.mxu0 %v23784_v18  ;;  %v23795_v18 = vld [vmem:[%s31129_s4 + $0xaac] ss:$16 sps:$4 sm:$0xff]  }
 0xf3f   : > { %16057 = vmatprep.subr.bf16.mxu1 %v23765_v45  ;;  %16072 = vmatprep.subr.bf16.mxu0 %v23792_v26  ;;  %v23790_v26 = vld [vmem:[%s31129_s4 + $0xee0] ss:$16 sps:$4 sm:$0xff]  }
 0xf42   : > { %16058 = vmatpush2.bf16.msra.mxu1 %v23763_v3 }
 0xf43   : > { %16059 = vmatprep.subr.bf16.mxu1 %v23771_v44  ;;  %v23789_v44 = vld [vmem:[%s31129_s4 + $0xacc] ss:$16 sps:$4 sm:$0xff]  }
 0xf46   : > { %16060 = vmatpush2.bf16.msra.mxu1 %v23769_v63 }
 0xf47   : > { %16061 = vmatprep.subr.bf16.mxu1 %v23777_v46 }
 0xf4a   : > { %16062 = vmatpush2.bf16.msra.mxu1 %v23775_v8  ;;  %v23787_v8 = vld [vmem:[%s31129_s4 + $0xac8] ss:$16 sps:$4 sm:$0xff]  }
 0xf4b   : > { %16113 = vmatprep.subr.bf16.mxu1 %v23783_v62 }
 0xf56   : > { %v14721_v14 = vpop.f32.mrf.mxu0 }
 0xf58   : > { %v14723_v10 = vpop.f32.mrf.mxu0 }
 0xf5a   : > { %v14725_v41 = vpop.f32.mrf.mxu0 }
 0xf5b   : > { %v23793_v41 = vld [vmem:[%s31129_s4 + $0xaa8] ss:$16 sps:$4 sm:$0xff]  }
 0xf5c   : > { %v14726_v55 = vpop.f32.mrf.mxu0 }
 0xf5d   : > { %v14680_v28 = vpop.f32.mrf.mxu1  ;;  %v23798_v55 = vld [vmem:[%s31129_s4 + $0xec4] ss:$16 sps:$4 sm:$0xff]  }
 0xf5e   : > { %v14681_v54 = vadd.f32 %v14680_v28, %v29952_v23  ;;  %v23801_v28 = vld [vmem:[%s31129_s4 + $0xa8c] ss:$16 sps:$4 sm:$0xff]  }
 0xf5f   : > { %v14682_v36 = vpop.f32.mrf.mxu1 }
 0xf60   : > { %v14683_v48 = vadd.f32 %v14682_v36, %v29964_v7  ;;  %v14722_v49 = vadd.f32 %v14721_v14, %v14681_v54  ;;  %v23796_v36 = vld [vmem:[%s31129_s4 + $0xec0] ss:$16 sps:$4 sm:$0xff]  }
 0xf61   : > { %v14684_v50 = vpop.f32.mrf.mxu1 }
 0xf62   : > { %v14724_v40 = vadd.f32 %v14723_v10, %v14683_v48  ;;  %v23799_v48 = vld [vmem:[%s31129_s4 + $0xa88] ss:$16 sps:$4 sm:$0xff]  }
 0xf63   : > { %v14685_v16 = vpop.f32.mrf.mxu1 }
 0xf7d   : > { %v14762_v29 = vpop.f32.mrf.mxu1 }
 0xf7e   : > { %v30256_v33 = vadd.f32 %v14762_v29, %v14722_v49  ;;  %v23804_v49 = vld [vmem:[%s31129_s4 + $0xea4] ss:$16 sps:$4 sm:$0xff]   ;;  %v23802_v29 = vld [vmem:[%s31129_s4 + $0xea0] ss:$16 sps:$4 sm:$0xff]  }
 0xf7f   : > { %v14764_v38 = vpop.f32.mrf.mxu1 }
 0xf80   : > { %v30258_v22 = vadd.f32 %v14764_v38, %v14724_v40  ;;  %v23807_v40 = vld [vmem:[%s31129_s4 + $0xa6c] ss:$16 sps:$4 sm:$0xff]   ;;  %v23805_v38 = vld [vmem:[%s31129_s4 + $0xa68] ss:$16 sps:$4 sm:$0xff]  }
 0xf81   : > { %v14766_v15 = vpop.f32.mrf.mxu1 }
 0xf82   : > { %v23810_v15 = vld [vmem:[%s31129_s4 + $0xe84] ss:$16 sps:$4 sm:$0xff]  }
 0xf83   : > { %v14767_v51 = vpop.f32.mrf.mxu1 }
 0xf96   : > { %v14803_v31 = vpop.f32.mrf.mxu0 }
 0xf97   : > { %v14804_v56 = vadd.f32 %v14803_v31, %v30130_v20  ;;  %v23813_v31 = vld [vmem:[%s31129_s4 + $0xa4c] ss:$16 sps:$4 sm:$0xff]  }
 0xf98   : > { %v14805_v24 = vpop.f32.mrf.mxu0 }
 0xf99   : > { %v14806_v23 = vadd.f32 %v14805_v24, %v30138_v30  ;;  %v23781_v30 = vld [vmem:[%s31129_s4 + $0xae8] ss:$16 sps:$4 sm:$0xff]   ;;  %v23808_v24 = vld [vmem:[%s31129_s4 + $0xe80] ss:$16 sps:$4 sm:$0xff]  }
 0xf9a   : > { %v14807_v6 = vpop.f32.mrf.mxu0 }
 0xf9b   : > { %v23816_v6 = vld [vmem:[%s31129_s4 + $0xe64] ss:$16 sps:$4 sm:$0xff]  }
 0xf9c   : > { %v14808_v7 = vpop.f32.mrf.mxu0 }
 0xf9d   : > { %v23819_v7 = vld [vmem:[%s31129_s4 + $0xa2c] ss:$16 sps:$4 sm:$0xff]  }
 0xfb6   : > { %v14885_v4 = vpop.f32.mrf.mxu0 }
 0xfb8   : > { %v14887_v17 = vpop.f32.mrf.mxu0 }
 0xfba   : > { %v14889_v37 = vpop.f32.mrf.mxu0 }
 0xfbb   : > { %v23822_v37 = vld [vmem:[%s31129_s4 + $0xe44] ss:$16 sps:$4 sm:$0xff]  }
 0xfbc   : > { %v14890_v34 = vpop.f32.mrf.mxu0 }
 0xfbd   : > { %v14844_v43 = vpop.f32.mrf.mxu1  ;;  %v23825_v34 = vld [vmem:[%s31129_s4 + $0xa0c] ss:$16 sps:$4 sm:$0xff]  }
 0xfbe   : > { %v14845_v27 = vadd.f32 %v14844_v43, %v14804_v56  ;;  %v14977_v32 = vpop.f32.mrf.mxu0  ;;  %v23820_v43 = vld [vmem:[%s31129_s4 + $0xe40] ss:$16 sps:$4 sm:$0xff]  }
 0xfbf   : > { %v14846_v42 = vpop.f32.mrf.mxu1  ;;  %v30264_v5 = vpack.c.bf16 %v14977_v32, %v14977_v32  ;;  %v23828_v32 = vld [vmem:[%s31129_s4 + $0xe24] ss:$16 sps:$4 sm:$0xff]  }
 0xfc0   : > { %v30262_v11 = vadd.f32 %v14885_v4, %v14845_v27  ;;  %v14847_v45 = vadd.f32 %v14846_v42, %v14806_v23  ;;  %v14979_v39 = vpop.f32.mrf.mxu0  ;;  %v23811_v23 = vld [vmem:[%s31129_s4 + $0xa48] ss:$16 sps:$4 sm:$0xff]   ;;  %v23814_v4 = vld [vmem:[%s31129_s4 + $0xe60] ss:$16 sps:$4 sm:$0xff]   ;;  %v23831_v42 = vld [vmem:[%s31129_s4 + $0xbec] ss:$16 sps:$4 sm:$0xff]  }
 0xfc1   : > { %v30266_v20 = vpack.c.bf16 %v14979_v39, %v14979_v39  ;;  %v14848_v3 = vpop.f32.mrf.mxu1  ;;  %v23823_v27 = vld [vmem:[%s31129_s4 + $0xa08] ss:$16 sps:$4 sm:$0xff]  }
 0xfc2   : > { %v30271_v61 = vadd.f32 %v14887_v17, %v14847_v45  ;;  %v14981_v19 = vpop.f32.mrf.mxu0  ;;  %v23817_v17 = vld [vmem:[%s31129_s4 + $0xa28] ss:$16 sps:$4 sm:$0xff]   ;;  %v23826_v45 = vld [vmem:[%s31129_s4 + $0xe20] ss:$16 sps:$4 sm:$0xff]   ;;  %v23834_v3 = vld [vmem:[%s31129_s4 + $0xe04] ss:$16 sps:$4 sm:$0xff]  }
 0xfc3   : > { %16063 = vmatprep.mubr.bf16.mxu1 %v30266_v20  ;;  %v14849_v63 = vpop.f32.mrf.mxu1  ;;  %v23829_v39 = vld [vmem:[%s31129_s4 + $0xbe8] ss:$16 sps:$4 sm:$0xff]  }
 0xfc4   : > { %16064 = vmatmul.mubr.bf16.vlgmr.msra.gmra.mxu1 %v30264_v5  ;;  %v14982_v13 = vpop.f32.mrf.mxu0  ;;  %v23835_v19 = vld [vmem:[%s31129_s4 + $0xbc8] ss:$16 sps:$4 sm:$0xff]   ;;  %v23843_v63 = vld [vmem:[%s31129_s4 + $0xcec] ss:$16 sps:$4 sm:$0xff]  }
 0xfc5   : > { %16114 = vmatpush1.bf16.msra.mxu1 %v23781_v30  ;;  %v14936_v46 = vpop.f32.mrf.mxu1  ;;  %v23837_v30 = vld [vmem:[%s31129_s4 + $0xbcc] ss:$16 sps:$4 sm:$0xff]  }
 0xfc6   : > { %16115 = vmatprep.subr.bf16.mxu1 %v23789_v44  ;;  %v30287_v14 = vpack.c.bf16 %v14936_v46, %v14936_v46  ;;  %v23832_v44 = vld [vmem:[%s31129_s4 + $0xe00] ss:$16 sps:$4 sm:$0xff]   ;;  %v23840_v13 = vld [vmem:[%s31129_s4 + $0xbac] ss:$16 sps:$4 sm:$0xff]  }
 0xfc7   : > { %v14938_v9 = vpop.f32.mrf.mxu1 }
 0xfc8   : > { %v15025_v62 = vpack.c.bf16 %v14938_v9, %v14938_v9  ;;  %v23849_v9 = vld [vmem:[%s31129_s4 + $0xccc] ss:$16 sps:$4 sm:$0xff]  }
 0xfc9   : > { %16116 = vmatpush1.bf16.msra.mxu1 %v23787_v8  ;;  %v14940_v10 = vpop.f32.mrf.mxu1  ;;  %v23841_v8 = vld [vmem:[%s31129_s4 + $0xce8] ss:$16 sps:$4 sm:$0xff]  }
 0xfca   : > { %16022 = vmatprep.mubr.bf16.mxu0 %v15025_v62  ;;  %16117 = vmatprep.subr.bf16.mxu1 %v23795_v18  ;;  %v23838_v18 = vld [vmem:[%s31129_s4 + $0xba8] ss:$16 sps:$4 sm:$0xff]  }
 0xfcb   : > { %v14941_v54 = vpop.f32.mrf.mxu1  ;;  %16023 = vmatmul.mubr.bf16.vlgmr.msra.gmra.mxu0 %v30287_v14  ;;  %16145 = vmatprep.mubr.bf16.mxu1 %v15025_v62  ;;  %v23846_v62 = vld [vmem:[%s31129_s4 + $0xb8c] ss:$16 sps:$4 sm:$0xff]   ;;  %v23844_v10 = vld [vmem:[%s31129_s4 + $0xb88] ss:$16 sps:$4 sm:$0xff]  }
 0xfcc   : > { %16073 = vmatpush1.bf16.msra.mxu0 %v23790_v26  ;;  %16104 = vmatprep.mubr.bf16.mxu0 %v31139_v52  ;;  %v23847_v26 = vld [vmem:[%s31129_s4 + $0xcc8] ss:$16 sps:$4 sm:$0xff]   ;;  %v23861_v54 = vld [vmem:[%s31129_s4 + $0xc8c] ss:$16 sps:$4 sm:$0xff]  }
 0xfcd   : > { %16118 = vmatpush1.bf16.msra.mxu1 %v23793_v41  ;;  %16074 = vmatprep.subr.bf16.mxu0 %v23798_v55  ;;  %v15018_v50 = vpop.f32.mrf.mxu1  ;;  %v23855_v41 = vld [vmem:[%s31129_s4 + $0xcac] ss:$16 sps:$4 sm:$0xff]  }
 0xfce   : > { %16119 = vmatprep.subr.bf16.mxu1 %v23801_v28  ;;  %v30384_v46 = vpack.c.bf16 %v15018_v50, %v15018_v50  ;;  %v23852_v55 = vld [vmem:[%s31129_s4 + $0xb6c] ss:$16 sps:$4 sm:$0xff]   ;;  %v23850_v28 = vld [vmem:[%s31129_s4 + $0xb68] ss:$16 sps:$4 sm:$0xff]  }
 0xfcf   : > { %v21372_v16 = vpop.f32.mrf.mxu1  ;;  %v23867_v50 = vld [vmem:[%s31129_s4 + $0xc6c] ss:$16 sps:$4 sm:$0xff]  }
 0xfd0   : > { %16075 = vmatpush1.bf16.msra.mxu0 %v23796_v36  ;;  %v23858_v36 = vld [vmem:[%s31129_s4 + $0xb4c] ss:$16 sps:$4 sm:$0xff]   ;;  %v23865_v16 = vld [vmem:[%s31129_s4 + $0xc68] ss:$16 sps:$4 sm:$0xff]  }
 0xfd1   : > { %16120 = vmatpush1.bf16.msra.mxu1 %v23799_v48  ;;  %16076 = vmatprep.subr.bf16.mxu0 %v23804_v49  ;;  %v15021_v51 = vpop.f32.mrf.mxu1  ;;  %v23859_v48 = vld [vmem:[%s31129_s4 + $0xc88] ss:$16 sps:$4 sm:$0xff]  }
 0xfd2   : > { %16121 = vmatprep.subr.bf16.mxu1 %v23807_v40  ;;  %v23856_v49 = vld [vmem:[%s31129_s4 + $0xb48] ss:$16 sps:$4 sm:$0xff]   ;;  %v23864_v40 = vld [vmem:[%s31129_s4 + $0xb2c] ss:$16 sps:$4 sm:$0xff]  }
 0xfd3   : > { %v21373_v56 = vpop.f32.mrf.mxu1  ;;  %v23871_v51 = vld [vmem:[%s31129_s4 + $0xc48] ss:$16 sps:$4 sm:$0xff]  }
 0xfd4   : > { %16077 = vmatpush1.bf16.msra.mxu0 %v23802_v29  ;;  %v23862_v29 = vld [vmem:[%s31129_s4 + $0xb28] ss:$16 sps:$4 sm:$0xff]   ;;  %v23876_v56 = vld [vmem:[%s31129_s4 + $0xc2c] ss:$16 sps:$4 sm:$0xff]  }
 0xfd5   : > { %16122 = vmatpush1.bf16.msra.mxu1 %v23805_v38  ;;  %16078 = vmatprep.subr.bf16.mxu0 %v23810_v15  ;;  %v23873_v38 = vld [vmem:[%s31129_s4 + $0xc4c] ss:$16 sps:$4 sm:$0xff]  }
 0xfd6   : > { %16123 = vmatprep.subr.bf16.mxu1 %v23813_v31  ;;  %v23870_v15 = vld [vmem:[%s31129_s4 + $0xb0c] ss:$16 sps:$4 sm:$0xff]   ;;  %v23868_v31 = vld [vmem:[%s31129_s4 + $0xb08] ss:$16 sps:$4 sm:$0xff]  }
 0xfd8   : > { %16079 = vmatpush1.bf16.msra.mxu0 %v23808_v24  ;;  %v23879_v24 = vld [vmem:[%s31129_s4 + $0xeec] ss:$16 sps:$4 sm:$0xff]  }
 0xfd9   : > { %16124 = vmatpush1.bf16.msra.mxu1 %v23811_v23  ;;  %16080 = vmatprep.subr.bf16.mxu0 %v23816_v6  ;;  %v23874_v23 = vld [vmem:[%s31129_s4 + $0xc28] ss:$16 sps:$4 sm:$0xff]  }
 0xfda   : > { %16125 = vmatprep.subr.bf16.mxu1 %v23819_v7  ;;  %v23877_v6 = vld [vmem:[%s31129_s4 + $0xee8] ss:$16 sps:$4 sm:$0xff]   ;;  %v23882_v7 = vld [vmem:[%s31129_s4 + $0xc0c] ss:$16 sps:$4 sm:$0xff]  }
 0xfdc   : > { %16081 = vmatpush1.bf16.msra.mxu0 %v23814_v4  ;;  %v23885_v4 = vld [vmem:[%s31129_s4 + $0xecc] ss:$16 sps:$4 sm:$0xff]  }
 0xfdd   : > { %16126 = vmatpush1.bf16.msra.mxu1 %v23817_v17  ;;  %16082 = vmatprep.subr.bf16.mxu0 %v23822_v37  ;;  %v23880_v17 = vld [vmem:[%s31129_s4 + $0xc08] ss:$16 sps:$4 sm:$0xff]  }
 0xfde   : > { %16127 = vmatprep.subr.bf16.mxu1 %v23825_v34  ;;  %v23883_v37 = vld [vmem:[%s31129_s4 + $0xec8] ss:$16 sps:$4 sm:$0xff]   ;;  %v23888_v34 = vld [vmem:[%s31129_s4 + $0xdec] ss:$16 sps:$4 sm:$0xff]  }
 0xfe0   : > { %16083 = vmatpush1.bf16.msra.mxu0 %v23820_v43  ;;  %v23886_v43 = vld [vmem:[%s31129_s4 + $0xde8] ss:$16 sps:$4 sm:$0xff]  }
 0xfe1   : > { %16128 = vmatpush1.bf16.msra.mxu1 %v23823_v27  ;;  %16084 = vmatprep.subr.bf16.mxu0 %v23828_v32  ;;  %v23889_v27 = vld [vmem:[%s31129_s4 + $0xea8] ss:$16 sps:$4 sm:$0xff]   ;;  %v23894_v32 = vld [vmem:[%s31129_s4 + $0xdcc] ss:$16 sps:$4 sm:$0xff]  }
 0xfe2   : > { %16129 = vmatprep.subr.bf16.mxu1 %v23831_v42  ;;  %v23897_v42 = vld [vmem:[%s31129_s4 + $0xe8c] ss:$16 sps:$4 sm:$0xff]  }
 0xfe4   : > { %16085 = vmatpush1.bf16.msra.mxu0 %v23826_v45  ;;  %v23892_v45 = vld [vmem:[%s31129_s4 + $0xdc8] ss:$16 sps:$4 sm:$0xff]  }
 0xfe5   : > { %16130 = vmatpush2.bf16.msra.mxu1 %v23829_v39  ;;  %16086 = vmatprep.subr.bf16.mxu0 %v23834_v3  ;;  %v23895_v39 = vld [vmem:[%s31129_s4 + $0xe88] ss:$16 sps:$4 sm:$0xff]   ;;  %v23900_v3 = vld [vmem:[%s31129_s4 + $0xdac] ss:$16 sps:$4 sm:$0xff]  }
 0xfe6   : > { %16131 = vmatprep.subr.bf16.mxu1 %v23837_v30  ;;  %v23903_v30 = vld [vmem:[%s31129_s4 + $0xe6c] ss:$16 sps:$4 sm:$0xff]  }
 0xfe8   : > { %16087 = vmatpush1.bf16.msra.mxu0 %v23832_v44  ;;  %v23898_v44 = vld [vmem:[%s31129_s4 + $0xda8] ss:$16 sps:$4 sm:$0xff]  }
 0xfe9   : > { %16132 = vmatpush2.bf16.msra.mxu1 %v23835_v19  ;;  %16154 = vmatprep.subr.bf16.mxu0 %v23843_v63  ;;  %v23901_v19 = vld [vmem:[%s31129_s4 + $0xe68] ss:$16 sps:$4 sm:$0xff]   ;;  %v23906_v63 = vld [vmem:[%s31129_s4 + $0xd8c] ss:$16 sps:$4 sm:$0xff]  }
 0xfea   : > { %16133 = vmatprep.subr.bf16.mxu1 %v23840_v13  ;;  %v23909_v13 = vld [vmem:[%s31129_s4 + $0xe4c] ss:$16 sps:$4 sm:$0xff]  }
 0xfeb   : > { %16105 = vmatmul.mubr.bf16.vlgmr.msra.gmra.mxu0 %v30384_v46 }
 0xfec   : > { %16155 = vmatpush1.bf16.msra.mxu0 %v23841_v8  ;;  %16186 = vmatprep.mubr.bf16.mxu0 %v30266_v20  ;;  %v23853_v20 = vld [vmem:[%s31129_s4 + $0xca8] ss:$16 sps:$4 sm:$0xff]  }
 0xfed   : > { %16134 = vmatpush2.bf16.msra.mxu1 %v23838_v18  ;;  %16156 = vmatprep.subr.bf16.mxu0 %v23849_v9  ;;  %v23904_v8 = vld [vmem:[%s31129_s4 + $0xd88] ss:$16 sps:$4 sm:$0xff]   ;;  %v23912_v9 = vld [vmem:[%s31129_s4 + $0xd6c] ss:$16 sps:$4 sm:$0xff]  }
 0xfee   : > { %16135 = vmatprep.subr.bf16.mxu1 %v23846_v62  ;;  %v23907_v18 = vld [vmem:[%s31129_s4 + $0xe48] ss:$16 sps:$4 sm:$0xff]   ;;  %v23915_v62 = vld [vmem:[%s31129_s4 + $0xe2c] ss:$16 sps:$4 sm:$0xff]  }
 0xff0   : > { %16157 = vmatpush1.bf16.msra.mxu0 %v23847_v26  ;;  %v23910_v26 = vld [vmem:[%s31129_s4 + $0xd68] ss:$16 sps:$4 sm:$0xff]  }
 0xff1   : > { %16136 = vmatpush2.bf16.msra.mxu1 %v23844_v10  ;;  %16158 = vmatprep.subr.bf16.mxu0 %v23855_v41  ;;  %v23913_v10 = vld [vmem:[%s31129_s4 + $0xe28] ss:$16 sps:$4 sm:$0xff]   ;;  %v23918_v41 = vld [vmem:[%s31129_s4 + $0xd4c] ss:$16 sps:$4 sm:$0xff]  }
 0xff2   : > { %16137 = vmatprep.subr.bf16.mxu1 %v23852_v55  ;;  %v23921_v55 = vld [vmem:[%s31129_s4 + $0xe0c] ss:$16 sps:$4 sm:$0xff]  }
 0xff4   : > { %16159 = vmatpush1.bf16.msra.mxu0 %v23853_v20  ;;  %v16241_v20 = vsel %vm16240_vm2, 9, %v24731_v0  ;;  %v23922_v0 = vld [vmem:[%s31129_s4 + $0xd28] ss:$16 sps:$4 sm:$0xff]  }
 0xff5   : > { %16138 = vmatpush2.bf16.msra.mxu1 %v23850_v28  ;;  %16160 = vmatprep.subr.bf16.mxu0 %v23861_v54  ;;  %v23916_v28 = vld [vmem:[%s31129_s4 + $0xd48] ss:$16 sps:$4 sm:$0xff]  }
 0xff6   : > { %16139 = vmatprep.subr.bf16.mxu1 %v23858_v36  ;;  %v23919_v54 = vld [vmem:[%s31129_s4 + $0xe08] ss:$16 sps:$4 sm:$0xff]   ;;  %v23924_v36 = vld [vmem:[%s31129_s4 + $0xd2c] ss:$16 sps:$4 sm:$0xff]  }
 0xff8   : > { %16161 = vmatpush1.bf16.msra.mxu0 %v23859_v48  ;;  %v16242_v48 = vsel %vm1446_vm0, 8, %v16241_v20  ;;  %v24002_v20 = vld [vmem:[%s31129_s4 + $0x1084] ss:$16 sps:$4 sm:$0xff]  }
 0xff9   : > { %16140 = vmatpush2.bf16.msra.mxu1 %v23856_v49  ;;  %16162 = vmatprep.subr.bf16.mxu0 %v23867_v50  ;;  %v23927_v49 = vld [vmem:[%s31129_s4 + $0xd0c] ss:$16 sps:$4 sm:$0xff]   ;;  %vm16243_vm14 = vcmp.eq.s32.totalorder %v24315_v25, %v16242_v48  ;;  %v23930_v25 = vld [vmem:[%s31129_s4 + $0x11e4] ss:$16 sps:$4 sm:$0xff]  }
 0xffa   : > { %16141 = vmatprep.subr.bf16.mxu1 %v23864_v40  ;;  %v20813_v50 = vsel %vm16243_vm14, 1.0, %v31140_v59  ;;  %v24008_v48 = vld [vmem:[%s31129_s4 + $0x1064] ss:$16 sps:$4 sm:$0xff]  }
 0xffb   : > { %v16246_v40 = vpack.c.bf16 %v20813_v50, %v20813_v50  ;;  %v24014_v50 = vld [vmem:[%s31129_s4 + $0x1044] ss:$16 sps:$4 sm:$0xff]  }
 0xffc   : > { %16163 = vmatpush1.bf16.msra.mxu0 %v23865_v16  ;;  %v23931_v16 = vld [vmem:[%s31129_s4 + $0x11c0] ss:$16 sps:$4 sm:$0xff]  }
 0xffd   : > { %16142 = vmatpush2.bf16.msra.mxu1 %v23862_v29  ;;  %16164 = vmatprep.subr.bf16.mxu0 %v23873_v38  ;;  %v23939_v29 = vld [vmem:[%s31129_s4 + $0x11a4] ss:$16 sps:$4 sm:$0xff]   ;;  %v23937_v38 = vld [vmem:[%s31129_s4 + $0x11a0] ss:$16 sps:$4 sm:$0xff]  }
 0xffe   : > { %16143 = vmatprep.subr.bf16.mxu1 %v23870_v15  ;;  %v23945_v15 = vld [vmem:[%s31129_s4 + $0x1184] ss:$16 sps:$4 sm:$0xff]  }
0x1000   : > { %16165 = vmatpush1.bf16.msra.mxu0 %v23871_v51  ;;  %v23954_v51 = vld [vmem:[%s31129_s4 + $0xf84] ss:$16 sps:$4 sm:$0xff]  }
0x1001   : > { %16144 = vmatpush2.bf16.msra.mxu1 %v23868_v31  ;;  %16166 = vmatprep.subr.bf16.mxu0 %v23876_v56  ;;  %v23943_v31 = vld [vmem:[%s31129_s4 + $0x1180] ss:$16 sps:$4 sm:$0xff]  }
0x1002   : > { %16195 = vmatprep.subr.bf16.mxu1 %v23879_v24  ;;  %v23952_v56 = vld [vmem:[%s31129_s4 + $0xf80] ss:$16 sps:$4 sm:$0xff]   ;;  %v23951_v24 = vld [vmem:[%s31129_s4 + $0x1164] ss:$16 sps:$4 sm:$0xff]  }
0x1004   : > { %16146 = vmatmul.mubr.bf16.vlgmr.msra.gmra.mxu1 %v30287_v14  ;;  %16167 = vmatpush1.bf16.msra.mxu0 %v23874_v23  ;;  %v23891_v14 = vld [vmem:[%s31129_s4 + $0xeac] ss:$16 sps:$4 sm:$0xff]   ;;  %v23960_v23 = vld [vmem:[%s31129_s4 + $0xf64] ss:$16 sps:$4 sm:$0xff]  }
0x1005   : > { %16196 = vmatpush1.bf16.msra.mxu1 %v23877_v6  ;;  %16168 = vmatprep.subr.bf16.mxu0 %v23882_v7  ;;  %v23949_v6 = vld [vmem:[%s31129_s4 + $0x1160] ss:$16 sps:$4 sm:$0xff]  }
0x1006   : > { %16197 = vmatprep.subr.bf16.mxu1 %v23885_v4  ;;  %16227 = vmatprep.mubr.bf16.mxu1 %v31139_v52  ;;  %v23958_v7 = vld [vmem:[%s31129_s4 + $0xf60] ss:$16 sps:$4 sm:$0xff]   ;;  %v23957_v4 = vld [vmem:[%s31129_s4 + $0x1144] ss:$16 sps:$4 sm:$0xff]  }
0x1008   : > { %16169 = vmatpush1.bf16.msra.mxu0 %v23880_v17  ;;  %v23964_v17 = vld [vmem:[%s31129_s4 + $0xf40] ss:$16 sps:$4 sm:$0xff]  }
0x1009   : > { %16198 = vmatpush1.bf16.msra.mxu1 %v23883_v37  ;;  %16170 = vmatprep.subr.bf16.mxu0 %v23888_v34  ;;  %v23966_v37 = vld [vmem:[%s31129_s4 + $0xf44] ss:$16 sps:$4 sm:$0xff]  }
0x100a   : > { %16199 = vmatprep.subr.bf16.mxu1 %v23891_v14  ;;  %v23972_v34 = vld [vmem:[%s31129_s4 + $0xf24] ss:$16 sps:$4 sm:$0xff]   ;;  %v23955_v14 = vld [vmem:[%s31129_s4 + $0x1140] ss:$16 sps:$4 sm:$0xff]  }
0x100c   : > { %16171 = vmatpush2.bf16.msra.mxu0 %v23886_v43  ;;  %v23963_v43 = vld [vmem:[%s31129_s4 + $0x1124] ss:$16 sps:$4 sm:$0xff]  }
0x100d   : > { %16200 = vmatpush1.bf16.msra.mxu1 %v23889_v27  ;;  %16172 = vmatprep.subr.bf16.mxu0 %v23894_v32  ;;  %v23970_v27 = vld [vmem:[%s31129_s4 + $0xf20] ss:$16 sps:$4 sm:$0xff]   ;;  %v23978_v32 = vld [vmem:[%s31129_s4 + $0xf04] ss:$16 sps:$4 sm:$0xff]  }
0x100e   : > { %16201 = vmatprep.subr.bf16.mxu1 %v23897_v42  ;;  %v23961_v42 = vld [vmem:[%s31129_s4 + $0x1120] ss:$16 sps:$4 sm:$0xff]  }
0x1010   : > { %16173 = vmatpush2.bf16.msra.mxu0 %v23892_v45  ;;  %v23969_v45 = vld [vmem:[%s31129_s4 + $0x1104] ss:$16 sps:$4 sm:$0xff]  }
0x1011   : > { %16202 = vmatpush1.bf16.msra.mxu1 %v23895_v39  ;;  %16174 = vmatprep.subr.bf16.mxu0 %v23900_v3  ;;  %v23976_v39 = vld [vmem:[%s31129_s4 + $0xf00] ss:$16 sps:$4 sm:$0xff]   ;;  %v23984_v3 = vld [vmem:[%s31129_s4 + $0x10e4] ss:$16 sps:$4 sm:$0xff]  }
0x1012   : > { %16203 = vmatprep.subr.bf16.mxu1 %v23903_v30  ;;  %v23967_v30 = vld [vmem:[%s31129_s4 + $0x1100] ss:$16 sps:$4 sm:$0xff]  }
0x1014   : > { %16175 = vmatpush2.bf16.msra.mxu0 %v23898_v44  ;;  %v23975_v44 = vld [vmem:[%s31129_s4 + $0x12e4] ss:$16 sps:$4 sm:$0xff]  }
0x1015   : > { %16204 = vmatpush1.bf16.msra.mxu1 %v23901_v19  ;;  %16176 = vmatprep.subr.bf16.mxu0 %v23906_v63  ;;  %v23982_v19 = vld [vmem:[%s31129_s4 + $0x10e0] ss:$16 sps:$4 sm:$0xff]   ;;  %v23990_v63 = vld [vmem:[%s31129_s4 + $0x10c4] ss:$16 sps:$4 sm:$0xff]  }
0x1016   : > { %16205 = vmatprep.subr.bf16.mxu1 %v23909_v13  ;;  %v23973_v13 = vld [vmem:[%s31129_s4 + $0x12e0] ss:$16 sps:$4 sm:$0xff]  }
0x1018   : > { %16177 = vmatpush2.bf16.msra.mxu0 %v23904_v8  ;;  %v23981_v8 = vld [vmem:[%s31129_s4 + $0x12c4] ss:$16 sps:$4 sm:$0xff]  }
0x1019   : > { %16206 = vmatpush1.bf16.msra.mxu1 %v23907_v18  ;;  %16178 = vmatprep.subr.bf16.mxu0 %v23912_v9  ;;  %v23988_v18 = vld [vmem:[%s31129_s4 + $0x10c0] ss:$16 sps:$4 sm:$0xff]   ;;  %v23996_v9 = vld [vmem:[%s31129_s4 + $0x10a4] ss:$16 sps:$4 sm:$0xff]  }
0x101a   : > { %16207 = vmatprep.subr.bf16.mxu1 %v23915_v62  ;;  %v23979_v62 = vld [vmem:[%s31129_s4 + $0x12c0] ss:$16 sps:$4 sm:$0xff]  }
0x101c   : > { %16179 = vmatpush2.bf16.msra.mxu0 %v23910_v26  ;;  %v23987_v26 = vld [vmem:[%s31129_s4 + $0x12a4] ss:$16 sps:$4 sm:$0xff]  }
0x101d   : > { %16208 = vmatpush1.bf16.msra.mxu1 %v23913_v10  ;;  %16180 = vmatprep.subr.bf16.mxu0 %v23918_v41  ;;  %v23994_v10 = vld [vmem:[%s31129_s4 + $0x10a0] ss:$16 sps:$4 sm:$0xff]  }
0x101e   : > { %16209 = vmatprep.subr.bf16.mxu1 %v23921_v55  ;;  %v23985_v41 = vld [vmem:[%s31129_s4 + $0x12a0] ss:$16 sps:$4 sm:$0xff]   ;;  %v23993_v55 = vld [vmem:[%s31129_s4 + $0x1284] ss:$16 sps:$4 sm:$0xff]  }
0x1020   : > { %16181 = vmatpush2.bf16.msra.mxu0 %v23916_v28  ;;  %v23991_v28 = vld [vmem:[%s31129_s4 + $0x1280] ss:$16 sps:$4 sm:$0xff]  }
0x1021   : > { %16210 = vmatpush1.bf16.msra.mxu1 %v23919_v54  ;;  %16182 = vmatprep.subr.bf16.mxu0 %v23924_v36  ;;  %v24000_v54 = vld [vmem:[%s31129_s4 + $0x1080] ss:$16 sps:$4 sm:$0xff]   ;;  %v23999_v36 = vld [vmem:[%s31129_s4 + $0x1264] ss:$16 sps:$4 sm:$0xff]  }
0x1022   : > { %20816 = vmatprep.subr.msk.bf16.mxu1 %vm12199_vm5, %v28972_v58  ;;  %v23934_v58 = vld [vmem:[%s31129_s4 + $0xfe0] ss:$16 sps:$4 sm:$0xff]  }
0x1024   : > { %16228 = vmatmul.mubr.bf16.vlgmr.msra.gmra.mxu1 %v30384_v46  ;;  %16183 = vmatpush2.bf16.msra.mxu0 %v23922_v0  ;;  %v23928_v46 = vld [vmem:[%s31129_s4 + $0x11e0] ss:$16 sps:$4 sm:$0xff]  }
0x1025   : > { %16306 = vmatpush1.bf16.msra.mxu1 %v28982_v60  ;;  %16184 = vmatprep.subr.bf16.mxu0 %v23927_v49  ;;  %v23940_v60 = vld [vmem:[%s31129_s4 + $0xfc0] ss:$16 sps:$4 sm:$0xff]  }
0x1026   : > { %16323 = vmatprep.mubr.bf16.mxu1 %v31139_v52  ;;  %v23997_v0 = vld [vmem:[%s31129_s4 + $0x1260] ss:$16 sps:$4 sm:$0xff]  }
0x1027   : > { %v24006_v49 = vld [vmem:[%s31129_s4 + $0x1060] ss:$16 sps:$4 sm:$0xff]  }
0x1028   : > { %16185 = vmatpush2.bf16.msra.mxu0 %v23925_v57  ;;  %v24005_v57 = vld [vmem:[%s31129_s4 + $0x1244] ss:$16 sps:$4 sm:$0xff]  }
0x1029   : > { %20814 = vmatprep.subr.msk.bf16.mxu0 %vm12199_vm5, %v28945_v1  ;;  %v23936_v1 = vld [vmem:[%s31129_s4 + $0xfe4] ss:$16 sps:$4 sm:$0xff]  }
0x102a   : > { %17338 = vmatprep.subr.bf16.mxu1 %v23936_v1  ;;  %v24020_v1 = vld [vmem:[%s31129_s4 + $0x1024] ss:$16 sps:$4 sm:$0xff]  }
0x102b   : > { %16187 = vmatmul.mubr.bf16.vlgmr.msra.gmra.mxu0 %v30264_v5  ;;  %v23948_v5 = vld [vmem:[%s31129_s4 + $0xfa4] ss:$16 sps:$4 sm:$0xff]  }
0x102c   : > { %20817 = vmatmul.mubr.msk.bf16.vlgmr.msra.gmra.mxu1 %vm12195_vm10, %v16246_v40  ;;  %16265 = vmatpush1.bf16.msra.mxu0 %v28950_v2  ;;  %v23942_v2 = vld [vmem:[%s31129_s4 + $0xfc4] ss:$16 sps:$4 sm:$0xff]  }
0x102d   : > { %16282 = vmatprep.mubr.bf16.mxu0 %v31139_v52  ;;  %21374 = vmatprep.subr.bf16.mxu0 %v31140_v59 }
0x102e   : > { %17339 = vmatpush1.bf16.msra.mxu1 %v23934_v58  ;;  %v24011_v58 = vld [vmem:[%s31129_s4 + $0x1224] ss:$16 sps:$4 sm:$0xff]  }
0x102f   : > { %17340 = vmatprep.subr.bf16.mxu1 %v23942_v2  ;;  %v24009_v2 = vld [vmem:[%s31129_s4 + $0x1220] ss:$16 sps:$4 sm:$0xff]  }
0x1032   : > { %17341 = vmatpush1.bf16.msra.mxu1 %v23940_v60  ;;  %v24018_v60 = vld [vmem:[%s31129_s4 + $0x1020] ss:$16 sps:$4 sm:$0xff]  }
0x1033   : > { %20815 = vmatmul.mubr.msk.bf16.vlgmr.msra.gmra.mxu0 %vm12195_vm10, %v16246_v40  ;;  %17342 = vmatprep.subr.bf16.mxu1 %v23948_v5  ;;  %v24017_v5 = vld [vmem:[%s31129_s4 + $0x1204] ss:$16 sps:$4 sm:$0xff]  }
0x1034   : > { %21375 = vmatpush3.bf16.msra.mxu0 %v28955_v35  ;;  %21376 = vmatprep.mubr.msk.bf16.mxu0 %vm24204_vm7, %v31140_v59  ;;  %v23933_v59 = vld [vmem:[%s31129_s4 + $0x11c4] ss:$16 sps:$4 sm:$0xff]   ;;  %v23946_v35 = vld [vmem:[%s31129_s4 + $0xfa0] ss:$16 sps:$4 sm:$0xff]  }
0x1035   : > { %17379 = vmatprep.subr.bf16.mxu0 %v23930_v25  ;;  %v24012_v25 = vld [vmem:[%s31129_s4 + $0x1040] ss:$16 sps:$4 sm:$0xff]  }
0x1036   : > { %17343 = vmatpush1.bf16.msra.mxu1 %v23946_v35  ;;  %v24026_v35 = vld [vmem:[%s31129_s4 + $0x1004] ss:$16 sps:$4 sm:$0xff]  }
0x1037   : > { %17344 = vmatprep.subr.bf16.mxu1 %v23954_v51 }
0x103a   : > { %17345 = vmatpush1.bf16.msra.mxu1 %v23952_v56 }
0x103b   : > { %21377 = vmatmul.mubr.msk.bf16.vlgmr.msra.gmra.mxu0 %vm12195_vm10, %v16246_v40  ;;  %17346 = vmatprep.subr.bf16.mxu1 %v23960_v23  ;;  %v24003_v40 = vld [vmem:[%s31129_s4 + $0x1240] ss:$16 sps:$4 sm:$0xff]  }
0x103c   : > { %17380 = vmatpush1.bf16.msra.mxu0 %v23928_v46  ;;  %v24015_v46 = vld [vmem:[%s31129_s4 + $0x1200] ss:$16 sps:$4 sm:$0xff]  }
0x103d   : > { %17381 = vmatprep.subr.bf16.mxu0 %v23933_v59  ;;  %v24024_v59 = vld [vmem:[%s31129_s4 + $0x1000] ss:$16 sps:$4 sm:$0xff]  }
0x103e   : > { %17347 = vmatpush1.bf16.msra.mxu1 %v23958_v7 }
0x103f   : > { %17348 = vmatprep.subr.bf16.mxu1 %v23966_v37 }
0x1040   : > { %17382 = vmatpush1.bf16.msra.mxu0 %v23931_v16  ;;  %v24023_v16 = vld [vmem:[%s31129_s4 + $0xfec] ss:$16 sps:$4 sm:$0xff]  }
0x1041   : > { %17383 = vmatprep.subr.bf16.mxu0 %v23939_v29  ;;  %v24032_v29 = vld [vmem:[%s31129_s4 + $0x13e4] ss:$16 sps:$4 sm:$0xff]  }
0x1042   : > { %17349 = vmatpush1.bf16.msra.mxu1 %v23964_v17 }
0x1043   : > { %17350 = vmatprep.subr.bf16.mxu1 %v23972_v34 }
0x1044   : > { %17384 = vmatpush1.bf16.msra.mxu0 %v23937_v38 }
0x1045   : > { %17385 = vmatprep.subr.bf16.mxu0 %v23945_v15 }
0x1046   : > { %17351 = vmatpush1.bf16.msra.mxu1 %v23970_v27 }
0x1047   : > { %17352 = vmatprep.subr.bf16.mxu1 %v23978_v32 }
0x1048   : > { %17386 = vmatpush1.bf16.msra.mxu0 %v23943_v31 }
0x1049   : > { %17387 = vmatprep.subr.bf16.mxu0 %v23951_v24 }
0x104a   : > { %17353 = vmatpush1.bf16.msra.mxu1 %v23976_v39 }
0x104b   : > { %17354 = vmatprep.subr.bf16.mxu1 %v23984_v3 }
0x104c   : > { %17388 = vmatpush1.bf16.msra.mxu0 %v23949_v6 }
0x104d   : > { %17389 = vmatprep.subr.bf16.mxu0 %v23957_v4 }
0x104e   : > { %17355 = vmatpush2.bf16.msra.mxu1 %v23982_v19 }
0x104f   : > { %17356 = vmatprep.subr.bf16.mxu1 %v23990_v63 }
0x1050   : > { %17390 = vmatpush1.bf16.msra.mxu0 %v23955_v14 }
0x1051   : > { %17391 = vmatprep.subr.bf16.mxu0 %v23963_v43 }
0x1052   : > { %17357 = vmatpush2.bf16.msra.mxu1 %v23988_v18 }
0x1053   : > { %17358 = vmatprep.subr.bf16.mxu1 %v23996_v9 }
0x1054   : > { %17392 = vmatpush1.bf16.msra.mxu0 %v23961_v42 }
0x1055   : > { %17393 = vmatprep.subr.bf16.mxu0 %v23969_v45 }
0x1056   : > { %17359 = vmatpush2.bf16.msra.mxu1 %v23994_v10 }
0x1057   : > { %17360 = vmatprep.subr.bf16.mxu1 %v24002_v20  ;;  %v24021_v20 = vld [vmem:[%s31129_s4 + $0xfe8] ss:$16 sps:$4 sm:$0xff]  }
0x1058   : > { %17394 = vmatpush1.bf16.msra.mxu0 %v23967_v30 }
0x1059   : > { %17395 = vmatprep.subr.bf16.mxu0 %v23975_v44 }
0x105a   : > { %17361 = vmatpush2.bf16.msra.mxu1 %v24000_v54 }
0x105b   : > { %17362 = vmatprep.subr.bf16.mxu1 %v24008_v48 }
0x105c   : > { %17396 = vmatpush2.bf16.msra.mxu0 %v23973_v13 }
0x105d   : > { %17397 = vmatprep.subr.bf16.mxu0 %v23981_v8 }
0x105e   : > { %17363 = vmatpush2.bf16.msra.mxu1 %v24006_v49 }
0x105f   : > { %17364 = vmatprep.subr.bf16.mxu1 %v24014_v50 }
0x1060   : > { %17398 = vmatpush2.bf16.msra.mxu0 %v23979_v62 }
0x1061   : > { %17399 = vmatprep.subr.bf16.mxu0 %v23987_v26 }
0x1062   : > { %17365 = vmatpush2.bf16.msra.mxu1 %v24012_v25 }
0x1063   : > { %17366 = vmatprep.subr.bf16.mxu1 %v24020_v1 }
0x1064   : > { %17400 = vmatpush2.bf16.msra.mxu0 %v23985_v41 }
0x1065   : > { %17401 = vmatprep.subr.bf16.mxu0 %v23993_v55 }
0x1066   : > { %17367 = vmatpush2.bf16.msra.mxu1 %v24018_v60  ;;  %v24033_v60 = vld [vmem:[%s31129_s4 + $0xfa8] ss:$16 sps:$4 sm:$0xff]  }
0x1067   : > { %17368 = vmatprep.subr.bf16.mxu1 %v24026_v35  ;;  %v24036_v35 = vld [vmem:[%s31129_s4 + $0x13c0] ss:$16 sps:$4 sm:$0xff]  }
0x1068   : > { %17402 = vmatpush2.bf16.msra.mxu0 %v23991_v28 }
0x1069   : > { %17403 = vmatprep.subr.bf16.mxu0 %v23999_v36  ;;  %v24029_v36 = vld [vmem:[%s31129_s4 + $0xfcc] ss:$16 sps:$4 sm:$0xff]  }
0x106a   : > { %17369 = vmatpush2.bf16.msra.mxu1 %v24024_v59 }
0x106b   : > { %17420 = vmatprep.subr.bf16.mxu1 %v24032_v29  ;;  %v24044_v29 = vld [vmem:[%s31129_s4 + $0x13a4] ss:$16 sps:$4 sm:$0xff]  }
0x106c   : > { %17404 = vmatpush2.bf16.msra.mxu0 %v23997_v0 }
0x106d   : > { %17405 = vmatprep.subr.bf16.mxu0 %v24005_v57 }
0x1070   : > { %17406 = vmatpush2.bf16.msra.mxu0 %v24003_v40  ;;  %v24035_v40 = vld [vmem:[%s31129_s4 + $0xfac] ss:$16 sps:$4 sm:$0xff]  }
0x1071   : > { %17407 = vmatprep.subr.bf16.mxu0 %v24011_v58 }
0x1074   : > { %17408 = vmatpush2.bf16.msra.mxu0 %v24009_v2 }
0x1075   : > { %17409 = vmatprep.subr.bf16.mxu0 %v24017_v5  ;;  %v24038_v5 = vld [vmem:[%s31129_s4 + $0x13c4] ss:$16 sps:$4 sm:$0xff]  }
0x1078   : > { %17410 = vmatpush2.bf16.msra.mxu0 %v24015_v46  ;;  %v24041_v46 = vld [vmem:[%s31129_s4 + $0xf8c] ss:$16 sps:$4 sm:$0xff]  }
0x1079   : > { %17461 = vmatprep.subr.bf16.mxu0 %v24023_v16  ;;  %v24039_v16 = vld [vmem:[%s31129_s4 + $0xf88] ss:$16 sps:$4 sm:$0xff]  }
0x1084   : > { %v16065_v38 = vpop.f32.mrf.mxu1 }
0x1086   : > { %v16067_v15 = vpop.f32.mrf.mxu1 }
0x1088   : > { %v16069_v51 = vpop.f32.mrf.mxu1 }
0x108a   : > { %v16070_v31 = vpop.f32.mrf.mxu1 }
0x108b   : > { %v16024_v56 = vpop.f32.mrf.mxu0  ;;  %v24042_v31 = vld [vmem:[%s31129_s4 + $0x13a0] ss:$16 sps:$4 sm:$0xff]  }
0x108c   : > { %v16066_v24 = vadd.f32 %v16065_v38, %v16024_v56  ;;  %v24045_v56 = vld [vmem:[%s31129_s4 + $0xf68] ss:$16 sps:$4 sm:$0xff]  }
0x108d   : > { %v16026_v23 = vpop.f32.mrf.mxu0 }
0x108e   : > { %v16068_v6 = vadd.f32 %v16067_v15, %v16026_v23  ;;  %v24047_v15 = vld [vmem:[%s31129_s4 + $0xf6c] ss:$16 sps:$4 sm:$0xff]  }
0x108f   : > { %v16028_v7 = vpop.f32.mrf.mxu0 }
0x1091   : > { %v16029_v4 = vpop.f32.mrf.mxu0 }
0x1092   : > { %v24048_v4 = vld [vmem:[%s31129_s4 + $0x1380] ss:$16 sps:$4 sm:$0xff]  }
0x10ab   : > { %v16106_v17 = vpop.f32.mrf.mxu0 }
0x10ac   : > { %v16107_v37 = vadd.f32 %v16106_v17, %v16066_v24  ;;  %v24050_v24 = vld [vmem:[%s31129_s4 + $0x1384] ss:$16 sps:$4 sm:$0xff]   ;;  %v24051_v17 = vld [vmem:[%s31129_s4 + $0xf48] ss:$16 sps:$4 sm:$0xff]  }
0x10ad   : > { %v16108_v34 = vpop.f32.mrf.mxu0 }
0x10ae   : > { %v30786_v14 = vadd.f32 %v16107_v37, %v30256_v33  ;;  %v16109_v43 = vadd.f32 %v16108_v34, %v16068_v6  ;;  %v24053_v6 = vld [vmem:[%s31129_s4 + $0xf4c] ss:$16 sps:$4 sm:$0xff]   ;;  %v24056_v37 = vld [vmem:[%s31129_s4 + $0x1364] ss:$16 sps:$4 sm:$0xff]  }
0x10af   : > { %v16110_v27 = vpop.f32.mrf.mxu0  ;;  %v24059_v34 = vld [vmem:[%s31129_s4 + $0xf2c] ss:$16 sps:$4 sm:$0xff]  }
0x10b0   : > { %v30789_v32 = vadd.f32 %v16109_v43, %v30258_v22  ;;  %v24054_v43 = vld [vmem:[%s31129_s4 + $0x1360] ss:$16 sps:$4 sm:$0xff]   ;;  %v24057_v27 = vld [vmem:[%s31129_s4 + $0xf28] ss:$16 sps:$4 sm:$0xff]  }
0x10b1   : > { %v16111_v42 = vpop.f32.mrf.mxu0 }
0x10b2   : > { %v24062_v42 = vld [vmem:[%s31129_s4 + $0x1344] ss:$16 sps:$4 sm:$0xff]  }
0x10c4   : > { %v16147_v45 = vpop.f32.mrf.mxu1 }
0x10c6   : > { %v16149_v39 = vpop.f32.mrf.mxu1 }
0x10c8   : > { %v16151_v3 = vpop.f32.mrf.mxu1 }
0x10c9   : > { %v24063_v3 = vld [vmem:[%s31129_s4 + $0xf08] ss:$16 sps:$4 sm:$0xff]  }
0x10ca   : > { %v16152_v30 = vpop.f32.mrf.mxu1 }
0x10cb   : > { %v24068_v30 = vld [vmem:[%s31129_s4 + $0x1324] ss:$16 sps:$4 sm:$0xff]  }
0x10e4   : > { %v16229_v44 = vpop.f32.mrf.mxu1 }
0x10e6   : > { %v16231_v19 = vpop.f32.mrf.mxu1 }
0x10e8   : > { %v16233_v63 = vpop.f32.mrf.mxu1 }
0x10e9   : > { %v24069_v63 = vld [vmem:[%s31129_s4 + $0x10e8] ss:$16 sps:$4 sm:$0xff]  }
0x10ea   : > { %v16234_v13 = vpop.f32.mrf.mxu1 }
0x10eb   : > { %v16188_v8 = vpop.f32.mrf.mxu0  ;;  %v24074_v13 = vld [vmem:[%s31129_s4 + $0x1304] ss:$16 sps:$4 sm:$0xff]  }
0x10ec   : > { %v16189_v18 = vadd.f32 %v16188_v8, %v16147_v45  ;;  %v16325_v9 = vpop.f32.mrf.mxu1  ;;  %v24065_v45 = vld [vmem:[%s31129_s4 + $0xf0c] ss:$16 sps:$4 sm:$0xff]  }
0x10ed   : > { %v16190_v62 = vpop.f32.mrf.mxu0  ;;  %v30791_v26 = vpack.c.bf16 %v16325_v9, %v16325_v9  ;;  %v24077_v8 = vld [vmem:[%s31129_s4 + $0x10cc] ss:$16 sps:$4 sm:$0xff]   ;;  %v24075_v9 = vld [vmem:[%s31129_s4 + $0x10c8] ss:$16 sps:$4 sm:$0xff]  }
0x10ee   : > { %v16230_v33 = vadd.f32 %v16229_v44, %v16189_v18  ;;  %v16191_v10 = vadd.f32 %v16190_v62, %v16149_v39  ;;  %v16327_v41 = vpop.f32.mrf.mxu1  ;;  %v24060_v39 = vld [vmem:[%s31129_s4 + $0x1340] ss:$16 sps:$4 sm:$0xff]   ;;  %v24071_v44 = vld [vmem:[%s31129_s4 + $0x10ec] ss:$16 sps:$4 sm:$0xff]  }
0x10ef   : > { %v30793_v22 = vpack.c.bf16 %v16327_v41, %v16327_v41  ;;  %v16192_v55 = vpop.f32.mrf.mxu0  ;;  %v24072_v18 = vld [vmem:[%s31129_s4 + $0x1300] ss:$16 sps:$4 sm:$0xff]   ;;  %v24083_v62 = vld [vmem:[%s31129_s4 + $0x11ec] ss:$16 sps:$4 sm:$0xff]   ;;  %v24081_v41 = vld [vmem:[%s31129_s4 + $0x11e8] ss:$16 sps:$4 sm:$0xff]  }
0x10f0   : > { %v30799_v28 = vadd.f32 %v16230_v33, %v30262_v11  ;;  %v16232_v54 = vadd.f32 %v16231_v19, %v16191_v10  ;;  %v16329_v48 = vpop.f32.mrf.mxu1  ;;  %v24027_v11 = vld [vmem:[%s31129_s4 + $0xfc8] ss:$16 sps:$4 sm:$0xff]   ;;  %v24066_v19 = vld [vmem:[%s31129_s4 + $0x1320] ss:$16 sps:$4 sm:$0xff]   ;;  %v24080_v33 = vld [vmem:[%s31129_s4 + $0x10ac] ss:$16 sps:$4 sm:$0xff]  }
0x10f1   : > { %17411 = vmatprep.mubr.bf16.mxu0 %v30793_v22  ;;  %v16193_v0 = vpop.f32.mrf.mxu0  ;;  %v24078_v55 = vld [vmem:[%s31129_s4 + $0x10a8] ss:$16 sps:$4 sm:$0xff]  }
0x10f2   : > { %v30806_v49 = vadd.f32 %v16232_v54, %v30271_v61  ;;  %17412 = vmatmul.mubr.bf16.vlgmr.msra.gmra.mxu0 %v30791_v26  ;;  %v16330_v57 = vpop.f32.mrf.mxu1  ;;  %v24030_v61 = vld [vmem:[%s31129_s4 + $0x13e0] ss:$16 sps:$4 sm:$0xff]   ;;  %v24086_v54 = vld [vmem:[%s31129_s4 + $0x108c] ss:$16 sps:$4 sm:$0xff]   ;;  %v24084_v48 = vld [vmem:[%s31129_s4 + $0x1088] ss:$16 sps:$4 sm:$0xff]  }
0x10f3   : > { %17462 = vmatpush1.bf16.msra.mxu0 %v24021_v20  ;;  %v16284_v50 = vpop.f32.mrf.mxu0  ;;  %v24089_v20 = vld [vmem:[%s31129_s4 + $0x11cc] ss:$16 sps:$4 sm:$0xff]  }
0x10f4   : > { %17463 = vmatprep.subr.bf16.mxu0 %v24029_v36  ;;  %v30818_v1 = vpack.c.bf16 %v16284_v50, %v16284_v50  ;;  %v24087_v36 = vld [vmem:[%s31129_s4 + $0x11c8] ss:$16 sps:$4 sm:$0xff]   ;;  %v24095_v0 = vld [vmem:[%s31129_s4 + $0x11ac] ss:$16 sps:$4 sm:$0xff]  }
0x10f5   : > { %v16286_v25 = vpop.f32.mrf.mxu0  ;;  %v24092_v57 = vld [vmem:[%s31129_s4 + $0x106c] ss:$16 sps:$4 sm:$0xff]   ;;  %v24090_v50 = vld [vmem:[%s31129_s4 + $0x1068] ss:$16 sps:$4 sm:$0xff]  }
0x10f6   : > { %v16373_v58 = vpack.c.bf16 %v16286_v25, %v16286_v25  ;;  %v24099_v25 = vld [vmem:[%s31129_s4 + $0x1188] ss:$16 sps:$4 sm:$0xff]  }
0x10f7   : > { %17464 = vmatpush1.bf16.msra.mxu0 %v24027_v11  ;;  %v16288_v2 = vpop.f32.mrf.mxu0  ;;  %v24101_v11 = vld [vmem:[%s31129_s4 + $0x118c] ss:$16 sps:$4 sm:$0xff]  }
0x10f8   : > { %17370 = vmatprep.mubr.bf16.mxu1 %v16373_v58  ;;  %17465 = vmatprep.subr.bf16.mxu0 %v24035_v40  ;;  %v24098_v40 = vld [vmem:[%s31129_s4 + $0x104c] ss:$16 sps:$4 sm:$0xff]  }
0x10f9   : > { %v16289_v59 = vpop.f32.mrf.mxu0  ;;  %17371 = vmatmul.mubr.bf16.vlgmr.msra.gmra.mxu1 %v30818_v1  ;;  %17493 = vmatprep.mubr.bf16.mxu0 %v16373_v58  ;;  %v24096_v58 = vld [vmem:[%s31129_s4 + $0x1048] ss:$16 sps:$4 sm:$0xff]   ;;  %v24104_v2 = vld [vmem:[%s31129_s4 + $0x102c] ss:$16 sps:$4 sm:$0xff]  }
0x10fa   : > { %17421 = vmatpush1.bf16.msra.mxu1 %v24030_v61  ;;  %17452 = vmatprep.mubr.bf16.mxu1 %v31139_v52  ;;  %v24107_v61 = vld [vmem:[%s31129_s4 + $0x116c] ss:$16 sps:$4 sm:$0xff]  }
0x10fb   : > { %17466 = vmatpush1.bf16.msra.mxu0 %v24033_v60  ;;  %17422 = vmatprep.subr.bf16.mxu1 %v24038_v5  ;;  %v16366_v38 = vpop.f32.mrf.mxu0  ;;  %v24105_v60 = vld [vmem:[%s31129_s4 + $0x1168] ss:$16 sps:$4 sm:$0xff]   ;;  %v24110_v59 = vld [vmem:[%s31129_s4 + $0x100c] ss:$16 sps:$4 sm:$0xff]  }
0x10fc   : > { %17467 = vmatprep.subr.bf16.mxu0 %v24041_v46  ;;  %v30915_v10 = vpack.c.bf16 %v16366_v38, %v16366_v38  ;;  %v24102_v5 = vld [vmem:[%s31129_s4 + $0x1028] ss:$16 sps:$4 sm:$0xff]   ;;  %v24113_v46 = vld [vmem:[%s31129_s4 + $0x114c] ss:$16 sps:$4 sm:$0xff]  }
0x10fd   : > { %v21378_v51 = vpop.f32.mrf.mxu0  ;;  %v24119_v38 = vld [vmem:[%s31129_s4 + $0x13ec] ss:$16 sps:$4 sm:$0xff]  }
0x10fe   : > { %17423 = vmatpush1.bf16.msra.mxu1 %v24036_v35  ;;  %v24111_v35 = vld [vmem:[%s31129_s4 + $0x1148] ss:$16 sps:$4 sm:$0xff]  }
0x10ff   : > { %17468 = vmatpush1.bf16.msra.mxu0 %v24039_v16  ;;  %17424 = vmatprep.subr.bf16.mxu1 %v24044_v29  ;;  %v16369_v23 = vpop.f32.mrf.mxu0  ;;  %v24108_v16 = vld [vmem:[%s31129_s4 + $0x1008] ss:$16 sps:$4 sm:$0xff]   ;;  %v24116_v29 = vld [vmem:[%s31129_s4 + $0x112c] ss:$16 sps:$4 sm:$0xff]  }
0x1100   : > { %17469 = vmatprep.subr.bf16.mxu0 %v24047_v15  ;;  %v24114_v15 = vld [vmem:[%s31129_s4 + $0x1128] ss:$16 sps:$4 sm:$0xff]  }
0x1101   : > { %v21379_v7 = vpop.f32.mrf.mxu0  ;;  %v24117_v51 = vld [vmem:[%s31129_s4 + $0x13e8] ss:$16 sps:$4 sm:$0xff]  }
0x1102   : > { %17425 = vmatpush1.bf16.msra.mxu1 %v24042_v31  ;;  %v24122_v31 = vld [vmem:[%s31129_s4 + $0x110c] ss:$16 sps:$4 sm:$0xff]   ;;  %v24123_v23 = vld [vmem:[%s31129_s4 + $0x13c8] ss:$16 sps:$4 sm:$0xff]  }
0x1103   : > { %17470 = vmatpush1.bf16.msra.mxu0 %v24045_v56  ;;  %17426 = vmatprep.subr.bf16.mxu1 %v24050_v24  ;;  %v24125_v56 = vld [vmem:[%s31129_s4 + $0x13cc] ss:$16 sps:$4 sm:$0xff]   ;;  %v24120_v24 = vld [vmem:[%s31129_s4 + $0x1108] ss:$16 sps:$4 sm:$0xff]  }
0x1104   : > { %17471 = vmatprep.subr.bf16.mxu0 %v24053_v6  ;;  %v24128_v6 = vld [vmem:[%s31129_s4 + $0x12ec] ss:$16 sps:$4 sm:$0xff]   ;;  %v24126_v7 = vld [vmem:[%s31129_s4 + $0x12e8] ss:$16 sps:$4 sm:$0xff]  }
0x1106   : > { %17427 = vmatpush1.bf16.msra.mxu1 %v24048_v4  ;;  %v24129_v4 = vld [vmem:[%s31129_s4 + $0x13a8] ss:$16 sps:$4 sm:$0xff]  }
0x1107   : > { %17472 = vmatpush1.bf16.msra.mxu0 %v24051_v17  ;;  %17428 = vmatprep.subr.bf16.mxu1 %v24056_v37  ;;  %v24134_v17 = vld [vmem:[%s31129_s4 + $0x12cc] ss:$16 sps:$4 sm:$0xff]   ;;  %v24132_v37 = vld [vmem:[%s31129_s4 + $0x12c8] ss:$16 sps:$4 sm:$0xff]  }
0x1108   : > { %17473 = vmatprep.subr.bf16.mxu0 %v24059_v34  ;;  %v24135_v34 = vld [vmem:[%s31129_s4 + $0x1388] ss:$16 sps:$4 sm:$0xff]  }
0x110a   : > { %17429 = vmatpush1.bf16.msra.mxu1 %v24054_v43  ;;  %v24140_v43 = vld [vmem:[%s31129_s4 + $0x12ac] ss:$16 sps:$4 sm:$0xff]  }
0x110b   : > { %17474 = vmatpush1.bf16.msra.mxu0 %v24057_v27  ;;  %17430 = vmatprep.subr.bf16.mxu1 %v24062_v42  ;;  %v24143_v27 = vld [vmem:[%s31129_s4 + $0x136c] ss:$16 sps:$4 sm:$0xff]   ;;  %v24138_v42 = vld [vmem:[%s31129_s4 + $0x12a8] ss:$16 sps:$4 sm:$0xff]  }
0x110c   : > { %17475 = vmatprep.subr.bf16.mxu0 %v24065_v45  ;;  %v24141_v45 = vld [vmem:[%s31129_s4 + $0x1368] ss:$16 sps:$4 sm:$0xff]  }
0x110e   : > { %17431 = vmatpush1.bf16.msra.mxu1 %v24060_v39  ;;  %v24146_v39 = vld [vmem:[%s31129_s4 + $0x128c] ss:$16 sps:$4 sm:$0xff]  }
0x110f   : > { %17476 = vmatpush1.bf16.msra.mxu0 %v24063_v3  ;;  %17432 = vmatprep.subr.bf16.mxu1 %v24068_v30  ;;  %v24149_v3 = vld [vmem:[%s31129_s4 + $0x134c] ss:$16 sps:$4 sm:$0xff]   ;;  %v24144_v30 = vld [vmem:[%s31129_s4 + $0x1288] ss:$16 sps:$4 sm:$0xff]  }
0x1110   : > { %17477 = vmatprep.subr.bf16.mxu0 %v24071_v44  ;;  %v24147_v44 = vld [vmem:[%s31129_s4 + $0x1348] ss:$16 sps:$4 sm:$0xff]  }
0x1112   : > { %17433 = vmatpush1.bf16.msra.mxu1 %v24066_v19  ;;  %v24152_v19 = vld [vmem:[%s31129_s4 + $0x126c] ss:$16 sps:$4 sm:$0xff]  }
0x1113   : > { %17478 = vmatpush2.bf16.msra.mxu0 %v24069_v63  ;;  %17434 = vmatprep.subr.bf16.mxu1 %v24074_v13  ;;  %v24155_v63 = vld [vmem:[%s31129_s4 + $0x132c] ss:$16 sps:$4 sm:$0xff]   ;;  %v24150_v13 = vld [vmem:[%s31129_s4 + $0x1268] ss:$16 sps:$4 sm:$0xff]  }
0x1114   : > { %17479 = vmatprep.subr.bf16.mxu0 %v24077_v8  ;;  %v24153_v8 = vld [vmem:[%s31129_s4 + $0x1328] ss:$16 sps:$4 sm:$0xff]  }
0x1116   : > { %17435 = vmatpush1.bf16.msra.mxu1 %v24072_v18  ;;  %v24158_v18 = vld [vmem:[%s31129_s4 + $0x124c] ss:$16 sps:$4 sm:$0xff]  }
0x1117   : > { %17480 = vmatpush2.bf16.msra.mxu0 %v24075_v9  ;;  %17502 = vmatprep.subr.bf16.mxu1 %v24083_v62  ;;  %v24161_v9 = vld [vmem:[%s31129_s4 + $0x130c] ss:$16 sps:$4 sm:$0xff]   ;;  %v24156_v62 = vld [vmem:[%s31129_s4 + $0x1248] ss:$16 sps:$4 sm:$0xff]  }
0x1118   : > { %17481 = vmatprep.subr.bf16.mxu0 %v24080_v33  ;;  %v24159_v33 = vld [vmem:[%s31129_s4 + $0x1308] ss:$16 sps:$4 sm:$0xff]  }
0x1119   : > { %17453 = vmatmul.mubr.bf16.vlgmr.msra.gmra.mxu1 %v30915_v10 }
0x111a   : > { %17503 = vmatpush1.bf16.msra.mxu1 %v24081_v41  ;;  %17534 = vmatprep.mubr.bf16.mxu1 %v30793_v22  ;;  %v24093_v22 = vld [vmem:[%s31129_s4 + $0x11a8] ss:$16 sps:$4 sm:$0xff]   ;;  %v24164_v41 = vld [vmem:[%s31129_s4 + $0x122c] ss:$16 sps:$4 sm:$0xff]  }
0x111b   : > { %17482 = vmatpush2.bf16.msra.mxu0 %v24078_v55  ;;  %17504 = vmatprep.subr.bf16.mxu1 %v24089_v20  ;;  %v24162_v55 = vld [vmem:[%s31129_s4 + $0x1228] ss:$16 sps:$4 sm:$0xff]   ;;  %v24167_v20 = vld [vmem:[%s31129_s4 + $0x120c] ss:$16 sps:$4 sm:$0xff]  }
0x111c   : > { %17483 = vmatprep.subr.bf16.mxu0 %v24086_v54  ;;  %v24165_v54 = vld [vmem:[%s31129_s4 + $0x1208] ss:$16 sps:$4 sm:$0xff]  }
0x111e   : > { %17505 = vmatpush1.bf16.msra.mxu1 %v24087_v36 }
0x111f   : > { %17484 = vmatpush2.bf16.msra.mxu0 %v24084_v48  ;;  %17506 = vmatprep.subr.bf16.mxu1 %v24095_v0 }
0x1120   : > { %17485 = vmatprep.subr.bf16.mxu0 %v24092_v57 }
0x1122   : > { %17507 = vmatpush1.bf16.msra.mxu1 %v24093_v22 }
0x1123   : > { %17486 = vmatpush2.bf16.msra.mxu0 %v24090_v50  ;;  %17508 = vmatprep.subr.bf16.mxu1 %v24101_v11 }
0x1124   : > { %17487 = vmatprep.subr.bf16.mxu0 %v24098_v40 }
0x1126   : > { %17509 = vmatpush1.bf16.msra.mxu1 %v24099_v25 }
0x1127   : > { %17488 = vmatpush2.bf16.msra.mxu0 %v24096_v58  ;;  %17510 = vmatprep.subr.bf16.mxu1 %v24107_v61 }
0x1128   : > { %17489 = vmatprep.subr.bf16.mxu0 %v24104_v2 }
0x112a   : > { %17511 = vmatpush1.bf16.msra.mxu1 %v24105_v60 }
0x112b   : > { %17490 = vmatpush2.bf16.msra.mxu0 %v24102_v5  ;;  %17512 = vmatprep.subr.bf16.mxu1 %v24113_v46 }
0x112c   : > { %17491 = vmatprep.subr.bf16.mxu0 %v24110_v59 }
0x112e   : > { %17513 = vmatpush1.bf16.msra.mxu1 %v24111_v35 }
0x112f   : > { %17492 = vmatpush2.bf16.msra.mxu0 %v24108_v16  ;;  %17514 = vmatprep.subr.bf16.mxu1 %v24116_v29 }
0x1130   : > { %17543 = vmatprep.subr.bf16.mxu0 %v24119_v38  ;;  %v17625_v38 = vld [vmem:[%s31130_s5] sm:$0xff] }
0x1132   : > { %17494 = vmatmul.mubr.bf16.vlgmr.msra.gmra.mxu0 %v30818_v1  ;;  %17515 = vmatpush1.bf16.msra.mxu1 %v24114_v15  ;;  %v24131_v1 = vld [vmem:[%s31129_s4 + $0x13ac] ss:$16 sps:$4 sm:$0xff]  }
0x1133   : > { %17544 = vmatpush1.bf16.msra.mxu0 %v24117_v51  ;;  %17516 = vmatprep.subr.bf16.mxu1 %v24122_v31 }
0x1134   : > { %17545 = vmatprep.subr.bf16.mxu0 %v24125_v56  ;;  %17575 = vmatprep.mubr.bf16.mxu0 %v31139_v52  ;;  %v24137_v52 = vld [vmem:[%s31129_s4 + $0x138c] ss:$16 sps:$4 sm:$0xff]   ;;  %v17629_v56 = vcombine.high %v17625_v38, %v17625_v38 }
0x1136   : > { %17517 = vmatpush1.bf16.msra.mxu1 %v24120_v24 }
0x1137   : > { %17546 = vmatpush1.bf16.msra.mxu0 %v24123_v23  ;;  %17518 = vmatprep.subr.bf16.mxu1 %v24128_v6 }
0x1138   : > { %17547 = vmatprep.subr.bf16.mxu0 %v24131_v1 }
0x113a   : > { %17519 = vmatpush2.bf16.msra.mxu1 %v24126_v7 }
0x113b   : > { %17548 = vmatpush1.bf16.msra.mxu0 %v24129_v4  ;;  %17520 = vmatprep.subr.bf16.mxu1 %v24134_v17 }
0x113c   : > { %17549 = vmatprep.subr.bf16.mxu0 %v24137_v52 }
0x113e   : > { %17521 = vmatpush2.bf16.msra.mxu1 %v24132_v37 }
0x113f   : > { %17550 = vmatpush1.bf16.msra.mxu0 %v24135_v34  ;;  %17522 = vmatprep.subr.bf16.mxu1 %v24140_v43 }
0x1140   : > { %17551 = vmatprep.subr.bf16.mxu0 %v24143_v27 }
0x1142   : > { %17523 = vmatpush2.bf16.msra.mxu1 %v24138_v42 }
0x1143   : > { %17552 = vmatpush1.bf16.msra.mxu0 %v24141_v45  ;;  %17524 = vmatprep.subr.bf16.mxu1 %v24146_v39 }
0x1144   : > { %17553 = vmatprep.subr.bf16.mxu0 %v24149_v3 }
0x1146   : > { %17525 = vmatpush2.bf16.msra.mxu1 %v24144_v30 }
0x1147   : > { %17554 = vmatpush1.bf16.msra.mxu0 %v24147_v44  ;;  %17526 = vmatprep.subr.bf16.mxu1 %v24152_v19 }
0x1148   : > { %17555 = vmatprep.subr.bf16.mxu0 %v24155_v63 }
0x114a   : > { %17527 = vmatpush2.bf16.msra.mxu1 %v24150_v13 }
0x114b   : > { %17556 = vmatpush1.bf16.msra.mxu0 %v24153_v8  ;;  %17528 = vmatprep.subr.bf16.mxu1 %v24158_v18 }
0x114c   : > { %17557 = vmatprep.subr.bf16.mxu0 %v24161_v9 }
0x114e   : > { %17529 = vmatpush2.bf16.msra.mxu1 %v24156_v62 }
0x114f   : > { %17558 = vmatpush1.bf16.msra.mxu0 %v24159_v33  ;;  %17530 = vmatprep.subr.bf16.mxu1 %v24164_v41  ;;  %v17626_v33 = vld [vmem:[%s31130_s5 + $0x8] sm:$0xff] }
0x1152   : > { %17576 = vmatmul.mubr.bf16.vlgmr.msra.gmra.mxu0 %v30915_v10  ;;  %17531 = vmatpush2.bf16.msra.mxu1 %v24162_v55  ;;  %v19989_v10 = vld [vmem:[%s31131_s6 + $0x3] ss:$4 sm:$0xf] }
0x1153   : > { %17532 = vmatprep.subr.bf16.mxu1 %v24167_v20  ;;  %v17592_v60 = vrot.slane %v19989_v10, %v24872_v47  ;;  %v17596_v59 = vrot.slane %v19989_v10, %v24883_v21  ;;  %v17600_v30 = vrot.slane %v19989_v10, %v24875_v53  ;;  %v17604_v8 = vrot.slane %v19989_v10, %v24886_v12 }
0x1154   : > { %v17630_v20 = vcombine.high %v17626_v33, %v17626_v33 }
0x1156   : > { %17533 = vmatpush2.bf16.msra.mxu1 %v24165_v54 }
0x1159   : > { %17535 = vmatmul.mubr.bf16.vlgmr.msra.gmra.mxu1 %v30791_v26 }
0x11b2   : > { %v17413_v36 = vpop.f32.mrf.mxu0 }
0x11b4   : > { %v17415_v48 = vpop.f32.mrf.mxu0 }
0x11b6   : > { %v17417_v0 = vpop.f32.mrf.mxu0 }
0x11b8   : > { %v17418_v57 = vpop.f32.mrf.mxu0 }
0x11b9   : > { %v17372_v22 = vpop.f32.mrf.mxu1 }
0x11ba   : > { %v17414_v50 = vadd.f32 %v17413_v36, %v17372_v22 }
0x11bb   : > { %v17374_v11 = vpop.f32.mrf.mxu1 }
0x11bc   : > { %v17416_v40 = vadd.f32 %v17415_v48, %v17374_v11 }
0x11bd   : > { %v17376_v25 = vpop.f32.mrf.mxu1 }
0x11bf   : > { %v17377_v58 = vpop.f32.mrf.mxu1 }
0x11d9   : > { %v17454_v61 = vpop.f32.mrf.mxu1 }
0x11da   : > { %v17455_v2 = vadd.f32 %v17454_v61, %v17414_v50  ;;  %v17655_v61 = vld [vmem:[#allocation6] sm:$0x1] }
0x11db   : > { %v17456_v5 = vpop.f32.mrf.mxu1 }
0x11dc   : > { %v17584_v26 = vadd.f32 %v17455_v2, %v30786_v14  ;;  %v17457_v46 = vadd.f32 %v17456_v5, %v17416_v40 }
0x11dd   : > { %v17458_v35 = vpop.f32.mrf.mxu1 }
0x11de   : > { %v17609_v16 = vadd.f32 %v17592_v60, %v17584_v26  ;;  %v17585_v29 = vadd.f32 %v17457_v46, %v30789_v32 }
0x11df   : > { %v17459_v15 = vpop.f32.mrf.mxu1 }
0x11e0   : > { %vm17613_vm0 = vcmp.gt.f32.partialorder %v17609_v16, 0.0  ;;  %v17617_v51 = vmul.f32 0.1, %v17609_v16  ;;  %v17610_v31 = vadd.f32 %v17596_v59, %v17585_v29 }
0x11e2   : > { %vm17614_vm7 = vcmp.gt.f32.partialorder %v17610_v31, 0.0  ;;  %v17618_v47 = vmul.f32 0.1, %v17610_v31  ;;  %v17621_v24 = vsel %vm17613_vm0, %v17609_v16, %v17617_v51 }
0x11e3   : > { %v17633_v14 = vmul.f32 %v17625_v38, %v17621_v24 }
0x11e4   : > { %v17622_v23 = vsel %vm17614_vm7, %v17610_v31, %v17618_v47 }
0x11e5   : > { %v17634_v21 = vmul.f32 %v17629_v56, %v17622_v23  ;;  %v17638_v6 = vsel %vm17637_vm15, %v17633_v14, 0.0 }
0x11e7   : > { %v17639_v32 = vsel %vm17637_vm15, %v17634_v21, 0.0 }
0x11e8   : > { %v17640_v1 = vadd.f32 %v17639_v32, %v17638_v6 }
0x11f2   : > { %v17495_v7 = vpop.f32.mrf.mxu0 }
0x11f4   : > { %v17497_v4 = vpop.f32.mrf.mxu0 }
0x11f6   : > { %v17499_v17 = vpop.f32.mrf.mxu0 }
0x11f8   : > { %v17500_v52 = vpop.f32.mrf.mxu0 }
0x1212   : > { %v17577_v37 = vpop.f32.mrf.mxu0 }
0x1214   : > { %v17579_v34 = vpop.f32.mrf.mxu0 }
0x1216   : > { %v17581_v43 = vpop.f32.mrf.mxu0 }
0x1218   : > { %v17582_v27 = vpop.f32.mrf.mxu0 }
0x1219   : > { %v17536_v42 = vpop.f32.mrf.mxu1 }
0x121a   : > { %v17537_v45 = vadd.f32 %v17536_v42, %v17495_v7 }
0x121b   : > { %v17538_v39 = vpop.f32.mrf.mxu1 }
0x121c   : > { %v17578_v3 = vadd.f32 %v17577_v37, %v17537_v45  ;;  %v17539_v44 = vadd.f32 %v17538_v39, %v17497_v4 }
0x121d   : > { %v17540_v19 = vpop.f32.mrf.mxu1 }
0x121e   : > { %v17586_v63 = vadd.f32 %v17578_v3, %v30799_v28  ;;  %v17580_v13 = vadd.f32 %v17579_v34, %v17539_v44 }
0x121f   : > { %v17541_v18 = vpop.f32.mrf.mxu1 }
0x1220   : > { %v17611_v9 = vadd.f32 %v17600_v30, %v17586_v63  ;;  %v17587_v62 = vadd.f32 %v17580_v13, %v30806_v49 }
0x1222   : > { %v17612_v41 = vadd.f32 %v17604_v8, %v17587_v62  ;;  %vm17615_vm6 = vcmp.gt.f32.partialorder %v17611_v9, 0.0  ;;  %v17619_v55 = vmul.f32 0.1, %v17611_v9 }
0x1224   : > { %vm17616_vm3 = vcmp.gt.f32.partialorder %v17612_v41, 0.0  ;;  %v17620_v53 = vmul.f32 0.1, %v17612_v41  ;;  %v17623_v54 = vsel %vm17615_vm6, %v17611_v9, %v17619_v55 }
0x1225   : > { %v17635_v36 = vmul.f32 %v17626_v33, %v17623_v54 }
0x1226   : > { %v17624_v28 = vsel %vm17616_vm3, %v17612_v41, %v17620_v53 }
0x1227   : > { %v17636_v48 = vmul.f32 %v17630_v20, %v17624_v28  ;;  %v17641_v12 = vsel %vm17637_vm15, %v17635_v36, 0.0 }
0x1228   : > { %v17642_v0 = vadd.f32 %v17641_v12, %v17640_v1 }
0x1229   : > { %v17643_v49 = vsel %vm17637_vm15, %v17636_v48, 0.0 }
0x122a   : > { %v17644_v57 = vadd.f32 %v17643_v49, %v17642_v0 }
0x122c   : > { %17645 = vadd.xlane.f32.xlu0 %v17644_v57 }
0x12b5   : > { %v17646_v22 = vpop.xlane.xlu0 %17645 }
0x12b6   : > { %v17647_v50 = vrot.slane %v17646_v22, 4 }
0x12b8   : > { %v17648_v11 = vadd.f32 %v17647_v50, %v17646_v22 }
0x12ba   : > { %v17649_v40 = vrot.slane %v17648_v11, 2 }
0x12bc   : > { %v17650_v25 = vadd.f32 %v17649_v40, %v17648_v11 }
0x12be   : > { %v17651_v58 = vrot.slane %v17650_v25, 1 }
0x12c0   : > { %v17652_v10 = vadd.f32 %v17651_v58, %v17650_v25 }
0x12c2   : > { %21384 = vpush %v17652_v10 }
0x12f3   : > { %s21385_s14 = spop %21384 }
0x12f4   : > { %v17654_v2 = vstv %s21385_s14 }
0x12f5   : > { %v17656_v60 = vadd.f32 %v17655_v61, %v17654_v2 }
0x12f7   : > { %17658 = vst.msk [vmem:[%s303_s17] sm:$0x1] %vm17657_vm8, %v17656_v60 }
0x12f8 PF: > { %s20_s29 = sadd.s32 1, %s24200_s29  }
0x12f9   : > { %p17_p4 = scmp.ge.s32.totalorder %s20_s29, 4  }
0x12fb   :  { %19 = sbr.rel (!%p17_p4) target bundleno = 3 (0x3), region = 97 }

</bundles_post_ra>
